<compile_context>
chip_gen: v7x
topology: tpu7x:2x2x1
jax: 0.10.0
libtpu: 0.0.40
codegen_flags: <defaults>
</compile_context>

<pallas_src>
import functools

import jax
import jax.numpy as jnp
from jax import lax
from jax.experimental import pallas as pl
from jax.experimental.pallas import tpu as pltpu


def _expand_matrix(n_rows, n_cols, group):
    # M[r, c] = 1.0 iff r // group == c   (built without vector integer division)
    r = lax.broadcasted_iota(jnp.int32, (n_rows, n_cols), 0)
    c = lax.broadcasted_iota(jnp.int32, (n_rows, n_cols), 1)
    lo = c * group
    return jnp.logical_and(r >= lo, r < lo + group).astype(jnp.float32)


def _spread_matrix(n_rows, n_cols, group):
    # M[r, c] = 1.0 iff c // group == r
    r = lax.broadcasted_iota(jnp.int32, (n_rows, n_cols), 0)
    c = lax.broadcasted_iota(jnp.int32, (n_rows, n_cols), 1)
    lo = r * group
    return jnp.logical_and(c >= lo, c < lo + group).astype(jnp.float32)


def _routing_kernel(u_ref, v_ref, *, n_iterations, oc, od):
    bb, ic, f = u_ref.shape          # (block_batch, input_caps, oc*od)
    n = bb * ic

    # Upcast the block once to f32 and view it as a lane-dense 2-D slab.
    u2 = u_ref[...].astype(jnp.float32).reshape(n, f)          # (N, F)

    # Constant 0/1 contraction / expansion matrices (cheap; small shapes).
    seg_sum = _expand_matrix(f, oc, od)      # (F, OC):  x @ seg_sum   sums each OD-group
    seg_bcast = _spread_matrix(oc, f, od)    # (OC, F):  x @ seg_bcast broadcasts per-o -> F
    bat_bcast = _expand_matrix(n, bb, ic)    # (N, Bb):  bat_bcast @ y repeats rows IC times
    bat_sum = _spread_matrix(bb, n, ic)      # (Bb, N):  bat_sum @ x   sums over IC per batch
    ones_oc = jnp.ones((oc, 1), jnp.float32)

    dot = functools.partial(jnp.dot, preferred_element_type=jnp.float32,
                            precision=lax.Precision.HIGHEST)

    def recip(x):
        # EUP approximate reciprocal + one Newton step (~f32 accurate, off the VALU path).
        r = pl.reciprocal(x, approx=True)
        return r * (2.0 - x * r)

    def squash(s):
        # s: (Bb, F). Per-(batch, output_capsule) squash in the flattened layout.
        length2 = dot(s * s, seg_sum) + 1e-7                   # (Bb, OC)
        scale = jnp.sqrt(length2) * recip(length2 + 1.0)       # == l2/(l2+1)/sqrt(l2)
        return s * dot(scale, seg_bcast)                       # (Bb, F)

    # b = 0  =>  softmax over output_caps is uniform 1/OC.
    s = dot(bat_sum, u2) * (1.0 / oc)                          # (Bb, F)
    v = squash(s)

    b_logits = jnp.zeros((n, oc), jnp.float32)                 # per-(b, i, o) routing logits
    for _ in range(n_iterations):
        uv = u2 * dot(bat_bcast, v)                            # (N, F) lane-dense elementwise
        b_logits = b_logits + dot(uv, seg_sum)                 # agreement <u, v>  -> (N, OC)
        m = jnp.max(b_logits, axis=-1, keepdims=True)          # stable softmax over OC
        e = jnp.exp(b_logits - m)
        c = e * recip(dot(e, ones_oc))                         # coupling coeffs   -> (N, OC)
        cu = dot(c, seg_bcast) * u2                            # (N, F) lane-dense elementwise
        s = dot(bat_sum, cu)                                   # sum over input_caps -> (Bb, F)
        v = squash(s)

    v_ref[...] = v[:, None, :].astype(v_ref.dtype)             # (Bb, 1, F), full-lane store


def agreement_routing(u_predict, n_iterations=3, *, block_batch=None,
                      transfer_dtype=None):
    """Dynamic routing-by-agreement. u_predict: (B, IC, OC, OD) -> v: (B, OC, OD)."""
    batch, ic, oc, od = u_predict.shape
    f = oc * od

    # Lane-dense layout for the kernel: last dim is OC*OD.
    u_flat = u_predict.reshape(batch, ic, f)
    if transfer_dtype is not None and u_flat.dtype != jnp.dtype(transfer_dtype):
        u_flat = u_flat.astype(transfer_dtype)   # halves HBM read traffic; compute stays f32

    bb = block_batch if block_batch is not None else min(batch, 8)
    bb = max(1, min(bb, batch))
    while batch % bb:        # make the block size a divisor of the batch
        bb -= 1

    kernel = functools.partial(_routing_kernel, n_iterations=n_iterations, oc=oc, od=od)

    itemsize = jnp.dtype(u_flat.dtype).itemsize
    cost = pl.CostEstimate(
        flops=int((10 * n_iterations + 4) * batch * ic * f),
        transcendentals=int(n_iterations * batch * ic * oc),
        bytes_accessed=int(batch * ic * f * itemsize + batch * f * 4),
    )

    out = pl.pallas_call(
        kernel,
        out_shape=jax.ShapeDtypeStruct((batch, 1, f), jnp.float32),
        grid_spec=pltpu.PrefetchScalarGridSpec(
            num_scalar_prefetch=0,
            grid=(batch // bb,),
            # trailing block dims equal the full array dims -> (8,128) tiling rule satisfied
            in_specs=[pl.BlockSpec((bb, ic, f), lambda b: (b, 0, 0))],
            out_specs=pl.BlockSpec((bb, 1, f), lambda b: (b, 0, 0)),
        ),
        compiler_params=pltpu.CompilerParams(
            dimension_semantics=("parallel",),
            vmem_limit_bytes=64 * 1024 * 1024,
        ),
        cost_estimate=cost,
    )(u_flat)

    return out.reshape(batch, oc, od).astype(u_predict.dtype)


def _reference(u, n_iterations=3):
    # Exact pure-JAX port of the PyTorch forward (b_batch ACCUMULATES across iterations).
    batch, ic, oc, od = u.shape

    def squash(x):
        length2 = jnp.sum(x * x, axis=2) + 1e-7
        length = jnp.sqrt(length2)
        return x * (length2 / (length2 + 1.0) / length)[:, :, None]

    c = jnp.full((ic, oc), 1.0 / oc, dtype=u.dtype)            # softmax of zeros over OC
    s = jnp.sum(c[None, :, :, None] * u, axis=1)
    v = squash(s)
    b_batch = jnp.zeros((batch, ic, oc), dtype=u.dtype)
    for _ in range(n_iterations):
        b_batch = b_batch + jnp.sum(u * v[:, None, :, :], axis=-1)
        c_b = jax.nn.softmax(b_batch, axis=2)[..., None]
        s = jnp.sum(c_b * u, axis=1)
        v = squash(s)
    return v


if __name__ == "__main__":
    # (batch, input_caps, output_caps, output_dim); OC*OD = 128 lanes at these shapes.
    batch, input_caps, output_caps, output_dim = 4, 32, 8, 16
    key = jax.random.PRNGKey(0)
    u_predict = jax.random.normal(
        key, (batch, input_caps, output_caps, output_dim), dtype=jnp.float32)

    v = agreement_routing(u_predict, n_iterations=3, block_batch=2)
    v = jax.block_until_ready(v)

    v_ref = _reference(u_predict, n_iterations=3)

    assert v.shape == (batch, output_caps, output_dim)
    max_err = float(jnp.max(jnp.abs(v - v_ref)))
    assert jnp.allclose(v, v_ref, atol=2e-3, rtol=2e-3), f"mismatch vs reference: {max_err}"
    print("KERNEL_OK")
</pallas_src>

<mosaic_0001>
module attributes {stable_mosaic.version = 11 : i64} {
  func.func @_routing_kernel(%arg0: i32, %arg1: memref<2x32x128xf32, #tpu.memory_space<vmem>>, %arg2: memref<2x1x128xf32, #tpu.memory_space<vmem>>) attributes {dimension_semantics = [#tpu.dimension_semantics<parallel>], iteration_bounds = array<i64: 2>, scalar_prefetch = 0 : i64, scratch_operands = 0 : i64, tpu.core_type = #tpu.core_type<tc>, window_params = [{transform_indices = @transform_0, window_bounds = array<i64: 2, 32, 128>}, {transform_indices = @transform_1, window_bounds = array<i64: 2, 1, 128>}]} {
    %c0 = arith.constant 0 : index
    %c0_0 = arith.constant 0 : index
    %c0_1 = arith.constant 0 : index
    %0 = vector.load %arg1[%c0, %c0_0, %c0_1] : memref<2x32x128xf32, #tpu.memory_space<vmem>>, vector<2x32x128xf32>
    %1 = vector.shape_cast %0 : vector<2x32x128xf32> to vector<64x128xf32>
    %2 = tpu.iota {dimensions = array<i32: 0>} : vector<128x8xi32>
    %3 = tpu.iota {dimensions = array<i32: 1>} : vector<128x8xi32>
    %c16_i32 = arith.constant 16 : i32
    %4 = vector.broadcast %c16_i32 : i32 to vector<128x8xi32>
    %5 = arith.muli %3, %4 : vector<128x8xi32>
    %6 = arith.cmpi sge, %2, %5 : vector<128x8xi32>
    %c16_i32_2 = arith.constant 16 : i32
    %7 = vector.broadcast %c16_i32_2 : i32 to vector<128x8xi32>
    %8 = arith.addi %5, %7 : vector<128x8xi32>
    %9 = arith.cmpi slt, %2, %8 : vector<128x8xi32>
    %10 = arith.andi %6, %9 : vector<128x8xi1>
    %11 = arith.extui %10 : vector<128x8xi1> to vector<128x8xi32>
    %12 = arith.sitofp %11 : vector<128x8xi32> to vector<128x8xf32>
    %13 = tpu.iota {dimensions = array<i32: 0>} : vector<8x128xi32>
    %14 = tpu.iota {dimensions = array<i32: 1>} : vector<8x128xi32>
    %c16_i32_3 = arith.constant 16 : i32
    %15 = vector.broadcast %c16_i32_3 : i32 to vector<8x128xi32>
    %16 = arith.muli %13, %15 : vector<8x128xi32>
    %17 = arith.cmpi sge, %14, %16 : vector<8x128xi32>
    %c16_i32_4 = arith.constant 16 : i32
    %18 = vector.broadcast %c16_i32_4 : i32 to vector<8x128xi32>
    %19 = arith.addi %16, %18 : vector<8x128xi32>
    %20 = arith.cmpi slt, %14, %19 : vector<8x128xi32>
    %21 = arith.andi %17, %20 : vector<8x128xi1>
    %22 = arith.extui %21 : vector<8x128xi1> to vector<8x128xi32>
    %23 = arith.sitofp %22 : vector<8x128xi32> to vector<8x128xf32>
    %24 = tpu.iota {dimensions = array<i32: 0>} : vector<64x2xi32>
    %25 = tpu.iota {dimensions = array<i32: 1>} : vector<64x2xi32>
    %c32_i32 = arith.constant 32 : i32
    %26 = vector.broadcast %c32_i32 : i32 to vector<64x2xi32>
    %27 = arith.muli %25, %26 : vector<64x2xi32>
    %28 = arith.cmpi sge, %24, %27 : vector<64x2xi32>
    %c32_i32_5 = arith.constant 32 : i32
    %29 = vector.broadcast %c32_i32_5 : i32 to vector<64x2xi32>
    %30 = arith.addi %27, %29 : vector<64x2xi32>
    %31 = arith.cmpi slt, %24, %30 : vector<64x2xi32>
    %32 = arith.andi %28, %31 : vector<64x2xi1>
    %33 = arith.extui %32 : vector<64x2xi1> to vector<64x2xi32>
    %34 = arith.sitofp %33 : vector<64x2xi32> to vector<64x2xf32>
    %35 = tpu.iota {dimensions = array<i32: 0>} : vector<2x64xi32>
    %36 = tpu.iota {dimensions = array<i32: 1>} : vector<2x64xi32>
    %c32_i32_6 = arith.constant 32 : i32
    %37 = vector.broadcast %c32_i32_6 : i32 to vector<2x64xi32>
    %38 = arith.muli %35, %37 : vector<2x64xi32>
    %39 = arith.cmpi sge, %36, %38 : vector<2x64xi32>
    %c32_i32_7 = arith.constant 32 : i32
    %40 = vector.broadcast %c32_i32_7 : i32 to vector<2x64xi32>
    %41 = arith.addi %38, %40 : vector<2x64xi32>
    %42 = arith.cmpi slt, %36, %41 : vector<2x64xi32>
    %43 = arith.andi %39, %42 : vector<2x64xi1>
    %44 = arith.extui %43 : vector<2x64xi1> to vector<2x64xi32>
    %45 = arith.sitofp %44 : vector<2x64xi32> to vector<2x64xf32>
    %cst = arith.constant 1.000000e+00 : f32
    %46 = vector.broadcast %cst : f32 to vector<8x1xf32>
    %cst_8 = arith.constant dense<0.000000e+00> : vector<2x128xf32>
    %47 = tpu.matmul %45, %1, %cst_8 {dimension_numbers = #tpu.dot_dimension_numbers<[1], [0], [0], [1], [0, 0, 1, 1], [], []>, precision = #tpu.contract_precision<fp32>} : vector<2x64xf32>, vector<64x128xf32>, vector<2x128xf32> -> vector<2x128xf32>
    %cst_9 = arith.constant 1.250000e-01 : f32
    %48 = vector.broadcast %cst_9 : f32 to vector<2x128xf32>
    %49 = arith.mulf %47, %48 : vector<2x128xf32>
    %50 = arith.mulf %49, %49 : vector<2x128xf32>
    %cst_10 = arith.constant dense<0.000000e+00> : vector<2x8xf32>
    %51 = tpu.matmul %50, %12, %cst_10 {dimension_numbers = #tpu.dot_dimension_numbers<[1], [0], [0], [1], [0, 0, 1, 1], [], []>, precision = #tpu.contract_precision<fp32>} : vector<2x128xf32>, vector<128x8xf32>, vector<2x8xf32> -> vector<2x8xf32>
    %cst_11 = arith.constant 1.000000e-07 : f32
    %52 = vector.broadcast %cst_11 : f32 to vector<2x8xf32>
    %53 = arith.addf %51, %52 : vector<2x8xf32>
    %54 = math.sqrt %53 : vector<2x8xf32>
    %cst_12 = arith.constant 1.000000e+00 : f32
    %55 = vector.broadcast %cst_12 : f32 to vector<2x8xf32>
    %56 = arith.addf %53, %55 : vector<2x8xf32>
    %57 = tpu.reciprocal %56 {approx = true} : vector<2x8xf32> -> vector<2x8xf32>
    %58 = arith.mulf %56, %57 : vector<2x8xf32>
    %cst_13 = arith.constant 2.000000e+00 : f32
    %59 = vector.broadcast %cst_13 : f32 to vector<2x8xf32>
    %60 = arith.subf %59, %58 : vector<2x8xf32>
    %61 = arith.mulf %57, %60 : vector<2x8xf32>
    %62 = arith.mulf %54, %61 : vector<2x8xf32>
    %cst_14 = arith.constant dense<0.000000e+00> : vector<2x128xf32>
    %63 = tpu.matmul %62, %23, %cst_14 {dimension_numbers = #tpu.dot_dimension_numbers<[1], [0], [0], [1], [0, 0, 1, 1], [], []>, precision = #tpu.contract_precision<fp32>} : vector<2x8xf32>, vector<8x128xf32>, vector<2x128xf32> -> vector<2x128xf32>
    %64 = arith.mulf %49, %63 : vector<2x128xf32>
    %cst_15 = arith.constant 0.000000e+00 : f32
    %65 = vector.broadcast %cst_15 : f32 to vector<64x8xf32>
    %cst_16 = arith.constant dense<0.000000e+00> : vector<64x128xf32>
    %66 = tpu.matmul %34, %64, %cst_16 {dimension_numbers = #tpu.dot_dimension_numbers<[1], [0], [0], [1], [0, 0, 1, 1], [], []>, precision = #tpu.contract_precision<fp32>} : vector<64x2xf32>, vector<2x128xf32>, vector<64x128xf32> -> vector<64x128xf32>
    %67 = arith.mulf %1, %66 : vector<64x128xf32>
    %cst_17 = arith.constant dense<0.000000e+00> : vector<64x8xf32>
    %68 = tpu.matmul %67, %12, %cst_17 {dimension_numbers = #tpu.dot_dimension_numbers<[1], [0], [0], [1], [0, 0, 1, 1], [], []>, precision = #tpu.contract_precision<fp32>} : vector<64x128xf32>, vector<128x8xf32>, vector<64x8xf32> -> vector<64x8xf32>
    %69 = arith.addf %65, %68 : vector<64x8xf32>
    %cst_18 = arith.constant dense<0xFF800000> : vector<64xf32>
    %70 = vector.multi_reduction <maximumf>, %69, %cst_18 [1] : vector<64x8xf32> to vector<64xf32>
    %71 = vector.shape_cast %70 : vector<64xf32> to vector<64x1xf32>
    %72 = vector.broadcast %71 : vector<64x1xf32> to vector<64x8xf32>
    %73 = arith.subf %69, %72 : vector<64x8xf32>
    %74 = math.exp %73 : vector<64x8xf32>
    %cst_19 = arith.constant dense<0.000000e+00> : vector<64x1xf32>
    %75 = tpu.matmul %74, %46, %cst_19 {dimension_numbers = #tpu.dot_dimension_numbers<[1], [0], [0], [1], [0, 0, 1, 1], [], []>, precision = #tpu.contract_precision<fp32>} : vector<64x8xf32>, vector<8x1xf32>, vector<64x1xf32> -> vector<64x1xf32>
    %76 = tpu.reciprocal %75 {approx = true} : vector<64x1xf32> -> vector<64x1xf32>
    %77 = arith.mulf %75, %76 : vector<64x1xf32>
    %cst_20 = arith.constant 2.000000e+00 : f32
    %78 = vector.broadcast %cst_20 : f32 to vector<64x1xf32>
    %79 = arith.subf %78, %77 : vector<64x1xf32>
    %80 = arith.mulf %76, %79 : vector<64x1xf32>
    %81 = vector.broadcast %80 : vector<64x1xf32> to vector<64x8xf32>
    %82 = arith.mulf %74, %81 : vector<64x8xf32>
    %cst_21 = arith.constant dense<0.000000e+00> : vector<64x128xf32>
    %83 = tpu.matmul %82, %23, %cst_21 {dimension_numbers = #tpu.dot_dimension_numbers<[1], [0], [0], [1], [0, 0, 1, 1], [], []>, precision = #tpu.contract_precision<fp32>} : vector<64x8xf32>, vector<8x128xf32>, vector<64x128xf32> -> vector<64x128xf32>
    %84 = arith.mulf %83, %1 : vector<64x128xf32>
    %cst_22 = arith.constant dense<0.000000e+00> : vector<2x128xf32>
    %85 = tpu.matmul %45, %84, %cst_22 {dimension_numbers = #tpu.dot_dimension_numbers<[1], [0], [0], [1], [0, 0, 1, 1], [], []>, precision = #tpu.contract_precision<fp32>} : vector<2x64xf32>, vector<64x128xf32>, vector<2x128xf32> -> vector<2x128xf32>
    %86 = arith.mulf %85, %85 : vector<2x128xf32>
    %cst_23 = arith.constant dense<0.000000e+00> : vector<2x8xf32>
    %87 = tpu.matmul %86, %12, %cst_23 {dimension_numbers = #tpu.dot_dimension_numbers<[1], [0], [0], [1], [0, 0, 1, 1], [], []>, precision = #tpu.contract_precision<fp32>} : vector<2x128xf32>, vector<128x8xf32>, vector<2x8xf32> -> vector<2x8xf32>
    %cst_24 = arith.constant 1.000000e-07 : f32
    %88 = vector.broadcast %cst_24 : f32 to vector<2x8xf32>
    %89 = arith.addf %87, %88 : vector<2x8xf32>
    %90 = math.sqrt %89 : vector<2x8xf32>
    %cst_25 = arith.constant 1.000000e+00 : f32
    %91 = vector.broadcast %cst_25 : f32 to vector<2x8xf32>
    %92 = arith.addf %89, %91 : vector<2x8xf32>
    %93 = tpu.reciprocal %92 {approx = true} : vector<2x8xf32> -> vector<2x8xf32>
    %94 = arith.mulf %92, %93 : vector<2x8xf32>
    %cst_26 = arith.constant 2.000000e+00 : f32
    %95 = vector.broadcast %cst_26 : f32 to vector<2x8xf32>
    %96 = arith.subf %95, %94 : vector<2x8xf32>
    %97 = arith.mulf %93, %96 : vector<2x8xf32>
    %98 = arith.mulf %90, %97 : vector<2x8xf32>
    %cst_27 = arith.constant dense<0.000000e+00> : vector<2x128xf32>
    %99 = tpu.matmul %98, %23, %cst_27 {dimension_numbers = #tpu.dot_dimension_numbers<[1], [0], [0], [1], [0, 0, 1, 1], [], []>, precision = #tpu.contract_precision<fp32>} : vector<2x8xf32>, vector<8x128xf32>, vector<2x128xf32> -> vector<2x128xf32>
    %100 = arith.mulf %85, %99 : vector<2x128xf32>
    %cst_28 = arith.constant dense<0.000000e+00> : vector<64x128xf32>
    %101 = tpu.matmul %34, %100, %cst_28 {dimension_numbers = #tpu.dot_dimension_numbers<[1], [0], [0], [1], [0, 0, 1, 1], [], []>, precision = #tpu.contract_precision<fp32>} : vector<64x2xf32>, vector<2x128xf32>, vector<64x128xf32> -> vector<64x128xf32>
    %102 = arith.mulf %1, %101 : vector<64x128xf32>
    %cst_29 = arith.constant dense<0.000000e+00> : vector<64x8xf32>
    %103 = tpu.matmul %102, %12, %cst_29 {dimension_numbers = #tpu.dot_dimension_numbers<[1], [0], [0], [1], [0, 0, 1, 1], [], []>, precision = #tpu.contract_precision<fp32>} : vector<64x128xf32>, vector<128x8xf32>, vector<64x8xf32> -> vector<64x8xf32>
    %104 = arith.addf %69, %103 : vector<64x8xf32>
    %cst_30 = arith.constant dense<0xFF800000> : vector<64xf32>
    %105 = vector.multi_reduction <maximumf>, %104, %cst_30 [1] : vector<64x8xf32> to vector<64xf32>
    %106 = vector.shape_cast %105 : vector<64xf32> to vector<64x1xf32>
    %107 = vector.broadcast %106 : vector<64x1xf32> to vector<64x8xf32>
    %108 = arith.subf %104, %107 : vector<64x8xf32>
    %109 = math.exp %108 : vector<64x8xf32>
    %cst_31 = arith.constant dense<0.000000e+00> : vector<64x1xf32>
    %110 = tpu.matmul %109, %46, %cst_31 {dimension_numbers = #tpu.dot_dimension_numbers<[1], [0], [0], [1], [0, 0, 1, 1], [], []>, precision = #tpu.contract_precision<fp32>} : vector<64x8xf32>, vector<8x1xf32>, vector<64x1xf32> -> vector<64x1xf32>
    %111 = tpu.reciprocal %110 {approx = true} : vector<64x1xf32> -> vector<64x1xf32>
    %112 = arith.mulf %110, %111 : vector<64x1xf32>
    %cst_32 = arith.constant 2.000000e+00 : f32
    %113 = vector.broadcast %cst_32 : f32 to vector<64x1xf32>
    %114 = arith.subf %113, %112 : vector<64x1xf32>
    %115 = arith.mulf %111, %114 : vector<64x1xf32>
    %116 = vector.broadcast %115 : vector<64x1xf32> to vector<64x8xf32>
    %117 = arith.mulf %109, %116 : vector<64x8xf32>
    %cst_33 = arith.constant dense<0.000000e+00> : vector<64x128xf32>
    %118 = tpu.matmul %117, %23, %cst_33 {dimension_numbers = #tpu.dot_dimension_numbers<[1], [0], [0], [1], [0, 0, 1, 1], [], []>, precision = #tpu.contract_precision<fp32>} : vector<64x8xf32>, vector<8x128xf32>, vector<64x128xf32> -> vector<64x128xf32>
    %119 = arith.mulf %118, %1 : vector<64x128xf32>
    %cst_34 = arith.constant dense<0.000000e+00> : vector<2x128xf32>
    %120 = tpu.matmul %45, %119, %cst_34 {dimension_numbers = #tpu.dot_dimension_numbers<[1], [0], [0], [1], [0, 0, 1, 1], [], []>, precision = #tpu.contract_precision<fp32>} : vector<2x64xf32>, vector<64x128xf32>, vector<2x128xf32> -> vector<2x128xf32>
    %121 = arith.mulf %120, %120 : vector<2x128xf32>
    %cst_35 = arith.constant dense<0.000000e+00> : vector<2x8xf32>
    %122 = tpu.matmul %121, %12, %cst_35 {dimension_numbers = #tpu.dot_dimension_numbers<[1], [0], [0], [1], [0, 0, 1, 1], [], []>, precision = #tpu.contract_precision<fp32>} : vector<2x128xf32>, vector<128x8xf32>, vector<2x8xf32> -> vector<2x8xf32>
    %cst_36 = arith.constant 1.000000e-07 : f32
    %123 = vector.broadcast %cst_36 : f32 to vector<2x8xf32>
    %124 = arith.addf %122, %123 : vector<2x8xf32>
    %125 = math.sqrt %124 : vector<2x8xf32>
    %cst_37 = arith.constant 1.000000e+00 : f32
    %126 = vector.broadcast %cst_37 : f32 to vector<2x8xf32>
    %127 = arith.addf %124, %126 : vector<2x8xf32>
    %128 = tpu.reciprocal %127 {approx = true} : vector<2x8xf32> -> vector<2x8xf32>
    %129 = arith.mulf %127, %128 : vector<2x8xf32>
    %cst_38 = arith.constant 2.000000e+00 : f32
    %130 = vector.broadcast %cst_38 : f32 to vector<2x8xf32>
    %131 = arith.subf %130, %129 : vector<2x8xf32>
    %132 = arith.mulf %128, %131 : vector<2x8xf32>
    %133 = arith.mulf %125, %132 : vector<2x8xf32>
    %cst_39 = arith.constant dense<0.000000e+00> : vector<2x128xf32>
    %134 = tpu.matmul %133, %23, %cst_39 {dimension_numbers = #tpu.dot_dimension_numbers<[1], [0], [0], [1], [0, 0, 1, 1], [], []>, precision = #tpu.contract_precision<fp32>} : vector<2x8xf32>, vector<8x128xf32>, vector<2x128xf32> -> vector<2x128xf32>
    %135 = arith.mulf %120, %134 : vector<2x128xf32>
    %cst_40 = arith.constant dense<0.000000e+00> : vector<64x128xf32>
    %136 = tpu.matmul %34, %135, %cst_40 {dimension_numbers = #tpu.dot_dimension_numbers<[1], [0], [0], [1], [0, 0, 1, 1], [], []>, precision = #tpu.contract_precision<fp32>} : vector<64x2xf32>, vector<2x128xf32>, vector<64x128xf32> -> vector<64x128xf32>
    %137 = arith.mulf %1, %136 : vector<64x128xf32>
    %cst_41 = arith.constant dense<0.000000e+00> : vector<64x8xf32>
    %138 = tpu.matmul %137, %12, %cst_41 {dimension_numbers = #tpu.dot_dimension_numbers<[1], [0], [0], [1], [0, 0, 1, 1], [], []>, precision = #tpu.contract_precision<fp32>} : vector<64x128xf32>, vector<128x8xf32>, vector<64x8xf32> -> vector<64x8xf32>
    %139 = arith.addf %104, %138 : vector<64x8xf32>
    %cst_42 = arith.constant dense<0xFF800000> : vector<64xf32>
    %140 = vector.multi_reduction <maximumf>, %139, %cst_42 [1] : vector<64x8xf32> to vector<64xf32>
    %141 = vector.shape_cast %140 : vector<64xf32> to vector<64x1xf32>
    %142 = vector.broadcast %141 : vector<64x1xf32> to vector<64x8xf32>
    %143 = arith.subf %139, %142 : vector<64x8xf32>
    %144 = math.exp %143 : vector<64x8xf32>
    %cst_43 = arith.constant dense<0.000000e+00> : vector<64x1xf32>
    %145 = tpu.matmul %144, %46, %cst_43 {dimension_numbers = #tpu.dot_dimension_numbers<[1], [0], [0], [1], [0, 0, 1, 1], [], []>, precision = #tpu.contract_precision<fp32>} : vector<64x8xf32>, vector<8x1xf32>, vector<64x1xf32> -> vector<64x1xf32>
    %146 = tpu.reciprocal %145 {approx = true} : vector<64x1xf32> -> vector<64x1xf32>
    %147 = arith.mulf %145, %146 : vector<64x1xf32>
    %cst_44 = arith.constant 2.000000e+00 : f32
    %148 = vector.broadcast %cst_44 : f32 to vector<64x1xf32>
    %149 = arith.subf %148, %147 : vector<64x1xf32>
    %150 = arith.mulf %146, %149 : vector<64x1xf32>
    %151 = vector.broadcast %150 : vector<64x1xf32> to vector<64x8xf32>
    %152 = arith.mulf %144, %151 : vector<64x8xf32>
    %cst_45 = arith.constant dense<0.000000e+00> : vector<64x128xf32>
    %153 = tpu.matmul %152, %23, %cst_45 {dimension_numbers = #tpu.dot_dimension_numbers<[1], [0], [0], [1], [0, 0, 1, 1], [], []>, precision = #tpu.contract_precision<fp32>} : vector<64x8xf32>, vector<8x128xf32>, vector<64x128xf32> -> vector<64x128xf32>
    %154 = arith.mulf %153, %1 : vector<64x128xf32>
    %cst_46 = arith.constant dense<0.000000e+00> : vector<2x128xf32>
    %155 = tpu.matmul %45, %154, %cst_46 {dimension_numbers = #tpu.dot_dimension_numbers<[1], [0], [0], [1], [0, 0, 1, 1], [], []>, precision = #tpu.contract_precision<fp32>} : vector<2x64xf32>, vector<64x128xf32>, vector<2x128xf32> -> vector<2x128xf32>
    %156 = arith.mulf %155, %155 : vector<2x128xf32>
    %cst_47 = arith.constant dense<0.000000e+00> : vector<2x8xf32>
    %157 = tpu.matmul %156, %12, %cst_47 {dimension_numbers = #tpu.dot_dimension_numbers<[1], [0], [0], [1], [0, 0, 1, 1], [], []>, precision = #tpu.contract_precision<fp32>} : vector<2x128xf32>, vector<128x8xf32>, vector<2x8xf32> -> vector<2x8xf32>
    %cst_48 = arith.constant 1.000000e-07 : f32
    %158 = vector.broadcast %cst_48 : f32 to vector<2x8xf32>
    %159 = arith.addf %157, %158 : vector<2x8xf32>
    %160 = math.sqrt %159 : vector<2x8xf32>
    %cst_49 = arith.constant 1.000000e+00 : f32
    %161 = vector.broadcast %cst_49 : f32 to vector<2x8xf32>
    %162 = arith.addf %159, %161 : vector<2x8xf32>
    %163 = tpu.reciprocal %162 {approx = true} : vector<2x8xf32> -> vector<2x8xf32>
    %164 = arith.mulf %162, %163 : vector<2x8xf32>
    %cst_50 = arith.constant 2.000000e+00 : f32
    %165 = vector.broadcast %cst_50 : f32 to vector<2x8xf32>
    %166 = arith.subf %165, %164 : vector<2x8xf32>
    %167 = arith.mulf %163, %166 : vector<2x8xf32>
    %168 = arith.mulf %160, %167 : vector<2x8xf32>
    %cst_51 = arith.constant dense<0.000000e+00> : vector<2x128xf32>
    %169 = tpu.matmul %168, %23, %cst_51 {dimension_numbers = #tpu.dot_dimension_numbers<[1], [0], [0], [1], [0, 0, 1, 1], [], []>, precision = #tpu.contract_precision<fp32>} : vector<2x8xf32>, vector<8x128xf32>, vector<2x128xf32> -> vector<2x128xf32>
    %170 = arith.mulf %155, %169 : vector<2x128xf32>
    %171 = vector.shape_cast %170 : vector<2x128xf32> to vector<2x1x128xf32>
    %c0_52 = arith.constant 0 : index
    %c0_53 = arith.constant 0 : index
    %c0_54 = arith.constant 0 : index
    %172 = vector.load %arg2[%c0_52, %c0_53, %c0_54] : memref<2x1x128xf32, #tpu.memory_space<vmem>>, vector<2x1x128xf32>
    tpu.vector_store %arg2[%c0_52, %c0_53, %c0_54], %171 {strides = array<i32>} : memref<2x1x128xf32, #tpu.memory_space<vmem>>, vector<2x1x128xf32>,
    return
  }
  func.func @transform_0(%arg0: i32) -> (i32, i32, i32) {
    %c0_i32 = arith.constant 0 : i32
    %c0_i32_0 = arith.constant 0 : i32
    %c0_i32_1 = arith.constant 0 : i32
    return %arg0, %c0_i32, %c0_i32_0 : i32, i32, i32
  }
  func.func @transform_1(%arg0: i32) -> (i32, i32, i32) {
    %c0_i32 = arith.constant 0 : i32
    %c0_i32_0 = arith.constant 0 : i32
    %c0_i32_1 = arith.constant 0 : i32
    return %arg0, %c0_i32, %c0_i32_0 : i32, i32, i32
  }
}

</mosaic_0001>

<bundles_post_ra>
// kernel: tpu_custom_call.1
= control target key start
LH: loop header
LB: loop body
LE: loop exit
PB: predicated region body
PF: predicated region fallthrough
CT: control target
= control target key end

     0   :  { %6 = vsyncpa [#allocation3], 0  ;;  %s28702_s0 = inlined_call_operand.hbm [shape: f32[4,32,128], index: 0, kind: input, shape index: {}]   ;;  %s28703_s1 = inlined_call_operand.hbm [shape: f32[4,1,128], index: 1, kind: output, shape index: {}]  }
   0x1   :  { %8 = vsyncpa [#allocation3 + $0x1], 0 }
   0x2   :  { %9 = vsyncpa [#allocation4], 0 }
   0x3   :  { %11 = vsyncpa [#allocation4 + $0x1], 0  ;;  %s24536_s6 = smov 0   ;;  %s24538_s7 = smov 0  }
   0x4   :  { %s24540_s8 = smov 0   ;;  %s24542_s9 = smov 0  }
   0x5 LB: > { %s24557_s10 = sadd.s32 4294967295, %s24511_s9   ;;  %s17128_s11 = sadd.s32 4294967294, %s24511_s9   ;;  %s24511_s9 = sphi %s24542_s9, %s29525_s9   ;;  %s24507_s8 = sphi %s24540_s8, %s29524_s8   ;;  %s24503_s7 = sphi %s24538_s7, %s29523_s7   ;;  %s24499_s6 = sphi %s24536_s6, %s29522_s6  }
   0x6   : > { %s24561_s12 = sadd.s32 1, %s24511_s9   ;;  %s24_s13 = sadd.s32 1, %s24507_s8 }
   0x7   : > { %s21_s14 = ssub.s32 %s24511_s9, %s24561_s12  ;;  %p31_p0 = scmp.ne.s32.totalorder %s24507_s8, %s24503_s7 }
   0x8   : > { %p22_p1 = scmp.eq.s32.totalorder %s21_s14, 0  ;;  %p32_p2 = scmp.eq.s32.totalorder %s24511_s9, 0 }
   0x9   : > { %p37_p3 = scmp.ne.s32.totalorder %s24503_s7, %s24499_s6  ;;  %p38_p4 = scmp.eq.s32.totalorder %s24557_s10, 0 }
   0xa   : > { %s24573_s15 = scalar_select %p22_p1, %s24507_s8, %s24_s13  }
   0xb   : > { %p24575_p5 = por %p32_p2, %p31_p0  ;;  %p24579_p6 = por %p38_p4, %p37_p3 }
   0xc   : > { %p61_p7 = scmp.eq.s32.totalorder %s24557_s10, 1  ;;  %p67_p8 = scmp.eq.s32.totalorder %s17128_s11, 1 }
   0xd   : > { %p24224_p10 = scmp.lt.s32.totalorder %s24511_s9, 2  ;;  %s87_s20 = sand.u32 1, %s24507_s8  }
   0xe   : > { %p24586_p11 = por %p61_p7, %p31_p0  ;;  %p24590_p12 = por %p67_p8, %p37_p3 }
   0xf   : > { %s17613_s21 = sshll.u32 %s24511_s9, 10  ;;  %s17131_s22 = sshll.u32 %s87_s20, 6 }
  0x10   : > { %s28987_s18 = scalar_select %p24586_p11, 1, 0 }
  0x11   : > { %s28988_s19 = scalar_select %p24590_p12, 1, 0 }
  0x12   : > { %s24599_s25 = scalar_lea.hbm %s28702_s0, %s17613_s21  ;;  %s91_s26 = scalar_lea.vmem [#allocation2], %s17131_s22 }
  0x13   : > { %s99_s27 = sshll.u32 %s91_s26, 4  ;;  %p24603_p13 = pnand %p24224_p10, %p24575_p5  ;;  %s24607_s27 = int_to_ptr.vmem [resolvable:$true] %s99_s27 }
  0x14   : > { %s24609_s29 = scalar_lea.sflag [#allocation3], %s87_s20  ;;  %s24415_s30 = scalar_lea.hbm %s24599_s25, 1024 }
  0x15   : > { %p24416_p0 = scmp.ne.s32.totalorder %s24599_s25, %s24415_s30  ;;  %p24417_p1 = pneg %p24603_p13 }
  0x16   : > { %s24420_s4 = scalar_lea.hbm %s28702_s0, 2048  ;;  %p24421_p4 = scmp.lt.u32.totalorder %s24599_s25, %s28702_s0 }
  0x17   : > { %p24418_p2 = pnand %p24417_p1, %p24416_p0  ;;  %p24422_p5 = scmp.lt.u32.totalorder %s24420_s4, %s24415_s30 }
  0x18   : > { %p24424_p8 = scmp.lt.u32.totalorder %s24415_s30, %s24599_s25 }
  0x19   : > { %p24419_p3 = pneg %p24418_p2  ;;  %p24423_p7 = por %p24422_p5, %p24421_p4 }
  0x1b   : > { %p24425_p10 = por %p24424_p8, %p24423_p7 }
  0x1d   : > { %p24426_p9 = pnand %p24425_p10, %p24419_p3 }
  0x1f   : > { %24429 = shalt.err (!%p24426_p9)
}
  0x20   : > { %s24430_s13 = scalar_lea.vmem %s24607_s27, 1024  ;;  %s24513_s14 = smov [#allocation2]  }
  0x21   : > { %p24431_p0 = scmp.ne.s32.totalorder %s24607_s27, %s24430_s13  ;;  %s24435_s16 = sshll.u32 %s24513_s14, 4  ;;  %s24436_s16 = int_to_ptr.vmem [resolvable:$false] %s24435_s16 }
  0x22   : > { %s24437_s20 = scalar_lea.vmem %s24436_s16, 2048  ;;  %p24438_p11 = scmp.lt.s32.totalorder %s24607_s27, %s24436_s16 }
  0x23   : > { %p24433_p2 = pnand %p24431_p0, %p24417_p1  ;;  %p24439_p4 = scmp.lt.s32.totalorder %s24437_s20, %s24430_s13 }
  0x25   : > { %p24434_p12 = pneg %p24433_p2  ;;  %p24440_p5 = por %p24439_p4, %p24438_p11 }
  0x27   : > { %p24441_p7 = pnand %p24440_p5, %p24434_p12 }
  0x29   : > { %24444 = shalt.err (!%p24441_p7)
}
  0x2a   : > { %s24514_s21 = smov 128   ;;  %s24515_s22 = smov 8  }
  0x2b   : > { %24219 = dma.hbm_to_vmem [thread:$0]  (!%p24603_p13), %s24599_s25, 1024, %s24607_s27, %s24609_s29, %s24514_s21, %s24514_s21, %s24515_s22  }
  0x2c   : > { %p17135_p9 = scmp.ge.s32.totalorder %s24511_s9, 1  ;;  %p107_p1 = scmp.lt.s32.totalorder %s24511_s9, 3 }
  0x2e   : > { %p108_p3 = pnand %p17135_p9, %p107_p1 }
  0x30   : > { %111 = sbr.rel (%p108_p3) target bundleno = 8789 (0x2255), region = 24 }
  0x37   : > { %s24640_s23 = sand.u32 1, %s24503_s7  }
  0x38   : > { %s17136_s24 = sshll.u32 %s24640_s23, 6  ;;  %s114_s26 = scalar_lea.sflag [#allocation3], %s24640_s23 }
  0x39   : > { %s24644_s30 = scalar_lea.vmem [#allocation2], %s17136_s24 }
  0x3a   : > { %24490 = dma.done.wait (%p24579_p6), %s114_s26, 1024  }
  0x3b   : > { %24492 = vsyncadd (%p24579_p6), %s114_s26, 4294966272  ;;  %v146_v0 = vlaneseq  ;;  %v28753_v1 = vmov 0.0|0.0   ;;  %vm28705_vm0 = vmmov 0   ;;  %v28747_v2 = vmov 0.0   ;;  %v138_v6 = vld [vmem:[%s24644_s30] sm:$0xff]  ;;  %v139_v7 = vld [vmem:[%s24644_s30 + $0x8] sm:$0xff] }
  0x3c   : > { %22169 = vmatprep.subr.bf16.mxu0 %v28753_v1  ;;  %19221 = vmatprep.mubr.msk.f32.mxu0 %vm28705_vm0, %v28747_v2  ;;  %v140_v8 = vld [vmem:[%s24644_s30 + $0x10] sm:$0xff]  ;;  %v308_v11 = vand.u32 4294901760, %v138_v6  ;;  %v311_v12 = vand.u32 4294901760, %v139_v7  ;;  %v141_v13 = vld [vmem:[%s24644_s30 + $0x18] sm:$0xff]  ;;  %v142_v15 = vld [vmem:[%s24644_s30 + $0x20] sm:$0xff]  ;;  %vm28707_vm3 = vcmask 523264  }
  0x3d   : > { %v24653_v3 = vshrl.u32 %v146_v0, 7  ;;  %22241 = vmatprep.subr.bf16.mxu1 %v28753_v1  ;;  %19351 = vmatprep.mubr.msk.f32.mxu1 %vm28705_vm0, %v28747_v2  ;;  %v24658_v4 = vand.u32 127, %v146_v0  ;;  %v314_v14 = vand.u32 4294901760, %v140_v8  ;;  %v143_v16 = vld [vmem:[%s24644_s30 + $0x28] sm:$0xff]  ;;  %v317_v17 = vand.u32 4294901760, %v141_v13  ;;  %v144_v26 = vld [vmem:[%s24644_s30 + $0x30] sm:$0xff] }
  0x3e   : > { %v24673_v18 = vpack.c.bf16 %v311_v12, %v308_v11  ;;  %v24675_v19 = vsub.f32 %v138_v6, %v308_v11  ;;  %v24677_v20 = vsub.f32 %v139_v7, %v311_v12  ;;  %v320_v23 = vand.u32 4294901760, %v142_v15  ;;  %v145_v28 = vld [vmem:[%s24644_s30 + $0x38] sm:$0xff]  ;;  %s17137_s17 = sshll.u32 %s24640_s23, 1  ;;  %s17614_s28 = sshll.u32 %s24557_s10, 5 }
  0x3f   : > { %28990 = vst [vmem:[#allocation8_spill] sm:$0xff] %v24653_v3  ;;  %v296_v5 = vmul.u32 32, %v24653_v3  ;;  %v24679_v21 = vsub.f32 %v140_v8, %v314_v14  ;;  %v24683_v22 = vsub.f32 %v141_v13, %v317_v17  ;;  %v323_v24 = vand.u32 4294901760, %v143_v16  ;;  %s135_s25 = scalar_lea.vmem [#allocation5], %s17137_s17  ;;  %s28658_s3 = scalar_lea.hbm %s28703_s1, %s17614_s28 }
  0x40   : > { %22171 = vmatpush3.bf16.msra.mxu0 %v24673_v18  ;;  %v24686_v25 = vpack.c.bf16 %v317_v17, %v314_v14  ;;  %v393_v30 = vand.u32 4294901760, %v24675_v19  ;;  %v400_v31 = vand.u32 4294901760, %v24677_v20  ;;  %v24698_v32 = vsub.f32 %v142_v15, %v320_v23  ;;  %s17055_s27 = sshll.u32 %s135_s25, 4  ;;  %s17042_s4 = scalar_lea.sflag [#allocation4], %s24640_s23  ;;  %s28653_s27 = int_to_ptr.vmem [resolvable:$true] %s17055_s27 }
  0x41   : > { %vm24665_vm1 = vcmp.ge.s32.totalorder %v24658_v4, %v296_v5  ;;  %v298_v10 = vadd.s32 32, %v296_v5  ;;  %22172 = vmatprep.subr.bf16.mxu0 %v28753_v1  ;;  %v24701_v33 = vmul.u32 16, %v24658_v4  ;;  %v407_v35 = vand.u32 4294901760, %v24679_v21  ;;  %s24445_s5 = scalar_lea.vmem %s28653_s27, 32  ;;  %p29519_p11 = scmp.ne.s32.totalorder %s28987_s18, 0 }
  0x42   : > { %v24706_v36 = vpack.c.bf16 %v323_v24, %v320_v23  ;;  %v24708_v37 = vsub.f32 %v143_v16, %v323_v24  ;;  %v326_v38 = vand.u32 4294901760, %v144_v26  ;;  %v414_v39 = vand.u32 4294901760, %v24683_v22  ;;  %p24446_p6 = scmp.ne.s32.totalorder %s28653_s27, %s24445_s5  ;;  %s24523_s10 = smov [#allocation5]  }
  0x43   : > { %vm299_vm2 = vcmp.lt.s32.totalorder %v24658_v4, %v298_v10  ;;  %v329_v40 = vand.u32 4294901760, %v145_v28  ;;  %v394_v42 = vsub.f32 %v24675_v19, %v393_v30  ;;  %v401_v43 = vsub.f32 %v24677_v20, %v400_v31  ;;  %s24449_s11 = sshll.u32 %s24523_s10, 4  ;;  %s24450_s11 = int_to_ptr.vmem [resolvable:$false] %s24449_s11 }
  0x44   : > { %vm300_vm4 = vmand %vm24665_vm1, %vm299_vm2  ;;  %22174 = vmatpush3.bf16.msra.mxu0 %v24686_v25  ;;  %v24723_v44 = vadd.s32 8, %v24653_v3  ;;  %v24726_v45 = vadd.s32 16, %v24653_v3  ;;  %v24728_v46 = vsub.f32 %v144_v26, %v326_v38  ;;  %v408_v47 = vsub.f32 %v24679_v21, %v407_v35  ;;  %p24447_p12 = pnand %p24446_p6, %p29519_p11  ;;  %s24451_s13 = scalar_lea.vmem %s24450_s11, 64 }
  0x45   : > { %v24690_v27 = vsel %vm300_vm4, 1.0, %v28747_v2  ;;  %22175 = vmatprep.subr.bf16.mxu0 %v28753_v1  ;;  %v421_v48 = vand.u32 4294901760, %v24698_v32  ;;  %v24735_v49 = vadd.s32 24, %v24653_v3  ;;  %v24738_v50 = vadd.s32 16, %v24701_v33  ;;  %p24452_p8 = scmp.lt.s32.totalorder %s28653_s27, %s24450_s11  ;;  %p24453_p10 = scmp.lt.s32.totalorder %s24451_s13, %s24445_s5 }
  0x46   : > { %28993 = vst [vmem:[#allocation9_spill] sm:$0xff] %v24690_v27  ;;  %v305_v29 = vsel %vm28707_vm3, %v24690_v27, 0  ;;  %v415_v52 = vsub.f32 %v24683_v22, %v414_v39  ;;  %v428_v53 = vand.u32 4294901760, %v24708_v37  ;;  %v24747_v54 = vpack.c.bf16 %v329_v40, %v326_v38  ;;  %p24448_p13 = pneg %p24447_p12 }
  0x47   : > { %v24703_v34 = vsub.f32 %v305_v29, %v305_v29  ;;  %v24749_v55 = vsub.f32 %v145_v28, %v329_v40  ;;  %v395_v56 = vand.u32 4294901760, %v394_v42  ;;  %v402_v57 = vand.u32 4294901760, %v401_v43  ;;  %p24454_p0 = por %p24453_p10, %p24452_p8 }
  0x48   : > { %22177 = vmatpush3.bf16.msra.mxu0 %v24706_v36  ;;  %vm166_vm5 = vcmp.ge.s32.totalorder %v24653_v3, %v24701_v33  ;;  %vm167_vm6 = vcmp.ge.s32.totalorder %v24723_v44, %v24701_v33  ;;  %v24757_v58 = vadd.s32 32, %v24653_v3  ;;  %v24760_v59 = vadd.s32 40, %v24653_v3 }
  0x49   : > { %28994 = vst [vmem:[#allocation10_spill] sm:$0xff] %v24703_v34  ;;  %v24713_v41 = vand.u32 4294901760, %v24703_v34  ;;  %22178 = vmatprep.subr.bf16.mxu0 %v28753_v1  ;;  %v409_v60 = vand.u32 4294901760, %v408_v47  ;;  %v422_v61 = vsub.f32 %v24698_v32, %v421_v48  ;;  %v435_v62 = vand.u32 4294901760, %v24728_v46  ;;  %p24455_p2 = pnand %p24454_p0, %p24448_p13 }
  0x4a   : > { %vm168_vm7 = vcmp.ge.s32.totalorder %v24726_v45, %v24701_v33  ;;  %v416_v0 = vand.u32 4294901760, %v415_v52  ;;  %v429_v5 = vsub.f32 %v24708_v37, %v428_v53  ;;  %vm183_vm8 = vcmp.lt.s32.totalorder %v24653_v3, %v24738_v50 }
  0x4b   : > { %28995 = vst [vmem:[#allocation11_spill] sm:$0xff] %v24713_v41  ;;  %v383_v51 = vsub.f32 %v24703_v34, %v24713_v41  ;;  %v22182_v6 = vpack.c.bf16 %v402_v57, %v395_v56  ;;  %v442_v7 = vand.u32 4294901760, %v24749_v55  ;;  %vm184_vm9 = vcmp.lt.s32.totalorder %v24723_v44, %v24738_v50  ;;  %vm24782_vm10 = vmand %vm166_vm5, %vm183_vm8 }
  0x4c   : > { %22180 = vmatpush3.bf16.msra.mxu0 %v24747_v54  ;;  %vm185_vm11 = vcmp.lt.s32.totalorder %v24726_v45, %v24738_v50  ;;  %vm24792_vm12 = vmand %vm167_vm6, %vm184_vm9  ;;  %vm169_vm13 = vcmp.ge.s32.totalorder %v24735_v49, %v24701_v33  ;;  %vm186_vm14 = vcmp.lt.s32.totalorder %v24735_v49, %v24738_v50  ;;  %v423_v10 = vand.u32 4294901760, %v422_v61 }
  0x4d   : > { %v24768_v63 = vand.u32 4294901760, %v383_v51  ;;  %22181 = vmatprep.subr.bf16.mxu0 %v28753_v1  ;;  %v436_v11 = vsub.f32 %v24728_v46, %v435_v62  ;;  %vm24807_vm15 = vmpackc.low %vm24792_vm12, %vm24782_vm10  ;;  %v29001_v12 = vmov 0  ;;  %v24812_v13 = vadd.s32 48, %v24653_v3 }
  0x4e   : > { %v29002_v12 = vsel %vm24807_vm15, 4294967295, %v29001_v12  ;;  %v22185_v14 = vpack.c.bf16 %v416_v0, %v409_v60  ;;  %v28739_v15 = vmov 1.0|1.0   ;;  %vm24821_vm1 = vmand %vm168_vm7, %vm185_vm11  ;;  %vm170_vm2 = vcmp.ge.s32.totalorder %v24757_v58, %v24701_v33 }
  0x4f   : > { %28996 = vst [vmem:[#allocation12_spill] sm:$0xff] %v24768_v63  ;;  %19222 = vmatmul.mubr.f32.vlgmr.msra.gmra.mrb[0].mxu0 %v24768_v63  ;;  %22243 = vmatpush3.bf16.msk.msra.mxu1 %vm24807_vm15, %v28739_v15  ;;  %vm187_vm4 = vcmp.lt.s32.totalorder %v24757_v58, %v24738_v50  ;;  %v24830_v17 = vadd.s32 56, %v24653_v3  ;;  %v430_v23 = vand.u32 4294901760, %v429_v5  ;;  %v443_v24 = vsub.f32 %v24749_v55, %v442_v7  ;;  %vm24843_vm5 = vmand %vm169_vm13, %vm186_vm14 }
  0x50   : > { %22183 = vmatpush3.bf16.msra.mxu0 %v22182_v6  ;;  %19240 = vmatprep.mubr.msk.f32.mxu0 %vm28705_vm0, %v28747_v2  ;;  %vm171_vm6 = vcmp.ge.s32.totalorder %v24760_v59, %v24701_v33  ;;  %vm188_vm7 = vcmp.lt.s32.totalorder %v24760_v59, %v24738_v50  ;;  %vm24857_vm8 = vmpackc.low %vm24843_vm5, %vm24821_vm1  ;;  %v29007_v28 = vmov 0  ;;  %v155_v29 = vadd.s32 64, %v24653_v3 }
  0x51   : > { %22184 = vmatprep.subr.bf16.mxu0 %v28753_v1  ;;  %22244 = vmatprep.subr.bf16.mxu1 %v28753_v1  ;;  %v29008_v28 = vsel %vm24857_vm8, 4294967295, %v29007_v28  ;;  %vm24862_vm9 = vmand %vm170_vm2, %vm187_vm4  ;;  %vm172_vm11 = vcmp.ge.s32.totalorder %v24812_v13, %v24701_v33  ;;  %vm189_vm13 = vcmp.lt.s32.totalorder %v24812_v13, %v24738_v50  ;;  %v156_v40 = vadd.s32 72, %v24653_v3 }
  0x52   : > { %vm24874_vm14 = vmand %vm171_vm6, %vm188_vm7  ;;  %v29011_v42 = vmov 0  ;;  %vm173_vm2 = vcmp.ge.s32.totalorder %v24830_v17, %v24701_v33  ;;  %vm190_vm4 = vcmp.lt.s32.totalorder %v24830_v17, %v24738_v50  ;;  %v22188_v43 = vpack.c.bf16 %v430_v23, %v423_v10 }
  0x53   : > { %22246 = vmatpush3.bf16.msk.msra.mxu1 %vm24857_vm8, %v28739_v15  ;;  %v29012_v42 = vsel %vm24874_vm14, 4294967295, %v29011_v42  ;;  %v437_v47 = vand.u32 4294901760, %v436_v11  ;;  %v444_v51 = vand.u32 4294901760, %v443_v24  ;;  %vm24887_vm6 = vmpackc.low %vm24874_vm14, %vm24862_vm9  ;;  %v29013_v52 = vmov 0 }
  0x54   : > { %22186 = vmatpush3.bf16.msra.mxu0 %v22185_v14  ;;  %22247 = vmatprep.subr.bf16.mxu1 %v28753_v1  ;;  %v29014_v52 = vsel %vm24887_vm6, 4294967295, %v29013_v52  ;;  %vm24892_vm7 = vmand %vm172_vm11, %vm189_vm13  ;;  %v29015_v56 = vmov 0  ;;  %vm174_vm0 = vcmp.ge.s32.totalorder %v155_v29, %v24701_v33  ;;  %vm191_vm3 = vcmp.lt.s32.totalorder %v155_v29, %v24738_v50 }
  0x55   : > { %22187 = vmatprep.subr.bf16.mxu0 %v28753_v1  ;;  %v29016_v56 = vsel %vm24892_vm7, 4294967295, %v29015_v56  ;;  %vm24898_vm8 = vmand %vm173_vm2, %vm190_vm4  ;;  %v29017_v57 = vmov 0  ;;  %vm175_vm15 = vcmp.ge.s32.totalorder %v156_v40, %v24701_v33  ;;  %vm192_vm14 = vcmp.lt.s32.totalorder %v156_v40, %v24738_v50 }
  0x56   : > { %v29018_v57 = vsel %vm24898_vm8, 4294967295, %v29017_v57  ;;  %vm24911_vm11 = vmpackc.low %vm24898_vm8, %vm24892_vm7  ;;  %v29019_v60 = vmov 0  ;;  %v22191_v61 = vpack.c.bf16 %v444_v51, %v437_v47  ;;  %v29021_v0 = vmov 0 }
  0x57   : > { %22249 = vmatpush3.bf16.msk.msra.mxu1 %vm24887_vm6, %v28739_v15  ;;  %v29020_v60 = vsel %vm24911_vm11, 4294967295, %v29019_v60  ;;  %vm24916_vm13 = vmand %vm174_vm0, %vm191_vm3  ;;  %v29023_v5 = vmov 0  ;;  %v22194_v6 = vpack.c.bf16 %v24677_v20, %v24675_v19  ;;  %v29025_v10 = vmov 0 }
  0x58   : > { %22189 = vmatpush3.bf16.msra.mxu0 %v22188_v43  ;;  %22250 = vmatprep.subr.bf16.mxu1 %v28753_v1  ;;  %v29022_v0 = vsel %vm24916_vm13, 4294967295, %v29021_v0  ;;  %vm24921_vm2 = vmand %vm175_vm15, %vm192_vm14  ;;  %vm29027_vm3 = vcmask 523264   ;;  %v22197_v11 = vpack.c.bf16 %v24683_v22, %v24679_v21  ;;  %vm29028_vm15 = vmmov 0  }
  0x59   : > { %22190 = vmatprep.subr.bf16.mxu0 %v28753_v1  ;;  %v29024_v5 = vsel %vm24921_vm2, 4294967295, %v29023_v5  ;;  %vm24935_vm0 = vmpackc.low %vm24921_vm2, %vm24916_vm13  ;;  %v22200_v14 = vpack.c.bf16 %v24708_v37, %v24698_v32  ;;  %v22203_v23 = vpack.c.bf16 %v24749_v55, %v24728_v46  ;;  %v22218_v24 = vpack.c.bf16 %v400_v31, %v393_v30 }
  0x5a   : > { %v29026_v10 = vsel %vm24935_vm0, 4294967295, %v29025_v10  ;;  %v22221_v29 = vpack.c.bf16 %v414_v39, %v407_v35  ;;  %v22224_v19 = vpack.c.bf16 %v428_v53, %v421_v48  ;;  %v22227_v20 = vpack.c.bf16 %v442_v7, %v435_v62  ;;  %vm29029_vm14 = vmmov %vm29027_vm3 }
  0x5b   : > { %22252 = vmatpush3.bf16.msk.msra.mxu1 %vm24911_vm11, %v28739_v15  ;;  %vm29030_vm4 = vmmov %vm29027_vm3  ;;  %v158_v21 = vadd.s32 88, %v24653_v3  ;;  %v159_v30 = vadd.s32 96, %v24653_v3  ;;  %v160_v31 = vadd.s32 104, %v24653_v3  ;;  %v29035_v32 = vmov 0 }
  0x5c   : > { %22192 = vmatpush3.bf16.msra.mxu0 %v22191_v61  ;;  %22253 = vmatprep.subr.bf16.mxu1 %v28753_v1  ;;  %v161_v37 = vadd.s32 112, %v24653_v3  ;;  %v162_v39 = vadd.s32 120, %v24653_v3  ;;  %v29041_v46 = vmov 0 }
  0x5d   : > { %22193 = vmatprep.subr.bf16.mxu0 %v28753_v1  ;;  %vm194_vm11 = vcmp.lt.s32.totalorder %v158_v21, %v24738_v50 }
  0x5f   : > { %19241 = vmatmul.mubr.msk.f32.vlgmr.msra.gmra.mrb[0].mxu0 %vm29027_vm3, %v24690_v27  ;;  %22255 = vmatpush3.bf16.msk.msra.mxu1 %vm24935_vm0, %v28739_v15 }
  0x60   : > { %22195 = vmatpush3.bf16.msra.mxu0 %v22194_v6  ;;  %19259 = vmatprep.mubr.msk.f32.mxu0 %vm29028_vm15, %v28747_v2 }
  0x61   : > { %22196 = vmatprep.subr.bf16.mxu0 %v28753_v1  ;;  %22256 = vmatprep.subr.bf16.mxu1 %v28753_v1 }
  0x64   : > { %22198 = vmatpush3.bf16.msra.mxu0 %v22197_v11 }
  0x65   : > { %22199 = vmatprep.subr.bf16.mxu0 %v28753_v1 }
  0x68   : > { %22201 = vmatpush3.bf16.msra.mxu0 %v22200_v14 }
  0x69   : > { %22202 = vmatprep.subr.bf16.mxu0 %v28753_v1 }
  0x6c   : > { %22204 = vmatpush3.bf16.msra.mxu0 %v22203_v23 }
  0x6d   : > { %22205 = vmatprep.subr.bf16.mxu0 %v28753_v1 }
  0x6f   : > { %19260 = vmatmul.mubr.f32.vlgmr.msra.gmra.mrb[0].mxu0 %v24703_v34  ;;  %v29086_v34 = vmov 0.0  }
  0x70   : > { %22207 = vmatpush3.bf16.msra.mxu0 %v24673_v18  ;;  %19278 = vmatprep.mubr.msk.f32.mxu0 %vm29028_vm15, %v28747_v2 }
  0x71   : > { %22208 = vmatprep.subr.bf16.mxu0 %v28753_v1 }
  0x74   : > { %22210 = vmatpush3.bf16.msra.mxu0 %v24686_v25 }
  0x75   : > { %22211 = vmatprep.subr.bf16.mxu0 %v28753_v1 }
  0x78   : > { %22213 = vmatpush3.bf16.msra.mxu0 %v24706_v36 }
  0x79   : > { %22214 = vmatprep.subr.bf16.mxu0 %v28753_v1 }
  0x7c   : > { %22216 = vmatpush3.bf16.msra.mxu0 %v24747_v54 }
  0x7d   : > { %22217 = vmatprep.subr.bf16.mxu0 %v28753_v1 }
  0x7f   : > { %19279 = vmatmul.mubr.f32.vlgmr.msra.gmra.mrb[0].mxu0 %v24713_v41 }
  0x80   : > { %22219 = vmatpush3.bf16.msra.mxu0 %v22218_v24  ;;  %19297 = vmatprep.mubr.msk.f32.mxu0 %vm29028_vm15, %v28747_v2 }
  0x81   : > { %22220 = vmatprep.subr.bf16.mxu0 %v28753_v1 }
  0x84   : > { %22222 = vmatpush3.bf16.msra.mxu0 %v22221_v29 }
  0x85   : > { %22223 = vmatprep.subr.bf16.mxu0 %v28753_v1 }
  0x88   : > { %22225 = vmatpush3.bf16.msra.mxu0 %v22224_v19 }
  0x89   : > { %22226 = vmatprep.subr.bf16.mxu0 %v28753_v1 }
  0x8c   : > { %22228 = vmatpush3.bf16.msra.mxu0 %v22227_v20 }
  0x8d   : > { %22229 = vmatprep.subr.bf16.mxu0 %v28753_v1 }
  0x8f   : > { %19298 = vmatmul.mubr.msk.f32.vlgmr.msra.gmra.mrb[0].mxu0 %vm29029_vm14, %v24690_v27  ;;  %vm177_vm14 = vcmp.ge.s32.totalorder %v158_v21, %v24701_v33 }
  0x90   : > { %22231 = vmatpush3.bf16.msra.mxu0 %v24673_v18  ;;  %19316 = vmatprep.mubr.msk.f32.mxu0 %vm29028_vm15, %v28747_v2  ;;  %v157_v18 = vadd.s32 80, %v24653_v3 }
  0x91   : > { %22232 = vmatprep.subr.bf16.mxu0 %v28753_v1 }
  0x92   : > { %vm176_vm3 = vcmp.ge.s32.totalorder %v157_v18, %v24701_v33  ;;  %vm193_vm0 = vcmp.lt.s32.totalorder %v157_v18, %v24738_v50 }
  0x93   : > { %vm25014_vm6 = vmand %vm176_vm3, %vm193_vm0  ;;  %vm179_vm0 = vcmp.ge.s32.totalorder %v160_v31, %v24701_v33  ;;  %vm195_vm3 = vcmp.lt.s32.totalorder %v159_v30, %v24738_v50 }
  0x94   : > { %22234 = vmatpush3.bf16.msra.mxu0 %v24686_v25 }
  0x95   : > { %22235 = vmatprep.subr.bf16.mxu0 %v28753_v1 }
  0x98   : > { %22237 = vmatpush3.bf16.msra.mxu0 %v24706_v36 }
  0x99   : > { %22238 = vmatprep.subr.bf16.mxu0 %v28753_v1 }
  0x9c   : > { %22240 = vmatpush3.bf16.msra.mxu0 %v24747_v54 }
  0x9d   : > { %19529 = vmatprep.subr.mxu0 %v28747_v2 }
  0x9f   : > { %19317 = vmatmul.mubr.msk.f32.vlgmr.msra.gmra.mrb[0].mxu0 %vm29030_vm4, %v24690_v27  ;;  %vm25018_vm4 = vmand %vm177_vm14, %vm194_vm11  ;;  %vm178_vm11 = vcmp.ge.s32.totalorder %v159_v30, %v24701_v33  ;;  %vm196_vm14 = vcmp.lt.s32.totalorder %v160_v31, %v24738_v50 }
  0xa0   : > { %19531 = vmatprep.mubr.msk.f32.mxu0 %vm29028_vm15, %v28747_v2  ;;  %vm25028_vm15 = vmpackc.low %vm25018_vm4, %vm25014_vm6  ;;  %v17149_v54 = vsel %vm25018_vm4, 1.0, %v28747_v2  ;;  %vm29076_vm4 = vnez %v29026_v10 }
  0xa1   : > { %v29036_v32 = vsel %vm25028_vm15, 4294967295, %v29035_v32  ;;  %22258 = vmatpush3.bf16.msk.msra.mxu1 %vm25028_vm15, %v28739_v15  ;;  %vm25040_vm2 = vmand %vm178_vm11, %vm195_vm3  ;;  %vm180_vm11 = vcmp.ge.s32.totalorder %v161_v37, %v24701_v33  ;;  %vm197_vm3 = vcmp.lt.s32.totalorder %v161_v37, %v24738_v50  ;;  %v25094_v62 = vsub.f32 %v17149_v54, %v17149_v54 }
  0xa2   : > { %22259 = vmatprep.subr.bf16.mxu1 %v28753_v1  ;;  %vm25044_vm13 = vmand %vm179_vm0, %vm196_vm14  ;;  %vm181_vm0 = vcmp.ge.s32.totalorder %v162_v39, %v24701_v33  ;;  %vm198_vm14 = vcmp.lt.s32.totalorder %v162_v39, %v24738_v50  ;;  %v29047_v33 = vmov 0  ;;  %v17148_v50 = vsel %vm25014_vm6, 1.0, %v28747_v2 }
  0xa3   : > { %vm25054_vm15 = vmpackc.low %vm25044_vm13, %vm25040_vm2  ;;  %v25092_v55 = vsub.f32 %v17148_v50, %v17148_v50  ;;  %v28732_v40 = vand.u32 4294901760, %v25094_v62  ;;  %v17150_v43 = vsel %vm25040_vm2, 1.0, %v28747_v2  ;;  %v17151_v47 = vsel %vm25044_vm13, 1.0, %v28747_v2 }
  0xa4   : > { %v29042_v46 = vsel %vm25054_vm15, 4294967295, %v29041_v46  ;;  %vm25066_vm8 = vmand %vm180_vm11, %vm197_vm3  ;;  %v25110_v6 = vsub.f32 %v17150_v43, %v17150_v43  ;;  %v25112_v11 = vsub.f32 %v17151_v47, %v17151_v47  ;;  %vm29072_vm6 = vnez %v29002_v12 }
  0xa5   : > { %22261 = vmatpush3.bf16.msk.msra.mxu1 %vm25054_vm15, %v28739_v15  ;;  %vm25070_vm7 = vmand %vm181_vm0, %vm198_vm14  ;;  %v28733_v7 = vand.u32 4294901760, %v25092_v55  ;;  %v1018_v61 = vsub.f32 %v25094_v62, %v28732_v40  ;;  %v17152_v19 = vsel %vm25066_vm8, 1.0, %v28747_v2  ;;  %v25148_v47 = vpack.c.bf16 %v25094_v62, %v25092_v55 }
  0xa6   : > { %22262 = vmatprep.subr.bf16.mxu1 %v28753_v1  ;;  %vm25078_vm15 = vmpackc.low %vm25070_vm7, %vm25066_vm8  ;;  %v28731_v24 = vand.u32 4294901760, %v25110_v6  ;;  %v28730_v29 = vand.u32 4294901760, %v25112_v11  ;;  %v17153_v20 = vsel %vm25070_vm7, 1.0, %v28747_v2  ;;  %v25127_v22 = vsub.f32 %v17152_v19, %v17152_v19 }
  0xa7   : > { %v29048_v33 = vsel %vm25078_vm15, 4294967295, %v29047_v33  ;;  %v1011_v51 = vsub.f32 %v25092_v55, %v28733_v7  ;;  %v1019_v23 = vand.u32 4294901760, %v1018_v61  ;;  %v25129_v25 = vsub.f32 %v17153_v20, %v17153_v20  ;;  %29052 = vst [vmem:[#allocation16_spill] sm:$0xff] %v25148_v47 }
  0xa8   : > { %v1025_v21 = vsub.f32 %v25110_v6, %v28731_v24  ;;  %v1032_v30 = vsub.f32 %v25112_v11, %v28730_v29  ;;  %v28729_v35 = vand.u32 4294901760, %v25127_v22  ;;  %vm29059_vm8 = vnez %v29024_v5 }
  0xa9   : > { %22264 = vmatpush3.bf16.msk.msra.mxu1 %vm25078_vm15, %v28739_v15  ;;  %v1012_v14 = vand.u32 4294901760, %v1011_v51  ;;  %v28728_v36 = vand.u32 4294901760, %v25129_v25  ;;  %v25152_v51 = vpack.c.bf16 %v25112_v11, %v25110_v6  ;;  %v25156_v61 = vpack.c.bf16 %v25129_v25, %v25127_v22 }
  0xaa   : > { %22265 = vmatprep.subr.bf16.mxu1 %v28753_v1  ;;  %v1026_v31 = vand.u32 4294901760, %v1025_v21  ;;  %v1033_v37 = vand.u32 4294901760, %v1032_v30  ;;  %v1039_v39 = vsub.f32 %v25127_v22, %v28729_v35  ;;  %v17140_v21 = vsel %vm24821_vm1, 1.0, %v28747_v2 }
  0xab   : > { %v25122_v18 = vpack.c.bf16 %v1019_v23, %v1012_v14  ;;  %v1046_v48 = vsub.f32 %v25129_v25, %v28728_v36  ;;  %29053 = vst [vmem:[#allocation17_spill] sm:$0xff] %v25152_v51  ;;  %29054 = vst [vmem:[#allocation18_spill] sm:$0xff] %v25156_v61  ;;  %v17138_v14 = vsel %vm24782_vm10, 1.0, %v28747_v2  ;;  %v17139_v23 = vsel %vm24792_vm12, 1.0, %v28747_v2 }
  0xac   : > { %v25142_v53 = vpack.c.bf16 %v1033_v37, %v1026_v31  ;;  %v1040_v50 = vand.u32 4294901760, %v1039_v39  ;;  %v25164_v19 = vsub.f32 %v17138_v14, %v17138_v14  ;;  %v25166_v20 = vsub.f32 %v17139_v23, %v17139_v23 }
  0xad   : > { %29049 = vst [vmem:[#allocation13_spill] sm:$0xff] %v25122_v18  ;;  %v1047_v54 = vand.u32 4294901760, %v1046_v48  ;;  %v17141_v30 = vsel %vm24843_vm5, 1.0, %v28747_v2  ;;  %v25176_v37 = vsub.f32 %v17140_v21, %v17140_v21  ;;  %v17142_v48 = vsel %vm24862_vm9, 1.0, %v28747_v2 }
  0xae   : > { %29050 = vst [vmem:[#allocation14_spill] sm:$0xff] %v25142_v53  ;;  %v28737_v31 = vand.u32 4294901760, %v25164_v19  ;;  %v28736_v8 = vand.u32 4294901760, %v25166_v20  ;;  %v25178_v9 = vsub.f32 %v17141_v30, %v17141_v30  ;;  %vm29055_vm10 = vnez %v29012_v42 }
  0xaf   : > { %v25144_v43 = vpack.c.bf16 %v1047_v54, %v1040_v50  ;;  %v17143_v16 = vsel %vm29055_vm10, 1.0, %v28747_v2  ;;  %v28734_v23 = vand.u32 4294901760, %v25176_v37  ;;  %v25198_v42 = vsub.f32 %v17142_v48, %v17142_v48 }
  0xb0   : > { %v941_v54 = vsub.f32 %v25164_v19, %v28737_v31  ;;  %v948_v14 = vsub.f32 %v25166_v20, %v28736_v8  ;;  %v28735_v21 = vand.u32 4294901760, %v25178_v9  ;;  %v25200_v30 = vsub.f32 %v17143_v16, %v17143_v16 }
  0xb1   : > { %29051 = vst [vmem:[#allocation15_spill] sm:$0xff] %v25144_v43  ;;  %vm29056_vm12 = vnez %v29016_v56  ;;  %vm29057_vm1 = vnez %v29018_v57  ;;  %v955_v24 = vsub.f32 %v25176_v37, %v28734_v23  ;;  %v28742_v56 = vand.u32 4294901760, %v25198_v42 }
  0xb2   : > { %v17145_v36 = vsel %vm29057_vm1, 1.0, %v28747_v2  ;;  %v942_v35 = vand.u32 4294901760, %v941_v54  ;;  %v949_v29 = vand.u32 4294901760, %v948_v14  ;;  %v962_v16 = vsub.f32 %v25178_v9, %v28735_v21 }
  0xb3   : > { %v28741_v40 = vand.u32 4294901760, %v25200_v30  ;;  %v25223_v57 = vsub.f32 %v17145_v36, %v17145_v36  ;;  %vm29058_vm5 = vnez %v29022_v0  ;;  %v956_v21 = vand.u32 4294901760, %v955_v24 }
  0xb4   : > { %v17146_v14 = vsel %vm29058_vm5, 1.0, %v28747_v2  ;;  %v25232_v23 = vpack.c.bf16 %v949_v29, %v942_v35  ;;  %v963_v8 = vand.u32 4294901760, %v962_v16  ;;  %v969_v36 = vsub.f32 %v25198_v42, %v28742_v56 }
  0xb5   : > { %v976_v0 = vsub.f32 %v25200_v30, %v28741_v40  ;;  %v28745_v5 = vand.u32 4294901760, %v25223_v57  ;;  %v25245_v29 = vsub.f32 %v17146_v14, %v17146_v14  ;;  %vm29062_vm9 = vmmov 0  }
  0xb6   : > { %29060 = vst [vmem:[#allocation19_spill] sm:$0xff] %v25232_v23  ;;  %v970_v16 = vand.u32 4294901760, %v969_v36  ;;  %vm29073_vm7 = vnez %v29008_v28  ;;  %vm29074_vm13 = vnez %v29014_v52  ;;  %vm29075_vm2 = vnez %v29020_v60 }
  0xb7   : > { %v977_v15 = vand.u32 4294901760, %v976_v0  ;;  %v990_v56 = vsub.f32 %v25223_v57, %v28745_v5  ;;  %v28744_v14 = vand.u32 4294901760, %v25245_v29  ;;  %vm29077_vm11 = vnez %v29036_v32 }
  0xb8   : > { %vm29078_vm0 = vnez %v29042_v46  ;;  %vm28759_vm5 = vcmask 64512  }
  0xb9   : > { %v997_v36 = vsub.f32 %v25245_v29, %v28744_v14 }
 0x172   : > { %v840_v39 = vpop.f32.mrb[0].mxu0 }
 0x173   : > { %v25186_v50 = vmul.f32 0.125, %v840_v39  ;;  %v19318_v26 = vpop.f32.mrb[1].mxu0 }
 0x174   : > { %v17144_v26 = vsel %vm29056_vm12, 1.0, %v28747_v2 }
 0x175   : > { %v845_v38 = vmul.f32 %v25186_v50, %v25186_v50  ;;  %v25221_v7 = vsub.f32 %v17144_v26, %v17144_v26 }
 0x177   : > { %v25202_v39 = vand.u32 4294901760, %v845_v38  ;;  %v28746_v31 = vand.u32 4294901760, %v25221_v7 }
 0x179   : > { %v25214_v48 = vsub.f32 %v845_v38, %v25202_v39  ;;  %v17147_v38 = vsel %vm29059_vm8, 1.0, %v28747_v2  ;;  %v983_v40 = vsub.f32 %v25221_v7, %v28746_v31  ;;  %v29083_v31 = vand.u32 4294901760, %v25176_v37 }
 0x17a   : > { %v25247_v24 = vsub.f32 %v17147_v38, %v17147_v38 }
 0x17b   : > { %v28738_v54 = vand.u32 4294901760, %v25214_v48  ;;  %v29082_v5 = vand.u32 4294901760, %v25214_v48 }
 0x17c   : > { %v28743_v38 = vand.u32 4294901760, %v25247_v24 }
 0x17d   : > { %v930_v26 = vsub.f32 %v25214_v48, %v28738_v54  ;;  %v25249_v54 = vpack.c.bf16 %v963_v8, %v956_v21  ;;  %v25263_v8 = vpack.c.bf16 %v977_v15, %v970_v16  ;;  %v984_v21 = vand.u32 4294901760, %v983_v40 }
 0x17e   : > { %v1004_v0 = vsub.f32 %v25247_v24, %v28743_v38  ;;  %v998_v15 = vand.u32 4294901760, %v997_v36  ;;  %v25311_v36 = vpack.c.bf16 %v25223_v57, %v25221_v7  ;;  %v29080_v38 = vand.u32 4294901760, %v25166_v20 }
 0x17f   : > { %v931_v35 = vand.u32 4294901760, %v930_v26  ;;  %29061 = vst [vmem:[#allocation20_spill] sm:$0xff] %v25249_v54  ;;  %29063 = vst [vmem:[#allocation21_spill] sm:$0xff] %v25263_v8  ;;  %v991_v26 = vand.u32 4294901760, %v990_v56  ;;  %v25290_v56 = vpack.c.bf16 %v25166_v20, %v25164_v19  ;;  %v29088_v20 = vand.u32 4294901760, %v25200_v30 }
 0x180   : > { %v1005_v16 = vand.u32 4294901760, %v1004_v0  ;;  %29069 = vst [vmem:[#allocation27_spill] sm:$0xff] %v25311_v36  ;;  %v25317_v0 = vpack.c.bf16 %v25247_v24, %v25245_v29 }
 0x181   : > { %19352 = vmatmul.mubr.f32.vlgmr.msra.gmra.mrb[0].mxu1 %v931_v35  ;;  %v25274_v35 = vpack.c.bf16 %v991_v26, %v984_v21  ;;  %29066 = vst [vmem:[#allocation24_spill] sm:$0xff] %v25290_v56  ;;  %v25297_v21 = vpack.c.bf16 %v25178_v9, %v25176_v37  ;;  %v25305_v26 = vpack.c.bf16 %v25200_v30, %v25198_v42 }
 0x182   : > { %22267 = vmatpush3.bf16.msra.mxu1 %v25232_v23  ;;  %19386 = vmatprep.mubr.msk.f32.mxu1 %vm29062_vm9, %v28747_v2  ;;  %v25278_v40 = vpack.c.bf16 %v1005_v16, %v998_v15  ;;  %29070 = vst [vmem:[#allocation28_spill] sm:$0xff] %v25317_v0  ;;  %v29071_v15 = vmov 1.0|1.0   ;;  %v29079_v16 = vand.u32 4294901760, %v25164_v19  ;;  %v29087_v19 = vand.u32 4294901760, %v25198_v42 }
 0x183   : > { %22268 = vmatprep.subr.bf16.mxu1 %v28753_v1  ;;  %29064 = vst [vmem:[#allocation22_spill] sm:$0xff] %v25274_v35  ;;  %29067 = vst [vmem:[#allocation25_spill] sm:$0xff] %v25297_v21  ;;  %v29094_v42 = vand.u32 4294901760, %v25247_v24  ;;  %v29100_v24 = vand.u32 4294901760, %v25112_v11 }
 0x184   : > { %29065 = vst [vmem:[#allocation23_spill] sm:$0xff] %v25278_v40  ;;  %29068 = vst [vmem:[#allocation26_spill] sm:$0xff] %v25305_v26  ;;  %v25366_v14 = vpack.c.bf16 %v29080_v38, %v29079_v16 }
 0x186   : > { %22270 = vmatpush3.bf16.msra.mxu1 %v25249_v54  ;;  %29081 = vst [vmem:[#allocation29_spill] sm:$0xff] %v25366_v14 }
 0x187   : > { %22271 = vmatprep.subr.bf16.mxu1 %v28753_v1 }
 0x18a   : > { %22273 = vmatpush3.bf16.msra.mxu1 %v25263_v8 }
 0x18b   : > { %22274 = vmatprep.subr.bf16.mxu1 %v28753_v1 }
 0x18e   : > { %22276 = vmatpush3.bf16.msra.mxu1 %v25274_v35 }
 0x18f   : > { %22277 = vmatprep.subr.bf16.mxu1 %v28753_v1 }
 0x192   : > { %22279 = vmatpush3.bf16.msra.mxu1 %v25278_v40 }
 0x193   : > { %22280 = vmatprep.subr.bf16.mxu1 %v28753_v1 }
 0x196   : > { %22282 = vmatpush3.bf16.msra.mxu1 %v25122_v18 }
 0x197   : > { %22283 = vmatprep.subr.bf16.mxu1 %v28753_v1 }
 0x19a   : > { %22285 = vmatpush3.bf16.msra.mxu1 %v25142_v53 }
 0x19b   : > { %22286 = vmatprep.subr.bf16.mxu1 %v28753_v1 }
 0x19e   : > { %22288 = vmatpush3.bf16.msra.mxu1 %v25144_v43 }
 0x19f   : > { %22289 = vmatprep.subr.bf16.mxu1 %v28753_v1 }
 0x1a1   : > { %19387 = vmatmul.mubr.f32.vlgmr.msra.gmra.mrb[0].mxu1 %v25202_v39 }
 0x1a2   : > { %22291 = vmatpush3.bf16.msra.mxu1 %v25290_v56  ;;  %19421 = vmatprep.mubr.msk.f32.mxu1 %vm29062_vm9, %v28747_v2 }
 0x1a3   : > { %22292 = vmatprep.subr.bf16.mxu1 %v28753_v1 }
 0x1a6   : > { %22294 = vmatpush3.bf16.msra.mxu1 %v25297_v21 }
 0x1a7   : > { %22295 = vmatprep.subr.bf16.mxu1 %v28753_v1 }
 0x1aa   : > { %22297 = vmatpush3.bf16.msra.mxu1 %v25305_v26 }
 0x1ab   : > { %22298 = vmatprep.subr.bf16.mxu1 %v28753_v1 }
 0x1ae   : > { %22300 = vmatpush3.bf16.msra.mxu1 %v25311_v36 }
 0x1af   : > { %22301 = vmatprep.subr.bf16.mxu1 %v28753_v1 }
 0x1b2   : > { %22303 = vmatpush3.bf16.msra.mxu1 %v25317_v0 }
 0x1b3   : > { %22304 = vmatprep.subr.bf16.mxu1 %v28753_v1 }
 0x1b6   : > { %22306 = vmatpush3.bf16.msra.mxu1 %v25148_v47 }
 0x1b7   : > { %22307 = vmatprep.subr.bf16.mxu1 %v28753_v1 }
 0x1ba   : > { %22309 = vmatpush3.bf16.msra.mxu1 %v25152_v51 }
 0x1bb   : > { %22310 = vmatprep.subr.bf16.mxu1 %v28753_v1 }
 0x1be   : > { %22312 = vmatpush3.bf16.msra.mxu1 %v25156_v61 }
 0x1bf   : > { %22313 = vmatprep.subr.bf16.mxu1 %v28753_v1 }
 0x1c1   : > { %19422 = vmatmul.mubr.f32.vlgmr.msra.gmra.mrb[0].mxu1 %v25214_v48  ;;  %v25386_v48 = vpack.c.bf16 %v29088_v20, %v29087_v19 }
 0x1c2   : > { %22315 = vmatpush3.bf16.msk.msra.mxu1 %vm29072_vm6, %v29071_v15  ;;  %19456 = vmatprep.mubr.msk.f32.mxu1 %vm29062_vm9, %v28747_v2  ;;  %v29084_v2 = vand.u32 4294901760, %v25178_v9  ;;  %v29093_v9 = vand.u32 4294901760, %v25245_v29  ;;  %v29099_v29 = vand.u32 4294901760, %v25110_v6  ;;  %v247_v6 = vmul.u32 16, %v24653_v3 }
 0x1c3   : > { %22316 = vmatprep.subr.bf16.mxu1 %v28753_v1  ;;  %29089 = vst [vmem:[#allocation31_spill] sm:$0xff] %v25386_v48 }
 0x1c4   : > { %v25376_v41 = vpack.c.bf16 %v29084_v2, %v29083_v31  ;;  %v29090_v2 = vand.u32 4294901760, %v25221_v7  ;;  %v29091_v31 = vand.u32 4294901760, %v25223_v57  ;;  %v25402_v30 = vpack.c.bf16 %v29094_v42, %v29093_v9 }
 0x1c5   : > { %v29096_v7 = vand.u32 4294901760, %v25092_v55  ;;  %v29097_v57 = vand.u32 4294901760, %v25094_v62  ;;  %v25418_v38 = vpack.c.bf16 %v29100_v24, %v29099_v29  ;;  %v29102_v55 = vand.u32 4294901760, %v25127_v22 }
 0x1c6   : > { %22318 = vmatpush3.bf16.msk.msra.mxu1 %vm29073_vm7, %v29071_v15  ;;  %29085 = vst [vmem:[#allocation30_spill] sm:$0xff] %v25376_v41  ;;  %v25394_v37 = vpack.c.bf16 %v29091_v31, %v29090_v2  ;;  %29095 = vst [vmem:[#allocation33_spill] sm:$0xff] %v25402_v30  ;;  %v29103_v62 = vand.u32 4294901760, %v25129_v25  ;;  %v249_v11 = vadd.s32 16, %v247_v6  ;;  %vm248_vm3 = vcmp.ge.s32.totalorder %v24658_v4, %v247_v6 }
 0x1c7   : > { %22319 = vmatprep.subr.bf16.mxu1 %v28753_v1  ;;  %29101 = vst [vmem:[#allocation35_spill] sm:$0xff] %v25418_v38  ;;  %v29105_v22 = vmov 0  ;;  %v28755_v25 = vmov 1.0  }
 0x1c8   : > { %29092 = vst [vmem:[#allocation32_spill] sm:$0xff] %v25394_v37  ;;  %v25426_v16 = vpack.c.bf16 %v29103_v62, %v29102_v55  ;;  %vm250_vm14 = vcmp.lt.s32.totalorder %v24658_v4, %v249_v11 }
 0x1c9   : > { %vm25469_vm10 = vmand %vm248_vm3, %vm250_vm14 }
 0x1ca   : > { %22321 = vmatpush3.bf16.msk.msra.mxu1 %vm29074_vm13, %v29071_v15  ;;  %29104 = vst [vmem:[#allocation36_spill] sm:$0xff] %v25426_v16  ;;  %v29106_v22 = vsel %vm25469_vm10, 4294967295, %v29105_v22  ;;  %19530 = vmatpush3.msk.msra.mxu0 %vm25469_vm10, %v28755_v25 }
 0x1cb   : > { %22322 = vmatprep.subr.bf16.mxu1 %v28753_v1  ;;  %29107 = vst [vmem:[#allocation37_spill] sm:$0xff] %v29106_v22  ;;  %19534 = vmatprep.subr.mxu0 %v29086_v34 }
 0x1ce   : > { %22324 = vmatpush3.bf16.msk.msra.mxu1 %vm29075_vm2, %v29071_v15 }
 0x1cf   : > { %22325 = vmatprep.subr.bf16.mxu1 %v28753_v1 }
 0x1d2   : > { %22327 = vmatpush3.bf16.msk.msra.mxu1 %vm29076_vm4, %v29071_v15 }
 0x1d3   : > { %22328 = vmatprep.subr.bf16.mxu1 %v28753_v1 }
 0x1d6   : > { %22330 = vmatpush3.bf16.msk.msra.mxu1 %vm29077_vm11, %v29071_v15 }
 0x1d7   : > { %22331 = vmatprep.subr.bf16.mxu1 %v28753_v1 }
 0x1da   : > { %22333 = vmatpush3.bf16.msk.msra.mxu1 %vm29078_vm0, %v29071_v15 }
 0x1db   : > { %22334 = vmatprep.subr.bf16.mxu1 %v28753_v1 }
 0x1de   : > { %22336 = vmatpush3.bf16.msk.msra.mxu1 %vm25078_vm15, %v29071_v15 }
 0x1df   : > { %22337 = vmatprep.subr.bf16.mxu1 %v28753_v1 }
 0x1e1   : > { %19457 = vmatmul.mubr.f32.vlgmr.msra.gmra.mrb[0].mxu1 %v29082_v5  ;;  %v25410_v5 = vpack.c.bf16 %v29097_v57, %v29096_v7  ;;  %v17154_v57 = vsel %vm25469_vm10, 1.0, %v29086_v34 }
 0x1e2   : > { %22339 = vmatpush3.bf16.msra.mxu1 %v25366_v14  ;;  %19491 = vmatprep.mubr.msk.f32.mxu1 %vm29062_vm9, %v29086_v34  ;;  %v25480_v6 = vsub.f32 %v17154_v57, %v17154_v57 }
 0x1e3   : > { %22340 = vmatprep.subr.bf16.mxu1 %v28753_v1  ;;  %29098 = vst [vmem:[#allocation34_spill] sm:$0xff] %v25410_v5 }
 0x1e4   : > { %29108 = vst [vmem:[#allocation38_spill] sm:$0xff] %v25480_v6 }
 0x1e6   : > { %22342 = vmatpush3.bf16.msra.mxu1 %v25376_v41 }
 0x1e7   : > { %22343 = vmatprep.subr.bf16.mxu1 %v28753_v1 }
 0x1ea   : > { %22345 = vmatpush3.bf16.msra.mxu1 %v25386_v48 }
 0x1eb   : > { %22346 = vmatprep.subr.bf16.mxu1 %v28753_v1 }
 0x1ee   : > { %22348 = vmatpush3.bf16.msra.mxu1 %v25394_v37 }
 0x1ef   : > { %22349 = vmatprep.subr.bf16.mxu1 %v28753_v1 }
 0x1f2   : > { %22351 = vmatpush3.bf16.msra.mxu1 %v25402_v30 }
 0x1f3   : > { %22352 = vmatprep.subr.bf16.mxu1 %v28753_v1 }
 0x1f6   : > { %22354 = vmatpush3.bf16.msra.mxu1 %v25410_v5 }
 0x1f7   : > { %22355 = vmatprep.subr.bf16.mxu1 %v28753_v1 }
 0x1fa   : > { %22357 = vmatpush3.bf16.msra.mxu1 %v25418_v38 }
 0x1fb   : > { %22358 = vmatprep.subr.bf16.mxu1 %v28753_v1 }
 0x1fe   : > { %22360 = vmatpush3.bf16.msra.mxu1 %v25426_v16 }
 0x1ff   : > { %22361 = vmatprep.subr.bf16.mxu1 %v28753_v1 }
 0x201   : > { %19492 = vmatmul.mubr.f32.vlgmr.msra.gmra.mrb[0].mxu1 %v25202_v39 }
 0x202   : > { %22363 = vmatpush3.bf16.msk.msra.mxu1 %vm29072_vm6, %v29071_v15  ;;  %19526 = vmatprep.mubr.msk.f32.mxu1 %vm29062_vm9, %v29086_v34 }
 0x203   : > { %22364 = vmatprep.subr.bf16.mxu1 %v28753_v1 }
 0x206   : > { %22366 = vmatpush3.bf16.msk.msra.mxu1 %vm29073_vm7, %v29071_v15 }
 0x207   : > { %22367 = vmatprep.subr.bf16.mxu1 %v28753_v1 }
 0x20a   : > { %22369 = vmatpush3.bf16.msk.msra.mxu1 %vm29074_vm13, %v29071_v15 }
 0x20b   : > { %22370 = vmatprep.subr.bf16.mxu1 %v28753_v1 }
 0x20e   : > { %22372 = vmatpush3.bf16.msk.msra.mxu1 %vm29075_vm2, %v29071_v15 }
 0x20f   : > { %22373 = vmatprep.subr.bf16.mxu1 %v28753_v1 }
 0x212   : > { %22375 = vmatpush3.bf16.msk.msra.mxu1 %vm29076_vm4, %v29071_v15 }
 0x213   : > { %22376 = vmatprep.subr.bf16.mxu1 %v28753_v1 }
 0x216   : > { %22378 = vmatpush3.bf16.msk.msra.mxu1 %vm29077_vm11, %v29071_v15 }
 0x217   : > { %22379 = vmatprep.subr.bf16.mxu1 %v28753_v1 }
 0x21a   : > { %22381 = vmatpush3.bf16.msk.msra.mxu1 %vm29078_vm0, %v29071_v15 }
 0x21b   : > { %22382 = vmatprep.subr.bf16.mxu1 %v28753_v1 }
 0x21e   : > { %22384 = vmatpush3.bf16.msk.msra.mxu1 %vm25078_vm15, %v29071_v15 }
 0x221   : > { %19527 = vmatmul.mubr.f32.vlgmr.msra.gmra.mrb[0].mxu1 %v25202_v39 }
 0x2f4   : > { %v1483_v19 = vpop.f32.mrb[0].mxu1 }
 0x2f5   : > { %v23609_v39 = vadd.f32 1e-07, %v1483_v19  ;;  %v19528_v20 = vpop.f32.mrb[1].mxu1 }
 0x2f7   : > { %24271 = vrsqrt.f32 %v23609_v39  ;;  %v1494_v2 = vadd.f32 1.0, %v23609_v39  ;;  %vm1489_vm12 = vcmp.eq.f32.partialorder %v23609_v39, inf  ;;  %v1492_v55 = vand.u32 2147483648, %v23609_v39 }
 0x2f8   : > { %vm1491_vm1 = vcmp.eq.f32.partialorder %v23609_v39, 0.0 }
 0x2f9   : > { %24273 = vrcp.f32 %v1494_v2 }
 0x301   : > { %v24272_v31 = vpop.eup %24271 }
 0x302   : > { %v1488_v9 = vmul.f32 %v24272_v31, %v23609_v39  ;;  %v25484_v31 = vand.u32 4294901760, %v25480_v6 }
 0x303   : > { %v24274_v42 = vpop.eup %24273 }
 0x304   : > { %v1496_v7 = vmul.f32 %v24274_v42, %v1494_v2  ;;  %v1490_v29 = vsel %vm1489_vm12, %v23609_v39, %v1488_v9  ;;  %29109 = vst [vmem:[#allocation39_spill] sm:$0xff] %v25484_v31  ;;  %v1584_v25 = vsub.f32 %v25480_v6, %v25484_v31 }
 0x305   : > { %v1493_v11 = vsel %vm1491_vm1, %v1492_v55, %v1490_v29 }
 0x306   : > { %v1497_v24 = vsub.f32 2.0, %v1496_v7  ;;  %v25488_v27 = vand.u32 4294901760, %v1584_v25  ;;  %v29111_v25 = vmov 1.0  }
 0x308   : > { %v1498_v62 = vmul.f32 %v24274_v42, %v1497_v24  ;;  %29110 = vst [vmem:[#allocation40_spill] sm:$0xff] %v25488_v27 }
 0x30a   : > { %v1499_v19 = vmul.f32 %v1498_v62, %v1493_v11 }
 0x30c   : > { %v1502_v20 = vsel %vm28759_vm5, %v1499_v19, 0  ;;  %vm28766_vm5 = vcmask 15360  }
 0x30d   : > { %v1570_v2 = vand.u32 4294901760, %v1502_v20 }
 0x30f   : > { %v1571_v1 = vsub.f32 %v1502_v20, %v1570_v2 }
 0x311   : > { %v1572_v9 = vand.u32 4294901760, %v1571_v1 }
 0x313   : > { %v1573_v7 = vsub.f32 %v1571_v1, %v1572_v9 }
 0x315   : > { %v1574_v39 = vand.u32 4294901760, %v1573_v7 }
 0x317   : > { %19532 = vmatmul.mubr.f32.vlgmr.msra.gmra.mrb[2].mxu0 %v1574_v39 }
 0x318   : > { %19535 = vmatpush3.msra.mxu0 %v25488_v27  ;;  %19536 = vmatprep.mubr.msk.f32.mxu0 %vm29062_vm9, %v29086_v34 }
 0x319   : > { %19539 = vmatprep.subr.mxu0 %v29086_v34 }
 0x31f   : > { %19537 = vmatmul.mubr.f32.vlgmr.msra.gmra.mrb[2].mxu0 %v1570_v2 }
 0x320   : > { %19540 = vmatpush3.msra.mxu0 %v25480_v6  ;;  %19541 = vmatprep.mubr.msk.f32.mxu0 %vm29062_vm9, %v29086_v34 }
 0x321   : > { %19544 = vmatprep.subr.mxu0 %v29086_v34 }
 0x327   : > { %19542 = vmatmul.mubr.f32.vlgmr.msra.gmra.mrb[2].mxu0 %v1571_v1  ;;  %v254_v1 = vmul.u32 32, %v24658_v4 }
 0x328   : > { %19545 = vmatpush3.msk.msra.mxu0 %vm25469_vm10, %v29111_v25  ;;  %19546 = vmatprep.mubr.msk.f32.mxu0 %vm29062_vm9, %v29086_v34 }
 0x329   : > { %19549 = vmatprep.subr.mxu0 %v29086_v34  ;;  %v263_v42 = vadd.s32 32, %v254_v1  ;;  %vm255_vm8 = vcmp.ge.s32.totalorder %v24653_v3, %v254_v1  ;;  %vm256_vm12 = vcmp.ge.s32.totalorder %v24723_v44, %v254_v1 }
 0x32b   : > { %vm264_vm3 = vcmp.lt.s32.totalorder %v24653_v3, %v263_v42  ;;  %vm265_vm1 = vcmp.lt.s32.totalorder %v24723_v44, %v263_v42  ;;  %vm266_vm15 = vcmp.lt.s32.totalorder %v24726_v45, %v263_v42 }
 0x32c   : > { %vm272_vm14 = vmand %vm255_vm8, %vm264_vm3  ;;  %vm258_vm3 = vcmp.ge.s32.totalorder %v24735_v49, %v254_v1 }
 0x32d   : > { %v25519_v57 = vsel %vm272_vm14, 1.0, %v29086_v34  ;;  %vm267_vm14 = vcmp.lt.s32.totalorder %v24735_v49, %v263_v42 }
 0x32e   : > { %29112 = vst [vmem:[#allocation41_spill] sm:$0xff] %v25519_v57  ;;  %vm25535_vm0 = vmand %vm258_vm3, %vm267_vm14  ;;  %vm261_vm3 = vcmp.ge.s32.totalorder %v24812_v13, %v254_v1  ;;  %vm270_vm14 = vcmp.lt.s32.totalorder %v24812_v13, %v263_v42 }
 0x32f   : > { %19547 = vmatmul.mubr.f32.vlgmr.msra.gmra.mrb[2].mxu0 %v1572_v9  ;;  %vm25553_vm4 = vmand %vm261_vm3, %vm270_vm14  ;;  %v25592_v9 = vsel %vm25535_vm0, 1.0, %v29086_v34  ;;  %vm28902_vm0 = vcmask 1041408  }
 0x330   : > { %19550 = vmatpush3.msra.mxu0 %v25484_v31  ;;  %19551 = vmatprep.mubr.msk.f32.mxu0 %vm29062_vm9, %v29086_v34  ;;  %29135 = vst [vmem:[#allocation47_spill] sm:$0xff] %v25592_v9 }
 0x331   : > { %19554 = vmatprep.subr.mxu0 %v29086_v34 }
 0x337   : > { %19552 = vmatmul.mubr.f32.vlgmr.msra.gmra.mrb[2].mxu0 %v1570_v2 }
 0x338   : > { %19555 = vmatpush3.msk.msra.mxu0 %vm25469_vm10, %v29111_v25  ;;  %19556 = vmatprep.mubr.msk.f32.mxu0 %vm29062_vm9, %v29086_v34  ;;  %vm25521_vm10 = vmand %vm256_vm12, %vm265_vm1  ;;  %vm257_vm9 = vcmp.ge.s32.totalorder %v24726_v45, %v254_v1  ;;  %vm259_vm12 = vcmp.ge.s32.totalorder %v24757_v58, %v254_v1  ;;  %vm268_vm1 = vcmp.lt.s32.totalorder %v24757_v58, %v263_v42 }
 0x339   : > { %vm25529_vm8 = vmand %vm257_vm9, %vm266_vm15  ;;  %vm260_vm15 = vcmp.ge.s32.totalorder %v24760_v59, %v254_v1  ;;  %vm269_vm9 = vcmp.lt.s32.totalorder %v24760_v59, %v263_v42 }
 0x33a   : > { %vm25547_vm11 = vmand %vm260_vm15, %vm269_vm9  ;;  %vm29127_vm15 = vcmask 15360   ;;  %v25583_v19 = vsel %vm25529_vm8, 1.0, %v29086_v34 }
 0x33b   : > { %v1953_v59 = vsel %vm29127_vm15, %v25519_v57, 0  ;;  %29132 = vst [vmem:[#allocation46_spill] sm:$0xff] %v25583_v19  ;;  %vm29133_vm9 = vmmov %vm29127_vm15  ;;  %v25625_v63 = vsel %vm25547_vm11, 1.0, %v29086_v34 }
 0x33c   : > { %v25565_v55 = vsub.f32 %v1953_v59, %v1953_v59  ;;  %vm29134_vm3 = vmmov %vm29133_vm9  ;;  %29145 = vst [vmem:[#allocation55_spill] sm:$0xff] %v25625_v63 }
 0x33d   : > { %vm29140_vm8 = vmmov %vm29134_vm3 }
 0x33e   : > { %29128 = vst [vmem:[#allocation42_spill] sm:$0xff] %v25565_v55  ;;  %v25568_v62 = vand.u32 4294901760, %v25565_v55  ;;  %vm29150_vm11 = vmmov %vm29134_vm3 }
 0x33f   : > { %19557 = vmatmul.mubr.f32.vlgmr.msra.gmra.mrb[2].mxu0 %v1570_v2  ;;  %v1959_v2 = vsel %vm29134_vm3, %v25583_v19, 0 }
 0x340   : > { %19575 = vmatprep.mubr.msk.f32.mxu0 %vm28766_vm5, %v25519_v57  ;;  %vm25541_vm5 = vmand %vm259_vm12, %vm268_vm1  ;;  %vm262_vm12 = vcmp.ge.s32.totalorder %v24830_v17, %v254_v1  ;;  %vm271_vm1 = vcmp.lt.s32.totalorder %v24830_v17, %v263_v42  ;;  %29129 = vst [vmem:[#allocation43_spill] sm:$0xff] %v25568_v62  ;;  %v2049_v13 = vsub.f32 %v25565_v55, %v25568_v62  ;;  %v25578_v17 = vsel %vm25521_vm10, 1.0, %v29086_v34 }
 0x341   : > { %vm25559_vm2 = vmand %vm262_vm12, %vm271_vm1  ;;  %29131 = vst [vmem:[#allocation45_spill] sm:$0xff] %v25578_v17  ;;  %v1956_v20 = vsel %vm29133_vm9, %v25578_v17, 0  ;;  %v25599_v39 = vsel %vm25541_vm5, 1.0, %v29086_v34  ;;  %v25601_v1 = vsub.f32 %v1959_v2, %v1959_v2  ;;  %vm29169_vm1 = vnez %v29020_v60 }
 0x342   : > { %v25572_v11 = vand.u32 4294901760, %v2049_v13  ;;  %v25594_v7 = vsub.f32 %v1956_v20, %v1956_v20  ;;  %29137 = vst [vmem:[#allocation49_spill] sm:$0xff] %v25599_v39  ;;  %vm29139_vm10 = vmmov %vm29134_vm3  ;;  %v1965_v29 = vsel %vm29140_vm8, %v25599_v39, 0  ;;  %v25658_v16 = vsel %vm25559_vm2, 1.0, %v29086_v34 }
 0x343   : > { %29138 = vst [vmem:[#allocation50_spill] sm:$0xff] %v25601_v1  ;;  %v1962_v42 = vsel %vm29139_vm10, %v25592_v9, 0  ;;  %v25611_v44 = vand.u32 4294901760, %v25601_v1  ;;  %v25618_v3 = vsub.f32 %v1965_v29, %v1965_v29  ;;  %vm29148_vm5 = vmmov %vm29134_vm3 }
 0x344   : > { %29130 = vst [vmem:[#allocation44_spill] sm:$0xff] %v25572_v11  ;;  %19561 = vmatprep.mubr.f32.mxu1 %v25572_v11  ;;  %29136 = vst [vmem:[#allocation48_spill] sm:$0xff] %v25594_v7  ;;  %v25608_v4 = vand.u32 4294901760, %v25594_v7  ;;  %v25613_v13 = vsub.f32 %v1962_v42, %v1962_v42  ;;  %v1968_v29 = vsel %vm29148_vm5, %v25625_v63, 0  ;;  %vm29175_vm5 = vnez %v29036_v32 }
 0x345   : > { %29142 = vst [vmem:[#allocation52_spill] sm:$0xff] %v25611_v44  ;;  %29144 = vst [vmem:[#allocation54_spill] sm:$0xff] %v25618_v3  ;;  %v2069_v11 = vsub.f32 %v25601_v1, %v25611_v44  ;;  %v25660_v38 = vsub.f32 %v1968_v29, %v1968_v29 }
 0x346   : > { %29141 = vst [vmem:[#allocation51_spill] sm:$0xff] %v25608_v4  ;;  %29143 = vst [vmem:[#allocation53_spill] sm:$0xff] %v25613_v13  ;;  %v2059_v24 = vsub.f32 %v25594_v7, %v25608_v4  ;;  %v25628_v31 = vand.u32 4294901760, %v25613_v13 }
 0x347   : > { %v25649_v27 = vand.u32 4294901760, %v2069_v11  ;;  %29153 = vst [vmem:[#allocation61_spill] sm:$0xff] %v25658_v16  ;;  %29154 = vst [vmem:[#allocation62_spill] sm:$0xff] %v25660_v38  ;;  %v25668_v30 = vand.u32 4294901760, %v25660_v38 }
 0x348   : > { %29146 = vst [vmem:[#allocation56_spill] sm:$0xff] %v25628_v31  ;;  %v25645_v6 = vand.u32 4294901760, %v2059_v24  ;;  %vm29165_vm2 = vmmov %vm29134_vm3 }
 0x349   : > { %29152 = vst [vmem:[#allocation60_spill] sm:$0xff] %v25649_v27  ;;  %29157 = vst [vmem:[#allocation64_spill] sm:$0xff] %v25668_v30 }
 0x34a   : > { %29151 = vst [vmem:[#allocation59_spill] sm:$0xff] %v25645_v6  ;;  %vm29166_vm14 = vmmov %vm29165_vm2 }
 0x34b   : > { %vm29168_vm12 = vmmov %vm29165_vm2 }
 0x34c   : > { %vm29170_vm15 = vmmov %vm29165_vm2 }
 0x34d   : > { %vm29171_vm9 = vmmov %vm29165_vm2 }
 0x34e   : > { %vm29173_vm10 = vmmov %vm29165_vm2 }
 0x34f   : > { %vm29174_vm8 = vmmov %vm29165_vm2 }
 0x412   : > { %v1946_v59 = vpop.f32.mrb[2].mxu0 }
 0x413   : > { %v1950_v20 = vmul.f32 %v1946_v59, %v25186_v50  ;;  %v19558_v2 = vpop.f32.mrb[3].mxu0  ;;  %v25634_v50 = vsel %vm25553_vm4, 1.0, %v29086_v34  ;;  %v25639_v59 = vand.u32 4294901760, %v25618_v3  ;;  %vm29156_vm4 = vmmov %vm29134_vm3  ;;  %vm29172_vm3 = vnez %v29026_v10 }
 0x414   : > { %29147 = vst [vmem:[#allocation57_spill] sm:$0xff] %v25634_v50  ;;  %v1971_v45 = vsel %vm29150_vm11, %v25634_v50, 0  ;;  %v1974_v11 = vsel %vm29156_vm4, %v25658_v16, 0  ;;  %vm29176_vm11 = vnez %v29042_v46  ;;  %vm29177_vm4 = vnez %v29048_v33 }
 0x415   : > { %v1978_v42 = vsel %vm28902_vm0, %v1950_v20, 0  ;;  %29149 = vst [vmem:[#allocation58_spill] sm:$0xff] %v25639_v59  ;;  %v2079_v20 = vsub.f32 %v25613_v13, %v25628_v31  ;;  %v2089_v49 = vsub.f32 %v25618_v3, %v25639_v59  ;;  %v25663_v24 = vsub.f32 %v1971_v45, %v1971_v45 }
 0x416   : > { %v25641_v2 = vand.u32 4294901760, %v1978_v42  ;;  %v25685_v37 = vsub.f32 %v1974_v11, %v1974_v11 }
 0x417   : > { %29155 = vst [vmem:[#allocation63_spill] sm:$0xff] %v25663_v24  ;;  %v25677_v58 = vand.u32 4294901760, %v25663_v24  ;;  %v25680_v29 = vand.u32 4294901760, %v2089_v49 }
 0x418   : > { %v2128_v22 = vsub.f32 %v1978_v42, %v25641_v2  ;;  %19559 = vmatprep.subr.mxu1 %v25641_v2  ;;  %v25671_v42 = vand.u32 4294901760, %v2079_v20  ;;  %29161 = vst [vmem:[#allocation68_spill] sm:$0xff] %v25685_v37  ;;  %v2099_v20 = vsub.f32 %v25660_v38, %v25668_v30  ;;  %v25695_v49 = vand.u32 4294901760, %v25685_v37 }
 0x419   : > { %19560 = vmatpush3.msra.mxu1 %v25641_v2  ;;  %29159 = vst [vmem:[#allocation66_spill] sm:$0xff] %v25677_v58  ;;  %29160 = vst [vmem:[#allocation67_spill] sm:$0xff] %v25680_v29 }
 0x41a   : > { %v2129_v5 = vand.u32 4294901760, %v2128_v22  ;;  %19562 = vmatmul.mubr.f32.vlgmr.msra.gmra.mrb[2].mxu1 %v25645_v6  ;;  %29158 = vst [vmem:[#allocation65_spill] sm:$0xff] %v25671_v42  ;;  %22386 = vmatprep.subr.msk.bf16.mxu1 %vm29072_vm6, %v29071_v15  ;;  %v2109_v6 = vsub.f32 %v25663_v24, %v25677_v58  ;;  %29162 = vst [vmem:[#allocation69_spill] sm:$0xff] %v25695_v49  ;;  %v25702_v11 = vand.u32 4294901760, %v2099_v20 }
 0x41b   : > { %19564 = vmatprep.mubr.f32.mxu1 %v25649_v27  ;;  %22388 = vmatpush3.bf16.msk.msra.mxu1 %vm29072_vm6, %v29071_v15  ;;  %v2119_v48 = vsub.f32 %v25685_v37, %v25695_v49 }
 0x41c   : > { %v2130_v45 = vsub.f32 %v2128_v22, %v2129_v5  ;;  %22390 = vmatprep.subr.msk.bf16.mxu1 %vm29073_vm7, %v29071_v15  ;;  %29163 = vst [vmem:[#allocation70_spill] sm:$0xff] %v25702_v11 }
 0x41d   : > { %v25717_v20 = vand.u32 4294901760, %v2119_v48 }
 0x41e   : > { %v2131_v27 = vand.u32 4294901760, %v2130_v45  ;;  %19565 = vmatmul.mubr.f32.gmra.mrb[4].mxu1 %v25671_v42  ;;  %v25709_v45 = vand.u32 4294901760, %v2109_v6 }
 0x41f   : > { %19567 = vmatprep.mubr.f32.mxu1 %v25680_v29  ;;  %22392 = vmatpush3.bf16.msk.msra.mxu1 %vm29073_vm7, %v29071_v15  ;;  %29167 = vst [vmem:[#allocation72_spill] sm:$0xff] %v25717_v20 }
 0x420   : > { %19573 = vmatprep.subr.mxu0 %v2131_v27  ;;  %22394 = vmatprep.subr.msk.bf16.mxu1 %vm29074_vm13, %v29071_v15  ;;  %29164 = vst [vmem:[#allocation71_spill] sm:$0xff] %v25709_v45 }
 0x421   : > { %19574 = vmatpush3.msra.mxu0 %v2131_v27 }
 0x422   : > { %19576 = vmatmul.mubr.msk.f32.vlgmr.msra.gmra.mrb[4].mxu0 %vm29165_vm2, %v25578_v17  ;;  %19587 = vmatprep.subr.mxu0 %v2128_v22 }
 0x423   : > { %19588 = vmatpush3.msra.mxu0 %v2128_v22  ;;  %19578 = vmatprep.mubr.msk.f32.mxu0 %vm29166_vm14, %v25583_v19  ;;  %vm29178_vm14 = vmmov %vm29165_vm2 }
 0x424   : > { %19601 = vmatprep.subr.mxu0 %v25641_v2  ;;  %19568 = vmatmul.mubr.f32.gmra.mrb[6].mxu1 %v25702_v11 }
 0x425   : > { %19570 = vmatprep.mubr.f32.mxu1 %v25709_v45  ;;  %22396 = vmatpush3.bf16.msk.msra.mxu1 %vm29074_vm13, %v29071_v15 }
 0x426   : > { %19579 = vmatmul.mubr.msk.f32.gmra.mrb[6].mxu0 %vm29168_vm12, %v25592_v9  ;;  %22398 = vmatprep.subr.msk.bf16.mxu1 %vm29169_vm1, %v29071_v15  ;;  %vm29179_vm12 = vmmov %vm29165_vm2 }
 0x427   : > { %19581 = vmatprep.mubr.msk.f32.mxu0 %vm29170_vm15, %v25599_v39  ;;  %vm29180_vm15 = vmmov %vm29165_vm2 }
 0x428   : > { %19571 = vmatmul.mubr.f32.gmra.mrb[8].mxu1 %v25717_v20 }
 0x429   : > { %22400 = vmatpush3.bf16.msk.msra.mxu1 %vm29169_vm1, %v29071_v15 }
 0x42a   : > { %19582 = vmatmul.mubr.msk.f32.gmra.mrb[8].mxu0 %vm29171_vm9, %v25625_v63  ;;  %22402 = vmatprep.subr.msk.bf16.mxu1 %vm29172_vm3, %v29071_v15  ;;  %vm29181_vm9 = vmmov %vm29165_vm2 }
 0x42b   : > { %19584 = vmatprep.mubr.msk.f32.mxu0 %vm29173_vm10, %v25634_v50  ;;  %vm29182_vm10 = vmmov %vm29165_vm2 }
 0x42d   : > { %22404 = vmatpush3.bf16.msk.msra.mxu1 %vm29172_vm3, %v29071_v15 }
 0x42e   : > { %19585 = vmatmul.mubr.msk.f32.gmra.mrb[10].mxu0 %vm29174_vm8, %v25658_v16  ;;  %22406 = vmatprep.subr.msk.bf16.mxu1 %vm29175_vm5, %v29071_v15  ;;  %vm29183_vm8 = vmmov %vm29165_vm2 }
 0x42f   : > { %19589 = vmatprep.mubr.f32.mxu0 %v25565_v55 }
 0x431   : > { %22408 = vmatpush3.bf16.msk.msra.mxu1 %vm29175_vm5, %v29071_v15 }
 0x432   : > { %19590 = vmatmul.mubr.f32.vlgmr.msra.gmra.mrb[4].mxu0 %v25594_v7  ;;  %22410 = vmatprep.subr.msk.bf16.mxu1 %vm29176_vm11, %v29071_v15 }
 0x433   : > { %19602 = vmatpush3.msra.mxu0 %v25641_v2  ;;  %19592 = vmatprep.mubr.f32.mxu0 %v25601_v1 }
 0x434   : > { %19615 = vmatprep.subr.mxu0 %v2129_v5 }
 0x435   : > { %22412 = vmatpush3.bf16.msk.msra.mxu1 %vm29176_vm11, %v29071_v15 }
 0x436   : > { %19593 = vmatmul.mubr.f32.gmra.mrb[6].mxu0 %v25613_v13  ;;  %22414 = vmatprep.subr.msk.bf16.mxu1 %vm29177_vm4, %v29071_v15 }
 0x437   : > { %19595 = vmatprep.mubr.f32.mxu0 %v25618_v3 }
 0x439   : > { %22416 = vmatpush3.bf16.msk.msra.mxu1 %vm29177_vm4, %v29071_v15 }
 0x43a   : > { %19596 = vmatmul.mubr.f32.gmra.mrb[8].mxu0 %v25660_v38  ;;  %22418 = vmatprep.subr.bf16.mxu1 %v25232_v23 }
 0x43b   : > { %19598 = vmatprep.mubr.f32.mxu0 %v25663_v24 }
 0x43e   : > { %19599 = vmatmul.mubr.f32.gmra.mrb[10].mxu0 %v25685_v37  ;;  %v24384_v37 = vld [vmem:[%s24644_s30] sm:$0xff] }
 0x43f   : > { %19603 = vmatprep.mubr.f32.mxu0 %v25568_v62 }
 0x442   : > { %19604 = vmatmul.mubr.f32.vlgmr.msra.gmra.mrb[4].mxu0 %v25608_v4  ;;  %v24383_v4 = vld [vmem:[%s24644_s30 + $0x8] sm:$0xff] }
 0x443   : > { %19616 = vmatpush3.msra.mxu0 %v2129_v5  ;;  %19606 = vmatprep.mubr.f32.mxu0 %v25611_v44 }
 0x444   : > { %19629 = vmatprep.subr.mxu0 %v25641_v2 }
 0x446   : > { %19607 = vmatmul.mubr.f32.gmra.mrb[6].mxu0 %v25628_v31 }
 0x447   : > { %19609 = vmatprep.mubr.f32.mxu0 %v25639_v59 }
 0x44a   : > { %19610 = vmatmul.mubr.f32.gmra.mrb[8].mxu0 %v25668_v30 }
 0x44b   : > { %19612 = vmatprep.mubr.f32.mxu0 %v25677_v58 }
 0x44e   : > { %19613 = vmatmul.mubr.f32.gmra.mrb[10].mxu0 %v25695_v49 }
 0x44f   : > { %19617 = vmatprep.mubr.msk.f32.mxu0 %vm29165_vm2, %v25519_v57 }
 0x452   : > { %19618 = vmatmul.mubr.msk.f32.vlgmr.msra.gmra.mrb[4].mxu0 %vm29178_vm14, %v25578_v17  ;;  %vm29184_vm14 = vmmov %vm29165_vm2 }
 0x453   : > { %19630 = vmatpush3.msra.mxu0 %v25641_v2  ;;  %19620 = vmatprep.mubr.msk.f32.mxu0 %vm29179_vm12, %v25583_v19  ;;  %vm29185_vm12 = vmmov %vm29165_vm2 }
 0x454   : > { %19907 = vmatprep.subr.mxu0 %v29111_v25 }
 0x456   : > { %19621 = vmatmul.mubr.msk.f32.gmra.mrb[6].mxu0 %vm29180_vm15, %v25592_v9  ;;  %vm29186_vm15 = vmmov %vm29165_vm2 }
 0x457   : > { %19623 = vmatprep.mubr.msk.f32.mxu0 %vm29181_vm9, %v25599_v39  ;;  %vm29187_vm9 = vmmov %vm29165_vm2 }
 0x45a   : > { %19624 = vmatmul.mubr.msk.f32.gmra.mrb[8].mxu0 %vm29182_vm10, %v25625_v63  ;;  %vm29188_vm10 = vmmov %vm29165_vm2 }
 0x45b   : > { %19626 = vmatprep.mubr.msk.f32.mxu0 %vm29183_vm8, %v25634_v50  ;;  %vm29189_vm8 = vmmov %vm29165_vm2 }
 0x45e   : > { %19627 = vmatmul.mubr.msk.f32.gmra.mrb[10].mxu0 %vm29165_vm2, %v25658_v16 }
 0x45f   : > { %19631 = vmatprep.mubr.msk.f32.mxu0 %vm29184_vm14, %v25519_v57  ;;  %vm29190_vm14 = vmmov %vm29165_vm2 }
 0x462   : > { %19632 = vmatmul.mubr.msk.f32.vlgmr.msra.gmra.mrb[4].mxu0 %vm29185_vm12, %v25578_v17  ;;  %vm29200_vm12 = vmmov 0  }
 0x463   : > { %19634 = vmatprep.mubr.msk.f32.mxu0 %vm29186_vm15, %v25583_v19  ;;  %19908 = vmatpush3.msra.mxu0 %v29111_v25  ;;  %vm29203_vm15 = vcmask 64512  }
 0x464   : > { %19921 = vmatprep.subr.mxu0 %v29086_v34 }
 0x466   : > { %19635 = vmatmul.mubr.msk.f32.gmra.mrb[6].mxu0 %vm29187_vm9, %v25592_v9  ;;  %vm29206_vm9 = vmmov %vm29203_vm15 }
 0x467   : > { %19637 = vmatprep.mubr.msk.f32.mxu0 %vm29188_vm10, %v25599_v39  ;;  %vm29207_vm10 = vmmov %vm29206_vm9 }
 0x46a   : > { %19638 = vmatmul.mubr.msk.f32.gmra.mrb[8].mxu0 %vm29189_vm8, %v25625_v63  ;;  %vm29210_vm8 = vmmov %vm29206_vm9 }
 0x46b   : > { %19640 = vmatprep.mubr.msk.f32.mxu0 %vm29165_vm2, %v25634_v50  ;;  %vm29211_vm2 = vmmov %vm29210_vm8 }
 0x46e   : > { %19641 = vmatmul.mubr.msk.f32.gmra.mrb[10].mxu0 %vm29190_vm14, %v25658_v16  ;;  %vm29214_vm14 = vmmov %vm29211_vm2 }
 0x4ed   : > { %v19563_v27 = vpop.f32.mrb[2].mxu1 }
 0x4ee   : > { %v2052_v48 = vpop.f32.mrb[3].mxu1 }
 0x4f1   : > { %v19566_v5 = vpop.f32.mrb[4].mxu1 }
 0x4f2   : > { %v2072_v22 = vpop.f32.mrb[5].mxu1 }
 0x4f7   : > { %v19569_v6 = vpop.f32.mrb[6].mxu1 }
 0x4f8   : > { %v2092_v2 = vpop.f32.mrb[7].mxu1 }
 0x4fb   : > { %v19572_v49 = vpop.f32.mrb[8].mxu1 }
 0x4fc   : > { %v2112_v58 = vpop.f32.mrb[9].mxu1 }
 0x535   : > { %v19633_v30 = vpop.f32.mrb[4].mxu0 }
 0x536   : > { %v23610_v59 = vadd.f32 %v19633_v30, %v19563_v27  ;;  %v2681_v31 = vpop.f32.mrb[5].mxu0  ;;  %v24385_v30 = vld [vmem:[%s24644_s30 + $0x18] sm:$0xff] }
 0x537   : > { %v23611_v44 = vadd.f32 %v2681_v31, %v2052_v48 }
 0x538   : > { %v2728_v62 = vmul.f32 %v24383_v4, %v23610_v59  ;;  %v24386_v4 = vld [vmem:[%s24644_s30 + $0x10] sm:$0xff] }
 0x539   : > { %v2727_v24 = vmul.f32 %v24384_v37, %v23611_v44  ;;  %v19636_v38 = vpop.f32.mrb[6].mxu0 }
 0x53a   : > { %v25821_v3 = vand.u32 4294901760, %v2728_v62  ;;  %v23612_v13 = vadd.f32 %v19636_v38, %v19566_v5  ;;  %v2693_v1 = vpop.f32.mrb[7].mxu0 }
 0x53b   : > { %v25823_v7 = vand.u32 4294901760, %v2727_v24  ;;  %v23613_v55 = vadd.f32 %v2693_v1, %v2072_v22 }
 0x53c   : > { %v25826_v16 = vsub.f32 %v2728_v62, %v25821_v3  ;;  %v2730_v27 = vmul.f32 %v24385_v30, %v23612_v13 }
 0x53d   : > { %v25830_v31 = vsub.f32 %v2727_v24, %v25823_v7  ;;  %v2729_v37 = vmul.f32 %v24386_v4, %v23613_v55  ;;  %v19639_v44 = vpop.f32.mrb[8].mxu0  ;;  %v24387_v55 = vld [vmem:[%s24644_s30 + $0x28] sm:$0xff] }
 0x53e   : > { %v28835_v59 = vand.u32 4294901760, %v25826_v16  ;;  %v25834_v38 = vand.u32 4294901760, %v2730_v27  ;;  %v23614_v48 = vadd.f32 %v19639_v44, %v19569_v6  ;;  %v2705_v5 = vpop.f32.mrb[9].mxu0  ;;  %v24388_v6 = vld [vmem:[%s24644_s30 + $0x20] sm:$0xff] }
 0x53f   : > { %v25836_v1 = vand.u32 4294901760, %v2729_v37  ;;  %v23615_v62 = vadd.f32 %v2705_v5, %v2092_v2  ;;  %v28844_v22 = vand.u32 4294901760, %v25830_v31 }
 0x540   : > { %v2829_v13 = vsub.f32 %v25826_v16, %v28835_v59  ;;  %v25843_v24 = vsub.f32 %v2730_v27, %v25834_v38  ;;  %v2732_v30 = vmul.f32 %v24387_v55, %v23614_v48 }
 0x541   : > { %v25847_v4 = vsub.f32 %v2729_v37, %v25836_v1  ;;  %v2731_v44 = vmul.f32 %v24388_v6, %v23615_v62  ;;  %v19642_v50 = vpop.f32.mrb[10].mxu0  ;;  %v2819_v2 = vsub.f32 %v25830_v31, %v28844_v22  ;;  %v24389_v6 = vld [vmem:[%s24644_s30 + $0x38] sm:$0xff] }
 0x542   : > { %v25853_v5 = vand.u32 4294901760, %v2732_v30  ;;  %v23616_v59 = vadd.f32 %v19642_v50, %v19572_v49  ;;  %v2717_v63 = vpop.f32.mrb[11].mxu0  ;;  %v2848_v27 = vand.u32 4294901760, %v25843_v24  ;;  %v2830_v9 = vand.u32 4294901760, %v2829_v13  ;;  %v24390_v49 = vld [vmem:[%s24644_s30 + $0x30] sm:$0xff] }
 0x543   : > { %v25856_v39 = vand.u32 4294901760, %v2731_v44  ;;  %v23617_v48 = vadd.f32 %v2717_v63, %v2112_v58  ;;  %v2820_v55 = vand.u32 4294901760, %v2819_v2  ;;  %v2838_v37 = vand.u32 4294901760, %v25847_v4 }
 0x544   : > { %v25860_v62 = vsub.f32 %v2732_v30, %v25853_v5  ;;  %v2734_v19 = vmul.f32 %v24389_v6, %v23616_v59  ;;  %v2849_v22 = vsub.f32 %v25843_v24, %v2848_v27 }
 0x545   : > { %v25867_v50 = vsub.f32 %v2731_v44, %v25856_v39  ;;  %v2733_v17 = vmul.f32 %v24390_v49, %v23617_v48  ;;  %19675 = vmatprep.mubr.f32.mxu1 %v2820_v55  ;;  %v2839_v63 = vsub.f32 %v25847_v4, %v2838_v37 }
 0x546   : > { %v25873_v58 = vand.u32 4294901760, %v2734_v19  ;;  %19676 = vmatmul.mubr.f32.vlgmr.msra.gmra.mrb[10].mxu1 %v2830_v9  ;;  %v2868_v13 = vand.u32 4294901760, %v25860_v62  ;;  %v2850_v48 = vand.u32 4294901760, %v2849_v22 }
 0x547   : > { %v25876_v59 = vand.u32 4294901760, %v2733_v17  ;;  %22420 = vmatpush3.bf16.msra.mxu1 %v25232_v23  ;;  %v2840_v30 = vand.u32 4294901760, %v2839_v63  ;;  %v2858_v44 = vand.u32 4294901760, %v25867_v50 }
 0x548   : > { %v25881_v2 = vsub.f32 %v2734_v19, %v25873_v58  ;;  %22422 = vmatprep.subr.bf16.mxu1 %v25249_v54  ;;  %v2869_v55 = vsub.f32 %v25860_v62, %v2868_v13 }
 0x549   : > { %v25888_v9 = vsub.f32 %v2733_v17, %v25876_v59  ;;  %19678 = vmatprep.mubr.f32.mxu1 %v2840_v30  ;;  %v2859_v6 = vsub.f32 %v25867_v50, %v2858_v44 }
 0x54a   : > { %19679 = vmatmul.mubr.f32.gmra.mrb[12].mxu1 %v2850_v48  ;;  %v2888_v49 = vand.u32 4294901760, %v25881_v2  ;;  %v2870_v63 = vand.u32 4294901760, %v2869_v55  ;;  %v29191_v55 = vand.u32 4294901760, %v25830_v31 }
 0x54b   : > { %22424 = vmatpush3.bf16.msra.mxu1 %v25249_v54  ;;  %v2860_v19 = vand.u32 4294901760, %v2859_v6  ;;  %v2878_v22 = vand.u32 4294901760, %v25888_v9 }
 0x54c   : > { %22426 = vmatprep.subr.bf16.mxu1 %v25263_v8  ;;  %v2889_v17 = vsub.f32 %v25881_v2, %v2888_v49 }
 0x54d   : > { %19681 = vmatprep.mubr.f32.mxu1 %v2860_v19  ;;  %v2879_v30 = vsub.f32 %v25888_v9, %v2878_v22  ;;  %v29193_v19 = vld [vmem:[#allocation31_spill] sm:$0xff] }
 0x54e   : > { %19682 = vmatmul.mubr.f32.gmra.mrb[14].mxu1 %v2870_v63  ;;  %v2890_v6 = vand.u32 4294901760, %v2889_v17 }
 0x54f   : > { %22428 = vmatpush3.bf16.msra.mxu1 %v25263_v8  ;;  %v2880_v48 = vand.u32 4294901760, %v2879_v30 }
 0x550   : > { %22430 = vmatprep.subr.bf16.mxu1 %v25274_v35 }
 0x551   : > { %19684 = vmatprep.mubr.f32.mxu1 %v2880_v48 }
 0x552   : > { %19685 = vmatmul.mubr.f32.gmra.mrb[16].mxu1 %v2890_v6 }
 0x553   : > { %22432 = vmatpush3.bf16.msra.mxu1 %v25274_v35  ;;  %19719 = vmatprep.mubr.f32.mxu1 %v25823_v7 }
 0x554   : > { %22434 = vmatprep.subr.bf16.mxu1 %v25278_v40 }
 0x557   : > { %22436 = vmatpush3.bf16.msra.mxu1 %v25278_v40 }
 0x558   : > { %22438 = vmatprep.subr.bf16.mxu1 %v25122_v18 }
 0x55b   : > { %22440 = vmatpush3.bf16.msra.mxu1 %v25122_v18 }
 0x55c   : > { %22442 = vmatprep.subr.bf16.mxu1 %v25142_v53 }
 0x55f   : > { %22444 = vmatpush3.bf16.msra.mxu1 %v25142_v53 }
 0x560   : > { %22446 = vmatprep.subr.bf16.mxu1 %v25144_v43 }
 0x563   : > { %22448 = vmatpush3.bf16.msra.mxu1 %v25144_v43 }
 0x564   : > { %22450 = vmatprep.subr.bf16.mxu1 %v25290_v56 }
 0x566   : > { %19720 = vmatmul.mubr.f32.vlgmr.msra.gmra.mrb[10].mxu1 %v25821_v3 }
 0x567   : > { %19722 = vmatprep.mubr.f32.mxu1 %v25836_v1  ;;  %22452 = vmatpush3.bf16.msra.mxu1 %v25290_v56 }
 0x568   : > { %22454 = vmatprep.subr.bf16.mxu1 %v25297_v21 }
 0x56a   : > { %19723 = vmatmul.mubr.f32.gmra.mrb[12].mxu1 %v25834_v38 }
 0x56b   : > { %19725 = vmatprep.mubr.f32.mxu1 %v25856_v39  ;;  %22456 = vmatpush3.bf16.msra.mxu1 %v25297_v21 }
 0x56c   : > { %22458 = vmatprep.subr.bf16.mxu1 %v25305_v26 }
 0x56e   : > { %19726 = vmatmul.mubr.f32.gmra.mrb[14].mxu1 %v25853_v5 }
 0x56f   : > { %19728 = vmatprep.mubr.f32.mxu1 %v25876_v59  ;;  %22460 = vmatpush3.bf16.msra.mxu1 %v25305_v26 }
 0x570   : > { %22462 = vmatprep.subr.bf16.mxu1 %v25311_v36 }
 0x572   : > { %19729 = vmatmul.mubr.f32.gmra.mrb[16].mxu1 %v25873_v58 }
 0x573   : > { %22464 = vmatpush3.bf16.msra.mxu1 %v25311_v36  ;;  %19763 = vmatprep.mubr.f32.mxu1 %v25830_v31  ;;  %v29192_v31 = vand.u32 4294901760, %v25826_v16 }
 0x574   : > { %22466 = vmatprep.subr.bf16.mxu1 %v25317_v0 }
 0x577   : > { %22468 = vmatpush3.bf16.msra.mxu1 %v25317_v0 }
 0x578   : > { %22470 = vmatprep.subr.bf16.mxu1 %v25148_v47 }
 0x57b   : > { %22472 = vmatpush3.bf16.msra.mxu1 %v25148_v47 }
 0x57c   : > { %22474 = vmatprep.subr.bf16.mxu1 %v25152_v51 }
 0x57f   : > { %22476 = vmatpush3.bf16.msra.mxu1 %v25152_v51 }
 0x580   : > { %22478 = vmatprep.subr.bf16.mxu1 %v25156_v61 }
 0x583   : > { %22480 = vmatpush3.bf16.msra.mxu1 %v25156_v61 }
 0x584   : > { %22482 = vmatprep.subr.msk.bf16.mxu1 %vm29072_vm6, %v29071_v15 }
 0x586   : > { %19764 = vmatmul.mubr.f32.vlgmr.msra.gmra.mrb[10].mxu1 %v25826_v16  ;;  %v29194_v16 = vld [vmem:[#allocation32_spill] sm:$0xff] }
 0x587   : > { %19766 = vmatprep.mubr.f32.mxu1 %v25847_v4  ;;  %22484 = vmatpush3.bf16.msk.msra.mxu1 %vm29072_vm6, %v29071_v15  ;;  %v29196_v4 = vld [vmem:[#allocation34_spill] sm:$0xff] }
 0x588   : > { %22486 = vmatprep.subr.msk.bf16.mxu1 %vm29073_vm7, %v29071_v15 }
 0x58a   : > { %19767 = vmatmul.mubr.f32.gmra.mrb[12].mxu1 %v25843_v24  ;;  %v29195_v24 = vld [vmem:[#allocation33_spill] sm:$0xff] }
 0x58b   : > { %19769 = vmatprep.mubr.f32.mxu1 %v25867_v50  ;;  %22488 = vmatpush3.bf16.msk.msra.mxu1 %vm29073_vm7, %v29071_v15 }
 0x58c   : > { %22490 = vmatprep.subr.msk.bf16.mxu1 %vm29074_vm13, %v29071_v15 }
 0x58e   : > { %19770 = vmatmul.mubr.f32.gmra.mrb[14].mxu1 %v25860_v62 }
 0x58f   : > { %19772 = vmatprep.mubr.f32.mxu1 %v25888_v9  ;;  %22492 = vmatpush3.bf16.msk.msra.mxu1 %vm29074_vm13, %v29071_v15 }
 0x590   : > { %22494 = vmatprep.subr.msk.bf16.mxu1 %vm29169_vm1, %v29071_v15 }
 0x592   : > { %19773 = vmatmul.mubr.f32.gmra.mrb[16].mxu1 %v25881_v2 }
 0x593   : > { %22496 = vmatpush3.bf16.msk.msra.mxu1 %vm29169_vm1, %v29071_v15  ;;  %19807 = vmatprep.mubr.f32.mxu1 %v29191_v55 }
 0x594   : > { %22498 = vmatprep.subr.msk.bf16.mxu1 %vm29172_vm3, %v29071_v15 }
 0x597   : > { %22500 = vmatpush3.bf16.msk.msra.mxu1 %vm29172_vm3, %v29071_v15 }
 0x598   : > { %22502 = vmatprep.subr.msk.bf16.mxu1 %vm29175_vm5, %v29071_v15 }
 0x59b   : > { %22504 = vmatpush3.bf16.msk.msra.mxu1 %vm29175_vm5, %v29071_v15 }
 0x59c   : > { %22506 = vmatprep.subr.msk.bf16.mxu1 %vm29176_vm11, %v29071_v15 }
 0x59f   : > { %22508 = vmatpush3.bf16.msk.msra.mxu1 %vm29176_vm11, %v29071_v15 }
 0x5a0   : > { %22510 = vmatprep.subr.msk.bf16.mxu1 %vm29177_vm4, %v29071_v15 }
 0x5a3   : > { %22512 = vmatpush3.bf16.msk.msra.mxu1 %vm29177_vm4, %v29071_v15 }
 0x5a4   : > { %22514 = vmatprep.subr.bf16.mxu1 %v25366_v14 }
 0x5a6   : > { %19808 = vmatmul.mubr.f32.vlgmr.msra.gmra.mrb[10].mxu1 %v29192_v31 }
 0x5a7   : > { %19810 = vmatprep.mubr.f32.mxu1 %v2838_v37  ;;  %22516 = vmatpush3.bf16.msra.mxu1 %v25366_v14  ;;  %v29198_v37 = vld [vmem:[#allocation36_spill] sm:$0xff] }
 0x5a8   : > { %22518 = vmatprep.subr.bf16.mxu1 %v25376_v41 }
 0x5aa   : > { %19811 = vmatmul.mubr.f32.gmra.mrb[12].mxu1 %v2848_v27  ;;  %v29197_v27 = vld [vmem:[#allocation35_spill] sm:$0xff] }
 0x5ab   : > { %19813 = vmatprep.mubr.f32.mxu1 %v2858_v44  ;;  %22520 = vmatpush3.bf16.msra.mxu1 %v25376_v41 }
 0x5ac   : > { %22522 = vmatprep.subr.bf16.mxu1 %v29193_v19 }
 0x5ae   : > { %19814 = vmatmul.mubr.f32.gmra.mrb[14].mxu1 %v2868_v13 }
 0x5af   : > { %19816 = vmatprep.mubr.f32.mxu1 %v2878_v22  ;;  %22524 = vmatpush3.bf16.msra.mxu1 %v29193_v19 }
 0x5b0   : > { %22526 = vmatprep.subr.bf16.mxu1 %v29194_v16 }
 0x5b2   : > { %19817 = vmatmul.mubr.f32.gmra.mrb[16].mxu1 %v2888_v49 }
 0x5b3   : > { %22528 = vmatpush3.bf16.msra.mxu1 %v29194_v16  ;;  %19851 = vmatprep.mubr.f32.mxu1 %v25823_v7 }
 0x5b4   : > { %22530 = vmatprep.subr.bf16.mxu1 %v29195_v24 }
 0x5b7   : > { %22532 = vmatpush3.bf16.msra.mxu1 %v29195_v24 }
 0x5b8   : > { %22534 = vmatprep.subr.bf16.mxu1 %v29196_v4 }
 0x5bb   : > { %22536 = vmatpush3.bf16.msra.mxu1 %v29196_v4 }
 0x5bc   : > { %22538 = vmatprep.subr.bf16.mxu1 %v29197_v27 }
 0x5bf   : > { %22540 = vmatpush3.bf16.msra.mxu1 %v29197_v27 }
 0x5c0   : > { %22542 = vmatprep.subr.bf16.mxu1 %v29198_v37 }
 0x5c3   : > { %22544 = vmatpush3.bf16.msra.mxu1 %v29198_v37 }
 0x5c4   : > { %22546 = vmatprep.subr.msk.bf16.mxu1 %vm29072_vm6, %v29071_v15 }
 0x5c6   : > { %19852 = vmatmul.mubr.f32.vlgmr.msra.gmra.mrb[10].mxu1 %v25821_v3 }
 0x5c7   : > { %19854 = vmatprep.mubr.f32.mxu1 %v25836_v1  ;;  %22548 = vmatpush3.bf16.msk.msra.mxu1 %vm29072_vm6, %v29071_v15 }
 0x5c8   : > { %22550 = vmatprep.subr.msk.bf16.mxu1 %vm29073_vm7, %v29071_v15 }
 0x5ca   : > { %19855 = vmatmul.mubr.f32.gmra.mrb[12].mxu1 %v25834_v38 }
 0x5cb   : > { %19857 = vmatprep.mubr.f32.mxu1 %v25856_v39  ;;  %22552 = vmatpush3.bf16.msk.msra.mxu1 %vm29073_vm7, %v29071_v15 }
 0x5cc   : > { %22554 = vmatprep.subr.msk.bf16.mxu1 %vm29074_vm13, %v29071_v15 }
 0x5ce   : > { %19858 = vmatmul.mubr.f32.gmra.mrb[14].mxu1 %v25853_v5 }
 0x5cf   : > { %19860 = vmatprep.mubr.f32.mxu1 %v25876_v59  ;;  %22556 = vmatpush3.bf16.msk.msra.mxu1 %vm29074_vm13, %v29071_v15 }
 0x5d0   : > { %22558 = vmatprep.subr.msk.bf16.mxu1 %vm29169_vm1, %v29071_v15 }
 0x5d2   : > { %19861 = vmatmul.mubr.f32.gmra.mrb[16].mxu1 %v25873_v58 }
 0x5d3   : > { %22560 = vmatpush3.bf16.msk.msra.mxu1 %vm29169_vm1, %v29071_v15  ;;  %19895 = vmatprep.mubr.f32.mxu1 %v25823_v7  ;;  %v29199_v7 = vmov 0.0|0.0  }
 0x5d4   : > { %22562 = vmatprep.subr.msk.bf16.mxu1 %vm29172_vm3, %v29071_v15 }
 0x5d7   : > { %22564 = vmatpush3.bf16.msk.msra.mxu1 %vm29172_vm3, %v29071_v15 }
 0x5d8   : > { %22566 = vmatprep.subr.msk.bf16.mxu1 %vm29175_vm5, %v29071_v15 }
 0x5db   : > { %22568 = vmatpush3.bf16.msk.msra.mxu1 %vm29175_vm5, %v29071_v15 }
 0x5dc   : > { %22570 = vmatprep.subr.msk.bf16.mxu1 %vm29176_vm11, %v29071_v15 }
 0x5df   : > { %22572 = vmatpush3.bf16.msk.msra.mxu1 %vm29176_vm11, %v29071_v15 }
 0x5e0   : > { %22574 = vmatprep.subr.msk.bf16.mxu1 %vm29177_vm4, %v29071_v15 }
 0x5e3   : > { %22576 = vmatpush3.bf16.msk.msra.mxu1 %vm29177_vm4, %v29071_v15 }
 0x5e4   : > { %22577 = vmatprep.subr.bf16.mxu1 %v29199_v7 }
 0x5e6   : > { %19896 = vmatmul.mubr.f32.vlgmr.msra.gmra.mrb[10].mxu1 %v25821_v3 }
 0x5e7   : > { %19898 = vmatprep.mubr.f32.mxu1 %v25836_v1 }
 0x5ea   : > { %19899 = vmatmul.mubr.f32.gmra.mrb[12].mxu1 %v25834_v38 }
 0x5eb   : > { %19901 = vmatprep.mubr.f32.mxu1 %v25856_v39 }
 0x5ee   : > { %19902 = vmatmul.mubr.f32.gmra.mrb[14].mxu1 %v25853_v5 }
 0x5ef   : > { %19904 = vmatprep.mubr.f32.mxu1 %v25876_v59 }
 0x5f2   : > { %19905 = vmatmul.mubr.f32.gmra.mrb[16].mxu1 %v25873_v58 }
 0x5f3   : > { %20091 = vmatprep.mubr.msk.f32.mxu1 %vm29200_vm12, %v29086_v34 }
 0x6b9   : > { %v26093_v62 = vpop.f32.mrb[10].mxu1 }
 0x6ba   : > { %29201 = vst [vmem:[#allocation73_spill] sm:$0xff] %v26093_v62  ;;  %v26095_v50 = vpop.f32.mrb[11].mxu1  ;;  %v3680_v1 = vsel %vm29206_vm9, %v26093_v62, -inf  ;;  %vm29216_vm9 = vmmov %vm29211_vm2 }
 0x6bb   : > { %29202 = vst [vmem:[#allocation74_spill] sm:$0xff] %v26095_v50  ;;  %v3677_v3 = vsel %vm29203_vm15, %v26095_v50, -inf  ;;  %vm29215_vm15 = vmmov %vm29211_vm2 }
 0x6bc   : > { %3678 = vmax.xlane.f32.xlu0 %v3677_v3 }
 0x6bd   : > { %v26099_v38 = vpop.f32.mrb[12].mxu1 }
 0x6be   : > { %29204 = vst [vmem:[#allocation75_spill] sm:$0xff] %v26099_v38  ;;  %v26101_v39 = vpop.f32.mrb[13].mxu1  ;;  %v3686_v59 = vsel %vm29210_vm8, %v26099_v38, -inf  ;;  %vm29218_vm8 = vmmov %vm29211_vm2 }
 0x6bf   : > { %29205 = vst [vmem:[#allocation76_spill] sm:$0xff] %v26101_v39  ;;  %v3683_v5 = vsel %vm29207_vm10, %v26101_v39, -inf  ;;  %vm29217_vm10 = vmmov %vm29211_vm2 }
 0x6c0   : > { %3681 = vmax.xlane.f32.xlu0 %v3680_v1  ;;  %3684 = vmax.xlane.f32.xlu1 %v3683_v5 }
 0x6c1   : > { %v26107_v58 = vpop.f32.mrb[14].mxu1 }
 0x6c2   : > { %29208 = vst [vmem:[#allocation77_spill] sm:$0xff] %v26107_v58  ;;  %v26109_v13 = vpop.f32.mrb[15].mxu1  ;;  %v3692_v49 = vsel %vm29214_vm14, %v26107_v58, -inf  ;;  %vm29219_vm14 = vmmov %vm29211_vm2 }
 0x6c3   : > { %29209 = vst [vmem:[#allocation78_spill] sm:$0xff] %v26109_v13  ;;  %v3689_v44 = vsel %vm29211_vm2, %v26109_v13, -inf }
 0x6c4   : > { %3687 = vmax.xlane.f32.xlu1 %v3686_v59  ;;  %3690 = vmax.xlane.f32.xlu0 %v3689_v44 }
 0x6c5   : > { %v26115_v2 = vpop.f32.mrb[16].mxu1 }
 0x6c6   : > { %29212 = vst [vmem:[#allocation79_spill] sm:$0xff] %v26115_v2  ;;  %v26117_v9 = vpop.f32.mrb[17].mxu1  ;;  %v3698_v63 = vsel %vm29216_vm9, %v26115_v2, -inf  ;;  %vm29221_vm9 = vmmov %vm29211_vm2 }
 0x6c7   : > { %29213 = vst [vmem:[#allocation80_spill] sm:$0xff] %v26117_v9  ;;  %v3695_v22 = vsel %vm29215_vm15, %v26117_v9, -inf  ;;  %vm29220_vm15 = vmmov %vm29211_vm2 }
 0x6c8   : > { %3693 = vmax.xlane.f32.xlu1 %v3692_v49  ;;  %3696 = vmax.xlane.f32.xlu0 %v3695_v22 }
 0x6cc   : > { %3699 = vmax.xlane.f32.xlu1 %v3698_v63 }
 0x749   : > { %v3679_v17 = vpop.xlane.xlu0 %3678 }
 0x74a   : > { %v3701_v30 = vsub.f32 %v26095_v50, %v3679_v17 }
 0x74c   : > { %v3709_v48 = vmul.f32 1.442695, %v3701_v30 }
 0x74d   : > { %v3682_v6 = vpop.xlane.xlu0 %3681  ;;  %v3685_v55 = vpop.xlane.xlu1 %3684 }
 0x74e   : > { %24275 = vpow2.f32 %v3709_v48  ;;  %v3702_v31 = vsub.f32 %v26093_v62, %v3682_v6  ;;  %v3703_v3 = vsub.f32 %v26101_v39, %v3685_v55 }
 0x750   : > { %v3711_v1 = vmul.f32 1.442695, %v3702_v31  ;;  %v3713_v5 = vmul.f32 1.442695, %v3703_v3 }
 0x751   : > { %v3688_v59 = vpop.xlane.xlu1 %3687  ;;  %v3691_v44 = vpop.xlane.xlu0 %3690 }
 0x752   : > { %24277 = vpow2.f32 %v3711_v1  ;;  %v3704_v49 = vsub.f32 %v26099_v38, %v3688_v59  ;;  %v3705_v22 = vsub.f32 %v26109_v13, %v3691_v44 }
 0x753   : > { %24279 = vpow2.f32 %v3713_v5 }
 0x754   : > { %v3715_v63 = vmul.f32 1.442695, %v3704_v49  ;;  %v3717_v17 = vmul.f32 1.442695, %v3705_v22 }
 0x755   : > { %v3694_v30 = vpop.xlane.xlu1 %3693  ;;  %v3697_v50 = vpop.xlane.xlu0 %3696 }
 0x756   : > { %24281 = vpow2.f32 %v3715_v63  ;;  %v3706_v48 = vsub.f32 %v26107_v58, %v3694_v30  ;;  %v3707_v6 = vsub.f32 %v26117_v9, %v3697_v50 }
 0x757   : > { %24283 = vpow2.f32 %v3717_v17 }
 0x758   : > { %v26132_v55 = vpop.eup %24275  ;;  %v3719_v31 = vmul.f32 1.442695, %v3706_v48  ;;  %v3721_v3 = vmul.f32 1.442695, %v3707_v6 }
 0x759   : > { %v3700_v1 = vpop.xlane.xlu1 %3699  ;;  %v3726_v59 = vsel %vm29217_vm10, %v26132_v55, 0  ;;  %vm29222_vm10 = vmmov %vm29211_vm2 }
 0x75a   : > { %24285 = vpow2.f32 %v3719_v31  ;;  %v3708_v5 = vsub.f32 %v26115_v2, %v3700_v1  ;;  %v26137_v44 = vand.u32 4294901760, %v3726_v59 }
 0x75b   : > { %24287 = vpow2.f32 %v3721_v3 }
 0x75c   : > { %v26139_v49 = vpop.eup %24277  ;;  %v3723_v22 = vmul.f32 1.442695, %v3708_v5  ;;  %v26142_v50 = vsub.f32 %v3726_v59, %v26137_v44 }
 0x75d   : > { %v26144_v63 = vpop.eup %24279  ;;  %v3729_v17 = vsel %vm29218_vm8, %v26139_v49, 0  ;;  %vm29223_vm8 = vmmov %vm29211_vm2 }
 0x75e   : > { %v26148_v30 = vand.u32 4294901760, %v3729_v17  ;;  %24289 = vpow2.f32 %v3723_v22  ;;  %v28854_v48 = vand.u32 4294901760, %v26142_v50  ;;  %v3732_v6 = vsel %vm29211_vm2, %v26144_v63, 0 }
 0x75f   : > { %v26153_v31 = vand.u32 4294901760, %v3732_v6 }
 0x760   : > { %v26155_v3 = vpop.eup %24281  ;;  %v26158_v1 = vsub.f32 %v3729_v17, %v26148_v30  ;;  %v3817_v59 = vsub.f32 %v26142_v50, %v28854_v48 }
 0x761   : > { %v26163_v5 = vpop.eup %24283  ;;  %v26166_v22 = vsub.f32 %v3732_v6, %v26153_v31  ;;  %v3735_v9 = vsel %vm29219_vm14, %v26155_v3, 0  ;;  %vm29230_vm14 = vmmov %vm29223_vm8 }
 0x762   : > { %v3818_v2 = vand.u32 4294901760, %v3817_v59  ;;  %v28866_v13 = vand.u32 4294901760, %v26158_v1  ;;  %v26171_v58 = vand.u32 4294901760, %v3735_v9  ;;  %v3738_v17 = vsel %vm29220_vm15, %v26163_v5, 0  ;;  %vm29231_vm15 = vmmov %vm29223_vm8 }
 0x763   : > { %v28870_v39 = vand.u32 4294901760, %v26166_v22  ;;  %v26176_v38 = vand.u32 4294901760, %v3738_v17 }
 0x764   : > { %v26178_v48 = vpop.eup %24285  ;;  %19909 = vmatprep.mubr.f32.mxu0 %v3818_v2  ;;  %v3827_v6 = vsub.f32 %v26158_v1, %v28866_v13  ;;  %v26184_v59 = vsub.f32 %v3735_v9, %v26171_v58 }
 0x765   : > { %v26186_v62 = vpop.eup %24287  ;;  %v3837_v57 = vsub.f32 %v26166_v22, %v28870_v39  ;;  %v26192_v20 = vsub.f32 %v3738_v17, %v26176_v38  ;;  %v3741_v45 = vsel %vm29221_vm9, %v26178_v48, 0  ;;  %vm29232_vm9 = vmmov %vm29223_vm8 }
 0x766   : > { %v3828_v2 = vand.u32 4294901760, %v3827_v6  ;;  %v3846_v11 = vand.u32 4294901760, %v26184_v59  ;;  %v26197_v29 = vand.u32 4294901760, %v3741_v45  ;;  %v3744_v9 = vsel %vm29222_vm10, %v26186_v62, 0  ;;  %vm29233_vm10 = vmmov %vm29223_vm8 }
 0x767   : > { %v3838_v13 = vand.u32 4294901760, %v3837_v57  ;;  %v3856_v42 = vand.u32 4294901760, %v26192_v20  ;;  %v26202_v37 = vand.u32 4294901760, %v3744_v9 }
 0x768   : > { %v26204_v39 = vpop.eup %24289  ;;  %19910 = vmatmul.mubr.f32.vlgmr.msra.gmra.mrb[12].mxu0 %v3828_v2  ;;  %v3847_v17 = vsub.f32 %v26184_v59, %v3846_v11  ;;  %v3865_v27 = vsub.f32 %v3741_v45, %v26197_v29 }
 0x769   : > { %19912 = vmatprep.mubr.f32.mxu0 %v3838_v13  ;;  %v3857_v6 = vsub.f32 %v26192_v20, %v3856_v42  ;;  %19922 = vmatpush3.msra.mxu0 %v29086_v34  ;;  %v3875_v4 = vsub.f32 %v3744_v9, %v26202_v37  ;;  %v3747_v57 = vsel %vm29223_vm8, %v26204_v39, 0 }
 0x76a   : > { %v3848_v24 = vand.u32 4294901760, %v3847_v17  ;;  %v3866_v16 = vand.u32 4294901760, %v3865_v27  ;;  %v26213_v19 = vand.u32 4294901760, %v3747_v57  ;;  %19935 = vmatprep.subr.mxu0 %v29086_v34 }
 0x76b   : > { %v3858_v2 = vand.u32 4294901760, %v3857_v6  ;;  %v3876_v41 = vand.u32 4294901760, %v3875_v4 }
 0x76c   : > { %19913 = vmatmul.mubr.f32.gmra.mrb[14].mxu0 %v3848_v24  ;;  %v3867_v45 = vsub.f32 %v3865_v27, %v3866_v16  ;;  %v3885_v13 = vsub.f32 %v3747_v57, %v26213_v19 }
 0x76d   : > { %19915 = vmatprep.mubr.f32.mxu0 %v3858_v2  ;;  %v3877_v14 = vsub.f32 %v3875_v4, %v3876_v41 }
 0x76e   : > { %v3868_v61 = vand.u32 4294901760, %v3867_v45  ;;  %v3886_v51 = vand.u32 4294901760, %v3885_v13 }
 0x76f   : > { %v3878_v9 = vand.u32 4294901760, %v3877_v14  ;;  %v29226_v14 = vand.u32 4294901760, %v26166_v22 }
 0x770   : > { %19916 = vmatmul.mubr.f32.gmra.mrb[16].mxu0 %v3868_v61  ;;  %v3887_v47 = vsub.f32 %v3885_v13, %v3886_v51  ;;  %v29225_v61 = vand.u32 4294901760, %v26158_v1 }
 0x771   : > { %19918 = vmatprep.mubr.f32.mxu0 %v3878_v9 }
 0x772   : > { %v3888_v17 = vand.u32 4294901760, %v3887_v47  ;;  %v29224_v47 = vand.u32 4294901760, %v26142_v50 }
 0x774   : > { %19919 = vmatmul.mubr.f32.gmra.mrb[18].mxu0 %v3888_v17 }
 0x775   : > { %19923 = vmatprep.mubr.f32.mxu0 %v26137_v44 }
 0x778   : > { %19924 = vmatmul.mubr.f32.vlgmr.msra.gmra.mrb[12].mxu0 %v26148_v30 }
 0x779   : > { %19926 = vmatprep.mubr.f32.mxu0 %v26153_v31  ;;  %19936 = vmatpush3.msra.mxu0 %v29086_v34 }
 0x77a   : > { %19949 = vmatprep.subr.mxu0 %v29111_v25 }
 0x77c   : > { %19927 = vmatmul.mubr.f32.gmra.mrb[14].mxu0 %v26171_v58 }
 0x77d   : > { %19929 = vmatprep.mubr.f32.mxu0 %v26176_v38 }
 0x780   : > { %19930 = vmatmul.mubr.f32.gmra.mrb[16].mxu0 %v26197_v29 }
 0x781   : > { %19932 = vmatprep.mubr.f32.mxu0 %v26202_v37 }
 0x784   : > { %19933 = vmatmul.mubr.f32.gmra.mrb[18].mxu0 %v26213_v19 }
 0x785   : > { %19937 = vmatprep.mubr.f32.mxu0 %v26142_v50 }
 0x788   : > { %19938 = vmatmul.mubr.f32.vlgmr.msra.gmra.mrb[12].mxu0 %v26158_v1 }
 0x789   : > { %19940 = vmatprep.mubr.f32.mxu0 %v26166_v22  ;;  %19950 = vmatpush3.msra.mxu0 %v29111_v25 }
 0x78a   : > { %19963 = vmatprep.subr.mxu0 %v29086_v34 }
 0x78c   : > { %19941 = vmatmul.mubr.f32.gmra.mrb[14].mxu0 %v26184_v59 }
 0x78d   : > { %19943 = vmatprep.mubr.f32.mxu0 %v26192_v20  ;;  %v29227_v20 = vld [vmem:[#allocation37_spill] sm:$0xff] }
 0x78e   : > { %vm29228_vm2 = vnez %v29227_v20 }
 0x790   : > { %19944 = vmatmul.mubr.f32.gmra.mrb[16].mxu0 %v3865_v27 }
 0x791   : > { %19946 = vmatprep.mubr.f32.mxu0 %v3875_v4 }
 0x794   : > { %19947 = vmatmul.mubr.f32.gmra.mrb[18].mxu0 %v3885_v13 }
 0x795   : > { %19951 = vmatprep.mubr.f32.mxu0 %v29224_v47 }
 0x798   : > { %19952 = vmatmul.mubr.f32.vlgmr.msra.gmra.mrb[12].mxu0 %v29225_v61 }
 0x799   : > { %19954 = vmatprep.mubr.f32.mxu0 %v29226_v14  ;;  %19964 = vmatpush3.msra.mxu0 %v29086_v34 }
 0x79a   : > { %19977 = vmatprep.subr.mxu0 %v29111_v25 }
 0x79c   : > { %19955 = vmatmul.mubr.f32.gmra.mrb[14].mxu0 %v3846_v11 }
 0x79d   : > { %19957 = vmatprep.mubr.f32.mxu0 %v3856_v42 }
 0x7a0   : > { %19958 = vmatmul.mubr.f32.gmra.mrb[16].mxu0 %v3866_v16 }
 0x7a1   : > { %19960 = vmatprep.mubr.f32.mxu0 %v3876_v41  ;;  %v29229_v41 = vld [vmem:[#allocation40_spill] sm:$0xff] }
 0x7a4   : > { %19961 = vmatmul.mubr.f32.gmra.mrb[18].mxu0 %v3886_v51  ;;  %v24521_v51 = vmov 0  }
 0x7a5   : > { %19965 = vmatprep.mubr.f32.mxu0 %v26137_v44  ;;  %24270 = vset.pattern.permute.xlu1 %v24521_v51 }
 0x7a6   : > { %24269 = vset.pattern.permute.xlu0 %v24521_v51 }
 0x7a8   : > { %19966 = vmatmul.mubr.f32.vlgmr.msra.gmra.mrb[12].mxu0 %v26148_v30 }
 0x7a9   : > { %19968 = vmatprep.mubr.f32.mxu0 %v26153_v31  ;;  %19978 = vmatpush3.msra.mxu0 %v29111_v25 }
 0x7aa   : > { %19991 = vmatprep.subr.msk.mxu0 %vm29228_vm2, %v29111_v25 }
 0x7ac   : > { %19969 = vmatmul.mubr.f32.gmra.mrb[14].mxu0 %v26171_v58 }
 0x7ad   : > { %19971 = vmatprep.mubr.f32.mxu0 %v26176_v38 }
 0x7b0   : > { %19972 = vmatmul.mubr.f32.gmra.mrb[16].mxu0 %v26197_v29 }
 0x7b1   : > { %19974 = vmatprep.mubr.f32.mxu0 %v26202_v37 }
 0x7b4   : > { %19975 = vmatmul.mubr.f32.gmra.mrb[18].mxu0 %v26213_v19 }
 0x7b5   : > { %19979 = vmatprep.mubr.f32.mxu0 %v26137_v44 }
 0x7b8   : > { %19980 = vmatmul.mubr.f32.vlgmr.msra.gmra.mrb[12].mxu0 %v26148_v30 }
 0x7b9   : > { %19982 = vmatprep.mubr.f32.mxu0 %v26153_v31  ;;  %19992 = vmatpush3.msk.msra.mxu0 %vm29228_vm2, %v29111_v25 }
 0x7ba   : > { %20005 = vmatprep.subr.mxu0 %v29229_v41 }
 0x7bc   : > { %19983 = vmatmul.mubr.f32.gmra.mrb[14].mxu0 %v26171_v58 }
 0x7bd   : > { %19985 = vmatprep.mubr.f32.mxu0 %v26176_v38 }
 0x7c0   : > { %19986 = vmatmul.mubr.f32.gmra.mrb[16].mxu0 %v26197_v29 }
 0x7c1   : > { %19988 = vmatprep.mubr.f32.mxu0 %v26202_v37 }
 0x7c4   : > { %19989 = vmatmul.mubr.f32.gmra.mrb[18].mxu0 %v26213_v19 }
 0x88b   : > { %v19981_v42 = vpop.f32.mrb[12].mxu0 }
 0x88c   : > { %24291 = vrcp.f32 %v19981_v42  ;;  %v4437_v11 = vpop.f32.mrb[13].mxu0 }
 0x88d   : > { %24293 = vrcp.f32 %v4437_v11 }
 0x88f   : > { %v19984_v16 = vpop.f32.mrb[14].mxu0 }
 0x890   : > { %24295 = vrcp.f32 %v19984_v16  ;;  %v4449_v24 = vpop.f32.mrb[15].mxu0 }
 0x891   : > { %24297 = vrcp.f32 %v4449_v24 }
 0x893   : > { %v19987_v4 = vpop.f32.mrb[16].mxu0 }
 0x894   : > { %24299 = vrcp.f32 %v19987_v4  ;;  %v4461_v27 = vpop.f32.mrb[17].mxu0 }
 0x895   : > { %24301 = vrcp.f32 %v4461_v27 }
 0x896   : > { %v24292_v38 = vpop.eup %24291 }
 0x897   : > { %v24294_v29 = vpop.eup %24293  ;;  %v4492_v37 = vmul.f32 %v24292_v38, %v19981_v42  ;;  %v19990_v58 = vpop.f32.mrb[18].mxu0 }
 0x898   : > { %v4491_v19 = vmul.f32 %v24294_v29, %v4437_v11  ;;  %v4473_v44 = vpop.f32.mrb[19].mxu0 }
 0x899   : > { %v4500_v50 = vsub.f32 2.0, %v4492_v37  ;;  %24303 = vrcp.f32 %v4473_v44 }
 0x89a   : > { %v24296_v30 = vpop.eup %24295  ;;  %v4499_v31 = vsub.f32 2.0, %v4491_v19  ;;  %24305 = vrcp.f32 %v19990_v58 }
 0x89b   : > { %v24298_v1 = vpop.eup %24297  ;;  %v4494_v22 = vmul.f32 %v24296_v30, %v19984_v16  ;;  %v4508_v59 = vmul.f32 %v24292_v38, %v4500_v50 }
 0x89c   : > { %v4493_v6 = vmul.f32 %v24298_v1, %v4449_v24  ;;  %v4507_v57 = vmul.f32 %v24294_v29, %v4499_v31 }
 0x89d   : > { %v4502_v2 = vsub.f32 2.0, %v4494_v22  ;;  %4522 = vperm.xlu1 %24270, %v4508_v59  }
 0x89e   : > { %v24300_v45 = vpop.eup %24299  ;;  %4517 = vperm.xlu0 %24269, %v4507_v57   ;;  %v4501_v13 = vsub.f32 2.0, %v4493_v6 }
 0x89f   : > { %v4496_v9 = vmul.f32 %v24300_v45, %v19987_v4  ;;  %v4510_v17 = vmul.f32 %v24296_v30, %v4502_v2  ;;  %v24302_v47 = vpop.eup %24301 }
 0x8a0   : > { %v4495_v14 = vmul.f32 %v24302_v47, %v4461_v27  ;;  %v4509_v51 = vmul.f32 %v24298_v1, %v4501_v13 }
 0x8a1   : > { %4532 = vperm.xlu1 %24270, %v4510_v17   ;;  %v4504_v61 = vsub.f32 2.0, %v4496_v9 }
 0x8a2   : > { %v4503_v11 = vsub.f32 2.0, %v4495_v14 }
 0x8a3   : > { %v24304_v42 = vpop.eup %24303  ;;  %v4512_v38 = vmul.f32 %v24300_v45, %v4504_v61 }
 0x8a4   : > { %v4497_v16 = vmul.f32 %v24304_v42, %v4473_v44  ;;  %v24306_v24 = vpop.eup %24305  ;;  %v4511_v19 = vmul.f32 %v24302_v47, %v4503_v11 }
 0x8a5   : > { %4527 = vperm.xlu1 %24270, %v4509_v51   ;;  %v4498_v29 = vmul.f32 %v24306_v24, %v19990_v58 }
 0x8a6   : > { %v4505_v37 = vsub.f32 2.0, %v4497_v16 }
 0x8a7   : > { %v4506_v50 = vsub.f32 2.0, %v4498_v29 }
 0x8a8   : > { %v4513_v31 = vmul.f32 %v24304_v42, %v4505_v37 }
 0x8a9   : > { %4542 = vperm.xlu1 %24270, %v4512_v38   ;;  %v4514_v4 = vmul.f32 %v24306_v24, %v4506_v50 }
 0x8ad   : > { %4537 = vperm.xlu1 %24270, %v4511_v19  }
 0x8b1   : > { %4547 = vperm.xlu1 %24270, %v4513_v31  }
 0x8b5   : > { %4552 = vperm.xlu1 %24270, %v4514_v4  }
 0x91c   : > { %v4523_v30 = vpop.permute.xlu1 %4522 }
 0x91d   : > { %v4556_v27 = vmul.f32 %v26139_v49, %v4523_v30  ;;  %v4518_v1 = vpop.permute.xlu0 %4517 }
 0x91e   : > { %v4555_v22 = vmul.f32 %v26132_v55, %v4518_v1 }
 0x91f   : > { %v4567_v44 = vsel %vm29230_vm14, %v4556_v27, 0  ;;  %vm29235_vm14 = vmmov %vm29223_vm8 }
 0x920   : > { %v26269_v59 = vand.u32 4294901760, %v4567_v44  ;;  %v4564_v58 = vsel %vm29231_vm15, %v4555_v22, 0  ;;  %v4533_v6 = vpop.permute.xlu1 %4532  ;;  %v29234_v22 = vld [vmem:[#allocation38_spill] sm:$0xff]  ;;  %vm29236_vm15 = vmmov %vm29223_vm8 }
 0x921   : > { %v26272_v57 = vand.u32 4294901760, %v4564_v58  ;;  %v4558_v2 = vmul.f32 %v26155_v3, %v4533_v6 }
 0x922   : > { %v26276_v45 = vsub.f32 %v4567_v44, %v26269_v59 }
 0x923   : > { %v26279_v13 = vsub.f32 %v4564_v58, %v26272_v57  ;;  %v4573_v49 = vsel %vm29232_vm9, %v4558_v2, 0  ;;  %vm29237_vm9 = vmmov %vm29223_vm8 }
 0x924   : > { %v4665_v55 = vand.u32 4294901760, %v26276_v45  ;;  %v26283_v9 = vand.u32 4294901760, %v4573_v49  ;;  %v4528_v17 = vpop.permute.xlu1 %4527 }
 0x925   : > { %v4557_v47 = vmul.f32 %v26144_v63, %v4528_v17  ;;  %v4655_v61 = vand.u32 4294901760, %v26279_v13 }
 0x926   : > { %v4666_v3 = vsub.f32 %v26276_v45, %v4665_v55  ;;  %v26291_v14 = vsub.f32 %v4573_v49, %v26283_v9 }
 0x927   : > { %v4570_v51 = vsel %vm29233_vm10, %v4557_v47, 0  ;;  %v4656_v42 = vsub.f32 %v26279_v13, %v4655_v61  ;;  %vm29243_vm10 = vcmask 523264  }
 0x928   : > { %v26297_v11 = vand.u32 4294901760, %v4570_v51  ;;  %v4543_v16 = vpop.permute.xlu1 %4542  ;;  %v4685_v24 = vand.u32 4294901760, %v26291_v14  ;;  %v4667_v29 = vand.u32 4294901760, %v4666_v3 }
 0x929   : > { %v4560_v63 = vmul.f32 %v26178_v48, %v4543_v16  ;;  %v4657_v38 = vand.u32 4294901760, %v4656_v42 }
 0x92a   : > { %v26302_v37 = vsub.f32 %v4570_v51, %v26297_v11  ;;  %v4686_v48 = vsub.f32 %v26291_v14, %v4685_v24 }
 0x92b   : > { %v4579_v19 = vsel %vm29223_vm8, %v4560_v63, 0  ;;  %19993 = vmatprep.mubr.f32.mxu0 %v4657_v38  ;;  %vm29247_vm8 = vmmov %vm29243_vm10 }
 0x92c   : > { %v26305_v50 = vand.u32 4294901760, %v4579_v19  ;;  %19994 = vmatmul.mubr.f32.vlgmr.msra.gmra.mrb[20].mxu0 %v4667_v29  ;;  %v4538_v31 = vpop.permute.xlu1 %4537  ;;  %v4675_v4 = vand.u32 4294901760, %v26302_v37  ;;  %v4687_v49 = vand.u32 4294901760, %v4686_v48 }
 0x92d   : > { %v4559_v30 = vmul.f32 %v26163_v5, %v4538_v31  ;;  %20006 = vmatpush3.msra.mxu0 %v29229_v41 }
 0x92e   : > { %v26314_v27 = vsub.f32 %v4579_v19, %v26305_v50  ;;  %v4676_v1 = vsub.f32 %v26302_v37, %v4675_v4  ;;  %20019 = vmatprep.subr.mxu0 %v29234_v22 }
 0x92f   : > { %v4576_v44 = vsel %vm29235_vm14, %v4559_v30, 0  ;;  %vm29248_vm14 = vmmov %vm29247_vm8 }
 0x930   : > { %v26319_v58 = vand.u32 4294901760, %v4576_v44  ;;  %v4548_v6 = vpop.permute.xlu1 %4547  ;;  %v4677_v2 = vand.u32 4294901760, %v4676_v1  ;;  %v4705_v17 = vand.u32 4294901760, %v26314_v27 }
 0x931   : > { %v4561_v5 = vmul.f32 %v26186_v62, %v4548_v6 }
 0x932   : > { %v4694_v47 = vsub.f32 %v4576_v44, %v26319_v58  ;;  %19996 = vmatprep.mubr.f32.mxu0 %v4677_v2  ;;  %v4706_v38 = vsub.f32 %v26314_v27, %v4705_v17 }
 0x933   : > { %v4582_v3 = vsel %vm29236_vm15, %v4561_v5, 0  ;;  %19997 = vmatmul.mubr.f32.gmra.mrb[22].mxu0 %v4687_v49 }
 0x934   : > { %v26325_v51 = vand.u32 4294901760, %v4582_v3  ;;  %v4553_v42 = vpop.permute.xlu1 %4552  ;;  %v4695_v16 = vand.u32 4294901760, %v4694_v47  ;;  %v4707_v1 = vand.u32 4294901760, %v4706_v38 }
 0x935   : > { %v4562_v63 = vmul.f32 %v26204_v39, %v4553_v42 }
 0x936   : > { %v4714_v29 = vsub.f32 %v4582_v3, %v26325_v51  ;;  %v4696_v62 = vsub.f32 %v4694_v47, %v4695_v16  ;;  %v29238_v3 = vld [vmem:[#allocation39_spill] sm:$0xff] }
 0x937   : > { %v4585_v19 = vsel %vm29237_vm9, %v4562_v63, 0 }
 0x938   : > { %v26331_v31 = vand.u32 4294901760, %v4585_v19  ;;  %v4697_v30 = vand.u32 4294901760, %v4696_v62  ;;  %v4715_v48 = vand.u32 4294901760, %v4714_v29 }
 0x93a   : > { %v4724_v44 = vsub.f32 %v4585_v19, %v26331_v31  ;;  %19999 = vmatprep.mubr.f32.mxu0 %v4697_v30  ;;  %v4716_v6 = vsub.f32 %v4714_v29, %v4715_v48 }
 0x93b   : > { %20000 = vmatmul.mubr.f32.gmra.mrb[24].mxu0 %v4707_v1 }
 0x93c   : > { %v4717_v2 = vand.u32 4294901760, %v4716_v6  ;;  %v4725_v5 = vand.u32 4294901760, %v4724_v44 }
 0x93e   : > { %20002 = vmatprep.mubr.f32.mxu0 %v4717_v2  ;;  %v4726_v39 = vsub.f32 %v4724_v44, %v4725_v5  ;;  %v26444_v2 = vld [vmem:[%s24644_s30 + $0x20] sm:$0xff] }
 0x940   : > { %v4727_v49 = vand.u32 4294901760, %v4726_v39 }
 0x942   : > { %20003 = vmatmul.mubr.f32.gmra.mrb[26].mxu0 %v4727_v49 }
 0x943   : > { %20007 = vmatprep.mubr.f32.mxu0 %v26272_v57 }
 0x946   : > { %20008 = vmatmul.mubr.f32.vlgmr.msra.gmra.mrb[20].mxu0 %v26269_v59 }
 0x947   : > { %20010 = vmatprep.mubr.f32.mxu0 %v26297_v11  ;;  %20020 = vmatpush3.msra.mxu0 %v29234_v22 }
 0x948   : > { %20033 = vmatprep.subr.msk.mxu0 %vm29228_vm2, %v29111_v25 }
 0x94a   : > { %20011 = vmatmul.mubr.f32.gmra.mrb[22].mxu0 %v26283_v9 }
 0x94b   : > { %20013 = vmatprep.mubr.f32.mxu0 %v26319_v58 }
 0x94e   : > { %20014 = vmatmul.mubr.f32.gmra.mrb[24].mxu0 %v26305_v50 }
 0x94f   : > { %20016 = vmatprep.mubr.f32.mxu0 %v26325_v51 }
 0x952   : > { %20017 = vmatmul.mubr.f32.gmra.mrb[26].mxu0 %v26331_v31 }
 0x953   : > { %20021 = vmatprep.mubr.f32.mxu0 %v26279_v13 }
 0x956   : > { %20022 = vmatmul.mubr.f32.vlgmr.msra.gmra.mrb[20].mxu0 %v26276_v45 }
 0x957   : > { %20024 = vmatprep.mubr.f32.mxu0 %v26302_v37  ;;  %20034 = vmatpush3.msk.msra.mxu0 %vm29228_vm2, %v29111_v25  ;;  %v26414_v37 = vld [vmem:[%s24644_s30 + $0x18] sm:$0xff] }
 0x958   : > { %20047 = vmatprep.subr.mxu0 %v29238_v3 }
 0x95a   : > { %20025 = vmatmul.mubr.f32.gmra.mrb[22].mxu0 %v26291_v14 }
 0x95b   : > { %20027 = vmatprep.mubr.f32.mxu0 %v4694_v47 }
 0x95e   : > { %20028 = vmatmul.mubr.f32.gmra.mrb[24].mxu0 %v26314_v27 }
 0x95f   : > { %20030 = vmatprep.mubr.f32.mxu0 %v4714_v29 }
 0x962   : > { %20031 = vmatmul.mubr.f32.gmra.mrb[26].mxu0 %v4724_v44 }
 0x963   : > { %20035 = vmatprep.mubr.f32.mxu0 %v4655_v61 }
 0x966   : > { %20036 = vmatmul.mubr.f32.vlgmr.msra.gmra.mrb[20].mxu0 %v4665_v55  ;;  %v26408_v55 = vld [vmem:[%s24644_s30] sm:$0xff] }
 0x967   : > { %20038 = vmatprep.mubr.f32.mxu0 %v4675_v4  ;;  %20048 = vmatpush3.msra.mxu0 %v29238_v3 }
 0x968   : > { %20061 = vmatprep.subr.msk.mxu0 %vm29228_vm2, %v29111_v25 }
 0x96a   : > { %20039 = vmatmul.mubr.f32.gmra.mrb[22].mxu0 %v4685_v24 }
 0x96b   : > { %20041 = vmatprep.mubr.f32.mxu0 %v4695_v16 }
 0x96e   : > { %20042 = vmatmul.mubr.f32.gmra.mrb[24].mxu0 %v4705_v17  ;;  %v26422_v17 = vld [vmem:[%s24644_s30 + $0x10] sm:$0xff] }
 0x96f   : > { %20044 = vmatprep.mubr.f32.mxu0 %v4715_v48 }
 0x972   : > { %20045 = vmatmul.mubr.f32.gmra.mrb[26].mxu0 %v4725_v5 }
 0x973   : > { %20049 = vmatprep.mubr.f32.mxu0 %v26272_v57 }
 0x976   : > { %20050 = vmatmul.mubr.f32.vlgmr.msra.gmra.mrb[20].mxu0 %v26269_v59 }
 0x977   : > { %20052 = vmatprep.mubr.f32.mxu0 %v26297_v11  ;;  %20062 = vmatpush3.msk.msra.mxu0 %vm29228_vm2, %v29111_v25 }
 0x978   : > { %22673 = vmatprep.subr.bf16.mxu0 %v29199_v7 }
 0x97a   : > { %20053 = vmatmul.mubr.f32.gmra.mrb[22].mxu0 %v26283_v9 }
 0x97b   : > { %20055 = vmatprep.mubr.f32.mxu0 %v26319_v58 }
 0x97e   : > { %20056 = vmatmul.mubr.f32.gmra.mrb[24].mxu0 %v26305_v50 }
 0x97f   : > { %20058 = vmatprep.mubr.f32.mxu0 %v26325_v51 }
 0x982   : > { %20059 = vmatmul.mubr.f32.gmra.mrb[26].mxu0 %v26331_v31 }
 0x983   : > { %20063 = vmatprep.mubr.f32.mxu0 %v26272_v57  ;;  %v26404_v57 = vld [vmem:[%s24644_s30 + $0x8] sm:$0xff] }
 0x986   : > { %20064 = vmatmul.mubr.f32.vlgmr.msra.gmra.mrb[20].mxu0 %v26269_v59 }
 0x987   : > { %20066 = vmatprep.mubr.f32.mxu0 %v26297_v11  ;;  %22675 = vmatpush3.bf16.msra.mxu0 %v25232_v23 }
 0x988   : > { %22676 = vmatprep.subr.bf16.mxu0 %v29199_v7 }
 0x98a   : > { %20067 = vmatmul.mubr.f32.gmra.mrb[22].mxu0 %v26283_v9 }
 0x98b   : > { %20069 = vmatprep.mubr.f32.mxu0 %v26319_v58  ;;  %22678 = vmatpush3.bf16.msra.mxu0 %v25249_v54 }
 0x98c   : > { %22679 = vmatprep.subr.bf16.mxu0 %v29199_v7 }
 0x98e   : > { %20070 = vmatmul.mubr.f32.gmra.mrb[24].mxu0 %v26305_v50 }
 0x98f   : > { %20072 = vmatprep.mubr.f32.mxu0 %v26325_v51  ;;  %22681 = vmatpush3.bf16.msra.mxu0 %v25263_v8 }
 0x990   : > { %22682 = vmatprep.subr.bf16.mxu0 %v29199_v7 }
 0x992   : > { %20073 = vmatmul.mubr.f32.gmra.mrb[26].mxu0 %v26331_v31  ;;  %v26434_v31 = vld [vmem:[%s24644_s30 + $0x28] sm:$0xff] }
 0x993   : > { %22684 = vmatpush3.bf16.msra.mxu0 %v25274_v35  ;;  %20256 = vmatprep.mubr.msk.f32.mxu0 %vm29200_vm12, %v29086_v34 }
 0x994   : > { %22685 = vmatprep.subr.bf16.mxu0 %v29199_v7 }
 0x997   : > { %22687 = vmatpush3.bf16.msra.mxu0 %v25278_v40 }
 0x998   : > { %22688 = vmatprep.subr.bf16.mxu0 %v29199_v7 }
 0x99b   : > { %22690 = vmatpush3.bf16.msra.mxu0 %v25122_v18 }
 0x99c   : > { %22691 = vmatprep.subr.bf16.mxu0 %v29199_v7 }
 0x99f   : > { %22693 = vmatpush3.bf16.msra.mxu0 %v25142_v53 }
 0x9a0   : > { %22694 = vmatprep.subr.bf16.mxu0 %v29199_v7 }
 0x9a3   : > { %22696 = vmatpush3.bf16.msra.mxu0 %v25144_v43 }
 0x9a4   : > { %22697 = vmatprep.subr.bf16.mxu0 %v29199_v7 }
 0xa59   : > { %v20065_v59 = vpop.f32.mrb[20].mxu0 }
 0xa5a   : > { %v5335_v45 = vmul.f32 %v26404_v57, %v20065_v59  ;;  %v5288_v13 = vpop.f32.mrb[21].mxu0 }
 0xa5b   : > { %v5334_v9 = vmul.f32 %v26408_v55, %v5288_v13 }
 0xa5c   : > { %v5346_v61 = vand.u32 4294901760, %v5335_v45 }
 0xa5d   : > { %v5343_v14 = vand.u32 4294901760, %v5334_v9  ;;  %v20068_v11 = vpop.f32.mrb[22].mxu0 }
 0xa5e   : > { %v26411_v24 = vsub.f32 %v5335_v45, %v5346_v61  ;;  %v5337_v50 = vmul.f32 %v26414_v37, %v20068_v11  ;;  %v5300_v4 = vpop.f32.mrb[23].mxu0 }
 0xa5f   : > { %v26417_v27 = vpack.c.bf16 %v5346_v61, %v5343_v14  ;;  %v26419_v58 = vsub.f32 %v5334_v9, %v5343_v14  ;;  %v5336_v47 = vmul.f32 %v26422_v17, %v5300_v4 }
 0xa60   : > { %v5435_v51 = vand.u32 4294901760, %v26411_v24  ;;  %v5352_v42 = vand.u32 4294901760, %v5337_v50 }
 0xa61   : > { %v5428_v16 = vand.u32 4294901760, %v26419_v58  ;;  %v5349_v38 = vand.u32 4294901760, %v5336_v47  ;;  %v20071_v29 = vpop.f32.mrb[24].mxu0  ;;  %22579 = vmatpush3.bf16.msra.mxu1 %v26417_v27 }
 0xa62   : > { %v5436_v62 = vsub.f32 %v26411_v24, %v5435_v51  ;;  %v26431_v19 = vsub.f32 %v5337_v50, %v5352_v42  ;;  %v5339_v30 = vmul.f32 %v26434_v31, %v20071_v29  ;;  %v5312_v48 = vpop.f32.mrb[25].mxu0  ;;  %22580 = vmatprep.subr.bf16.mxu1 %v29199_v7 }
 0xa63   : > { %v5429_v1 = vsub.f32 %v26419_v58, %v5428_v16  ;;  %v26439_v44 = vpack.c.bf16 %v5352_v42, %v5349_v38  ;;  %v26441_v6 = vsub.f32 %v5336_v47, %v5349_v38  ;;  %v5338_v5 = vmul.f32 %v26444_v2, %v5312_v48  ;;  %v26456_v47 = vld [vmem:[%s24644_s30 + $0x38] sm:$0xff] }
 0xa64   : > { %v5437_v39 = vand.u32 4294901760, %v5436_v62  ;;  %v5449_v49 = vand.u32 4294901760, %v26431_v19  ;;  %v5358_v59 = vand.u32 4294901760, %v5339_v30  ;;  %v26448_v45 = vpack.c.bf16 %v5435_v51, %v5428_v16  ;;  %29239 = vst [vmem:[#allocation37_spill] sm:$0xff] %v26456_v47  ;;  %v26464_v62 = vld [vmem:[%s24644_s30 + $0x30] sm:$0xff] }
 0xa65   : > { %v5430_v13 = vand.u32 4294901760, %v5429_v1  ;;  %v5442_v9 = vand.u32 4294901760, %v26441_v6  ;;  %v22605_v61 = vpack.c.bf16 %v26431_v19, %v26441_v6  ;;  %v5355_v14 = vand.u32 4294901760, %v5338_v5  ;;  %v20074_v11 = vpop.f32.mrb[26].mxu0  ;;  %22582 = vmatpush3.bf16.msra.mxu1 %v26439_v44  ;;  %29240 = vst [vmem:[#allocation81_spill] sm:$0xff] %v26464_v62 }
 0xa66   : > { %v5450_v50 = vsub.f32 %v26431_v19, %v5449_v49  ;;  %v5462_v4 = vsub.f32 %v5339_v30, %v5358_v59  ;;  %v5341_v42 = vmul.f32 %v26456_v47, %v20074_v11  ;;  %v5324_v51 = vpop.f32.mrb[27].mxu0  ;;  %22583 = vmatprep.subr.bf16.mxu1 %v29199_v7 }
 0xa67   : > { %v5443_v16 = vsub.f32 %v26441_v6, %v5442_v9  ;;  %v26461_v38 = vpack.c.bf16 %v5358_v59, %v5355_v14  ;;  %v5455_v29 = vsub.f32 %v5338_v5, %v5355_v14  ;;  %v5340_v48 = vmul.f32 %v26464_v62, %v5324_v51 }
 0xa68   : > { %v5451_v1 = vand.u32 4294901760, %v5450_v50  ;;  %v5463_v63 = vand.u32 4294901760, %v5462_v4  ;;  %v5364_v19 = vand.u32 4294901760, %v5341_v42  ;;  %v22590_v30 = vpack.c.bf16 %v5437_v39, %v5430_v13 }
 0xa69   : > { %v5444_v43 = vand.u32 4294901760, %v5443_v16  ;;  %v5456_v53 = vand.u32 4294901760, %v5455_v29  ;;  %v22608_v18 = vpack.c.bf16 %v5462_v4, %v5455_v29  ;;  %v5361_v11 = vand.u32 4294901760, %v5340_v48  ;;  %22585 = vmatpush3.bf16.msra.mxu1 %v26461_v38 }
 0xa6a   : > { %v5464_v40 = vsub.f32 %v5462_v4, %v5463_v63  ;;  %v5476_v35 = vsub.f32 %v5341_v42, %v5364_v19  ;;  %22586 = vmatprep.subr.bf16.mxu1 %v29199_v7  ;;  %v22629_v6 = vpack.c.bf16 %v5449_v49, %v5442_v9  ;;  %v29241_v9 = vld [vmem:[#allocation12_spill] sm:$0xff] }
 0xa6b   : > { %v5457_v5 = vsub.f32 %v5455_v29, %v5456_v53  ;;  %v26469_v59 = vpack.c.bf16 %v5364_v19, %v5361_v11  ;;  %v5469_v14 = vsub.f32 %v5340_v48, %v5361_v11  ;;  %v22593_v51 = vpack.c.bf16 %v5451_v1, %v5444_v43  ;;  %v29242_v43 = vld [vmem:[#allocation9_spill] sm:$0xff]  ;;  %v29253_v48 = vld [vmem:[#allocation30_spill] sm:$0xff]  ;;  %v29254_v1 = vld [vmem:[#allocation31_spill] sm:$0xff] }
 0xa6c   : > { %v5465_v50 = vand.u32 4294901760, %v5464_v40  ;;  %v5477_v8 = vand.u32 4294901760, %v5476_v35  ;;  %v22632_v54 = vpack.c.bf16 %v5463_v63, %v5456_v53  ;;  %v29255_v19 = vld [vmem:[#allocation32_spill] sm:$0xff]  ;;  %v29257_v11 = vld [vmem:[#allocation34_spill] sm:$0xff] }
 0xa6d   : > { %v5458_v39 = vand.u32 4294901760, %v5457_v5  ;;  %v5470_v13 = vand.u32 4294901760, %v5469_v14  ;;  %v22611_v16 = vpack.c.bf16 %v5476_v35, %v5469_v14  ;;  %22588 = vmatpush3.bf16.msra.mxu1 %v26469_v59  ;;  %v29259_v5 = vld [vmem:[#allocation36_spill] sm:$0xff] }
 0xa6e   : > { %v5478_v62 = vsub.f32 %v5476_v35, %v5477_v8  ;;  %22589 = vmatprep.subr.bf16.mxu1 %v29199_v7  ;;  %v29245_v35 = vld [vmem:[#allocation10_spill] sm:$0xff] }
 0xa6f   : > { %v5471_v4 = vsub.f32 %v5469_v14, %v5470_v13  ;;  %v22596_v42 = vpack.c.bf16 %v5465_v50, %v5458_v39  ;;  %v22635_v47 = vpack.c.bf16 %v5477_v8, %v5470_v13  ;;  %v29244_v8 = vpack.c.bf16 %v26411_v24, %v26419_v58 }
 0xa70   : > { %v5479_v49 = vand.u32 4294901760, %v5478_v62  ;;  %20092 = vmatmul.mubr.f32.vlgmr.msra.gmra.mrb[18].mxu1 %v29241_v9  ;;  %v29252_v62 = vld [vmem:[#allocation29_spill] sm:$0xff] }
 0xa71   : > { %v5472_v29 = vand.u32 4294901760, %v5471_v4  ;;  %22591 = vmatpush3.bf16.msra.mxu1 %v22590_v30  ;;  %20110 = vmatprep.mubr.msk.f32.mxu1 %vm29200_vm12, %v29086_v34  ;;  %v29256_v30 = vld [vmem:[#allocation33_spill] sm:$0xff] }
 0xa72   : > { %22592 = vmatprep.subr.bf16.mxu1 %v29199_v7 }
 0xa73   : > { %v22599_v53 = vpack.c.bf16 %v5479_v49, %v5472_v29 }
 0xa75   : > { %22594 = vmatpush3.bf16.msra.mxu1 %v22593_v51 }
 0xa76   : > { %22595 = vmatprep.subr.bf16.mxu1 %v29199_v7 }
 0xa79   : > { %22597 = vmatpush3.bf16.msra.mxu1 %v22596_v42 }
 0xa7a   : > { %22598 = vmatprep.subr.bf16.mxu1 %v29199_v7 }
 0xa7d   : > { %22600 = vmatpush3.bf16.msra.mxu1 %v22599_v53 }
 0xa7e   : > { %22601 = vmatprep.subr.bf16.mxu1 %v29199_v7 }
 0xa80   : > { %20111 = vmatmul.mubr.msk.f32.vlgmr.msra.gmra.mrb[18].mxu1 %vm29243_vm10, %v29242_v43  ;;  %vm29260_vm10 = vcmask 64512  }
 0xa81   : > { %22603 = vmatpush3.bf16.msra.mxu1 %v29244_v8  ;;  %20129 = vmatprep.mubr.msk.f32.mxu1 %vm29200_vm12, %v29086_v34 }
 0xa82   : > { %22604 = vmatprep.subr.bf16.mxu1 %v29199_v7 }
 0xa85   : > { %22606 = vmatpush3.bf16.msra.mxu1 %v22605_v61  ;;  %v29249_v61 = vld [vmem:[#allocation16_spill] sm:$0xff] }
 0xa86   : > { %22607 = vmatprep.subr.bf16.mxu1 %v29199_v7 }
 0xa89   : > { %22609 = vmatpush3.bf16.msra.mxu1 %v22608_v18  ;;  %v29246_v18 = vld [vmem:[#allocation11_spill] sm:$0xff] }
 0xa8a   : > { %22610 = vmatprep.subr.bf16.mxu1 %v29199_v7 }
 0xa8d   : > { %22612 = vmatpush3.bf16.msra.mxu1 %v22611_v16 }
 0xa8e   : > { %22613 = vmatprep.subr.bf16.mxu1 %v29199_v7 }
 0xa90   : > { %20130 = vmatmul.mubr.f32.vlgmr.msra.gmra.mrb[18].mxu1 %v29245_v35 }
 0xa91   : > { %22615 = vmatpush3.bf16.msra.mxu1 %v26417_v27  ;;  %20148 = vmatprep.mubr.msk.f32.mxu1 %vm29200_vm12, %v29086_v34 }
 0xa92   : > { %22616 = vmatprep.subr.bf16.mxu1 %v29199_v7 }
 0xa95   : > { %22618 = vmatpush3.bf16.msra.mxu1 %v26439_v44 }
 0xa96   : > { %22619 = vmatprep.subr.bf16.mxu1 %v29199_v7 }
 0xa99   : > { %22621 = vmatpush3.bf16.msra.mxu1 %v26461_v38 }
 0xa9a   : > { %22622 = vmatprep.subr.bf16.mxu1 %v29199_v7 }
 0xa9d   : > { %22624 = vmatpush3.bf16.msra.mxu1 %v26469_v59 }
 0xa9e   : > { %22625 = vmatprep.subr.bf16.mxu1 %v29199_v7 }
 0xaa0   : > { %20149 = vmatmul.mubr.f32.vlgmr.msra.gmra.mrb[18].mxu1 %v29246_v18 }
 0xaa1   : > { %22627 = vmatpush3.bf16.msra.mxu1 %v26448_v45  ;;  %20167 = vmatprep.mubr.msk.f32.mxu1 %vm29200_vm12, %v29086_v34 }
 0xaa2   : > { %22628 = vmatprep.subr.bf16.mxu1 %v29199_v7 }
 0xaa5   : > { %22630 = vmatpush3.bf16.msra.mxu1 %v22629_v6  ;;  %v29258_v6 = vld [vmem:[#allocation35_spill] sm:$0xff] }
 0xaa6   : > { %22631 = vmatprep.subr.bf16.mxu1 %v29199_v7 }
 0xaa9   : > { %22633 = vmatpush3.bf16.msra.mxu1 %v22632_v54 }
 0xaaa   : > { %22634 = vmatprep.subr.bf16.mxu1 %v29199_v7 }
 0xaad   : > { %22636 = vmatpush3.bf16.msra.mxu1 %v22635_v47  ;;  %v29250_v47 = vld [vmem:[#allocation17_spill] sm:$0xff] }
 0xaae   : > { %22637 = vmatprep.subr.bf16.mxu1 %v29199_v7 }
 0xab0   : > { %20168 = vmatmul.mubr.msk.f32.vlgmr.msra.gmra.mrb[18].mxu1 %vm29247_vm8, %v29242_v43  ;;  %vm29270_vm8 = vcmask 15360  }
 0xab1   : > { %22639 = vmatpush3.bf16.msra.mxu1 %v26417_v27  ;;  %20186 = vmatprep.mubr.msk.f32.mxu1 %vm29200_vm12, %v29086_v34 }
 0xab2   : > { %22640 = vmatprep.subr.bf16.mxu1 %v29199_v7 }
 0xab5   : > { %22642 = vmatpush3.bf16.msra.mxu1 %v26439_v44 }
 0xab6   : > { %22643 = vmatprep.subr.bf16.mxu1 %v29199_v7 }
 0xab9   : > { %22645 = vmatpush3.bf16.msra.mxu1 %v26461_v38  ;;  %v29251_v38 = vld [vmem:[#allocation18_spill] sm:$0xff] }
 0xaba   : > { %22646 = vmatprep.subr.bf16.mxu1 %v29199_v7 }
 0xabd   : > { %22648 = vmatpush3.bf16.msra.mxu1 %v26469_v59 }
 0xabe   : > { %22649 = vmatprep.subr.bf16.mxu1 %v29199_v7 }
 0xac0   : > { %20187 = vmatmul.mubr.msk.f32.vlgmr.msra.gmra.mrb[18].mxu1 %vm29248_vm14, %v29242_v43  ;;  %vm29272_vm14 = vmmov %vm29270_vm8 }
 0xac1   : > { %22651 = vmatpush3.bf16.msk.msra.mxu1 %vm29072_vm6, %v29071_v15  ;;  %20221 = vmatprep.mubr.msk.f32.mxu1 %vm29200_vm12, %v29086_v34 }
 0xac2   : > { %22652 = vmatprep.subr.bf16.mxu1 %v29199_v7 }
 0xac5   : > { %22654 = vmatpush3.bf16.msk.msra.mxu1 %vm29073_vm7, %v29071_v15 }
 0xac6   : > { %22655 = vmatprep.subr.bf16.mxu1 %v29199_v7 }
 0xac9   : > { %22657 = vmatpush3.bf16.msk.msra.mxu1 %vm29074_vm13, %v29071_v15 }
 0xaca   : > { %22658 = vmatprep.subr.bf16.mxu1 %v29199_v7 }
 0xacd   : > { %22660 = vmatpush3.bf16.msk.msra.mxu1 %vm29169_vm1, %v29071_v15 }
 0xace   : > { %22661 = vmatprep.subr.bf16.mxu1 %v29199_v7 }
 0xad1   : > { %22663 = vmatpush3.bf16.msk.msra.mxu1 %vm29172_vm3, %v29071_v15 }
 0xad2   : > { %22664 = vmatprep.subr.bf16.mxu1 %v29199_v7 }
 0xad5   : > { %22666 = vmatpush3.bf16.msk.msra.mxu1 %vm29175_vm5, %v29071_v15 }
 0xad6   : > { %22667 = vmatprep.subr.bf16.mxu1 %v29199_v7 }
 0xad9   : > { %22669 = vmatpush3.bf16.msk.msra.mxu1 %vm29176_vm11, %v29071_v15 }
 0xada   : > { %22670 = vmatprep.subr.bf16.mxu1 %v29199_v7 }
 0xadd   : > { %22672 = vmatpush3.bf16.msk.msra.mxu1 %vm29177_vm4, %v29071_v15 }
 0xade   : > { %20399 = vmatprep.subr.mxu1 %v29086_v34 }
 0xb93   : > { %v26558_v54 = vpop.f32.mrb[18].mxu1 }
 0xb94   : > { %v5879_v40 = vmul.f32 %v26558_v54, %v26558_v54  ;;  %v20188_v24 = vpop.f32.mrb[19].mxu1 }
 0xb96   : > { %v26562_v27 = vand.u32 4294901760, %v5879_v40 }
 0xb98   : > { %v5962_v58 = vsub.f32 %v5879_v40, %v26562_v27  ;;  %20257 = vmatmul.mubr.f32.vlgmr.msra.gmra.mrb[28].mxu0 %v26562_v27 }
 0xb99   : > { %22699 = vmatpush3.bf16.msra.mxu0 %v25290_v56  ;;  %20291 = vmatprep.mubr.msk.f32.mxu0 %vm29200_vm12, %v29086_v34 }
 0xb9a   : > { %v5963_v63 = vand.u32 4294901760, %v5962_v58  ;;  %22700 = vmatprep.subr.bf16.mxu0 %v29199_v7 }
 0xb9c   : > { %v5964_v44 = vsub.f32 %v5962_v58, %v5963_v63 }
 0xb9d   : > { %22702 = vmatpush3.bf16.msra.mxu0 %v25297_v21 }
 0xb9e   : > { %22703 = vmatprep.subr.bf16.mxu0 %v29199_v7  ;;  %v5965_v45 = vand.u32 4294901760, %v5964_v44 }
 0xba0   : > { %20222 = vmatmul.mubr.f32.vlgmr.msra.gmra.mrb[20].mxu1 %v5965_v45 }
 0xba1   : > { %22705 = vmatpush3.bf16.msra.mxu0 %v25305_v26  ;;  %20400 = vmatpush3.msk.msra.mxu1 %vm29228_vm2, %v29111_v25 }
 0xba2   : > { %22706 = vmatprep.subr.bf16.mxu0 %v29199_v7  ;;  %20401 = vmatprep.mubr.msk.f32.mxu1 %vm29200_vm12, %v29086_v34 }
 0xba3   : > { %20404 = vmatprep.subr.mxu1 %v29086_v34 }
 0xba5   : > { %22708 = vmatpush3.bf16.msra.mxu0 %v25311_v36 }
 0xba6   : > { %22709 = vmatprep.subr.bf16.mxu0 %v29199_v7 }
 0xba9   : > { %22711 = vmatpush3.bf16.msra.mxu0 %v25317_v0 }
 0xbaa   : > { %22712 = vmatprep.subr.bf16.mxu0 %v29199_v7 }
 0xbad   : > { %22714 = vmatpush3.bf16.msra.mxu0 %v29249_v61 }
 0xbae   : > { %22715 = vmatprep.subr.bf16.mxu0 %v29199_v7 }
 0xbb1   : > { %22717 = vmatpush3.bf16.msra.mxu0 %v29250_v47 }
 0xbb2   : > { %22718 = vmatprep.subr.bf16.mxu0 %v29199_v7 }
 0xbb5   : > { %22720 = vmatpush3.bf16.msra.mxu0 %v29251_v38 }
 0xbb6   : > { %22721 = vmatprep.subr.bf16.mxu0 %v29199_v7 }
 0xbb8   : > { %20292 = vmatmul.mubr.f32.vlgmr.msra.gmra.mrb[28].mxu0 %v5962_v58 }
 0xbb9   : > { %22723 = vmatpush3.bf16.msk.msra.mxu0 %vm29072_vm6, %v29071_v15  ;;  %20326 = vmatprep.mubr.msk.f32.mxu0 %vm29200_vm12, %v29086_v34 }
 0xbba   : > { %22724 = vmatprep.subr.bf16.mxu0 %v29199_v7 }
 0xbbd   : > { %22726 = vmatpush3.bf16.msk.msra.mxu0 %vm29073_vm7, %v29071_v15 }
 0xbbe   : > { %22727 = vmatprep.subr.bf16.mxu0 %v29199_v7 }
 0xbc1   : > { %22729 = vmatpush3.bf16.msk.msra.mxu0 %vm29074_vm13, %v29071_v15 }
 0xbc2   : > { %22730 = vmatprep.subr.bf16.mxu0 %v29199_v7 }
 0xbc5   : > { %22732 = vmatpush3.bf16.msk.msra.mxu0 %vm29169_vm1, %v29071_v15 }
 0xbc6   : > { %22733 = vmatprep.subr.bf16.mxu0 %v29199_v7 }
 0xbc9   : > { %22735 = vmatpush3.bf16.msk.msra.mxu0 %vm29172_vm3, %v29071_v15 }
 0xbca   : > { %22736 = vmatprep.subr.bf16.mxu0 %v29199_v7 }
 0xbcd   : > { %22738 = vmatpush3.bf16.msk.msra.mxu0 %vm29175_vm5, %v29071_v15 }
 0xbce   : > { %22739 = vmatprep.subr.bf16.mxu0 %v29199_v7 }
 0xbd1   : > { %22741 = vmatpush3.bf16.msk.msra.mxu0 %vm29176_vm11, %v29071_v15 }
 0xbd2   : > { %22742 = vmatprep.subr.bf16.mxu0 %v29199_v7 }
 0xbd5   : > { %22744 = vmatpush3.bf16.msk.msra.mxu0 %vm29177_vm4, %v29071_v15 }
 0xbd6   : > { %22745 = vmatprep.subr.bf16.mxu0 %v29199_v7 }
 0xbd8   : > { %20327 = vmatmul.mubr.f32.vlgmr.msra.gmra.mrb[28].mxu0 %v5963_v63 }
 0xbd9   : > { %22747 = vmatpush3.bf16.msra.mxu0 %v29252_v62  ;;  %20361 = vmatprep.mubr.msk.f32.mxu0 %vm29200_vm12, %v29086_v34 }
 0xbda   : > { %22748 = vmatprep.subr.bf16.mxu0 %v29199_v7 }
 0xbdd   : > { %22750 = vmatpush3.bf16.msra.mxu0 %v29253_v48 }
 0xbde   : > { %22751 = vmatprep.subr.bf16.mxu0 %v29199_v7 }
 0xbe1   : > { %22753 = vmatpush3.bf16.msra.mxu0 %v29254_v1 }
 0xbe2   : > { %22754 = vmatprep.subr.bf16.mxu0 %v29199_v7 }
 0xbe5   : > { %22756 = vmatpush3.bf16.msra.mxu0 %v29255_v19 }
 0xbe6   : > { %22757 = vmatprep.subr.bf16.mxu0 %v29199_v7 }
 0xbe9   : > { %22759 = vmatpush3.bf16.msra.mxu0 %v29256_v30 }
 0xbea   : > { %22760 = vmatprep.subr.bf16.mxu0 %v29199_v7 }
 0xbed   : > { %22762 = vmatpush3.bf16.msra.mxu0 %v29257_v11 }
 0xbee   : > { %22763 = vmatprep.subr.bf16.mxu0 %v29199_v7 }
 0xbf1   : > { %22765 = vmatpush3.bf16.msra.mxu0 %v29258_v6 }
 0xbf2   : > { %22766 = vmatprep.subr.bf16.mxu0 %v29199_v7 }
 0xbf5   : > { %22768 = vmatpush3.bf16.msra.mxu0 %v29259_v5 }
 0xbf6   : > { %22769 = vmatprep.subr.bf16.mxu0 %v29199_v7 }
 0xbf8   : > { %20362 = vmatmul.mubr.f32.vlgmr.msra.gmra.mrb[28].mxu0 %v26562_v27 }
 0xbf9   : > { %22771 = vmatpush3.bf16.msk.msra.mxu0 %vm29072_vm6, %v29071_v15  ;;  %20396 = vmatprep.mubr.msk.f32.mxu0 %vm29200_vm12, %v29086_v34 }
 0xbfa   : > { %22772 = vmatprep.subr.bf16.mxu0 %v29199_v7 }
 0xbfd   : > { %22774 = vmatpush3.bf16.msk.msra.mxu0 %vm29073_vm7, %v29071_v15 }
 0xbfe   : > { %22775 = vmatprep.subr.bf16.mxu0 %v29199_v7 }
 0xc01   : > { %22777 = vmatpush3.bf16.msk.msra.mxu0 %vm29074_vm13, %v29071_v15 }
 0xc02   : > { %22778 = vmatprep.subr.bf16.mxu0 %v29199_v7 }
 0xc05   : > { %22780 = vmatpush3.bf16.msk.msra.mxu0 %vm29169_vm1, %v29071_v15 }
 0xc06   : > { %22781 = vmatprep.subr.bf16.mxu0 %v29199_v7 }
 0xc09   : > { %22783 = vmatpush3.bf16.msk.msra.mxu0 %vm29172_vm3, %v29071_v15 }
 0xc0a   : > { %22784 = vmatprep.subr.bf16.mxu0 %v29199_v7 }
 0xc0d   : > { %22786 = vmatpush3.bf16.msk.msra.mxu0 %vm29175_vm5, %v29071_v15 }
 0xc0e   : > { %22787 = vmatprep.subr.bf16.mxu0 %v29199_v7 }
 0xc11   : > { %22789 = vmatpush3.bf16.msk.msra.mxu0 %vm29176_vm11, %v29071_v15 }
 0xc12   : > { %22790 = vmatprep.subr.bf16.mxu0 %v29199_v7 }
 0xc15   : > { %22792 = vmatpush3.bf16.msk.msra.mxu0 %vm29177_vm4, %v29071_v15 }
 0xc16   : > { %22794 = vmatprep.subr.msk.bf16.mxu0 %vm29072_vm6, %v29071_v15 }
 0xc18   : > { %20397 = vmatmul.mubr.f32.vlgmr.msra.gmra.mrb[28].mxu0 %v26562_v27 }
 0xc19   : > { %22796 = vmatpush3.bf16.msk.msra.mxu0 %vm29072_vm6, %v29071_v15 }
 0xc1a   : > { %22798 = vmatprep.subr.msk.bf16.mxu0 %vm29073_vm7, %v29071_v15 }
 0xc1d   : > { %22800 = vmatpush3.bf16.msk.msra.mxu0 %vm29073_vm7, %v29071_v15 }
 0xc1e   : > { %22802 = vmatprep.subr.msk.bf16.mxu0 %vm29074_vm13, %v29071_v15 }
 0xc21   : > { %22804 = vmatpush3.bf16.msk.msra.mxu0 %vm29074_vm13, %v29071_v15 }
 0xc22   : > { %22806 = vmatprep.subr.msk.bf16.mxu0 %vm29169_vm1, %v29071_v15 }
 0xc25   : > { %22808 = vmatpush3.bf16.msk.msra.mxu0 %vm29169_vm1, %v29071_v15 }
 0xc26   : > { %22810 = vmatprep.subr.msk.bf16.mxu0 %vm29172_vm3, %v29071_v15 }
 0xc29   : > { %22812 = vmatpush3.bf16.msk.msra.mxu0 %vm29172_vm3, %v29071_v15 }
 0xc2a   : > { %22814 = vmatprep.subr.msk.bf16.mxu0 %vm29175_vm5, %v29071_v15 }
 0xc2d   : > { %22816 = vmatpush3.bf16.msk.msra.mxu0 %vm29175_vm5, %v29071_v15 }
 0xc2e   : > { %22818 = vmatprep.subr.msk.bf16.mxu0 %vm29176_vm11, %v29071_v15 }
 0xc31   : > { %22820 = vmatpush3.bf16.msk.msra.mxu0 %vm29176_vm11, %v29071_v15 }
 0xc32   : > { %22822 = vmatprep.subr.msk.bf16.mxu0 %vm29177_vm4, %v29071_v15 }
 0xc35   : > { %22824 = vmatpush3.bf16.msk.msra.mxu0 %vm29177_vm4, %v29071_v15 }
 0xc36   : > { %22826 = vmatprep.subr.bf16.mxu0 %v25232_v23 }
 0xc73   : > { %v5967_v59 = vpop.f32.mrb[20].mxu1 }
 0xc74   : > { %v20223_v14 = vpop.f32.mrb[21].mxu1  ;;  %v5968_v51 = vadd.f32 1e-07, %v5967_v59 }
 0xceb   : > { %v6517_v50 = vpop.f32.mrb[28].mxu0 }
 0xcec   : > { %v23619_v39 = vadd.f32 %v6517_v50, %v5968_v51  ;;  %v20398_v13 = vpop.f32.mrb[29].mxu0  ;;  %v29261_v50 = vld [vmem:[#allocation44_spill] sm:$0xff] }
 0xcee   : > { %24307 = vrsqrt.f32 %v23619_v39  ;;  %v6528_v16 = vadd.f32 1.0, %v23619_v39  ;;  %vm6523_vm15 = vcmp.eq.f32.partialorder %v23619_v39, inf  ;;  %v6526_v40 = vand.u32 2147483648, %v23619_v39 }
 0xcef   : > { %vm6525_vm9 = vcmp.eq.f32.partialorder %v23619_v39, 0.0 }
 0xcf0   : > { %24309 = vrcp.f32 %v6528_v16 }
 0xcf8   : > { %v24308_v4 = vpop.eup %24307 }
 0xcf9   : > { %v6522_v42 = vmul.f32 %v24308_v4, %v23619_v39 }
 0xcfa   : > { %v24310_v49 = vpop.eup %24309 }
 0xcfb   : > { %v6530_v29 = vmul.f32 %v24310_v49, %v6528_v16  ;;  %v6524_v53 = vsel %vm6523_vm15, %v23619_v39, %v6522_v42  ;;  %vm29274_vm15 = vmmov %vm29270_vm8 }
 0xcfc   : > { %v6527_v27 = vsel %vm6525_vm9, %v6526_v40, %v6524_v53  ;;  %vm29276_vm9 = vmmov %vm29270_vm8 }
 0xcfd   : > { %v6531_v8 = vsub.f32 2.0, %v6530_v29  ;;  %v29262_v29 = vld [vmem:[#allocation59_spill] sm:$0xff] }
 0xcff   : > { %v6532_v24 = vmul.f32 %v24310_v49, %v6531_v8  ;;  %v29263_v8 = vld [vmem:[#allocation60_spill] sm:$0xff] }
 0xd01   : > { %v6533_v58 = vmul.f32 %v6532_v24, %v6527_v27  ;;  %v29264_v24 = vld [vmem:[#allocation65_spill] sm:$0xff] }
 0xd03   : > { %v6535_v63 = vsel %vm29260_vm10, %v6533_v58, 0  ;;  %v29265_v58 = vld [vmem:[#allocation67_spill] sm:$0xff]  ;;  %vm29278_vm10 = vmmov %vm29270_vm8 }
 0xd04   : > { %v6603_v44 = vand.u32 4294901760, %v6535_v63 }
 0xd06   : > { %v6604_v45 = vsub.f32 %v6535_v63, %v6603_v44  ;;  %v29267_v63 = vld [vmem:[#allocation71_spill] sm:$0xff] }
 0xd08   : > { %v6605_v59 = vand.u32 4294901760, %v6604_v45 }
 0xd0a   : > { %v6606_v14 = vsub.f32 %v6604_v45, %v6605_v59 }
 0xd0c   : > { %v6607_v51 = vand.u32 4294901760, %v6606_v14  ;;  %v29273_v14 = vld [vmem:[#allocation46_spill] sm:$0xff] }
 0xd0e   : > { %20402 = vmatmul.mubr.f32.vlgmr.msra.gmra.mrb[22].mxu1 %v6607_v51  ;;  %v29275_v51 = vld [vmem:[#allocation47_spill] sm:$0xff] }
 0xd0f   : > { %20405 = vmatpush3.msra.mxu1 %v29229_v41  ;;  %20406 = vmatprep.mubr.msk.f32.mxu1 %vm29200_vm12, %v29086_v34 }
 0xd10   : > { %20409 = vmatprep.subr.mxu1 %v29086_v34 }
 0xd16   : > { %20407 = vmatmul.mubr.f32.vlgmr.msra.gmra.mrb[22].mxu1 %v6603_v44 }
 0xd17   : > { %20410 = vmatpush3.msra.mxu1 %v29234_v22  ;;  %20411 = vmatprep.mubr.msk.f32.mxu1 %vm29200_vm12, %v29086_v34 }
 0xd18   : > { %20414 = vmatprep.subr.mxu1 %v29086_v34 }
 0xd1e   : > { %20412 = vmatmul.mubr.f32.vlgmr.msra.gmra.mrb[22].mxu1 %v6604_v45  ;;  %v29269_v45 = vld [vmem:[#allocation41_spill] sm:$0xff] }
 0xd1f   : > { %20415 = vmatpush3.msk.msra.mxu1 %vm29228_vm2, %v29111_v25  ;;  %20416 = vmatprep.mubr.msk.f32.mxu1 %vm29200_vm12, %v29086_v34 }
 0xd20   : > { %20419 = vmatprep.subr.mxu1 %v29086_v34 }
 0xd26   : > { %20417 = vmatmul.mubr.f32.vlgmr.msra.gmra.mrb[22].mxu1 %v6605_v59  ;;  %v29271_v59 = vld [vmem:[#allocation45_spill] sm:$0xff] }
 0xd27   : > { %20420 = vmatpush3.msra.mxu1 %v29238_v3  ;;  %20421 = vmatprep.mubr.msk.f32.mxu1 %vm29200_vm12, %v29086_v34 }
 0xd28   : > { %20424 = vmatprep.subr.mxu1 %v29086_v34 }
 0xd2e   : > { %20422 = vmatmul.mubr.f32.vlgmr.msra.gmra.mrb[22].mxu1 %v6603_v44 }
 0xd2f   : > { %20425 = vmatpush3.msk.msra.mxu1 %vm29228_vm2, %v29111_v25  ;;  %20426 = vmatprep.mubr.msk.f32.mxu1 %vm29200_vm12, %v29086_v34 }
 0xd36   : > { %20427 = vmatmul.mubr.f32.vlgmr.msra.gmra.mrb[22].mxu1 %v6603_v44  ;;  %v29268_v44 = vld [vmem:[#allocation72_spill] sm:$0xff] }
 0xd37   : > { %20431 = vmatprep.mubr.f32.mxu1 %v29261_v50 }
 0xe09   : > { %v6979_v39 = vpop.f32.mrb[22].mxu1 }
 0xe0a   : > { %v6983_v13 = vmul.f32 %v6979_v39, %v26558_v54  ;;  %v20428_v16 = vpop.f32.mrb[23].mxu1  ;;  %v29266_v54 = vld [vmem:[#allocation70_spill] sm:$0xff]  ;;  %v29277_v39 = vld [vmem:[#allocation49_spill] sm:$0xff] }
 0xe0b   : > { %v29281_v16 = vld [vmem:[#allocation57_spill] sm:$0xff] }
 0xe0c   : > { %v6985_v4 = vsel %vm28902_vm0, %v6983_v13, 0  ;;  %v29279_v13 = vld [vmem:[#allocation55_spill] sm:$0xff]  ;;  %vm29280_vm0 = vmmov %vm29270_vm8 }
 0xe0d   : > { %v6988_v42 = vand.u32 4294901760, %v6985_v4  ;;  %vm29282_vm2 = vmmov %vm29280_vm0 }
 0xe0f   : > { %v7135_v49 = vsub.f32 %v6985_v4, %v6988_v42  ;;  %20429 = vmatprep.subr.mxu1 %v6988_v42  ;;  %v29283_v4 = vld [vmem:[#allocation61_spill] sm:$0xff] }
 0xe10   : > { %20430 = vmatpush3.msra.mxu1 %v6988_v42 }
 0xe11   : > { %20432 = vmatmul.mubr.f32.vlgmr.msra.gmra.mrb[24].mxu1 %v29262_v29  ;;  %v7136_v53 = vand.u32 4294901760, %v7135_v49  ;;  %v29294_v29 = vld [vmem:[#allocation51_spill] sm:$0xff] }
 0xe12   : > { %20434 = vmatprep.mubr.f32.mxu1 %v29263_v8  ;;  %v29293_v8 = vld [vmem:[#allocation43_spill] sm:$0xff] }
 0xe13   : > { %v7137_v40 = vsub.f32 %v7135_v49, %v7136_v53 }
 0xe15   : > { %20435 = vmatmul.mubr.f32.gmra.mrb[26].mxu1 %v29264_v24  ;;  %v7138_v27 = vand.u32 4294901760, %v7137_v40  ;;  %v29286_v40 = vld [vmem:[#allocation48_spill] sm:$0xff] }
 0xe16   : > { %20437 = vmatprep.mubr.f32.mxu1 %v29265_v58  ;;  %v29291_v58 = vld [vmem:[#allocation63_spill] sm:$0xff]  ;;  %v29292_v24 = vld [vmem:[#allocation68_spill] sm:$0xff] }
 0xe17   : > { %20443 = vmatprep.subr.mxu1 %v7138_v27 }
 0xe18   : > { %20444 = vmatpush3.msra.mxu1 %v7138_v27  ;;  %v29287_v27 = vld [vmem:[#allocation50_spill] sm:$0xff] }
 0xe19   : > { %20438 = vmatmul.mubr.f32.gmra.mrb[28].mxu1 %v29266_v54  ;;  %20457 = vmatprep.subr.mxu1 %v7135_v49  ;;  %v29290_v54 = vld [vmem:[#allocation62_spill] sm:$0xff] }
 0xe1a   : > { %20440 = vmatprep.mubr.f32.mxu1 %v29267_v63  ;;  %v29289_v63 = vld [vmem:[#allocation54_spill] sm:$0xff] }
 0xe1d   : > { %20441 = vmatmul.mubr.f32.gmra.mrb[30].mxu1 %v29268_v44  ;;  %v29288_v44 = vld [vmem:[#allocation53_spill] sm:$0xff] }
 0xe1e   : > { %20445 = vmatprep.mubr.msk.f32.mxu1 %vm29270_vm8, %v29269_v45  ;;  %vm29284_vm8 = vmmov %vm29280_vm0 }
 0xe21   : > { %20446 = vmatmul.mubr.msk.f32.vlgmr.msra.gmra.mrb[24].mxu1 %vm29272_vm14, %v29271_v59  ;;  %vm29302_vm14 = vmmov %vm29280_vm0 }
 0xe22   : > { %20458 = vmatpush3.msra.mxu1 %v7135_v49  ;;  %20448 = vmatprep.mubr.msk.f32.mxu1 %vm29274_vm15, %v29273_v14  ;;  %v29285_v49 = vld [vmem:[#allocation42_spill] sm:$0xff]  ;;  %vm29303_vm15 = vmmov %vm29280_vm0 }
 0xe23   : > { %20471 = vmatprep.subr.mxu1 %v6988_v42 }
 0xe25   : > { %20449 = vmatmul.mubr.msk.f32.gmra.mrb[26].mxu1 %vm29276_vm9, %v29275_v51  ;;  %vm29304_vm9 = vmmov %vm29280_vm0 }
 0xe26   : > { %20451 = vmatprep.mubr.msk.f32.mxu1 %vm29278_vm10, %v29277_v39  ;;  %vm29305_vm10 = vmmov %vm29280_vm0 }
 0xe29   : > { %20452 = vmatmul.mubr.msk.f32.gmra.mrb[28].mxu1 %vm29280_vm0, %v29279_v13 }
 0xe2a   : > { %20454 = vmatprep.mubr.msk.f32.mxu1 %vm29282_vm2, %v29281_v16  ;;  %vm29301_vm2 = vmmov %vm29280_vm0 }
 0xe2d   : > { %20455 = vmatmul.mubr.msk.f32.gmra.mrb[30].mxu1 %vm29284_vm8, %v29283_v4  ;;  %vm29306_vm8 = vmmov %vm29280_vm0 }
 0xe2e   : > { %20459 = vmatprep.mubr.f32.mxu1 %v29285_v49  ;;  %v29297_v49 = vld [vmem:[#allocation58_spill] sm:$0xff] }
 0xe31   : > { %20460 = vmatmul.mubr.f32.vlgmr.msra.gmra.mrb[24].mxu1 %v29286_v40  ;;  %v29295_v40 = vld [vmem:[#allocation52_spill] sm:$0xff] }
 0xe32   : > { %20472 = vmatpush3.msra.mxu1 %v6988_v42  ;;  %20462 = vmatprep.mubr.f32.mxu1 %v29287_v27  ;;  %v29296_v27 = vld [vmem:[#allocation56_spill] sm:$0xff] }
 0xe33   : > { %20485 = vmatprep.subr.mxu1 %v7136_v53 }
 0xe35   : > { %20463 = vmatmul.mubr.f32.gmra.mrb[26].mxu1 %v29288_v44  ;;  %v29298_v44 = vld [vmem:[#allocation64_spill] sm:$0xff] }
 0xe36   : > { %20465 = vmatprep.mubr.f32.mxu1 %v29289_v63  ;;  %v29299_v63 = vld [vmem:[#allocation66_spill] sm:$0xff] }
 0xe39   : > { %20466 = vmatmul.mubr.f32.gmra.mrb[28].mxu1 %v29290_v54  ;;  %v29300_v54 = vld [vmem:[#allocation69_spill] sm:$0xff] }
 0xe3a   : > { %20468 = vmatprep.mubr.f32.mxu1 %v29291_v58 }
 0xe3d   : > { %20469 = vmatmul.mubr.f32.gmra.mrb[30].mxu1 %v29292_v24 }
 0xe3e   : > { %20473 = vmatprep.mubr.f32.mxu1 %v29293_v8 }
 0xe41   : > { %20474 = vmatmul.mubr.f32.vlgmr.msra.gmra.mrb[24].mxu1 %v29294_v29 }
 0xe42   : > { %20486 = vmatpush3.msra.mxu1 %v7136_v53  ;;  %20476 = vmatprep.mubr.f32.mxu1 %v29295_v40 }
 0xe43   : > { %20499 = vmatprep.subr.mxu1 %v6988_v42 }
 0xe45   : > { %20477 = vmatmul.mubr.f32.gmra.mrb[26].mxu1 %v29296_v27 }
 0xe46   : > { %20479 = vmatprep.mubr.f32.mxu1 %v29297_v49 }
 0xe49   : > { %20480 = vmatmul.mubr.f32.gmra.mrb[28].mxu1 %v29298_v44 }
 0xe4a   : > { %20482 = vmatprep.mubr.f32.mxu1 %v29299_v63 }
 0xe4d   : > { %20483 = vmatmul.mubr.f32.gmra.mrb[30].mxu1 %v29300_v54 }
 0xe4e   : > { %20487 = vmatprep.mubr.msk.f32.mxu1 %vm29280_vm0, %v29269_v45 }
 0xe51   : > { %20488 = vmatmul.mubr.msk.f32.vlgmr.msra.gmra.mrb[24].mxu1 %vm29301_vm2, %v29271_v59  ;;  %vm29307_vm2 = vmmov %vm29280_vm0 }
 0xe52   : > { %20500 = vmatpush3.msra.mxu1 %v6988_v42  ;;  %20490 = vmatprep.mubr.msk.f32.mxu1 %vm29302_vm14, %v29273_v14  ;;  %vm29308_vm14 = vmmov %vm29280_vm0 }
 0xe53   : > { %20777 = vmatprep.subr.mxu1 %v29111_v25 }
 0xe55   : > { %20491 = vmatmul.mubr.msk.f32.gmra.mrb[26].mxu1 %vm29303_vm15, %v29275_v51  ;;  %vm29309_vm15 = vmmov %vm29280_vm0 }
 0xe56   : > { %20493 = vmatprep.mubr.msk.f32.mxu1 %vm29304_vm9, %v29277_v39  ;;  %vm29310_vm9 = vmmov %vm29280_vm0 }
 0xe59   : > { %20494 = vmatmul.mubr.msk.f32.gmra.mrb[28].mxu1 %vm29305_vm10, %v29279_v13  ;;  %vm29311_vm10 = vmmov %vm29280_vm0 }
 0xe5a   : > { %20496 = vmatprep.mubr.msk.f32.mxu1 %vm29306_vm8, %v29281_v16  ;;  %vm29312_vm8 = vmmov %vm29280_vm0 }
 0xe5d   : > { %20497 = vmatmul.mubr.msk.f32.gmra.mrb[30].mxu1 %vm29280_vm0, %v29283_v4 }
 0xe5e   : > { %20501 = vmatprep.mubr.msk.f32.mxu1 %vm29307_vm2, %v29269_v45  ;;  %vm29313_vm2 = vmmov %vm29280_vm0  ;;  %v29315_v45 = vld [vmem:[#allocation81_spill] sm:$0xff] }
 0xe61   : > { %20502 = vmatmul.mubr.msk.f32.vlgmr.msra.gmra.mrb[24].mxu1 %vm29308_vm14, %v29271_v59  ;;  %vm29332_vm14 = vcmask 64512  }
 0xe62   : > { %20504 = vmatprep.mubr.msk.f32.mxu1 %vm29309_vm15, %v29273_v14  ;;  %20778 = vmatpush3.msra.mxu1 %v29111_v25  ;;  %vm29333_vm15 = vmmov %vm29332_vm14 }
 0xe63   : > { %20791 = vmatprep.subr.mxu1 %v29086_v34 }
 0xe65   : > { %20505 = vmatmul.mubr.msk.f32.gmra.mrb[26].mxu1 %vm29310_vm9, %v29275_v51  ;;  %vm29338_vm9 = vmmov %vm29332_vm14 }
 0xe66   : > { %20507 = vmatprep.mubr.msk.f32.mxu1 %vm29311_vm10, %v29277_v39  ;;  %vm29339_vm10 = vmmov %vm29338_vm9 }
 0xe69   : > { %20508 = vmatmul.mubr.msk.f32.gmra.mrb[28].mxu1 %vm29312_vm8, %v29279_v13  ;;  %vm29344_vm8 = vmmov %vm29338_vm9 }
 0xe6a   : > { %20510 = vmatprep.mubr.msk.f32.mxu1 %vm29280_vm0, %v29281_v16  ;;  %vm29345_vm0 = vmmov %vm29344_vm8 }
 0xe6d   : > { %20511 = vmatmul.mubr.msk.f32.gmra.mrb[30].mxu1 %vm29313_vm2, %v29283_v4  ;;  %vm29350_vm2 = vmmov %vm29345_vm0 }
 0xf34   : > { %v20503_v42 = vpop.f32.mrb[24].mxu1 }
 0xf35   : > { %v7735_v53 = vmul.f32 %v26404_v57, %v20503_v42  ;;  %v7688_v54 = vpop.f32.mrb[25].mxu1 }
 0xf36   : > { %v7734_v63 = vmul.f32 %v26408_v55, %v7688_v54 }
 0xf37   : > { %v26829_v44 = vand.u32 4294901760, %v7735_v53 }
 0xf38   : > { %v26831_v49 = vand.u32 4294901760, %v7734_v63  ;;  %v20506_v27 = vpop.f32.mrb[26].mxu1 }
 0xf39   : > { %v26834_v40 = vsub.f32 %v7735_v53, %v26829_v44  ;;  %v7737_v29 = vmul.f32 %v26414_v37, %v20506_v27  ;;  %v7700_v8 = vpop.f32.mrb[27].mxu1 }
 0xf3a   : > { %v26838_v24 = vsub.f32 %v7734_v63, %v26831_v49  ;;  %v7736_v58 = vmul.f32 %v26422_v17, %v7700_v8 }
 0xf3b   : > { %v28908_v57 = vand.u32 4294901760, %v26834_v40  ;;  %v26842_v42 = vand.u32 4294901760, %v7737_v29 }
 0xf3c   : > { %v26844_v55 = vand.u32 4294901760, %v7736_v58  ;;  %v20509_v54 = vpop.f32.mrb[28].mxu1  ;;  %v28911_v4 = vand.u32 4294901760, %v26838_v24 }
 0xf3d   : > { %v7836_v53 = vsub.f32 %v26834_v40, %v28908_v57  ;;  %v26851_v37 = vsub.f32 %v7737_v29, %v26842_v42  ;;  %v7739_v63 = vmul.f32 %v26434_v31, %v20509_v54  ;;  %v7712_v27 = vpop.f32.mrb[29].mxu1 }
 0xf3e   : > { %v26855_v17 = vsub.f32 %v7736_v58, %v26844_v55  ;;  %v7738_v8 = vmul.f32 %v26444_v2, %v7712_v27  ;;  %v7826_v16 = vsub.f32 %v26838_v24, %v28911_v4  ;;  %v29314_v58 = vld [vmem:[#allocation37_spill] sm:$0xff] }
 0xf3f   : > { %v26861_v13 = vand.u32 4294901760, %v7739_v63  ;;  %v28914_v39 = vand.u32 4294901760, %v26851_v37  ;;  %v7837_v27 = vand.u32 4294901760, %v7836_v53 }
 0xf40   : > { %v26864_v57 = vand.u32 4294901760, %v7738_v8  ;;  %v20512_v29 = vpop.f32.mrb[30].mxu1  ;;  %v7827_v51 = vand.u32 4294901760, %v7826_v16  ;;  %v28915_v31 = vand.u32 4294901760, %v26855_v17 }
 0xf41   : > { %v26868_v54 = vsub.f32 %v7739_v63, %v26861_v13  ;;  %v7741_v14 = vmul.f32 %v29314_v58, %v20512_v29  ;;  %v7724_v2 = vpop.f32.mrb[31].mxu1  ;;  %v7856_v4 = vsub.f32 %v26851_v37, %v28914_v39 }
 0xf42   : > { %v26875_v59 = vsub.f32 %v7738_v8, %v26864_v57  ;;  %v7740_v50 = vmul.f32 %v29315_v45, %v7724_v2  ;;  %20545 = vmatprep.mubr.f32.mxu0 %v7827_v51  ;;  %v7846_v16 = vsub.f32 %v26855_v17, %v28915_v31  ;;  %v29316_v45 = vld [vmem:[#allocation20_spill] sm:$0xff] }
 0xf43   : > { %v26881_v63 = vand.u32 4294901760, %v7741_v14  ;;  %20546 = vmatmul.mubr.f32.vlgmr.msra.gmra.mrb[30].mxu0 %v7837_v27  ;;  %v28918_v29 = vand.u32 4294901760, %v26868_v54  ;;  %v7857_v51 = vand.u32 4294901760, %v7856_v4 }
 0xf44   : > { %v26884_v53 = vand.u32 4294901760, %v7740_v50  ;;  %22828 = vmatpush3.bf16.msra.mxu0 %v25232_v23  ;;  %v7847_v58 = vand.u32 4294901760, %v7846_v16  ;;  %v7865_v8 = vand.u32 4294901760, %v26875_v59  ;;  %v29317_v23 = vld [vmem:[#allocation21_spill] sm:$0xff] }
 0xf45   : > { %v26889_v39 = vsub.f32 %v7741_v14, %v26881_v63  ;;  %22830 = vmatprep.subr.bf16.mxu0 %v29316_v45  ;;  %v7876_v2 = vsub.f32 %v26868_v54, %v28918_v29  ;;  %v29318_v29 = vld [vmem:[#allocation22_spill] sm:$0xff] }
 0xf46   : > { %v26896_v27 = vsub.f32 %v7740_v50, %v26884_v53  ;;  %20548 = vmatprep.mubr.f32.mxu0 %v7847_v58  ;;  %v7866_v16 = vsub.f32 %v26875_v59, %v7865_v8 }
 0xf47   : > { %20549 = vmatmul.mubr.f32.gmra.mrb[32].mxu0 %v7857_v51  ;;  %v7895_v31 = vand.u32 4294901760, %v26889_v39  ;;  %v7877_v18 = vand.u32 4294901760, %v7876_v2  ;;  %v29319_v2 = vld [vmem:[#allocation23_spill] sm:$0xff] }
 0xf48   : > { %22832 = vmatpush3.bf16.msra.mxu0 %v29316_v45  ;;  %v7867_v14 = vand.u32 4294901760, %v7866_v16  ;;  %v7885_v4 = vand.u32 4294901760, %v26896_v27 }
 0xf49   : > { %22834 = vmatprep.subr.bf16.mxu0 %v29317_v23  ;;  %v7896_v50 = vsub.f32 %v26889_v39, %v7895_v31 }
 0xf4a   : > { %20551 = vmatprep.mubr.f32.mxu0 %v7867_v14  ;;  %v7886_v58 = vsub.f32 %v26896_v27, %v7885_v4  ;;  %v29320_v14 = vld [vmem:[#allocation13_spill] sm:$0xff] }
 0xf4b   : > { %20552 = vmatmul.mubr.f32.gmra.mrb[34].mxu0 %v7877_v18  ;;  %v7897_v16 = vand.u32 4294901760, %v7896_v50  ;;  %v29321_v18 = vld [vmem:[#allocation14_spill] sm:$0xff]  ;;  %v29323_v50 = vand.u32 4294901760, %v26838_v24 }
 0xf4c   : > { %22836 = vmatpush3.bf16.msra.mxu0 %v29317_v23  ;;  %v7887_v51 = vand.u32 4294901760, %v7886_v58  ;;  %v29322_v58 = vld [vmem:[#allocation15_spill] sm:$0xff] }
 0xf4d   : > { %22838 = vmatprep.subr.bf16.mxu0 %v29318_v29 }
 0xf4e   : > { %20554 = vmatprep.mubr.f32.mxu0 %v7887_v51  ;;  %v29325_v51 = vand.u32 4294901760, %v26855_v17 }
 0xf4f   : > { %20555 = vmatmul.mubr.f32.gmra.mrb[36].mxu0 %v7897_v16  ;;  %v29326_v16 = vand.u32 4294901760, %v26851_v37 }
 0xf50   : > { %22840 = vmatpush3.bf16.msra.mxu0 %v29318_v29  ;;  %20589 = vmatprep.mubr.f32.mxu0 %v26831_v49 }
 0xf51   : > { %22842 = vmatprep.subr.bf16.mxu0 %v29319_v2 }
 0xf54   : > { %22844 = vmatpush3.bf16.msra.mxu0 %v29319_v2 }
 0xf55   : > { %22846 = vmatprep.subr.bf16.mxu0 %v29320_v14 }
 0xf58   : > { %22848 = vmatpush3.bf16.msra.mxu0 %v29320_v14 }
 0xf59   : > { %22850 = vmatprep.subr.bf16.mxu0 %v29321_v18 }
 0xf5c   : > { %22852 = vmatpush3.bf16.msra.mxu0 %v29321_v18 }
 0xf5d   : > { %22854 = vmatprep.subr.bf16.mxu0 %v29322_v58 }
 0xf60   : > { %22856 = vmatpush3.bf16.msra.mxu0 %v29322_v58 }
 0xf61   : > { %22858 = vmatprep.subr.bf16.mxu0 %v25290_v56 }
 0xf63   : > { %20590 = vmatmul.mubr.f32.vlgmr.msra.gmra.mrb[30].mxu0 %v26829_v44 }
 0xf64   : > { %20592 = vmatprep.mubr.f32.mxu0 %v26844_v55  ;;  %22860 = vmatpush3.bf16.msra.mxu0 %v25290_v56 }
 0xf65   : > { %22862 = vmatprep.subr.bf16.mxu0 %v25297_v21 }
 0xf67   : > { %20593 = vmatmul.mubr.f32.gmra.mrb[32].mxu0 %v26842_v42 }
 0xf68   : > { %20595 = vmatprep.mubr.f32.mxu0 %v26864_v57  ;;  %22864 = vmatpush3.bf16.msra.mxu0 %v25297_v21 }
 0xf69   : > { %22866 = vmatprep.subr.bf16.mxu0 %v25305_v26 }
 0xf6b   : > { %20596 = vmatmul.mubr.f32.gmra.mrb[34].mxu0 %v26861_v13 }
 0xf6c   : > { %20598 = vmatprep.mubr.f32.mxu0 %v26884_v53  ;;  %22868 = vmatpush3.bf16.msra.mxu0 %v25305_v26 }
 0xf6d   : > { %22870 = vmatprep.subr.bf16.mxu0 %v25311_v36 }
 0xf6f   : > { %20599 = vmatmul.mubr.f32.gmra.mrb[36].mxu0 %v26881_v63 }
 0xf70   : > { %22872 = vmatpush3.bf16.msra.mxu0 %v25311_v36  ;;  %20633 = vmatprep.mubr.f32.mxu0 %v26838_v24  ;;  %v29324_v24 = vand.u32 4294901760, %v26834_v40 }
 0xf71   : > { %22874 = vmatprep.subr.bf16.mxu0 %v25317_v0 }
 0xf74   : > { %22876 = vmatpush3.bf16.msra.mxu0 %v25317_v0 }
 0xf75   : > { %22878 = vmatprep.subr.bf16.mxu0 %v29249_v61 }
 0xf78   : > { %22880 = vmatpush3.bf16.msra.mxu0 %v29249_v61 }
 0xf79   : > { %22882 = vmatprep.subr.bf16.mxu0 %v29250_v47 }
 0xf7c   : > { %22884 = vmatpush3.bf16.msra.mxu0 %v29250_v47 }
 0xf7d   : > { %22886 = vmatprep.subr.bf16.mxu0 %v29251_v38 }
 0xf80   : > { %22888 = vmatpush3.bf16.msra.mxu0 %v29251_v38 }
 0xf81   : > { %22890 = vmatprep.subr.msk.bf16.mxu0 %vm29072_vm6, %v29071_v15 }
 0xf83   : > { %20634 = vmatmul.mubr.f32.vlgmr.msra.gmra.mrb[30].mxu0 %v26834_v40  ;;  %v29327_v40 = vand.u32 4294901760, %v26868_v54 }
 0xf84   : > { %20636 = vmatprep.mubr.f32.mxu0 %v26855_v17  ;;  %22892 = vmatpush3.bf16.msk.msra.mxu0 %vm29072_vm6, %v29071_v15  ;;  %v29334_v17 = vld [vmem:[#allocation75_spill] sm:$0xff] }
 0xf85   : > { %22894 = vmatprep.subr.msk.bf16.mxu0 %vm29073_vm7, %v29071_v15 }
 0xf87   : > { %20637 = vmatmul.mubr.f32.gmra.mrb[32].mxu0 %v26851_v37  ;;  %v29330_v37 = vld [vmem:[#allocation74_spill] sm:$0xff] }
 0xf88   : > { %20639 = vmatprep.mubr.f32.mxu0 %v26875_v59  ;;  %22896 = vmatpush3.bf16.msk.msra.mxu0 %vm29073_vm7, %v29071_v15 }
 0xf89   : > { %22898 = vmatprep.subr.msk.bf16.mxu0 %vm29074_vm13, %v29071_v15 }
 0xf8b   : > { %20640 = vmatmul.mubr.f32.gmra.mrb[34].mxu0 %v26868_v54 }
 0xf8c   : > { %20642 = vmatprep.mubr.f32.mxu0 %v26896_v27  ;;  %22900 = vmatpush3.bf16.msk.msra.mxu0 %vm29074_vm13, %v29071_v15 }
 0xf8d   : > { %22902 = vmatprep.subr.msk.bf16.mxu0 %vm29169_vm1, %v29071_v15 }
 0xf8f   : > { %20643 = vmatmul.mubr.f32.gmra.mrb[36].mxu0 %v26889_v39  ;;  %v29328_v39 = vld [vmem:[#allocation73_spill] sm:$0xff] }
 0xf90   : > { %22904 = vmatpush3.bf16.msk.msra.mxu0 %vm29169_vm1, %v29071_v15  ;;  %20677 = vmatprep.mubr.f32.mxu0 %v29323_v50  ;;  %v29340_v50 = vld [vmem:[#allocation77_spill] sm:$0xff] }
 0xf91   : > { %22906 = vmatprep.subr.msk.bf16.mxu0 %vm29172_vm3, %v29071_v15 }
 0xf94   : > { %22908 = vmatpush3.bf16.msk.msra.mxu0 %vm29172_vm3, %v29071_v15 }
 0xf95   : > { %22910 = vmatprep.subr.msk.bf16.mxu0 %vm29175_vm5, %v29071_v15 }
 0xf98   : > { %22912 = vmatpush3.bf16.msk.msra.mxu0 %vm29175_vm5, %v29071_v15 }
 0xf99   : > { %22914 = vmatprep.subr.msk.bf16.mxu0 %vm29176_vm11, %v29071_v15 }
 0xf9c   : > { %22916 = vmatpush3.bf16.msk.msra.mxu0 %vm29176_vm11, %v29071_v15 }
 0xf9d   : > { %22918 = vmatprep.subr.msk.bf16.mxu0 %vm29177_vm4, %v29071_v15 }
 0xfa0   : > { %22920 = vmatpush3.bf16.msk.msra.mxu0 %vm29177_vm4, %v29071_v15 }
 0xfa1   : > { %22922 = vmatprep.subr.bf16.mxu0 %v29252_v62 }
 0xfa3   : > { %20678 = vmatmul.mubr.f32.vlgmr.msra.gmra.mrb[30].mxu0 %v29324_v24 }
 0xfa4   : > { %20680 = vmatprep.mubr.f32.mxu0 %v29325_v51  ;;  %22924 = vmatpush3.bf16.msra.mxu0 %v29252_v62 }
 0xfa5   : > { %22926 = vmatprep.subr.bf16.mxu0 %v29253_v48 }
 0xfa7   : > { %20681 = vmatmul.mubr.f32.gmra.mrb[32].mxu0 %v29326_v16  ;;  %v29342_v16 = vld [vmem:[#allocation78_spill] sm:$0xff] }
 0xfa8   : > { %20683 = vmatprep.mubr.f32.mxu0 %v7865_v8  ;;  %22928 = vmatpush3.bf16.msra.mxu0 %v29253_v48 }
 0xfa9   : > { %22930 = vmatprep.subr.bf16.mxu0 %v29254_v1 }
 0xfab   : > { %20684 = vmatmul.mubr.f32.gmra.mrb[34].mxu0 %v29327_v40 }
 0xfac   : > { %20686 = vmatprep.mubr.f32.mxu0 %v7885_v4  ;;  %22932 = vmatpush3.bf16.msra.mxu0 %v29254_v1 }
 0xfad   : > { %22934 = vmatprep.subr.bf16.mxu0 %v29255_v19 }
 0xfaf   : > { %20687 = vmatmul.mubr.f32.gmra.mrb[36].mxu0 %v7895_v31 }
 0xfb0   : > { %22936 = vmatpush3.bf16.msra.mxu0 %v29255_v19  ;;  %20721 = vmatprep.mubr.f32.mxu0 %v26831_v49 }
 0xfb1   : > { %22938 = vmatprep.subr.bf16.mxu0 %v29256_v30 }
 0xfb4   : > { %22940 = vmatpush3.bf16.msra.mxu0 %v29256_v30 }
 0xfb5   : > { %22942 = vmatprep.subr.bf16.mxu0 %v29257_v11 }
 0xfb8   : > { %22944 = vmatpush3.bf16.msra.mxu0 %v29257_v11 }
 0xfb9   : > { %22946 = vmatprep.subr.bf16.mxu0 %v29258_v6 }
 0xfbc   : > { %22948 = vmatpush3.bf16.msra.mxu0 %v29258_v6 }
 0xfbd   : > { %22950 = vmatprep.subr.bf16.mxu0 %v29259_v5 }
 0xfc0   : > { %22952 = vmatpush3.bf16.msra.mxu0 %v29259_v5 }
 0xfc1   : > { %22954 = vmatprep.subr.msk.bf16.mxu0 %vm29072_vm6, %v29071_v15 }
 0xfc3   : > { %20722 = vmatmul.mubr.f32.vlgmr.msra.gmra.mrb[30].mxu0 %v26829_v44 }
 0xfc4   : > { %20724 = vmatprep.mubr.f32.mxu0 %v26844_v55  ;;  %22956 = vmatpush3.bf16.msk.msra.mxu0 %vm29072_vm6, %v29071_v15 }
 0xfc5   : > { %22958 = vmatprep.subr.msk.bf16.mxu0 %vm29073_vm7, %v29071_v15 }
 0xfc7   : > { %20725 = vmatmul.mubr.f32.gmra.mrb[32].mxu0 %v26842_v42 }
 0xfc8   : > { %20727 = vmatprep.mubr.f32.mxu0 %v26864_v57  ;;  %22960 = vmatpush3.bf16.msk.msra.mxu0 %vm29073_vm7, %v29071_v15 }
 0xfc9   : > { %22962 = vmatprep.subr.msk.bf16.mxu0 %vm29074_vm13, %v29071_v15 }
 0xfcb   : > { %20728 = vmatmul.mubr.f32.gmra.mrb[34].mxu0 %v26861_v13 }
 0xfcc   : > { %20730 = vmatprep.mubr.f32.mxu0 %v26884_v53  ;;  %22964 = vmatpush3.bf16.msk.msra.mxu0 %vm29074_vm13, %v29071_v15 }
 0xfcd   : > { %22966 = vmatprep.subr.msk.bf16.mxu0 %vm29169_vm1, %v29071_v15 }
 0xfcf   : > { %20731 = vmatmul.mubr.f32.gmra.mrb[36].mxu0 %v26881_v63 }
 0xfd0   : > { %22968 = vmatpush3.bf16.msk.msra.mxu0 %vm29169_vm1, %v29071_v15  ;;  %20765 = vmatprep.mubr.f32.mxu0 %v26831_v49 }
 0xfd1   : > { %22970 = vmatprep.subr.msk.bf16.mxu0 %vm29172_vm3, %v29071_v15 }
 0xfd4   : > { %22972 = vmatpush3.bf16.msk.msra.mxu0 %vm29172_vm3, %v29071_v15 }
 0xfd5   : > { %22974 = vmatprep.subr.msk.bf16.mxu0 %vm29175_vm5, %v29071_v15 }
 0xfd8   : > { %22976 = vmatpush3.bf16.msk.msra.mxu0 %vm29175_vm5, %v29071_v15 }
 0xfd9   : > { %22978 = vmatprep.subr.msk.bf16.mxu0 %vm29176_vm11, %v29071_v15 }
 0xfdc   : > { %22980 = vmatpush3.bf16.msk.msra.mxu0 %vm29176_vm11, %v29071_v15 }
 0xfdd   : > { %22982 = vmatprep.subr.msk.bf16.mxu0 %vm29177_vm4, %v29071_v15 }
 0xfe0   : > { %22984 = vmatpush3.bf16.msk.msra.mxu0 %vm29177_vm4, %v29071_v15 }
 0xfe1   : > { %22985 = vmatprep.subr.bf16.mxu0 %v29199_v7 }
 0xfe3   : > { %20766 = vmatmul.mubr.f32.vlgmr.msra.gmra.mrb[30].mxu0 %v26829_v44 }
 0xfe4   : > { %20768 = vmatprep.mubr.f32.mxu0 %v26844_v55 }
 0xfe7   : > { %20769 = vmatmul.mubr.f32.gmra.mrb[32].mxu0 %v26842_v42 }
 0xfe8   : > { %20771 = vmatprep.mubr.f32.mxu0 %v26864_v57 }
 0xfeb   : > { %20772 = vmatmul.mubr.f32.gmra.mrb[34].mxu0 %v26861_v13 }
 0xfec   : > { %20774 = vmatprep.mubr.f32.mxu0 %v26884_v53 }
 0xfef   : > { %20775 = vmatmul.mubr.f32.gmra.mrb[36].mxu0 %v26881_v63  ;;  %v29336_v63 = vld [vmem:[#allocation76_spill] sm:$0xff] }
 0xff0   : > { %20961 = vmatprep.mubr.msk.f32.mxu0 %vm29200_vm12, %v29086_v34 }
0x10b6   : > { %v20767_v59 = vpop.f32.mrb[30].mxu0 }
0x10b7   : > { %v27102_v49 = vadd.f32 %v20767_v59, %v29328_v39  ;;  %v8638_v44 = vpop.f32.mrb[31].mxu0 }
0x10b8   : > { %v27105_v55 = vadd.f32 %v8638_v44, %v29330_v37  ;;  %v29346_v37 = vld [vmem:[#allocation79_spill] sm:$0xff] }
0x10b9   : > { %29329 = vst [vmem:[#allocation37_spill] sm:$0xff] %v27102_v49  ;;  %v8695_v57 = vsel %vm29332_vm14, %v27102_v49, -inf  ;;  %vm29351_vm14 = vmmov %vm29345_vm0 }
0x10ba   : > { %29331 = vst [vmem:[#allocation81_spill] sm:$0xff] %v27105_v55  ;;  %8696 = vmax.xlane.f32.xlu0 %v8695_v57  ;;  %v20770_v13 = vpop.f32.mrb[32].mxu0  ;;  %v8692_v42 = vsel %vm29333_vm15, %v27105_v55, -inf  ;;  %vm29352_vm15 = vmmov %vm29345_vm0 }
0x10bb   : > { %v27112_v31 = vadd.f32 %v20770_v13, %v29334_v17  ;;  %8693 = vmax.xlane.f32.xlu1 %v8692_v42  ;;  %v8650_v54 = vpop.f32.mrb[33].mxu0  ;;  %v29348_v42 = vld [vmem:[#allocation80_spill] sm:$0xff] }
0x10bc   : > { %v27115_v53 = vadd.f32 %v8650_v54, %v29336_v63 }
0x10bd   : > { %29335 = vst [vmem:[#allocation20_spill] sm:$0xff] %v27112_v31  ;;  %v8701_v8 = vsel %vm29338_vm9, %v27112_v31, -inf  ;;  %vm29353_vm9 = vmmov %vm29345_vm0 }
0x10be   : > { %29337 = vst [vmem:[#allocation21_spill] sm:$0xff] %v27115_v53  ;;  %v20773_v27 = vpop.f32.mrb[34].mxu0  ;;  %v8698_v4 = vsel %vm29339_vm10, %v27115_v53, -inf  ;;  %vm29354_vm10 = vmmov %vm29345_vm0 }
0x10bf   : > { %v27122_v24 = vadd.f32 %v20773_v27, %v29340_v50  ;;  %8702 = vmax.xlane.f32.xlu1 %v8701_v8  ;;  %8699 = vmax.xlane.f32.xlu0 %v8698_v4  ;;  %v8662_v51 = vpop.f32.mrb[35].mxu0 }
0x10c0   : > { %v27125_v40 = vadd.f32 %v8662_v51, %v29342_v16 }
0x10c1   : > { %29341 = vst [vmem:[#allocation22_spill] sm:$0xff] %v27122_v24  ;;  %v8707_v59 = vsel %vm29344_vm8, %v27122_v24, -inf  ;;  %vm29355_vm8 = vmmov %vm29345_vm0 }
0x10c2   : > { %29343 = vst [vmem:[#allocation23_spill] sm:$0xff] %v27125_v40  ;;  %v20776_v39 = vpop.f32.mrb[36].mxu0  ;;  %v8704_v44 = vsel %vm29345_vm0, %v27125_v40, -inf }
0x10c3   : > { %v27132_v57 = vadd.f32 %v20776_v39, %v29346_v37  ;;  %8708 = vmax.xlane.f32.xlu1 %v8707_v59  ;;  %8705 = vmax.xlane.f32.xlu0 %v8704_v44  ;;  %v8674_v13 = vpop.f32.mrb[37].mxu0 }
0x10c4   : > { %v27135_v17 = vadd.f32 %v8674_v13, %v29348_v42 }
0x10c5   : > { %29347 = vst [vmem:[#allocation73_spill] sm:$0xff] %v27132_v57  ;;  %v8713_v54 = vsel %vm29350_vm2, %v27132_v57, -inf  ;;  %vm29356_vm2 = vmmov %vm29345_vm0 }
0x10c6   : > { %29349 = vst [vmem:[#allocation74_spill] sm:$0xff] %v27135_v17  ;;  %v8710_v63 = vsel %vm29351_vm14, %v27135_v17, -inf  ;;  %vm29357_vm14 = vmmov %vm29345_vm0 }
0x10c7   : > { %8714 = vmax.xlane.f32.xlu1 %v8713_v54  ;;  %8711 = vmax.xlane.f32.xlu0 %v8710_v63 }
0x1147   : > { %v8697_v8 = vpop.xlane.xlu0 %8696 }
0x1148   : > { %v8717_v27 = vsub.f32 %v27102_v49, %v8697_v8  ;;  %v8694_v4 = vpop.xlane.xlu1 %8693 }
0x1149   : > { %v8716_v50 = vsub.f32 %v27105_v55, %v8694_v4 }
0x114a   : > { %v8726_v51 = vmul.f32 1.442695, %v8717_v27 }
0x114b   : > { %v8724_v16 = vmul.f32 1.442695, %v8716_v50 }
0x114c   : > { %24311 = vpow2.f32 %v8726_v51  ;;  %v8703_v59 = vpop.xlane.xlu1 %8702  ;;  %v8700_v39 = vpop.xlane.xlu0 %8699 }
0x114d   : > { %24313 = vpow2.f32 %v8724_v16  ;;  %v8719_v44 = vsub.f32 %v27112_v31, %v8703_v59  ;;  %v8718_v37 = vsub.f32 %v27115_v53, %v8700_v39 }
0x114f   : > { %v8730_v13 = vmul.f32 1.442695, %v8719_v44  ;;  %v8728_v42 = vmul.f32 1.442695, %v8718_v37 }
0x1150   : > { %v8709_v54 = vpop.xlane.xlu1 %8708  ;;  %v8706_v63 = vpop.xlane.xlu0 %8705 }
0x1151   : > { %24315 = vpow2.f32 %v8730_v13  ;;  %v8721_v8 = vsub.f32 %v27122_v24, %v8709_v54  ;;  %v8720_v49 = vsub.f32 %v27125_v40, %v8706_v63 }
0x1152   : > { %24317 = vpow2.f32 %v8728_v42 }
0x1153   : > { %v8734_v27 = vmul.f32 1.442695, %v8721_v8  ;;  %v8732_v4 = vmul.f32 1.442695, %v8720_v49 }
0x1154   : > { %v8715_v50 = vpop.xlane.xlu1 %8714  ;;  %v8712_v51 = vpop.xlane.xlu0 %8711 }
0x1155   : > { %24319 = vpow2.f32 %v8734_v27  ;;  %v8723_v16 = vsub.f32 %v27132_v57, %v8715_v50  ;;  %v8722_v59 = vsub.f32 %v27135_v17, %v8712_v51 }
0x1156   : > { %v27149_v39 = vpop.eup %24311  ;;  %24321 = vpow2.f32 %v8732_v4 }
0x1157   : > { %v27151_v44 = vpop.eup %24313  ;;  %v8744_v37 = vsel %vm29352_vm15, %v27149_v39, 0  ;;  %v8738_v13 = vmul.f32 1.442695, %v8723_v16  ;;  %v8736_v54 = vmul.f32 1.442695, %v8722_v59  ;;  %vm29358_vm15 = vmmov %vm29345_vm0 }
0x1158   : > { %v27155_v42 = vand.u32 4294901760, %v8744_v37  ;;  %v8741_v49 = vsel %vm29353_vm9, %v27151_v44, 0  ;;  %vm29362_vm9 = vnez %v29227_v20 }
0x1159   : > { %24323 = vpow2.f32 %v8738_v13  ;;  %v27159_v63 = vand.u32 4294901760, %v8741_v49 }
0x115a   : > { %v27162_v8 = vsub.f32 %v8744_v37, %v27155_v42  ;;  %24325 = vpow2.f32 %v8736_v54 }
0x115b   : > { %v27164_v27 = vpop.eup %24315  ;;  %v27167_v4 = vsub.f32 %v8741_v49, %v27159_v63 }
0x115c   : > { %v27169_v50 = vpop.eup %24317  ;;  %v28926_v51 = vand.u32 4294901760, %v27162_v8  ;;  %v8750_v16 = vsel %vm29354_vm10, %v27164_v27, 0  ;;  %vm29363_vm10 = vmmov %vm29345_vm0 }
0x115d   : > { %v28930_v59 = vand.u32 4294901760, %v27167_v4  ;;  %v8747_v13 = vsel %vm29355_vm8, %v27169_v50, 0  ;;  %v27177_v37 = vand.u32 4294901760, %v8750_v16  ;;  %vm29364_vm8 = vmmov %vm29345_vm0 }
0x115e   : > { %v8842_v54 = vsub.f32 %v27162_v8, %v28926_v51  ;;  %v27182_v49 = vand.u32 4294901760, %v8747_v13 }
0x115f   : > { %v27184_v17 = vpop.eup %24319  ;;  %v8832_v57 = vsub.f32 %v27167_v4, %v28930_v59  ;;  %v27190_v40 = vsub.f32 %v8750_v16, %v27177_v37 }
0x1160   : > { %v27192_v24 = vpop.eup %24321  ;;  %v27195_v53 = vsub.f32 %v8747_v13, %v27182_v49  ;;  %v8756_v31 = vsel %vm29345_vm0, %v27184_v17, 0  ;;  %v8843_v59 = vand.u32 4294901760, %v8842_v54 }
0x1161   : > { %v8833_v51 = vand.u32 4294901760, %v8832_v57  ;;  %v28938_v55 = vand.u32 4294901760, %v27190_v40  ;;  %v8753_v5 = vsel %vm29356_vm2, %v27192_v24, 0  ;;  %v27202_v6 = vand.u32 4294901760, %v8756_v31  ;;  %vm29365_vm2 = vmmov %vm29345_vm0 }
0x1162   : > { %v8851_v16 = vand.u32 4294901760, %v27195_v53  ;;  %v27205_v11 = vand.u32 4294901760, %v8753_v5 }
0x1163   : > { %v27207_v30 = vpop.eup %24323  ;;  %20779 = vmatprep.mubr.f32.mxu1 %v8833_v51  ;;  %v8862_v13 = vsub.f32 %v27190_v40, %v28938_v55  ;;  %v8880_v57 = vsub.f32 %v8756_v31, %v27202_v6 }
0x1164   : > { %v27213_v19 = vpop.eup %24325  ;;  %20780 = vmatmul.mubr.f32.vlgmr.msra.gmra.mrb[32].mxu1 %v8843_v59  ;;  %v8852_v1 = vsub.f32 %v27195_v53, %v8851_v16  ;;  %v8870_v54 = vsub.f32 %v8753_v5, %v27205_v11  ;;  %v8762_v48 = vsel %vm29357_vm14, %v27207_v30, 0  ;;  %vm29366_vm14 = vmmov %vm29345_vm0 }
0x1165   : > { %v8863_v62 = vand.u32 4294901760, %v8862_v13  ;;  %20792 = vmatpush3.msra.mxu1 %v29086_v34  ;;  %v8881_v51 = vand.u32 4294901760, %v8880_v57  ;;  %v8759_v38 = vsel %vm29358_vm15, %v27213_v19, 0  ;;  %v27222_v55 = vand.u32 4294901760, %v8762_v48  ;;  %vm29367_vm15 = vmmov %vm29345_vm0 }
0x1166   : > { %v8853_v31 = vand.u32 4294901760, %v8852_v1  ;;  %v8871_v47 = vand.u32 4294901760, %v8870_v54  ;;  %v27224_v61 = vand.u32 4294901760, %v8759_v38  ;;  %20805 = vmatprep.subr.mxu1 %v29086_v34 }
0x1167   : > { %v8882_v59 = vsub.f32 %v8880_v57, %v8881_v51  ;;  %v8900_v5 = vsub.f32 %v8762_v48, %v27222_v55 }
0x1168   : > { %20782 = vmatprep.mubr.f32.mxu1 %v8853_v31  ;;  %v8872_v0 = vsub.f32 %v8870_v54, %v8871_v47  ;;  %v8890_v13 = vsub.f32 %v8759_v38, %v27224_v61 }
0x1169   : > { %20783 = vmatmul.mubr.f32.gmra.mrb[34].mxu1 %v8863_v62  ;;  %v8883_v36 = vand.u32 4294901760, %v8882_v59  ;;  %v8901_v26 = vand.u32 4294901760, %v8900_v5 }
0x116a   : > { %v8873_v21 = vand.u32 4294901760, %v8872_v0  ;;  %v8891_v56 = vand.u32 4294901760, %v8890_v13  ;;  %v29361_v0 = vand.u32 4294901760, %v27190_v40 }
0x116b   : > { %v8902_v58 = vsub.f32 %v8900_v5, %v8901_v26 }
0x116c   : > { %20785 = vmatprep.mubr.f32.mxu1 %v8873_v21  ;;  %v8892_v1 = vsub.f32 %v8890_v13, %v8891_v56  ;;  %v29359_v21 = vand.u32 4294901760, %v27167_v4 }
0x116d   : > { %20786 = vmatmul.mubr.f32.gmra.mrb[36].mxu1 %v8883_v36  ;;  %v8903_v18 = vand.u32 4294901760, %v8902_v58  ;;  %v29360_v36 = vand.u32 4294901760, %v27162_v8 }
0x116e   : > { %v8893_v14 = vand.u32 4294901760, %v8892_v1 }
0x1170   : > { %20788 = vmatprep.mubr.f32.mxu1 %v8893_v14 }
0x1171   : > { %20789 = vmatmul.mubr.f32.gmra.mrb[38].mxu1 %v8903_v18 }
0x1172   : > { %20793 = vmatprep.mubr.f32.mxu1 %v27159_v63 }
0x1175   : > { %20794 = vmatmul.mubr.f32.vlgmr.msra.gmra.mrb[32].mxu1 %v27155_v42 }
0x1176   : > { %20796 = vmatprep.mubr.f32.mxu1 %v27182_v49  ;;  %20806 = vmatpush3.msra.mxu1 %v29086_v34 }
0x1177   : > { %20819 = vmatprep.subr.mxu1 %v29111_v25 }
0x1179   : > { %20797 = vmatmul.mubr.f32.gmra.mrb[34].mxu1 %v27177_v37 }
0x117a   : > { %20799 = vmatprep.mubr.f32.mxu1 %v27205_v11 }
0x117d   : > { %20800 = vmatmul.mubr.f32.gmra.mrb[36].mxu1 %v27202_v6 }
0x117e   : > { %20802 = vmatprep.mubr.f32.mxu1 %v27224_v61 }
0x1181   : > { %20803 = vmatmul.mubr.f32.gmra.mrb[38].mxu1 %v27222_v55 }
0x1182   : > { %20807 = vmatprep.mubr.f32.mxu1 %v27167_v4 }
0x1185   : > { %20808 = vmatmul.mubr.f32.vlgmr.msra.gmra.mrb[32].mxu1 %v27162_v8 }
0x1186   : > { %20810 = vmatprep.mubr.f32.mxu1 %v27195_v53  ;;  %20820 = vmatpush3.msra.mxu1 %v29111_v25 }
0x1187   : > { %20833 = vmatprep.subr.mxu1 %v29086_v34 }
0x1189   : > { %20811 = vmatmul.mubr.f32.gmra.mrb[34].mxu1 %v27190_v40 }
0x118a   : > { %20813 = vmatprep.mubr.f32.mxu1 %v8870_v54 }
0x118d   : > { %20814 = vmatmul.mubr.f32.gmra.mrb[36].mxu1 %v8880_v57 }
0x118e   : > { %20816 = vmatprep.mubr.f32.mxu1 %v8890_v13 }
0x1191   : > { %20817 = vmatmul.mubr.f32.gmra.mrb[38].mxu1 %v8900_v5 }
0x1192   : > { %20821 = vmatprep.mubr.f32.mxu1 %v29359_v21 }
0x1195   : > { %20822 = vmatmul.mubr.f32.vlgmr.msra.gmra.mrb[32].mxu1 %v29360_v36 }
0x1196   : > { %20824 = vmatprep.mubr.f32.mxu1 %v8851_v16  ;;  %20834 = vmatpush3.msra.mxu1 %v29086_v34 }
0x1197   : > { %20847 = vmatprep.subr.mxu1 %v29111_v25 }
0x1199   : > { %20825 = vmatmul.mubr.f32.gmra.mrb[34].mxu1 %v29361_v0 }
0x119a   : > { %20827 = vmatprep.mubr.f32.mxu1 %v8871_v47 }
0x119d   : > { %20828 = vmatmul.mubr.f32.gmra.mrb[36].mxu1 %v8881_v51 }
0x119e   : > { %20830 = vmatprep.mubr.f32.mxu1 %v8891_v56 }
0x11a1   : > { %20831 = vmatmul.mubr.f32.gmra.mrb[38].mxu1 %v8901_v26 }
0x11a2   : > { %20835 = vmatprep.mubr.f32.mxu1 %v27159_v63 }
0x11a5   : > { %20836 = vmatmul.mubr.f32.vlgmr.msra.gmra.mrb[32].mxu1 %v27155_v42 }
0x11a6   : > { %20838 = vmatprep.mubr.f32.mxu1 %v27182_v49  ;;  %20848 = vmatpush3.msra.mxu1 %v29111_v25 }
0x11a7   : > { %20861 = vmatprep.subr.msk.mxu1 %vm29362_vm9, %v29111_v25 }
0x11a9   : > { %20839 = vmatmul.mubr.f32.gmra.mrb[34].mxu1 %v27177_v37 }
0x11aa   : > { %20841 = vmatprep.mubr.f32.mxu1 %v27205_v11 }
0x11ad   : > { %20842 = vmatmul.mubr.f32.gmra.mrb[36].mxu1 %v27202_v6 }
0x11ae   : > { %20844 = vmatprep.mubr.f32.mxu1 %v27224_v61 }
0x11b1   : > { %20845 = vmatmul.mubr.f32.gmra.mrb[38].mxu1 %v27222_v55 }
0x11b2   : > { %20849 = vmatprep.mubr.f32.mxu1 %v27159_v63 }
0x11b5   : > { %20850 = vmatmul.mubr.f32.vlgmr.msra.gmra.mrb[32].mxu1 %v27155_v42 }
0x11b6   : > { %20852 = vmatprep.mubr.f32.mxu1 %v27182_v49  ;;  %20862 = vmatpush3.msk.msra.mxu1 %vm29362_vm9, %v29111_v25 }
0x11b7   : > { %20875 = vmatprep.subr.mxu1 %v29229_v41 }
0x11b9   : > { %20853 = vmatmul.mubr.f32.gmra.mrb[34].mxu1 %v27177_v37 }
0x11ba   : > { %20855 = vmatprep.mubr.f32.mxu1 %v27205_v11 }
0x11bd   : > { %20856 = vmatmul.mubr.f32.gmra.mrb[36].mxu1 %v27202_v6 }
0x11be   : > { %20858 = vmatprep.mubr.f32.mxu1 %v27224_v61 }
0x11c1   : > { %20859 = vmatmul.mubr.f32.gmra.mrb[38].mxu1 %v27222_v55 }
0x1288   : > { %v20851_v56 = vpop.f32.mrb[32].mxu1 }
0x1289   : > { %24327 = vrcp.f32 %v20851_v56  ;;  %v9452_v26 = vpop.f32.mrb[33].mxu1 }
0x128a   : > { %24329 = vrcp.f32 %v9452_v26 }
0x128c   : > { %v20854_v47 = vpop.f32.mrb[34].mxu1 }
0x128d   : > { %24331 = vrcp.f32 %v20854_v47  ;;  %v9464_v38 = vpop.f32.mrb[35].mxu1 }
0x128e   : > { %24333 = vrcp.f32 %v9464_v38 }
0x1290   : > { %v20857_v62 = vpop.f32.mrb[36].mxu1 }
0x1291   : > { %24335 = vrcp.f32 %v20857_v62  ;;  %v9476_v48 = vpop.f32.mrb[37].mxu1 }
0x1292   : > { %24337 = vrcp.f32 %v9476_v48 }
0x1293   : > { %v24328_v14 = vpop.eup %24327 }
0x1294   : > { %v24330_v11 = vpop.eup %24329  ;;  %v9507_v18 = vmul.f32 %v24328_v14, %v20851_v56  ;;  %v20860_v6 = vpop.f32.mrb[38].mxu1 }
0x1295   : > { %v9506_v58 = vmul.f32 %v24330_v11, %v9452_v26  ;;  %24339 = vrcp.f32 %v20860_v6  ;;  %v9488_v61 = vpop.f32.mrb[39].mxu1 }
0x1296   : > { %v9515_v55 = vsub.f32 2.0, %v9507_v18  ;;  %24341 = vrcp.f32 %v9488_v61 }
0x1297   : > { %v24332_v53 = vpop.eup %24331  ;;  %v9514_v40 = vsub.f32 2.0, %v9506_v58 }
0x1298   : > { %v24334_v42 = vpop.eup %24333  ;;  %v9509_v63 = vmul.f32 %v24332_v53, %v20854_v47  ;;  %v9523_v8 = vmul.f32 %v24328_v14, %v9515_v55 }
0x1299   : > { %v9508_v4 = vmul.f32 %v24334_v42, %v9464_v38  ;;  %v9522_v37 = vmul.f32 %v24330_v11, %v9514_v40 }
0x129a   : > { %v9517_v49 = vsub.f32 2.0, %v9509_v63  ;;  %9537 = vperm.xlu1 %24270, %v9523_v8  }
0x129b   : > { %v24336_v16 = vpop.eup %24335  ;;  %v9516_v57 = vsub.f32 2.0, %v9508_v4  ;;  %9532 = vperm.xlu0 %24269, %v9522_v37  }
0x129c   : > { %v24338_v54 = vpop.eup %24337  ;;  %v9511_v51 = vmul.f32 %v24336_v16, %v20857_v62  ;;  %v9525_v31 = vmul.f32 %v24332_v53, %v9517_v49 }
0x129d   : > { %v9510_v59 = vmul.f32 %v24338_v54, %v9476_v48  ;;  %v9524_v5 = vmul.f32 %v24334_v42, %v9516_v57 }
0x129e   : > { %v9519_v13 = vsub.f32 2.0, %v9511_v51 }
0x129f   : > { %v24340_v1 = vpop.eup %24339  ;;  %v9518_v21 = vsub.f32 2.0, %v9510_v59  ;;  %9547 = vperm.xlu0 %24269, %v9525_v31   ;;  %9542 = vperm.xlu1 %24270, %v9524_v5  }
0x12a0   : > { %v24342_v36 = vpop.eup %24341  ;;  %v9513_v0 = vmul.f32 %v24340_v1, %v20860_v6  ;;  %v9527_v56 = vmul.f32 %v24336_v16, %v9519_v13 }
0x12a1   : > { %v9512_v26 = vmul.f32 %v24342_v36, %v9488_v61  ;;  %v9526_v47 = vmul.f32 %v24338_v54, %v9518_v21 }
0x12a2   : > { %v9521_v38 = vsub.f32 2.0, %v9513_v0 }
0x12a3   : > { %v9520_v14 = vsub.f32 2.0, %v9512_v26  ;;  %9557 = vperm.xlu0 %24269, %v9527_v56   ;;  %9552 = vperm.xlu1 %24270, %v9526_v47  }
0x12a4   : > { %v9529_v11 = vmul.f32 %v24340_v1, %v9521_v38 }
0x12a5   : > { %v9528_v18 = vmul.f32 %v24342_v36, %v9520_v14 }
0x12a7   : > { %9567 = vperm.xlu0 %24269, %v9529_v11   ;;  %9562 = vperm.xlu1 %24270, %v9528_v18  }
0x1319   : > { %v9538_v62 = vpop.permute.xlu1 %9537 }
0x131a   : > { %v9571_v48 = vmul.f32 %v27149_v39, %v9538_v62  ;;  %v9533_v58 = vpop.permute.xlu0 %9532 }
0x131b   : > { %v9570_v55 = vmul.f32 %v27151_v44, %v9533_v58 }
0x131c   : > { %v9582_v53 = vsel %vm29363_vm10, %v9571_v48, 0  ;;  %vm29368_vm10 = vmmov %vm29345_vm0 }
0x131d   : > { %v27280_v6 = vand.u32 4294901760, %v9582_v53  ;;  %v9579_v61 = vsel %vm29364_vm8, %v9570_v55, 0  ;;  %vm29369_vm8 = vmmov %vm29345_vm0 }
0x131e   : > { %v27283_v40 = vand.u32 4294901760, %v9579_v61  ;;  %v9548_v42 = vpop.permute.xlu0 %9547  ;;  %v9543_v63 = vpop.permute.xlu1 %9542 }
0x131f   : > { %v27286_v8 = vsub.f32 %v9582_v53, %v27280_v6  ;;  %v9573_v4 = vmul.f32 %v27164_v27, %v9548_v42  ;;  %v9572_v39 = vmul.f32 %v27169_v50, %v9543_v63 }
0x1320   : > { %v27291_v37 = vsub.f32 %v9579_v61, %v27283_v40 }
0x1321   : > { %v9680_v44 = vand.u32 4294901760, %v27286_v8  ;;  %v9588_v49 = vsel %vm29345_vm0, %v9573_v4, 0  ;;  %v9585_v16 = vsel %vm29365_vm2, %v9572_v39, 0  ;;  %vm29373_vm0 = vcmask 523264  }
0x1322   : > { %v27296_v57 = vand.u32 4294901760, %v9588_v49  ;;  %v27298_v54 = vand.u32 4294901760, %v9585_v16  ;;  %v9558_v51 = vpop.permute.xlu0 %9557  ;;  %v9553_v31 = vpop.permute.xlu1 %9552  ;;  %v9670_v59 = vand.u32 4294901760, %v27291_v37  ;;  %vm29376_vm2 = vmmov %vm29373_vm0 }
0x1323   : > { %v9681_v27 = vsub.f32 %v27286_v8, %v9680_v44  ;;  %v9575_v50 = vmul.f32 %v27184_v17, %v9558_v51  ;;  %v9574_v5 = vmul.f32 %v27192_v24, %v9553_v31 }
0x1324   : > { %v27307_v13 = vsub.f32 %v9588_v49, %v27296_v57  ;;  %v27310_v1 = vsub.f32 %v9585_v16, %v27298_v54  ;;  %v9671_v21 = vsub.f32 %v27291_v37, %v9670_v59 }
0x1325   : > { %v9594_v36 = vsel %vm29366_vm14, %v9575_v50, 0  ;;  %v9591_v0 = vsel %vm29367_vm15, %v9574_v5, 0  ;;  %v9682_v14 = vand.u32 4294901760, %v9681_v27  ;;  %vm29377_vm14 = vmmov %vm29373_vm0 }
0x1326   : > { %v27317_v56 = vand.u32 4294901760, %v9594_v36  ;;  %v27319_v26 = vand.u32 4294901760, %v9591_v0  ;;  %v9568_v17 = vpop.permute.xlu0 %9567  ;;  %v9563_v24 = vpop.permute.xlu1 %9562  ;;  %v9672_v47 = vand.u32 4294901760, %v9671_v21  ;;  %v9690_v38 = vand.u32 4294901760, %v27310_v1 }
0x1327   : > { %v9577_v11 = vmul.f32 %v27207_v30, %v9568_v17  ;;  %v9576_v18 = vmul.f32 %v27213_v19, %v9563_v24  ;;  %v9700_v62 = vand.u32 4294901760, %v27307_v13 }
0x1328   : > { %v9719_v48 = vsub.f32 %v9594_v36, %v27317_v56  ;;  %v9709_v58 = vsub.f32 %v9591_v0, %v27319_v26  ;;  %20863 = vmatprep.mubr.f32.mxu1 %v9672_v47  ;;  %v9691_v55 = vsub.f32 %v27310_v1, %v9690_v38 }
0x1329   : > { %v9600_v53 = vsel %vm29368_vm10, %v9577_v11, 0  ;;  %v9597_v61 = vsel %vm29369_vm8, %v9576_v18, 0  ;;  %20864 = vmatmul.mubr.f32.vlgmr.msra.gmra.mrb[40].mxu1 %v9682_v14  ;;  %v9701_v42 = vsub.f32 %v27307_v13, %v9700_v62  ;;  %v27440_v18 = vld [vmem:[%s24644_s30 + $0x10] sm:$0xff] }
0x132a   : > { %v27331_v63 = vand.u32 4294901760, %v9600_v53  ;;  %v27333_v30 = vand.u32 4294901760, %v9597_v61  ;;  %v9692_v19 = vand.u32 4294901760, %v9691_v55  ;;  %v9710_v4 = vand.u32 4294901760, %v9709_v58  ;;  %20876 = vmatpush3.msra.mxu1 %v29229_v41 }
0x132b   : > { %v9702_v39 = vand.u32 4294901760, %v9701_v42  ;;  %v9720_v49 = vand.u32 4294901760, %v9719_v48  ;;  %20889 = vmatprep.subr.mxu1 %v29234_v22 }
0x132c   : > { %v9739_v16 = vsub.f32 %v9600_v53, %v27331_v63  ;;  %v9729_v51 = vsub.f32 %v9597_v61, %v27333_v30  ;;  %20866 = vmatprep.mubr.f32.mxu1 %v9692_v19  ;;  %v9711_v31 = vsub.f32 %v9709_v58, %v9710_v4  ;;  %v27452_v19 = vld [vmem:[%s24644_s30 + $0x28] sm:$0xff] }
0x132d   : > { %20867 = vmatmul.mubr.f32.gmra.mrb[42].mxu1 %v9702_v39  ;;  %v9721_v27 = vsub.f32 %v9719_v48, %v9720_v49 }
0x132e   : > { %v9712_v50 = vand.u32 4294901760, %v9711_v31  ;;  %v9730_v5 = vand.u32 4294901760, %v9729_v51  ;;  %v9740_v21 = vand.u32 4294901760, %v9739_v16  ;;  %v27462_v31 = vld [vmem:[%s24644_s30 + $0x20] sm:$0xff] }
0x132f   : > { %v9722_v36 = vand.u32 4294901760, %v9721_v27  ;;  %29370 = vst [vmem:[#allocation75_spill] sm:$0xff] %v27462_v31 }
0x1330   : > { %20869 = vmatprep.mubr.f32.mxu1 %v9712_v50  ;;  %v9731_v0 = vsub.f32 %v9729_v51, %v9730_v5  ;;  %v9741_v17 = vsub.f32 %v9739_v16, %v9740_v21 }
0x1331   : > { %20870 = vmatmul.mubr.f32.gmra.mrb[44].mxu1 %v9722_v36 }
0x1332   : > { %v9732_v24 = vand.u32 4294901760, %v9731_v0  ;;  %v9742_v47 = vand.u32 4294901760, %v9741_v17 }
0x1334   : > { %20872 = vmatprep.mubr.f32.mxu1 %v9732_v24 }
0x1335   : > { %20873 = vmatmul.mubr.f32.gmra.mrb[46].mxu1 %v9742_v47 }
0x1336   : > { %20877 = vmatprep.mubr.f32.mxu1 %v27283_v40 }
0x1339   : > { %20878 = vmatmul.mubr.f32.vlgmr.msra.gmra.mrb[40].mxu1 %v27280_v6 }
0x133a   : > { %20880 = vmatprep.mubr.f32.mxu1 %v27298_v54  ;;  %20890 = vmatpush3.msra.mxu1 %v29234_v22 }
0x133b   : > { %20903 = vmatprep.subr.msk.mxu1 %vm29362_vm9, %v29111_v25 }
0x133d   : > { %20881 = vmatmul.mubr.f32.gmra.mrb[42].mxu1 %v27296_v57 }
0x133e   : > { %20883 = vmatprep.mubr.f32.mxu1 %v27319_v26 }
0x1341   : > { %20884 = vmatmul.mubr.f32.gmra.mrb[44].mxu1 %v27317_v56 }
0x1342   : > { %20886 = vmatprep.mubr.f32.mxu1 %v27333_v30 }
0x1345   : > { %20887 = vmatmul.mubr.f32.gmra.mrb[46].mxu1 %v27331_v63 }
0x1346   : > { %20891 = vmatprep.mubr.f32.mxu1 %v27291_v37 }
0x1349   : > { %20892 = vmatmul.mubr.f32.vlgmr.msra.gmra.mrb[40].mxu1 %v27286_v8 }
0x134a   : > { %20894 = vmatprep.mubr.f32.mxu1 %v27310_v1  ;;  %20904 = vmatpush3.msk.msra.mxu1 %vm29362_vm9, %v29111_v25 }
0x134b   : > { %20917 = vmatprep.subr.mxu1 %v29238_v3 }
0x134d   : > { %20895 = vmatmul.mubr.f32.gmra.mrb[42].mxu1 %v27307_v13 }
0x134e   : > { %20897 = vmatprep.mubr.f32.mxu1 %v9709_v58 }
0x1351   : > { %20898 = vmatmul.mubr.f32.gmra.mrb[44].mxu1 %v9719_v48 }
0x1352   : > { %20900 = vmatprep.mubr.f32.mxu1 %v9729_v51 }
0x1355   : > { %20901 = vmatmul.mubr.f32.gmra.mrb[46].mxu1 %v9739_v16 }
0x1356   : > { %20905 = vmatprep.mubr.f32.mxu1 %v9670_v59 }
0x1359   : > { %20906 = vmatmul.mubr.f32.vlgmr.msra.gmra.mrb[40].mxu1 %v9680_v44  ;;  %v27426_v44 = vld [vmem:[%s24644_s30] sm:$0xff] }
0x135a   : > { %20908 = vmatprep.mubr.f32.mxu1 %v9690_v38  ;;  %20918 = vmatpush3.msra.mxu1 %v29238_v3 }
0x135b   : > { %20931 = vmatprep.subr.msk.mxu1 %vm29362_vm9, %v29111_v25 }
0x135d   : > { %20909 = vmatmul.mubr.f32.gmra.mrb[42].mxu1 %v9700_v62 }
0x135e   : > { %20911 = vmatprep.mubr.f32.mxu1 %v9710_v4 }
0x1361   : > { %20912 = vmatmul.mubr.f32.gmra.mrb[44].mxu1 %v9720_v49 }
0x1362   : > { %20914 = vmatprep.mubr.f32.mxu1 %v9730_v5 }
0x1365   : > { %20915 = vmatmul.mubr.f32.gmra.mrb[46].mxu1 %v9740_v21 }
0x1366   : > { %20919 = vmatprep.mubr.f32.mxu1 %v27283_v40 }
0x1369   : > { %20920 = vmatmul.mubr.f32.vlgmr.msra.gmra.mrb[40].mxu1 %v27280_v6 }
0x136a   : > { %20922 = vmatprep.mubr.f32.mxu1 %v27298_v54  ;;  %20932 = vmatpush3.msk.msra.mxu1 %vm29362_vm9, %v29111_v25 }
0x136b   : > { %23057 = vmatprep.subr.bf16.mxu1 %v29199_v7 }
0x136d   : > { %20923 = vmatmul.mubr.f32.gmra.mrb[42].mxu1 %v27296_v57 }
0x136e   : > { %20925 = vmatprep.mubr.f32.mxu1 %v27319_v26 }
0x1371   : > { %20926 = vmatmul.mubr.f32.gmra.mrb[44].mxu1 %v27317_v56 }
0x1372   : > { %20928 = vmatprep.mubr.f32.mxu1 %v27333_v30 }
0x1375   : > { %20929 = vmatmul.mubr.f32.gmra.mrb[46].mxu1 %v27331_v63 }
0x1376   : > { %20933 = vmatprep.mubr.f32.mxu1 %v27283_v40  ;;  %v27422_v40 = vld [vmem:[%s24644_s30 + $0x8] sm:$0xff] }
0x1379   : > { %20934 = vmatmul.mubr.f32.vlgmr.msra.gmra.mrb[40].mxu1 %v27280_v6 }
0x137a   : > { %20936 = vmatprep.mubr.f32.mxu1 %v27298_v54  ;;  %23059 = vmatpush3.bf16.msk.msra.mxu1 %vm29072_vm6, %v29071_v15 }
0x137b   : > { %23060 = vmatprep.subr.bf16.mxu1 %v29199_v7 }
0x137d   : > { %20937 = vmatmul.mubr.f32.gmra.mrb[42].mxu1 %v27296_v57 }
0x137e   : > { %20939 = vmatprep.mubr.f32.mxu1 %v27319_v26  ;;  %23062 = vmatpush3.bf16.msk.msra.mxu1 %vm29073_vm7, %v29071_v15 }
0x137f   : > { %23063 = vmatprep.subr.bf16.mxu1 %v29199_v7 }
0x1381   : > { %20940 = vmatmul.mubr.f32.gmra.mrb[44].mxu1 %v27317_v56  ;;  %v27432_v56 = vld [vmem:[%s24644_s30 + $0x18] sm:$0xff] }
0x1382   : > { %20942 = vmatprep.mubr.f32.mxu1 %v27333_v30  ;;  %23065 = vmatpush3.bf16.msk.msra.mxu1 %vm29074_vm13, %v29071_v15 }
0x1383   : > { %23066 = vmatprep.subr.bf16.mxu1 %v29199_v7 }
0x1385   : > { %20943 = vmatmul.mubr.f32.gmra.mrb[46].mxu1 %v27331_v63 }
0x1386   : > { %23068 = vmatpush3.bf16.msk.msra.mxu1 %vm29169_vm1, %v29071_v15  ;;  %21091 = vmatprep.mubr.msk.f32.mxu1 %vm29200_vm12, %v29086_v34 }
0x1387   : > { %23069 = vmatprep.subr.bf16.mxu1 %v29199_v7 }
0x138a   : > { %23071 = vmatpush3.bf16.msk.msra.mxu1 %vm29172_vm3, %v29071_v15 }
0x138b   : > { %23072 = vmatprep.subr.bf16.mxu1 %v29199_v7 }
0x138e   : > { %23074 = vmatpush3.bf16.msk.msra.mxu1 %vm29175_vm5, %v29071_v15 }
0x138f   : > { %23075 = vmatprep.subr.bf16.mxu1 %v29199_v7 }
0x1392   : > { %23077 = vmatpush3.bf16.msk.msra.mxu1 %vm29176_vm11, %v29071_v15 }
0x1393   : > { %23078 = vmatprep.subr.bf16.mxu1 %v29199_v7 }
0x1396   : > { %23080 = vmatpush3.bf16.msk.msra.mxu1 %vm29177_vm4, %v29071_v15 }
0x1397   : > { %23081 = vmatprep.subr.bf16.mxu1 %v29199_v7 }
0x144c   : > { %v20935_v6 = vpop.f32.mrb[40].mxu1 }
0x144d   : > { %v10350_v8 = vmul.f32 %v27422_v40, %v20935_v6  ;;  %v10303_v37 = vpop.f32.mrb[41].mxu1 }
0x144e   : > { %v10349_v57 = vmul.f32 %v27426_v44, %v10303_v37 }
0x144f   : > { %v10361_v54 = vand.u32 4294901760, %v10350_v8 }
0x1450   : > { %v10358_v59 = vand.u32 4294901760, %v10349_v57  ;;  %v20938_v13 = vpop.f32.mrb[42].mxu1 }
0x1451   : > { %v27429_v1 = vsub.f32 %v10350_v8, %v10361_v54  ;;  %v10352_v26 = vmul.f32 %v27432_v56, %v20938_v13  ;;  %v10315_v38 = vpop.f32.mrb[43].mxu1 }
0x1452   : > { %v27435_v14 = vpack.c.bf16 %v10361_v54, %v10358_v59  ;;  %v27437_v11 = vsub.f32 %v10349_v57, %v10358_v59  ;;  %v10351_v62 = vmul.f32 %v27440_v18, %v10315_v38  ;;  %v27474_v57 = vld [vmem:[%s24644_s30 + $0x38] sm:$0xff] }
0x1453   : > { %v10450_v48 = vand.u32 4294901760, %v27429_v1  ;;  %v10367_v58 = vand.u32 4294901760, %v10352_v26  ;;  %29371 = vst [vmem:[#allocation76_spill] sm:$0xff] %v27474_v57 }
0x1454   : > { %v10443_v55 = vand.u32 4294901760, %v27437_v11  ;;  %v10364_v61 = vand.u32 4294901760, %v10351_v62  ;;  %v20941_v42 = vpop.f32.mrb[44].mxu1  ;;  %22987 = vmatpush3.bf16.msra.mxu0 %v27435_v14 }
0x1455   : > { %v10451_v63 = vsub.f32 %v27429_v1, %v10450_v48  ;;  %v27449_v30 = vsub.f32 %v10352_v26, %v10367_v58  ;;  %v10354_v4 = vmul.f32 %v27452_v19, %v20941_v42  ;;  %v10327_v39 = vpop.f32.mrb[45].mxu1  ;;  %22988 = vmatprep.subr.bf16.mxu0 %v29199_v7 }
0x1456   : > { %v10444_v49 = vsub.f32 %v27437_v11, %v10443_v55  ;;  %v27457_v16 = vpack.c.bf16 %v10367_v58, %v10364_v61  ;;  %v27459_v51 = vsub.f32 %v10351_v62, %v10364_v61  ;;  %v10353_v27 = vmul.f32 %v27462_v31, %v10327_v39  ;;  %v27482_v62 = vld [vmem:[%s24644_s30 + $0x30] sm:$0xff] }
0x1457   : > { %v10452_v50 = vand.u32 4294901760, %v10451_v63  ;;  %v10464_v5 = vand.u32 4294901760, %v27449_v30  ;;  %v10373_v21 = vand.u32 4294901760, %v10354_v4  ;;  %v27466_v36 = vpack.c.bf16 %v10450_v48, %v10443_v55  ;;  %29372 = vst [vmem:[#allocation77_spill] sm:$0xff] %v27482_v62 }
0x1458   : > { %v10445_v0 = vand.u32 4294901760, %v10444_v49  ;;  %v10457_v17 = vand.u32 4294901760, %v27459_v51  ;;  %v23013_v24 = vpack.c.bf16 %v27449_v30, %v27459_v51  ;;  %v10370_v47 = vand.u32 4294901760, %v10353_v27  ;;  %v20944_v6 = vpop.f32.mrb[46].mxu1  ;;  %22990 = vmatpush3.bf16.msra.mxu0 %v27457_v16 }
0x1459   : > { %v10465_v8 = vsub.f32 %v27449_v30, %v10464_v5  ;;  %v10477_v37 = vsub.f32 %v10354_v4, %v10373_v21  ;;  %v10356_v54 = vmul.f32 %v27474_v57, %v20944_v6  ;;  %v10339_v59 = vpop.f32.mrb[47].mxu1  ;;  %22991 = vmatprep.subr.bf16.mxu0 %v29199_v7 }
0x145a   : > { %v10458_v13 = vsub.f32 %v27459_v51, %v10457_v17  ;;  %v27479_v26 = vpack.c.bf16 %v10373_v21, %v10370_v47  ;;  %v10470_v38 = vsub.f32 %v10353_v27, %v10370_v47  ;;  %v10355_v48 = vmul.f32 %v27482_v62, %v10339_v59 }
0x145b   : > { %v10466_v58 = vand.u32 4294901760, %v10465_v8  ;;  %v10478_v55 = vand.u32 4294901760, %v10477_v37  ;;  %v10379_v61 = vand.u32 4294901760, %v10356_v54  ;;  %v22998_v42 = vpack.c.bf16 %v10452_v50, %v10445_v0 }
0x145c   : > { %v10459_v63 = vand.u32 4294901760, %v10458_v13  ;;  %v10471_v30 = vand.u32 4294901760, %v10470_v38  ;;  %v23016_v4 = vpack.c.bf16 %v10477_v37, %v10470_v38  ;;  %v10376_v39 = vand.u32 4294901760, %v10355_v48  ;;  %22993 = vmatpush3.bf16.msra.mxu0 %v27479_v26 }
0x145d   : > { %v10479_v49 = vsub.f32 %v10477_v37, %v10478_v55  ;;  %v10491_v6 = vsub.f32 %v10356_v54, %v10379_v61  ;;  %22994 = vmatprep.subr.bf16.mxu0 %v29199_v7  ;;  %v23037_v51 = vpack.c.bf16 %v10464_v5, %v10457_v17 }
0x145e   : > { %v10472_v27 = vsub.f32 %v10470_v38, %v10471_v30  ;;  %v27487_v21 = vpack.c.bf16 %v10379_v61, %v10376_v39  ;;  %v10484_v47 = vsub.f32 %v10355_v48, %v10376_v39  ;;  %v23001_v59 = vpack.c.bf16 %v10466_v58, %v10459_v63  ;;  %v29379_v48 = vld [vmem:[#allocation13_spill] sm:$0xff]  ;;  %v29380_v58 = vld [vmem:[#allocation14_spill] sm:$0xff]  ;;  %v29382_v61 = vld [vmem:[#allocation24_spill] sm:$0xff] }
0x145f   : > { %v10480_v8 = vand.u32 4294901760, %v10479_v49  ;;  %v10492_v53 = vand.u32 4294901760, %v10491_v6  ;;  %v23040_v62 = vpack.c.bf16 %v10478_v55, %v10471_v30  ;;  %v29381_v55 = vld [vmem:[#allocation15_spill] sm:$0xff]  ;;  %v29384_v63 = vld [vmem:[#allocation26_spill] sm:$0xff]  ;;  %v29387_v39 = vld [vmem:[#allocation16_spill] sm:$0xff] }
0x1460   : > { %v10473_v50 = vand.u32 4294901760, %v10472_v27  ;;  %v10485_v0 = vand.u32 4294901760, %v10484_v47  ;;  %v23019_v13 = vpack.c.bf16 %v10491_v6, %v10484_v47  ;;  %22996 = vmatpush3.bf16.msra.mxu0 %v27487_v21  ;;  %v29385_v30 = vld [vmem:[#allocation27_spill] sm:$0xff]  ;;  %v29388_v49 = vld [vmem:[#allocation17_spill] sm:$0xff]  ;;  %v29391_v27 = vld [vmem:[#allocation30_spill] sm:$0xff] }
0x1461   : > { %v10493_v57 = vsub.f32 %v10491_v6, %v10492_v53  ;;  %22997 = vmatprep.subr.bf16.mxu0 %v29199_v7  ;;  %v29389_v6 = vld [vmem:[#allocation18_spill] sm:$0xff] }
0x1462   : > { %v10486_v37 = vsub.f32 %v10484_v47, %v10485_v0  ;;  %v23004_v54 = vpack.c.bf16 %v10480_v8, %v10473_v50  ;;  %v23043_v31 = vpack.c.bf16 %v10492_v53, %v10485_v0  ;;  %v29374_v53 = vpack.c.bf16 %v27429_v1, %v27437_v11  ;;  %v29375_v1 = vld [vmem:[#allocation11_spill] sm:$0xff]  ;;  %v29393_v47 = vld [vmem:[#allocation32_spill] sm:$0xff]  ;;  %v29395_v8 = vld [vmem:[#allocation34_spill] sm:$0xff] }
0x1463   : > { %v10494_v5 = vand.u32 4294901760, %v10493_v57  ;;  %20962 = vmatmul.mubr.f32.vlgmr.msra.gmra.mrb[38].mxu0 %v29241_v9  ;;  %v29396_v50 = vld [vmem:[#allocation35_spill] sm:$0xff]  ;;  %v29397_v0 = vld [vmem:[#allocation36_spill] sm:$0xff] }
0x1464   : > { %v10487_v17 = vand.u32 4294901760, %v10486_v37  ;;  %22999 = vmatpush3.bf16.msra.mxu0 %v22998_v42  ;;  %20980 = vmatprep.mubr.msk.f32.mxu0 %vm29200_vm12, %v29086_v34  ;;  %v29383_v42 = vld [vmem:[#allocation25_spill] sm:$0xff] }
0x1465   : > { %23000 = vmatprep.subr.bf16.mxu0 %v29199_v7 }
0x1466   : > { %v23007_v38 = vpack.c.bf16 %v10494_v5, %v10487_v17 }
0x1468   : > { %23002 = vmatpush3.bf16.msra.mxu0 %v23001_v59  ;;  %v29394_v59 = vld [vmem:[#allocation33_spill] sm:$0xff] }
0x1469   : > { %23003 = vmatprep.subr.bf16.mxu0 %v29199_v7 }
0x146c   : > { %23005 = vmatpush3.bf16.msra.mxu0 %v23004_v54 }
0x146d   : > { %23006 = vmatprep.subr.bf16.mxu0 %v29199_v7 }
0x1470   : > { %23008 = vmatpush3.bf16.msra.mxu0 %v23007_v38 }
0x1471   : > { %23009 = vmatprep.subr.bf16.mxu0 %v29199_v7 }
0x1473   : > { %20981 = vmatmul.mubr.msk.f32.vlgmr.msra.gmra.mrb[38].mxu0 %vm29373_vm0, %v29242_v43  ;;  %vm29399_vm0 = vcmask 1041408  }
0x1474   : > { %23011 = vmatpush3.bf16.msra.mxu0 %v29374_v53  ;;  %20999 = vmatprep.mubr.msk.f32.mxu0 %vm29200_vm12, %v29086_v34 }
0x1475   : > { %23012 = vmatprep.subr.bf16.mxu0 %v29199_v7 }
0x1478   : > { %23014 = vmatpush3.bf16.msra.mxu0 %v23013_v24 }
0x1479   : > { %23015 = vmatprep.subr.bf16.mxu0 %v29199_v7 }
0x147c   : > { %23017 = vmatpush3.bf16.msra.mxu0 %v23016_v4  ;;  %v29386_v4 = vld [vmem:[#allocation28_spill] sm:$0xff] }
0x147d   : > { %23018 = vmatprep.subr.bf16.mxu0 %v29199_v7 }
0x1480   : > { %23020 = vmatpush3.bf16.msra.mxu0 %v23019_v13 }
0x1481   : > { %23021 = vmatprep.subr.bf16.mxu0 %v29199_v7 }
0x1483   : > { %21000 = vmatmul.mubr.f32.vlgmr.msra.gmra.mrb[38].mxu0 %v29245_v35 }
0x1484   : > { %23023 = vmatpush3.bf16.msra.mxu0 %v27435_v14  ;;  %21018 = vmatprep.mubr.msk.f32.mxu0 %vm29200_vm12, %v29086_v34 }
0x1485   : > { %23024 = vmatprep.subr.bf16.mxu0 %v29199_v7 }
0x1488   : > { %23026 = vmatpush3.bf16.msra.mxu0 %v27457_v16 }
0x1489   : > { %23027 = vmatprep.subr.bf16.mxu0 %v29199_v7 }
0x148c   : > { %23029 = vmatpush3.bf16.msra.mxu0 %v27479_v26 }
0x148d   : > { %23030 = vmatprep.subr.bf16.mxu0 %v29199_v7 }
0x1490   : > { %23032 = vmatpush3.bf16.msra.mxu0 %v27487_v21 }
0x1491   : > { %23033 = vmatprep.subr.bf16.mxu0 %v29199_v7 }
0x1493   : > { %21019 = vmatmul.mubr.f32.vlgmr.msra.gmra.mrb[38].mxu0 %v29375_v1 }
0x1494   : > { %23035 = vmatpush3.bf16.msra.mxu0 %v27466_v36  ;;  %21037 = vmatprep.mubr.msk.f32.mxu0 %vm29200_vm12, %v29086_v34 }
0x1495   : > { %23036 = vmatprep.subr.bf16.mxu0 %v29199_v7 }
0x1498   : > { %23038 = vmatpush3.bf16.msra.mxu0 %v23037_v51  ;;  %v29390_v51 = vld [vmem:[#allocation29_spill] sm:$0xff] }
0x1499   : > { %23039 = vmatprep.subr.bf16.mxu0 %v29199_v7 }
0x149c   : > { %23041 = vmatpush3.bf16.msra.mxu0 %v23040_v62  ;;  %v29378_v62 = vld [vmem:[#allocation19_spill] sm:$0xff] }
0x149d   : > { %23042 = vmatprep.subr.bf16.mxu0 %v29199_v7 }
0x14a0   : > { %23044 = vmatpush3.bf16.msra.mxu0 %v23043_v31 }
0x14a1   : > { %23045 = vmatprep.subr.bf16.mxu0 %v29199_v7 }
0x14a3   : > { %21038 = vmatmul.mubr.msk.f32.vlgmr.msra.gmra.mrb[38].mxu0 %vm29376_vm2, %v29242_v43  ;;  %vm29408_vm2 = vcmask 15360  }
0x14a4   : > { %23047 = vmatpush3.bf16.msra.mxu0 %v27435_v14  ;;  %21056 = vmatprep.mubr.msk.f32.mxu0 %vm29200_vm12, %v29086_v34 }
0x14a5   : > { %23048 = vmatprep.subr.bf16.mxu0 %v29199_v7 }
0x14a8   : > { %23050 = vmatpush3.bf16.msra.mxu0 %v27457_v16 }
0x14a9   : > { %23051 = vmatprep.subr.bf16.mxu0 %v29199_v7 }
0x14ac   : > { %23053 = vmatpush3.bf16.msra.mxu0 %v27479_v26 }
0x14ad   : > { %23054 = vmatprep.subr.bf16.mxu0 %v29199_v7 }
0x14b0   : > { %23056 = vmatpush3.bf16.msra.mxu0 %v27487_v21  ;;  %v29392_v21 = vld [vmem:[#allocation31_spill] sm:$0xff] }
0x14b1   : > { %21269 = vmatprep.subr.mxu0 %v29086_v34 }
0x14b3   : > { %21057 = vmatmul.mubr.msk.f32.vlgmr.msra.gmra.mrb[38].mxu0 %vm29377_vm14, %v29242_v43  ;;  %vm29410_vm14 = vmmov %vm29408_vm2 }
0x14b4   : > { %21270 = vmatpush3.msk.msra.mxu0 %vm29362_vm9, %v29111_v25  ;;  %21271 = vmatprep.mubr.msk.f32.mxu0 %vm29200_vm12, %v29086_v34 }
0x14b5   : > { %21274 = vmatprep.subr.mxu0 %v29086_v34 }
0x1586   : > { %v27548_v14 = vpop.f32.mrb[38].mxu0 }
0x1587   : > { %v10894_v11 = vmul.f32 %v27548_v14, %v27548_v14  ;;  %v21058_v16 = vpop.f32.mrb[39].mxu0 }
0x1589   : > { %v27552_v31 = vand.u32 4294901760, %v10894_v11 }
0x158b   : > { %v10977_v36 = vsub.f32 %v10894_v11, %v27552_v31 }
0x158d   : > { %v10978_v24 = vand.u32 4294901760, %v10977_v36 }
0x158f   : > { %v10979_v57 = vsub.f32 %v10977_v36, %v10978_v24 }
0x1591   : > { %v10980_v26 = vand.u32 4294901760, %v10979_v57 }
0x1593   : > { %21092 = vmatmul.mubr.f32.vlgmr.msra.gmra.mrb[48].mxu1 %v10980_v26 }
0x1594   : > { %23083 = vmatpush3.bf16.msra.mxu1 %v29378_v62  ;;  %21126 = vmatprep.mubr.msk.f32.mxu1 %vm29200_vm12, %v29086_v34 }
0x1595   : > { %23084 = vmatprep.subr.bf16.mxu1 %v29199_v7 }
0x1598   : > { %23086 = vmatpush3.bf16.msra.mxu1 %v29316_v45 }
0x1599   : > { %23087 = vmatprep.subr.bf16.mxu1 %v29199_v7 }
0x159c   : > { %23089 = vmatpush3.bf16.msra.mxu1 %v29317_v23 }
0x159d   : > { %23090 = vmatprep.subr.bf16.mxu1 %v29199_v7 }
0x15a0   : > { %23092 = vmatpush3.bf16.msra.mxu1 %v29318_v29 }
0x15a1   : > { %23093 = vmatprep.subr.bf16.mxu1 %v29199_v7 }
0x15a4   : > { %23095 = vmatpush3.bf16.msra.mxu1 %v29319_v2 }
0x15a5   : > { %23096 = vmatprep.subr.bf16.mxu1 %v29199_v7 }
0x15a8   : > { %23098 = vmatpush3.bf16.msra.mxu1 %v29379_v48 }
0x15a9   : > { %23099 = vmatprep.subr.bf16.mxu1 %v29199_v7 }
0x15ac   : > { %23101 = vmatpush3.bf16.msra.mxu1 %v29380_v58 }
0x15ad   : > { %23102 = vmatprep.subr.bf16.mxu1 %v29199_v7 }
0x15b0   : > { %23104 = vmatpush3.bf16.msra.mxu1 %v29381_v55 }
0x15b1   : > { %23105 = vmatprep.subr.bf16.mxu1 %v29199_v7 }
0x15b3   : > { %21127 = vmatmul.mubr.f32.vlgmr.msra.gmra.mrb[48].mxu1 %v27552_v31 }
0x15b4   : > { %23107 = vmatpush3.bf16.msra.mxu1 %v29382_v61  ;;  %21161 = vmatprep.mubr.msk.f32.mxu1 %vm29200_vm12, %v29086_v34 }
0x15b5   : > { %23108 = vmatprep.subr.bf16.mxu1 %v29199_v7 }
0x15b8   : > { %23110 = vmatpush3.bf16.msra.mxu1 %v29383_v42 }
0x15b9   : > { %23111 = vmatprep.subr.bf16.mxu1 %v29199_v7 }
0x15bc   : > { %23113 = vmatpush3.bf16.msra.mxu1 %v29384_v63 }
0x15bd   : > { %23114 = vmatprep.subr.bf16.mxu1 %v29199_v7 }
0x15c0   : > { %23116 = vmatpush3.bf16.msra.mxu1 %v29385_v30 }
0x15c1   : > { %23117 = vmatprep.subr.bf16.mxu1 %v29199_v7 }
0x15c4   : > { %23119 = vmatpush3.bf16.msra.mxu1 %v29386_v4 }
0x15c5   : > { %23120 = vmatprep.subr.bf16.mxu1 %v29199_v7 }
0x15c8   : > { %23122 = vmatpush3.bf16.msra.mxu1 %v29387_v39 }
0x15c9   : > { %23123 = vmatprep.subr.bf16.mxu1 %v29199_v7 }
0x15cc   : > { %23125 = vmatpush3.bf16.msra.mxu1 %v29388_v49 }
0x15cd   : > { %23126 = vmatprep.subr.bf16.mxu1 %v29199_v7 }
0x15d0   : > { %23128 = vmatpush3.bf16.msra.mxu1 %v29389_v6 }
0x15d1   : > { %23129 = vmatprep.subr.bf16.mxu1 %v29199_v7 }
0x15d3   : > { %21162 = vmatmul.mubr.f32.vlgmr.msra.gmra.mrb[48].mxu1 %v10977_v36 }
0x15d4   : > { %23131 = vmatpush3.bf16.msk.msra.mxu1 %vm29072_vm6, %v29071_v15  ;;  %21196 = vmatprep.mubr.msk.f32.mxu1 %vm29200_vm12, %v29086_v34 }
0x15d5   : > { %23132 = vmatprep.subr.bf16.mxu1 %v29199_v7 }
0x15d8   : > { %23134 = vmatpush3.bf16.msk.msra.mxu1 %vm29073_vm7, %v29071_v15 }
0x15d9   : > { %23135 = vmatprep.subr.bf16.mxu1 %v29199_v7 }
0x15dc   : > { %23137 = vmatpush3.bf16.msk.msra.mxu1 %vm29074_vm13, %v29071_v15 }
0x15dd   : > { %23138 = vmatprep.subr.bf16.mxu1 %v29199_v7 }
0x15e0   : > { %23140 = vmatpush3.bf16.msk.msra.mxu1 %vm29169_vm1, %v29071_v15 }
0x15e1   : > { %23141 = vmatprep.subr.bf16.mxu1 %v29199_v7 }
0x15e4   : > { %23143 = vmatpush3.bf16.msk.msra.mxu1 %vm29172_vm3, %v29071_v15 }
0x15e5   : > { %23144 = vmatprep.subr.bf16.mxu1 %v29199_v7 }
0x15e8   : > { %23146 = vmatpush3.bf16.msk.msra.mxu1 %vm29175_vm5, %v29071_v15 }
0x15e9   : > { %23147 = vmatprep.subr.bf16.mxu1 %v29199_v7 }
0x15ec   : > { %23149 = vmatpush3.bf16.msk.msra.mxu1 %vm29176_vm11, %v29071_v15 }
0x15ed   : > { %23150 = vmatprep.subr.bf16.mxu1 %v29199_v7 }
0x15f0   : > { %23152 = vmatpush3.bf16.msk.msra.mxu1 %vm29177_vm4, %v29071_v15 }
0x15f1   : > { %23153 = vmatprep.subr.bf16.mxu1 %v29199_v7 }
0x15f3   : > { %21197 = vmatmul.mubr.f32.vlgmr.msra.gmra.mrb[48].mxu1 %v10978_v24 }
0x15f4   : > { %23155 = vmatpush3.bf16.msra.mxu1 %v29390_v51  ;;  %21231 = vmatprep.mubr.msk.f32.mxu1 %vm29200_vm12, %v29086_v34 }
0x15f5   : > { %23156 = vmatprep.subr.bf16.mxu1 %v29199_v7 }
0x15f8   : > { %23158 = vmatpush3.bf16.msra.mxu1 %v29391_v27 }
0x15f9   : > { %23159 = vmatprep.subr.bf16.mxu1 %v29199_v7 }
0x15fc   : > { %23161 = vmatpush3.bf16.msra.mxu1 %v29392_v21 }
0x15fd   : > { %23162 = vmatprep.subr.bf16.mxu1 %v29199_v7 }
0x1600   : > { %23164 = vmatpush3.bf16.msra.mxu1 %v29393_v47 }
0x1601   : > { %23165 = vmatprep.subr.bf16.mxu1 %v29199_v7 }
0x1604   : > { %23167 = vmatpush3.bf16.msra.mxu1 %v29394_v59 }
0x1605   : > { %23168 = vmatprep.subr.bf16.mxu1 %v29199_v7 }
0x1608   : > { %23170 = vmatpush3.bf16.msra.mxu1 %v29395_v8 }
0x1609   : > { %23171 = vmatprep.subr.bf16.mxu1 %v29199_v7 }
0x160c   : > { %23173 = vmatpush3.bf16.msra.mxu1 %v29396_v50 }
0x160d   : > { %23174 = vmatprep.subr.bf16.mxu1 %v29199_v7 }
0x1610   : > { %23176 = vmatpush3.bf16.msra.mxu1 %v29397_v0 }
0x1611   : > { %23177 = vmatprep.subr.bf16.mxu1 %v29199_v7 }
0x1613   : > { %21232 = vmatmul.mubr.f32.vlgmr.msra.gmra.mrb[48].mxu1 %v27552_v31 }
0x1614   : > { %23179 = vmatpush3.bf16.msk.msra.mxu1 %vm29072_vm6, %v29071_v15  ;;  %21266 = vmatprep.mubr.msk.f32.mxu1 %vm29200_vm12, %v29086_v34 }
0x1615   : > { %23180 = vmatprep.subr.bf16.mxu1 %v29199_v7 }
0x1618   : > { %23182 = vmatpush3.bf16.msk.msra.mxu1 %vm29073_vm7, %v29071_v15 }
0x1619   : > { %23183 = vmatprep.subr.bf16.mxu1 %v29199_v7 }
0x161c   : > { %23185 = vmatpush3.bf16.msk.msra.mxu1 %vm29074_vm13, %v29071_v15 }
0x161d   : > { %23186 = vmatprep.subr.bf16.mxu1 %v29199_v7 }
0x1620   : > { %23188 = vmatpush3.bf16.msk.msra.mxu1 %vm29169_vm1, %v29071_v15 }
0x1621   : > { %23189 = vmatprep.subr.bf16.mxu1 %v29199_v7 }
0x1624   : > { %23191 = vmatpush3.bf16.msk.msra.mxu1 %vm29172_vm3, %v29071_v15 }
0x1625   : > { %23192 = vmatprep.subr.bf16.mxu1 %v29199_v7 }
0x1628   : > { %23194 = vmatpush3.bf16.msk.msra.mxu1 %vm29175_vm5, %v29071_v15 }
0x1629   : > { %23195 = vmatprep.subr.bf16.mxu1 %v29199_v7 }
0x162c   : > { %23197 = vmatpush3.bf16.msk.msra.mxu1 %vm29176_vm11, %v29071_v15 }
0x162d   : > { %23198 = vmatprep.subr.bf16.mxu1 %v29199_v7 }
0x1630   : > { %23200 = vmatpush3.bf16.msk.msra.mxu1 %vm29177_vm4, %v29071_v15 }
0x1631   : > { %23202 = vmatprep.subr.msk.bf16.mxu1 %vm29072_vm6, %v29071_v15 }
0x1633   : > { %21267 = vmatmul.mubr.f32.vlgmr.msra.gmra.mrb[48].mxu1 %v27552_v31 }
0x1634   : > { %23204 = vmatpush3.bf16.msk.msra.mxu1 %vm29072_vm6, %v29071_v15 }
0x1635   : > { %23206 = vmatprep.subr.msk.bf16.mxu1 %vm29073_vm7, %v29071_v15 }
0x1638   : > { %23208 = vmatpush3.bf16.msk.msra.mxu1 %vm29073_vm7, %v29071_v15 }
0x1639   : > { %23210 = vmatprep.subr.msk.bf16.mxu1 %vm29074_vm13, %v29071_v15 }
0x163c   : > { %23212 = vmatpush3.bf16.msk.msra.mxu1 %vm29074_vm13, %v29071_v15 }
0x163d   : > { %23214 = vmatprep.subr.msk.bf16.mxu1 %vm29169_vm1, %v29071_v15 }
0x1640   : > { %23216 = vmatpush3.bf16.msk.msra.mxu1 %vm29169_vm1, %v29071_v15 }
0x1641   : > { %23218 = vmatprep.subr.msk.bf16.mxu1 %vm29172_vm3, %v29071_v15 }
0x1644   : > { %23220 = vmatpush3.bf16.msk.msra.mxu1 %vm29172_vm3, %v29071_v15 }
0x1645   : > { %23222 = vmatprep.subr.msk.bf16.mxu1 %vm29175_vm5, %v29071_v15 }
0x1648   : > { %23224 = vmatpush3.bf16.msk.msra.mxu1 %vm29175_vm5, %v29071_v15 }
0x1649   : > { %23226 = vmatprep.subr.msk.bf16.mxu1 %vm29176_vm11, %v29071_v15 }
0x164c   : > { %23228 = vmatpush3.bf16.msk.msra.mxu1 %vm29176_vm11, %v29071_v15 }
0x164d   : > { %23230 = vmatprep.subr.msk.bf16.mxu1 %vm29177_vm4, %v29071_v15 }
0x1650   : > { %23232 = vmatpush3.bf16.msk.msra.mxu1 %vm29177_vm4, %v29071_v15 }
0x1651   : > { %23234 = vmatprep.subr.bf16.mxu1 %v29378_v62 }
0x1706   : > { %v11532_v13 = vpop.f32.mrb[48].mxu1 }
0x1707   : > { %v23620_v37 = vadd.f32 1e-07, %v11532_v13  ;;  %v21268_v54 = vpop.f32.mrb[49].mxu1 }
0x1709   : > { %24343 = vrsqrt.f32 %v23620_v37  ;;  %v11543_v5 = vadd.f32 1.0, %v23620_v37  ;;  %vm11538_vm15 = vcmp.eq.f32.partialorder %v23620_v37, inf  ;;  %v11541_v36 = vand.u32 2147483648, %v23620_v37 }
0x170a   : > { %vm11540_vm10 = vcmp.eq.f32.partialorder %v23620_v37, 0.0 }
0x170b   : > { %24345 = vrcp.f32 %v11543_v5 }
0x1713   : > { %v24344_v17 = vpop.eup %24343 }
0x1714   : > { %v11537_v38 = vmul.f32 %v24344_v17, %v23620_v37 }
0x1715   : > { %v24346_v53 = vpop.eup %24345 }
0x1716   : > { %v11545_v11 = vmul.f32 %v24346_v53, %v11543_v5  ;;  %v11539_v16 = vsel %vm11538_vm15, %v23620_v37, %v11537_v38  ;;  %vm29412_vm15 = vmmov %vm29408_vm2 }
0x1717   : > { %v11542_v57 = vsel %vm11540_vm10, %v11541_v36, %v11539_v16  ;;  %v29401_v16 = vld [vmem:[#allocation60_spill] sm:$0xff]  ;;  %v29402_v36 = vld [vmem:[#allocation65_spill] sm:$0xff]  ;;  %vm29414_vm10 = vmmov %vm29408_vm2 }
0x1718   : > { %v11546_v31 = vsub.f32 2.0, %v11545_v11 }
0x171a   : > { %v11547_v24 = vmul.f32 %v24346_v53, %v11546_v31  ;;  %v29400_v53 = vld [vmem:[#allocation59_spill] sm:$0xff] }
0x171c   : > { %v11548_v26 = vmul.f32 %v11547_v24, %v11542_v57  ;;  %v29403_v24 = vld [vmem:[#allocation67_spill] sm:$0xff] }
0x171d   : > { %v29405_v57 = vld [vmem:[#allocation71_spill] sm:$0xff] }
0x171e   : > { %v11550_v1 = vsel %vm29369_vm8, %v11548_v26, 0  ;;  %v29406_v26 = vld [vmem:[#allocation72_spill] sm:$0xff]  ;;  %vm29416_vm8 = vmmov %vm29408_vm2 }
0x171f   : > { %v11618_v35 = vand.u32 4294901760, %v11550_v1 }
0x1721   : > { %v11619_v13 = vsub.f32 %v11550_v1, %v11618_v35 }
0x1723   : > { %v11620_v54 = vand.u32 4294901760, %v11619_v13 }
0x1725   : > { %v11621_v43 = vsub.f32 %v11619_v13, %v11620_v54 }
0x1727   : > { %v11622_v9 = vand.u32 4294901760, %v11621_v43 }
0x1729   : > { %21272 = vmatmul.mubr.f32.vlgmr.msra.gmra.mrb[40].mxu0 %v11622_v9  ;;  %v29398_v9 = vld [vmem:[#allocation44_spill] sm:$0xff] }
0x172a   : > { %21275 = vmatpush3.msra.mxu0 %v29229_v41  ;;  %21276 = vmatprep.mubr.msk.f32.mxu0 %vm29200_vm12, %v29086_v34 }
0x172b   : > { %21279 = vmatprep.subr.mxu0 %v29086_v34 }
0x1731   : > { %21277 = vmatmul.mubr.f32.vlgmr.msra.gmra.mrb[40].mxu0 %v11618_v35 }
0x1732   : > { %21280 = vmatpush3.msra.mxu0 %v29234_v22  ;;  %21281 = vmatprep.mubr.msk.f32.mxu0 %vm29200_vm12, %v29086_v34  ;;  %v29455_v22 = vld [vmem:[#allocation77_spill] sm:$0xff] }
0x1733   : > { %21284 = vmatprep.subr.mxu0 %v29086_v34 }
0x1739   : > { %21282 = vmatmul.mubr.f32.vlgmr.msra.gmra.mrb[40].mxu0 %v11619_v13  ;;  %v29407_v13 = vld [vmem:[#allocation41_spill] sm:$0xff] }
0x173a   : > { %21285 = vmatpush3.msk.msra.mxu0 %vm29362_vm9, %v29111_v25  ;;  %21286 = vmatprep.mubr.msk.f32.mxu0 %vm29200_vm12, %v29086_v34 }
0x173b   : > { %21289 = vmatprep.subr.mxu0 %v29086_v34 }
0x1741   : > { %21287 = vmatmul.mubr.f32.vlgmr.msra.gmra.mrb[40].mxu0 %v11620_v54  ;;  %v29409_v54 = vld [vmem:[#allocation45_spill] sm:$0xff] }
0x1742   : > { %21290 = vmatpush3.msra.mxu0 %v29238_v3  ;;  %21291 = vmatprep.mubr.msk.f32.mxu0 %vm29200_vm12, %v29086_v34  ;;  %v29432_v3 = vld [vmem:[#allocation51_spill] sm:$0xff] }
0x1743   : > { %21294 = vmatprep.subr.mxu0 %v29086_v34 }
0x1749   : > { %21292 = vmatmul.mubr.f32.vlgmr.msra.gmra.mrb[40].mxu0 %v11618_v35 }
0x174a   : > { %21295 = vmatpush3.msk.msra.mxu0 %vm29362_vm9, %v29111_v25  ;;  %21296 = vmatprep.mubr.msk.f32.mxu0 %vm29200_vm12, %v29086_v34 }
0x1751   : > { %21297 = vmatmul.mubr.f32.vlgmr.msra.gmra.mrb[40].mxu0 %v11618_v35 }
0x1752   : > { %21301 = vmatprep.mubr.f32.mxu0 %v29398_v9  ;;  %v29411_v9 = vld [vmem:[#allocation46_spill] sm:$0xff] }
0x1824   : > { %v11994_v43 = vpop.f32.mrb[40].mxu0 }
0x1825   : > { %v11998_v1 = vmul.f32 %v11994_v43, %v27548_v14  ;;  %v21298_v37 = vpop.f32.mrb[41].mxu0  ;;  %v29404_v14 = vld [vmem:[#allocation70_spill] sm:$0xff]  ;;  %v29413_v43 = vld [vmem:[#allocation47_spill] sm:$0xff] }
0x1826   : > { %v29417_v37 = vld [vmem:[#allocation55_spill] sm:$0xff] }
0x1827   : > { %v12000_v5 = vsel %vm29399_vm0, %v11998_v1, 0  ;;  %v29415_v1 = vld [vmem:[#allocation49_spill] sm:$0xff]  ;;  %vm29418_vm0 = vmmov %vm29408_vm2 }
0x1828   : > { %v12003_v17 = vand.u32 4294901760, %v12000_v5  ;;  %vm29420_vm9 = vmmov %vm29418_vm0 }
0x182a   : > { %v12150_v38 = vsub.f32 %v12000_v5, %v12003_v17  ;;  %21299 = vmatprep.subr.mxu0 %v12003_v17  ;;  %v29419_v5 = vld [vmem:[#allocation57_spill] sm:$0xff] }
0x182b   : > { %21300 = vmatpush3.msra.mxu0 %v12003_v17 }
0x182c   : > { %21302 = vmatmul.mubr.f32.vlgmr.msra.gmra.mrb[42].mxu0 %v29400_v53  ;;  %v12151_v11 = vand.u32 4294901760, %v12150_v38  ;;  %v29421_v53 = vld [vmem:[#allocation61_spill] sm:$0xff] }
0x182d   : > { %21304 = vmatprep.mubr.f32.mxu0 %v29401_v16  ;;  %v29424_v16 = vld [vmem:[#allocation48_spill] sm:$0xff] }
0x182e   : > { %v12152_v31 = vsub.f32 %v12150_v38, %v12151_v11 }
0x1830   : > { %21305 = vmatmul.mubr.f32.gmra.mrb[44].mxu0 %v29402_v36  ;;  %v12153_v35 = vand.u32 4294901760, %v12152_v31  ;;  %v29425_v31 = vld [vmem:[#allocation50_spill] sm:$0xff]  ;;  %v29426_v36 = vld [vmem:[#allocation53_spill] sm:$0xff] }
0x1831   : > { %21307 = vmatprep.mubr.f32.mxu0 %v29403_v24  ;;  %v29428_v24 = vld [vmem:[#allocation62_spill] sm:$0xff] }
0x1832   : > { %21313 = vmatprep.subr.mxu0 %v12153_v35 }
0x1833   : > { %21314 = vmatpush3.msra.mxu0 %v12153_v35  ;;  %v29427_v35 = vld [vmem:[#allocation54_spill] sm:$0xff] }
0x1834   : > { %21308 = vmatmul.mubr.f32.gmra.mrb[46].mxu0 %v29404_v14  ;;  %21327 = vmatprep.subr.mxu0 %v12150_v38  ;;  %v29429_v14 = vld [vmem:[#allocation63_spill] sm:$0xff] }
0x1835   : > { %21310 = vmatprep.mubr.f32.mxu0 %v29405_v57  ;;  %v29430_v57 = vld [vmem:[#allocation68_spill] sm:$0xff] }
0x1838   : > { %21311 = vmatmul.mubr.f32.gmra.mrb[48].mxu0 %v29406_v26  ;;  %v29431_v26 = vld [vmem:[#allocation43_spill] sm:$0xff] }
0x1839   : > { %21315 = vmatprep.mubr.msk.f32.mxu0 %vm29408_vm2, %v29407_v13  ;;  %vm29422_vm2 = vmmov %vm29418_vm0 }
0x183c   : > { %21316 = vmatmul.mubr.msk.f32.vlgmr.msra.gmra.mrb[42].mxu0 %vm29410_vm14, %v29409_v54  ;;  %vm29440_vm14 = vmmov %vm29418_vm0 }
0x183d   : > { %21328 = vmatpush3.msra.mxu0 %v12150_v38  ;;  %21318 = vmatprep.mubr.msk.f32.mxu0 %vm29412_vm15, %v29411_v9  ;;  %v29423_v38 = vld [vmem:[#allocation42_spill] sm:$0xff]  ;;  %vm29441_vm15 = vmmov %vm29418_vm0 }
0x183e   : > { %21341 = vmatprep.subr.mxu0 %v12003_v17 }
0x1840   : > { %21319 = vmatmul.mubr.msk.f32.gmra.mrb[44].mxu0 %vm29414_vm10, %v29413_v43  ;;  %vm29442_vm10 = vmmov %vm29418_vm0 }
0x1841   : > { %21321 = vmatprep.mubr.msk.f32.mxu0 %vm29416_vm8, %v29415_v1  ;;  %vm29443_vm8 = vmmov %vm29418_vm0 }
0x1844   : > { %21322 = vmatmul.mubr.msk.f32.gmra.mrb[46].mxu0 %vm29418_vm0, %v29417_v37 }
0x1845   : > { %21324 = vmatprep.mubr.msk.f32.mxu0 %vm29420_vm9, %v29419_v5  ;;  %vm29439_vm9 = vmmov %vm29418_vm0 }
0x1848   : > { %21325 = vmatmul.mubr.msk.f32.gmra.mrb[48].mxu0 %vm29422_vm2, %v29421_v53  ;;  %vm29444_vm2 = vmmov %vm29418_vm0 }
0x1849   : > { %21329 = vmatprep.mubr.f32.mxu0 %v29423_v38  ;;  %v29433_v38 = vld [vmem:[#allocation52_spill] sm:$0xff] }
0x184c   : > { %21330 = vmatmul.mubr.f32.vlgmr.msra.gmra.mrb[42].mxu0 %v29424_v16  ;;  %v29434_v16 = vld [vmem:[#allocation56_spill] sm:$0xff] }
0x184d   : > { %21342 = vmatpush3.msra.mxu0 %v12003_v17  ;;  %21332 = vmatprep.mubr.f32.mxu0 %v29425_v31  ;;  %v29435_v31 = vld [vmem:[#allocation58_spill] sm:$0xff] }
0x184e   : > { %21355 = vmatprep.subr.mxu0 %v12151_v11 }
0x1850   : > { %21333 = vmatmul.mubr.f32.gmra.mrb[44].mxu0 %v29426_v36  ;;  %v29436_v36 = vld [vmem:[#allocation64_spill] sm:$0xff] }
0x1851   : > { %21335 = vmatprep.mubr.f32.mxu0 %v29427_v35  ;;  %v29437_v35 = vld [vmem:[#allocation66_spill] sm:$0xff] }
0x1854   : > { %21336 = vmatmul.mubr.f32.gmra.mrb[46].mxu0 %v29428_v24  ;;  %v29438_v24 = vld [vmem:[#allocation69_spill] sm:$0xff] }
0x1855   : > { %21338 = vmatprep.mubr.f32.mxu0 %v29429_v14 }
0x1858   : > { %21339 = vmatmul.mubr.f32.gmra.mrb[48].mxu0 %v29430_v57 }
0x1859   : > { %21343 = vmatprep.mubr.f32.mxu0 %v29431_v26 }
0x185c   : > { %21344 = vmatmul.mubr.f32.vlgmr.msra.gmra.mrb[42].mxu0 %v29432_v3 }
0x185d   : > { %21356 = vmatpush3.msra.mxu0 %v12151_v11  ;;  %21346 = vmatprep.mubr.f32.mxu0 %v29433_v38 }
0x185e   : > { %21369 = vmatprep.subr.mxu0 %v12003_v17 }
0x1860   : > { %21347 = vmatmul.mubr.f32.gmra.mrb[44].mxu0 %v29434_v16 }
0x1861   : > { %21349 = vmatprep.mubr.f32.mxu0 %v29435_v31 }
0x1864   : > { %21350 = vmatmul.mubr.f32.gmra.mrb[46].mxu0 %v29436_v36 }
0x1865   : > { %21352 = vmatprep.mubr.f32.mxu0 %v29437_v35  ;;  %v29453_v35 = vld [vmem:[#allocation75_spill] sm:$0xff] }
0x1868   : > { %21353 = vmatmul.mubr.f32.gmra.mrb[48].mxu0 %v29438_v24 }
0x1869   : > { %21357 = vmatprep.mubr.msk.f32.mxu0 %vm29439_vm9, %v29407_v13  ;;  %vm29445_vm9 = vmmov %vm29418_vm0 }
0x186c   : > { %21358 = vmatmul.mubr.msk.f32.vlgmr.msra.gmra.mrb[42].mxu0 %vm29440_vm14, %v29409_v54  ;;  %vm29446_vm14 = vmmov %vm29418_vm0 }
0x186d   : > { %21370 = vmatpush3.msra.mxu0 %v12003_v17  ;;  %21360 = vmatprep.mubr.msk.f32.mxu0 %vm29441_vm15, %v29411_v9  ;;  %vm29447_vm15 = vmmov %vm29418_vm0 }
0x186e   : > { %21647 = vmatprep.subr.mxu0 %v29111_v25 }
0x1870   : > { %21361 = vmatmul.mubr.msk.f32.gmra.mrb[44].mxu0 %vm29442_vm10, %v29413_v43  ;;  %vm29448_vm10 = vmmov %vm29418_vm0 }
0x1871   : > { %21363 = vmatprep.mubr.msk.f32.mxu0 %vm29443_vm8, %v29415_v1  ;;  %vm29449_vm8 = vmmov %vm29418_vm0 }
0x1874   : > { %21364 = vmatmul.mubr.msk.f32.gmra.mrb[46].mxu0 %vm29418_vm0, %v29417_v37 }
0x1875   : > { %21366 = vmatprep.mubr.msk.f32.mxu0 %vm29444_vm2, %v29419_v5  ;;  %vm29450_vm2 = vmmov %vm29418_vm0 }
0x1878   : > { %21367 = vmatmul.mubr.msk.f32.gmra.mrb[48].mxu0 %vm29445_vm9, %v29421_v53  ;;  %vm29451_vm9 = vmmov %vm29418_vm0 }
0x1879   : > { %21371 = vmatprep.mubr.msk.f32.mxu0 %vm29446_vm14, %v29407_v13  ;;  %vm29452_vm14 = vmmov %vm29418_vm0 }
0x187c   : > { %21372 = vmatmul.mubr.msk.f32.vlgmr.msra.gmra.mrb[42].mxu0 %vm29447_vm15, %v29409_v54  ;;  %vm29462_vm15 = vcmask 64512  }
0x187d   : > { %21374 = vmatprep.mubr.msk.f32.mxu0 %vm29448_vm10, %v29411_v9  ;;  %21648 = vmatpush3.msra.mxu0 %v29111_v25  ;;  %vm29463_vm10 = vmmov %vm29462_vm15 }
0x187e   : > { %21661 = vmatprep.subr.mxu0 %v29086_v34 }
0x1880   : > { %21375 = vmatmul.mubr.msk.f32.gmra.mrb[44].mxu0 %vm29449_vm8, %v29413_v43  ;;  %vm29466_vm8 = vmmov %vm29463_vm10 }
0x1881   : > { %21377 = vmatprep.mubr.msk.f32.mxu0 %vm29418_vm0, %v29415_v1  ;;  %vm29467_vm0 = vmmov %vm29466_vm8 }
0x1884   : > { %21378 = vmatmul.mubr.msk.f32.gmra.mrb[46].mxu0 %vm29450_vm2, %v29417_v37  ;;  %vm29470_vm2 = vmmov %vm29467_vm0 }
0x1885   : > { %21380 = vmatprep.mubr.msk.f32.mxu0 %vm29451_vm9, %v29419_v5  ;;  %vm29471_vm9 = vmmov %vm29467_vm0 }
0x1888   : > { %21381 = vmatmul.mubr.msk.f32.gmra.mrb[48].mxu0 %vm29452_vm14, %v29421_v53  ;;  %vm29474_vm14 = vmmov %vm29467_vm0 }
0x194f   : > { %v21373_v3 = vpop.f32.mrb[42].mxu0 }
0x1950   : > { %v12750_v17 = vmul.f32 %v27422_v40, %v21373_v3  ;;  %v12703_v11 = vpop.f32.mrb[43].mxu0 }
0x1951   : > { %v12749_v13 = vmul.f32 %v27426_v44, %v12703_v11 }
0x1952   : > { %v27831_v54 = vand.u32 4294901760, %v12750_v17 }
0x1953   : > { %v27833_v9 = vand.u32 4294901760, %v12749_v13  ;;  %v21376_v43 = vpop.f32.mrb[44].mxu0 }
0x1954   : > { %v27836_v1 = vsub.f32 %v12750_v17, %v27831_v54  ;;  %v12752_v37 = vmul.f32 %v27432_v56, %v21376_v43  ;;  %v12715_v5 = vpop.f32.mrb[45].mxu0 }
0x1955   : > { %v27840_v14 = vsub.f32 %v12749_v13, %v27833_v9  ;;  %v12751_v53 = vmul.f32 %v27440_v18, %v12715_v5 }
0x1956   : > { %v28962_v40 = vand.u32 4294901760, %v27836_v1  ;;  %v27844_v57 = vand.u32 4294901760, %v12752_v37 }
0x1957   : > { %v27846_v44 = vand.u32 4294901760, %v12751_v53  ;;  %v21379_v26 = vpop.f32.mrb[46].mxu0  ;;  %v28963_v38 = vand.u32 4294901760, %v27840_v14 }
0x1958   : > { %v12851_v16 = vsub.f32 %v27836_v1, %v28962_v40  ;;  %v27853_v56 = vsub.f32 %v12752_v37, %v27844_v57  ;;  %v12754_v31 = vmul.f32 %v27452_v19, %v21379_v26  ;;  %v12727_v36 = vpop.f32.mrb[47].mxu0 }
0x1959   : > { %v27857_v18 = vsub.f32 %v12751_v53, %v27846_v44  ;;  %v12753_v24 = vmul.f32 %v29453_v35, %v12727_v36  ;;  %v12841_v3 = vsub.f32 %v27840_v14, %v28963_v38  ;;  %v29454_v53 = vld [vmem:[#allocation76_spill] sm:$0xff] }
0x195a   : > { %v27863_v17 = vand.u32 4294901760, %v12754_v31  ;;  %v28966_v11 = vand.u32 4294901760, %v27853_v56  ;;  %v12852_v35 = vand.u32 4294901760, %v12851_v16 }
0x195b   : > { %v27866_v13 = vand.u32 4294901760, %v12753_v24  ;;  %v21382_v43 = vpop.f32.mrb[48].mxu0  ;;  %v12842_v37 = vand.u32 4294901760, %v12841_v3  ;;  %v28967_v19 = vand.u32 4294901760, %v27857_v18 }
0x195c   : > { %v27870_v5 = vsub.f32 %v12754_v31, %v27863_v17  ;;  %v12756_v26 = vmul.f32 %v29454_v53, %v21382_v43  ;;  %v12739_v36 = vpop.f32.mrb[49].mxu0  ;;  %v12871_v40 = vsub.f32 %v27853_v56, %v28966_v11 }
0x195d   : > { %v27877_v38 = vsub.f32 %v12753_v24, %v27866_v13  ;;  %v12755_v41 = vmul.f32 %v29455_v22, %v12739_v36  ;;  %21415 = vmatprep.mubr.f32.mxu1 %v12842_v37  ;;  %v12861_v3 = vsub.f32 %v27857_v18, %v28967_v19 }
0x195e   : > { %v27883_v31 = vand.u32 4294901760, %v12756_v26  ;;  %21416 = vmatmul.mubr.f32.vlgmr.msra.gmra.mrb[50].mxu1 %v12852_v35  ;;  %v12890_v43 = vand.u32 4294901760, %v27870_v5  ;;  %v12872_v22 = vand.u32 4294901760, %v12871_v40 }
0x195f   : > { %v27886_v16 = vand.u32 4294901760, %v12755_v41  ;;  %23236 = vmatpush3.bf16.msra.mxu1 %v29378_v62  ;;  %v12862_v53 = vand.u32 4294901760, %v12861_v3  ;;  %v12880_v24 = vand.u32 4294901760, %v27877_v38 }
0x1960   : > { %v27891_v11 = vsub.f32 %v12756_v26, %v27883_v31  ;;  %23238 = vmatprep.subr.bf16.mxu1 %v29316_v45  ;;  %v12891_v37 = vsub.f32 %v27870_v5, %v12890_v43 }
0x1961   : > { %v27898_v36 = vsub.f32 %v12755_v41, %v27886_v16  ;;  %21418 = vmatprep.mubr.f32.mxu1 %v12862_v53  ;;  %v12881_v35 = vsub.f32 %v27877_v38, %v12880_v24 }
0x1962   : > { %21419 = vmatmul.mubr.f32.gmra.mrb[52].mxu1 %v12872_v22  ;;  %v12910_v3 = vand.u32 4294901760, %v27891_v11  ;;  %v12892_v19 = vand.u32 4294901760, %v12891_v37  ;;  %v29458_v37 = vand.u32 4294901760, %v27857_v18 }
0x1963   : > { %23240 = vmatpush3.bf16.msra.mxu1 %v29316_v45  ;;  %v12882_v26 = vand.u32 4294901760, %v12881_v35  ;;  %v12900_v40 = vand.u32 4294901760, %v27898_v36 }
0x1964   : > { %23242 = vmatprep.subr.bf16.mxu1 %v29317_v23  ;;  %v12911_v41 = vsub.f32 %v27891_v11, %v12910_v3 }
0x1965   : > { %21421 = vmatprep.mubr.f32.mxu1 %v12882_v26  ;;  %v12901_v53 = vsub.f32 %v27898_v36, %v12900_v40  ;;  %v29459_v26 = vand.u32 4294901760, %v27853_v56 }
0x1966   : > { %21422 = vmatmul.mubr.f32.gmra.mrb[54].mxu1 %v12892_v19  ;;  %v12912_v35 = vand.u32 4294901760, %v12911_v41  ;;  %v29456_v19 = vand.u32 4294901760, %v27840_v14 }
0x1967   : > { %23244 = vmatpush3.bf16.msra.mxu1 %v29317_v23  ;;  %v12902_v22 = vand.u32 4294901760, %v12901_v53  ;;  %v29469_v53 = vld [vmem:[#allocation23_spill] sm:$0xff] }
0x1968   : > { %23246 = vmatprep.subr.bf16.mxu1 %v29318_v29 }
0x1969   : > { %21424 = vmatprep.mubr.f32.mxu1 %v12902_v22 }
0x196a   : > { %21425 = vmatmul.mubr.f32.gmra.mrb[56].mxu1 %v12912_v35 }
0x196b   : > { %23248 = vmatpush3.bf16.msra.mxu1 %v29318_v29  ;;  %21459 = vmatprep.mubr.f32.mxu1 %v27833_v9 }
0x196c   : > { %23250 = vmatprep.subr.bf16.mxu1 %v29319_v2 }
0x196f   : > { %23252 = vmatpush3.bf16.msra.mxu1 %v29319_v2 }
0x1970   : > { %23254 = vmatprep.subr.bf16.mxu1 %v29379_v48 }
0x1973   : > { %23256 = vmatpush3.bf16.msra.mxu1 %v29379_v48 }
0x1974   : > { %23258 = vmatprep.subr.bf16.mxu1 %v29380_v58 }
0x1977   : > { %23260 = vmatpush3.bf16.msra.mxu1 %v29380_v58 }
0x1978   : > { %23262 = vmatprep.subr.bf16.mxu1 %v29381_v55 }
0x197b   : > { %23264 = vmatpush3.bf16.msra.mxu1 %v29381_v55 }
0x197c   : > { %23266 = vmatprep.subr.bf16.mxu1 %v29382_v61 }
0x197e   : > { %21460 = vmatmul.mubr.f32.vlgmr.msra.gmra.mrb[50].mxu1 %v27831_v54 }
0x197f   : > { %21462 = vmatprep.mubr.f32.mxu1 %v27846_v44  ;;  %23268 = vmatpush3.bf16.msra.mxu1 %v29382_v61 }
0x1980   : > { %23270 = vmatprep.subr.bf16.mxu1 %v29383_v42 }
0x1982   : > { %21463 = vmatmul.mubr.f32.gmra.mrb[52].mxu1 %v27844_v57 }
0x1983   : > { %21465 = vmatprep.mubr.f32.mxu1 %v27866_v13  ;;  %23272 = vmatpush3.bf16.msra.mxu1 %v29383_v42 }
0x1984   : > { %23274 = vmatprep.subr.bf16.mxu1 %v29384_v63 }
0x1986   : > { %21466 = vmatmul.mubr.f32.gmra.mrb[54].mxu1 %v27863_v17 }
0x1987   : > { %21468 = vmatprep.mubr.f32.mxu1 %v27886_v16  ;;  %23276 = vmatpush3.bf16.msra.mxu1 %v29384_v63 }
0x1988   : > { %23278 = vmatprep.subr.bf16.mxu1 %v29385_v30 }
0x198a   : > { %21469 = vmatmul.mubr.f32.gmra.mrb[56].mxu1 %v27883_v31 }
0x198b   : > { %23280 = vmatpush3.bf16.msra.mxu1 %v29385_v30  ;;  %21503 = vmatprep.mubr.f32.mxu1 %v27840_v14  ;;  %v29457_v14 = vand.u32 4294901760, %v27836_v1 }
0x198c   : > { %23282 = vmatprep.subr.bf16.mxu1 %v29386_v4 }
0x198f   : > { %23284 = vmatpush3.bf16.msra.mxu1 %v29386_v4 }
0x1990   : > { %23286 = vmatprep.subr.bf16.mxu1 %v29387_v39 }
0x1993   : > { %23288 = vmatpush3.bf16.msra.mxu1 %v29387_v39 }
0x1994   : > { %23290 = vmatprep.subr.bf16.mxu1 %v29388_v49 }
0x1997   : > { %23292 = vmatpush3.bf16.msra.mxu1 %v29388_v49 }
0x1998   : > { %23294 = vmatprep.subr.bf16.mxu1 %v29389_v6 }
0x199b   : > { %23296 = vmatpush3.bf16.msra.mxu1 %v29389_v6 }
0x199c   : > { %23298 = vmatprep.subr.msk.bf16.mxu1 %vm29072_vm6, %v29071_v15 }
0x199e   : > { %21504 = vmatmul.mubr.f32.vlgmr.msra.gmra.mrb[50].mxu1 %v27836_v1  ;;  %v29460_v1 = vld [vmem:[#allocation37_spill] sm:$0xff] }
0x199f   : > { %21506 = vmatprep.mubr.f32.mxu1 %v27857_v18  ;;  %23300 = vmatpush3.bf16.msk.msra.mxu1 %vm29072_vm6, %v29071_v15 }
0x19a0   : > { %23302 = vmatprep.subr.msk.bf16.mxu1 %vm29073_vm7, %v29071_v15 }
0x19a2   : > { %21507 = vmatmul.mubr.f32.gmra.mrb[52].mxu1 %v27853_v56 }
0x19a3   : > { %21509 = vmatprep.mubr.f32.mxu1 %v27877_v38  ;;  %23304 = vmatpush3.bf16.msk.msra.mxu1 %vm29073_vm7, %v29071_v15 }
0x19a4   : > { %23306 = vmatprep.subr.msk.bf16.mxu1 %vm29074_vm13, %v29071_v15 }
0x19a6   : > { %21510 = vmatmul.mubr.f32.gmra.mrb[54].mxu1 %v27870_v5 }
0x19a7   : > { %21512 = vmatprep.mubr.f32.mxu1 %v27898_v36  ;;  %23308 = vmatpush3.bf16.msk.msra.mxu1 %vm29074_vm13, %v29071_v15 }
0x19a8   : > { %23310 = vmatprep.subr.msk.bf16.mxu1 %vm29169_vm1, %v29071_v15 }
0x19aa   : > { %21513 = vmatmul.mubr.f32.gmra.mrb[56].mxu1 %v27891_v11 }
0x19ab   : > { %23312 = vmatpush3.bf16.msk.msra.mxu1 %vm29169_vm1, %v29071_v15  ;;  %21547 = vmatprep.mubr.f32.mxu1 %v29456_v19 }
0x19ac   : > { %23314 = vmatprep.subr.msk.bf16.mxu1 %vm29172_vm3, %v29071_v15 }
0x19af   : > { %23316 = vmatpush3.bf16.msk.msra.mxu1 %vm29172_vm3, %v29071_v15 }
0x19b0   : > { %23318 = vmatprep.subr.msk.bf16.mxu1 %vm29175_vm5, %v29071_v15 }
0x19b3   : > { %23320 = vmatpush3.bf16.msk.msra.mxu1 %vm29175_vm5, %v29071_v15 }
0x19b4   : > { %23322 = vmatprep.subr.msk.bf16.mxu1 %vm29176_vm11, %v29071_v15 }
0x19b7   : > { %23324 = vmatpush3.bf16.msk.msra.mxu1 %vm29176_vm11, %v29071_v15 }
0x19b8   : > { %23326 = vmatprep.subr.msk.bf16.mxu1 %vm29177_vm4, %v29071_v15 }
0x19bb   : > { %23328 = vmatpush3.bf16.msk.msra.mxu1 %vm29177_vm4, %v29071_v15 }
0x19bc   : > { %23330 = vmatprep.subr.bf16.mxu1 %v29390_v51 }
0x19be   : > { %21548 = vmatmul.mubr.f32.vlgmr.msra.gmra.mrb[50].mxu1 %v29457_v14 }
0x19bf   : > { %21550 = vmatprep.mubr.f32.mxu1 %v29458_v37  ;;  %23332 = vmatpush3.bf16.msra.mxu1 %v29390_v51  ;;  %v29472_v37 = vld [vmem:[#allocation73_spill] sm:$0xff] }
0x19c0   : > { %23334 = vmatprep.subr.bf16.mxu1 %v29391_v27 }
0x19c2   : > { %21551 = vmatmul.mubr.f32.gmra.mrb[52].mxu1 %v29459_v26 }
0x19c3   : > { %21553 = vmatprep.mubr.f32.mxu1 %v12880_v24  ;;  %23336 = vmatpush3.bf16.msra.mxu1 %v29391_v27 }
0x19c4   : > { %23338 = vmatprep.subr.bf16.mxu1 %v29392_v21 }
0x19c6   : > { %21554 = vmatmul.mubr.f32.gmra.mrb[54].mxu1 %v12890_v43 }
0x19c7   : > { %21556 = vmatprep.mubr.f32.mxu1 %v12900_v40  ;;  %23340 = vmatpush3.bf16.msra.mxu1 %v29392_v21 }
0x19c8   : > { %23342 = vmatprep.subr.bf16.mxu1 %v29393_v47 }
0x19ca   : > { %21557 = vmatmul.mubr.f32.gmra.mrb[56].mxu1 %v12910_v3  ;;  %v29468_v3 = vld [vmem:[#allocation22_spill] sm:$0xff] }
0x19cb   : > { %23344 = vmatpush3.bf16.msra.mxu1 %v29393_v47  ;;  %21591 = vmatprep.mubr.f32.mxu1 %v27833_v9 }
0x19cc   : > { %23346 = vmatprep.subr.bf16.mxu1 %v29394_v59 }
0x19cf   : > { %23348 = vmatpush3.bf16.msra.mxu1 %v29394_v59 }
0x19d0   : > { %23350 = vmatprep.subr.bf16.mxu1 %v29395_v8 }
0x19d3   : > { %23352 = vmatpush3.bf16.msra.mxu1 %v29395_v8 }
0x19d4   : > { %23354 = vmatprep.subr.bf16.mxu1 %v29396_v50 }
0x19d7   : > { %23356 = vmatpush3.bf16.msra.mxu1 %v29396_v50 }
0x19d8   : > { %23358 = vmatprep.subr.bf16.mxu1 %v29397_v0 }
0x19db   : > { %23360 = vmatpush3.bf16.msra.mxu1 %v29397_v0 }
0x19dc   : > { %23362 = vmatprep.subr.msk.bf16.mxu1 %vm29072_vm6, %v29071_v15 }
0x19de   : > { %21592 = vmatmul.mubr.f32.vlgmr.msra.gmra.mrb[50].mxu1 %v27831_v54 }
0x19df   : > { %21594 = vmatprep.mubr.f32.mxu1 %v27846_v44  ;;  %23364 = vmatpush3.bf16.msk.msra.mxu1 %vm29072_vm6, %v29071_v15 }
0x19e0   : > { %23366 = vmatprep.subr.msk.bf16.mxu1 %vm29073_vm7, %v29071_v15 }
0x19e2   : > { %21595 = vmatmul.mubr.f32.gmra.mrb[52].mxu1 %v27844_v57 }
0x19e3   : > { %21597 = vmatprep.mubr.f32.mxu1 %v27866_v13  ;;  %23368 = vmatpush3.bf16.msk.msra.mxu1 %vm29073_vm7, %v29071_v15 }
0x19e4   : > { %23370 = vmatprep.subr.msk.bf16.mxu1 %vm29074_vm13, %v29071_v15 }
0x19e6   : > { %21598 = vmatmul.mubr.f32.gmra.mrb[54].mxu1 %v27863_v17 }
0x19e7   : > { %21600 = vmatprep.mubr.f32.mxu1 %v27886_v16  ;;  %23372 = vmatpush3.bf16.msk.msra.mxu1 %vm29074_vm13, %v29071_v15 }
0x19e8   : > { %23374 = vmatprep.subr.msk.bf16.mxu1 %vm29169_vm1, %v29071_v15 }
0x19ea   : > { %21601 = vmatmul.mubr.f32.gmra.mrb[56].mxu1 %v27883_v31 }
0x19eb   : > { %23376 = vmatpush3.bf16.msk.msra.mxu1 %vm29169_vm1, %v29071_v15  ;;  %21635 = vmatprep.mubr.f32.mxu1 %v27833_v9 }
0x19ec   : > { %23378 = vmatprep.subr.msk.bf16.mxu1 %vm29172_vm3, %v29071_v15 }
0x19ef   : > { %23380 = vmatpush3.bf16.msk.msra.mxu1 %vm29172_vm3, %v29071_v15 }
0x19f0   : > { %23382 = vmatprep.subr.msk.bf16.mxu1 %vm29175_vm5, %v29071_v15 }
0x19f3   : > { %23384 = vmatpush3.bf16.msk.msra.mxu1 %vm29175_vm5, %v29071_v15 }
0x19f4   : > { %23386 = vmatprep.subr.msk.bf16.mxu1 %vm29176_vm11, %v29071_v15 }
0x19f7   : > { %23388 = vmatpush3.bf16.msk.msra.mxu1 %vm29176_vm11, %v29071_v15 }
0x19f8   : > { %23390 = vmatprep.subr.msk.bf16.mxu1 %vm29177_vm4, %v29071_v15 }
0x19fb   : > { %23392 = vmatpush3.bf16.msk.msra.mxu1 %vm29177_vm4, %v29071_v15 }
0x19fc   : > { %23393 = vmatprep.subr.bf16.mxu1 %v29199_v7 }
0x19fe   : > { %21636 = vmatmul.mubr.f32.vlgmr.msra.gmra.mrb[50].mxu1 %v27831_v54  ;;  %v29461_v54 = vld [vmem:[#allocation81_spill] sm:$0xff] }
0x19ff   : > { %21638 = vmatprep.mubr.f32.mxu1 %v27846_v44 }
0x1a02   : > { %21639 = vmatmul.mubr.f32.gmra.mrb[52].mxu1 %v27844_v57 }
0x1a03   : > { %21641 = vmatprep.mubr.f32.mxu1 %v27866_v13 }
0x1a06   : > { %21642 = vmatmul.mubr.f32.gmra.mrb[54].mxu1 %v27863_v17  ;;  %v29464_v17 = vld [vmem:[#allocation20_spill] sm:$0xff] }
0x1a07   : > { %21644 = vmatprep.mubr.f32.mxu1 %v27886_v16 }
0x1a0a   : > { %21645 = vmatmul.mubr.f32.gmra.mrb[56].mxu1 %v27883_v31  ;;  %v29465_v31 = vld [vmem:[#allocation21_spill] sm:$0xff] }
0x1a0b   : > { %21831 = vmatprep.mubr.msk.f32.mxu1 %vm29200_vm12, %v29086_v34 }
0x1ad1   : > { %v21637_v9 = vpop.f32.mrb[50].mxu1 }
0x1ad2   : > { %v13700_v38 = vadd.f32 %v21637_v9, %v29460_v1  ;;  %v13653_v56 = vpop.f32.mrb[51].mxu1  ;;  %v29473_v1 = vld [vmem:[#allocation74_spill] sm:$0xff] }
0x1ad3   : > { %v13699_v18 = vadd.f32 %v13653_v56, %v29461_v54 }
0x1ad4   : > { %v13710_v44 = vsel %vm29462_vm15, %v13700_v38, -inf  ;;  %vm29475_vm15 = vmmov %vm29467_vm0 }
0x1ad5   : > { %13711 = vmax.xlane.f32.xlu0 %v13710_v44  ;;  %v21640_v57 = vpop.f32.mrb[52].mxu1  ;;  %v13707_v11 = vsel %vm29463_vm10, %v13699_v18, -inf  ;;  %vm29476_vm10 = vmmov %vm29467_vm0 }
0x1ad6   : > { %v13702_v13 = vadd.f32 %v21640_v57, %v29464_v17  ;;  %13708 = vmax.xlane.f32.xlu1 %v13707_v11  ;;  %v13665_v5 = vpop.f32.mrb[53].mxu1 }
0x1ad7   : > { %v13701_v43 = vadd.f32 %v13665_v5, %v29465_v31 }
0x1ad8   : > { %v13716_v16 = vsel %vm29466_vm8, %v13702_v13, -inf  ;;  %vm29477_vm8 = vmmov %vm29467_vm0 }
0x1ad9   : > { %v21643_v24 = vpop.f32.mrb[54].mxu1  ;;  %v13713_v36 = vsel %vm29467_vm0, %v13701_v43, -inf }
0x1ada   : > { %v13704_v40 = vadd.f32 %v21643_v24, %v29468_v3  ;;  %13717 = vmax.xlane.f32.xlu1 %v13716_v16  ;;  %13714 = vmax.xlane.f32.xlu0 %v13713_v36  ;;  %v13677_v41 = vpop.f32.mrb[55].mxu1 }
0x1adb   : > { %v13703_v22 = vadd.f32 %v13677_v41, %v29469_v53 }
0x1adc   : > { %v13722_v35 = vsel %vm29470_vm2, %v13704_v40, -inf  ;;  %vm29478_vm2 = vmmov %vm29467_vm0 }
0x1add   : > { %v21646_v19 = vpop.f32.mrb[56].mxu1  ;;  %v13719_v14 = vsel %vm29471_vm9, %v13703_v22, -inf  ;;  %vm29479_vm9 = vmmov %vm29467_vm0 }
0x1ade   : > { %v13706_v26 = vadd.f32 %v21646_v19, %v29472_v37  ;;  %13723 = vmax.xlane.f32.xlu1 %v13722_v35  ;;  %13720 = vmax.xlane.f32.xlu0 %v13719_v14  ;;  %v13689_v9 = vpop.f32.mrb[57].mxu1 }
0x1adf   : > { %v13705_v56 = vadd.f32 %v13689_v9, %v29473_v1 }
0x1ae0   : > { %v13728_v54 = vsel %vm29474_vm14, %v13706_v26, -inf  ;;  %vm29480_vm14 = vmmov %vm29467_vm0 }
0x1ae1   : > { %v13725_v44 = vsel %vm29475_vm15, %v13705_v56, -inf  ;;  %vm29481_vm15 = vmmov %vm29467_vm0 }
0x1ae2   : > { %13729 = vmax.xlane.f32.xlu1 %v13728_v54  ;;  %13726 = vmax.xlane.f32.xlu0 %v13725_v44 }
0x1b62   : > { %v13712_v57 = vpop.xlane.xlu0 %13711 }
0x1b63   : > { %v13732_v11 = vsub.f32 %v13700_v38, %v13712_v57  ;;  %v13709_v17 = vpop.xlane.xlu1 %13708 }
0x1b64   : > { %v13731_v5 = vsub.f32 %v13699_v18, %v13709_v17 }
0x1b65   : > { %v13741_v31 = vmul.f32 1.442695, %v13732_v11 }
0x1b66   : > { %v13739_v16 = vmul.f32 1.442695, %v13731_v5 }
0x1b67   : > { %24347 = vpow2.f32 %v13741_v31  ;;  %v13718_v24 = vpop.xlane.xlu1 %13717  ;;  %v13715_v36 = vpop.xlane.xlu0 %13714 }
0x1b68   : > { %24349 = vpow2.f32 %v13739_v16  ;;  %v13734_v3 = vsub.f32 %v13702_v13, %v13718_v24  ;;  %v13733_v41 = vsub.f32 %v13701_v43, %v13715_v36 }
0x1b6a   : > { %v13745_v53 = vmul.f32 1.442695, %v13734_v3  ;;  %v13743_v35 = vmul.f32 1.442695, %v13733_v41 }
0x1b6b   : > { %v13724_v19 = vpop.xlane.xlu1 %13723  ;;  %v13721_v14 = vpop.xlane.xlu0 %13720 }
0x1b6c   : > { %24351 = vpow2.f32 %v13745_v53  ;;  %v13736_v37 = vsub.f32 %v13704_v40, %v13724_v19  ;;  %v13735_v9 = vsub.f32 %v13703_v22, %v13721_v14 }
0x1b6d   : > { %24353 = vpow2.f32 %v13743_v35 }
0x1b6e   : > { %v13749_v1 = vmul.f32 1.442695, %v13736_v37  ;;  %v13747_v38 = vmul.f32 1.442695, %v13735_v9 }
0x1b6f   : > { %v13730_v54 = vpop.xlane.xlu1 %13729  ;;  %v13727_v18 = vpop.xlane.xlu0 %13726 }
0x1b70   : > { %24355 = vpow2.f32 %v13749_v1  ;;  %v13738_v44 = vsub.f32 %v13706_v26, %v13730_v54  ;;  %v13737_v57 = vsub.f32 %v13705_v56, %v13727_v18 }
0x1b71   : > { %v28119_v11 = vpop.eup %24347  ;;  %24357 = vpow2.f32 %v13747_v38 }
0x1b72   : > { %v28121_v13 = vpop.eup %24349  ;;  %v13759_v43 = vsel %vm29476_vm10, %v28119_v11, 0  ;;  %v13753_v17 = vmul.f32 1.442695, %v13738_v44  ;;  %v13751_v5 = vmul.f32 1.442695, %v13737_v57  ;;  %vm29482_vm10 = vmmov %vm29467_vm0 }
0x1b73   : > { %v28125_v40 = vand.u32 4294901760, %v13759_v43  ;;  %v13756_v22 = vsel %vm29477_vm8, %v28121_v13, 0  ;;  %vm29486_vm8 = vnez %v29227_v20 }
0x1b74   : > { %24359 = vpow2.f32 %v13753_v17  ;;  %v28129_v31 = vand.u32 4294901760, %v13756_v22 }
0x1b75   : > { %v28132_v26 = vsub.f32 %v13759_v43, %v28125_v40  ;;  %24361 = vpow2.f32 %v13751_v5 }
0x1b76   : > { %v28134_v56 = vpop.eup %24351  ;;  %v28137_v16 = vsub.f32 %v13756_v22, %v28129_v31 }
0x1b77   : > { %v28139_v24 = vpop.eup %24353  ;;  %v28968_v36 = vand.u32 4294901760, %v28132_v26  ;;  %v13765_v3 = vsel %vm29467_vm0, %v28134_v56, 0 }
0x1b78   : > { %v28969_v41 = vand.u32 4294901760, %v28137_v16  ;;  %v13762_v53 = vsel %vm29478_vm2, %v28139_v24, 0  ;;  %v28147_v35 = vand.u32 4294901760, %v13765_v3  ;;  %vm29488_vm2 = vmmov %vm29467_vm0 }
0x1b79   : > { %v13857_v19 = vsub.f32 %v28132_v26, %v28968_v36  ;;  %v28152_v14 = vand.u32 4294901760, %v13762_v53 }
0x1b7a   : > { %v28154_v37 = vpop.eup %24355  ;;  %v13847_v9 = vsub.f32 %v28137_v16, %v28969_v41  ;;  %v28160_v1 = vsub.f32 %v13765_v3, %v28147_v35 }
0x1b7b   : > { %v28162_v38 = vpop.eup %24357  ;;  %v28165_v54 = vsub.f32 %v13762_v53, %v28152_v14  ;;  %v13771_v18 = vsel %vm29479_vm9, %v28154_v37, 0  ;;  %v13858_v5 = vand.u32 4294901760, %v13857_v19  ;;  %vm29489_vm9 = vmmov %vm29467_vm0 }
0x1b7c   : > { %v13848_v44 = vand.u32 4294901760, %v13847_v9  ;;  %v28974_v57 = vand.u32 4294901760, %v28160_v1  ;;  %v13768_v43 = vsel %vm29480_vm14, %v28162_v38, 0  ;;  %v28172_v17 = vand.u32 4294901760, %v13771_v18  ;;  %vm29490_vm14 = vmmov %vm29467_vm0 }
0x1b7d   : > { %v13866_v22 = vand.u32 4294901760, %v28165_v54  ;;  %v28175_v3 = vand.u32 4294901760, %v13768_v43 }
0x1b7e   : > { %v28177_v36 = vpop.eup %24359  ;;  %21649 = vmatprep.mubr.f32.mxu0 %v13848_v44  ;;  %v13877_v53 = vsub.f32 %v28160_v1, %v28974_v57  ;;  %v13895_v9 = vsub.f32 %v13771_v18, %v28172_v17 }
0x1b7f   : > { %v28183_v41 = vpop.eup %24361  ;;  %21650 = vmatmul.mubr.f32.vlgmr.msra.gmra.mrb[50].mxu0 %v13858_v5  ;;  %v13867_v0 = vsub.f32 %v28165_v54, %v13866_v22  ;;  %v13885_v19 = vsub.f32 %v13768_v43, %v28175_v3  ;;  %v13777_v50 = vsel %vm29481_vm15, %v28177_v36, 0  ;;  %vm29491_vm15 = vmmov %vm29467_vm0 }
0x1b80   : > { %v13878_v8 = vand.u32 4294901760, %v13877_v53  ;;  %21662 = vmatpush3.msra.mxu0 %v29086_v34  ;;  %v13896_v44 = vand.u32 4294901760, %v13895_v9  ;;  %v13774_v59 = vsel %vm29482_vm10, %v28183_v41, 0  ;;  %v28192_v57 = vand.u32 4294901760, %v13777_v50  ;;  %vm29492_vm10 = vmmov %vm29467_vm0 }
0x1b81   : > { %v13868_v18 = vand.u32 4294901760, %v13867_v0  ;;  %v13886_v47 = vand.u32 4294901760, %v13885_v19  ;;  %v28194_v21 = vand.u32 4294901760, %v13774_v59  ;;  %21675 = vmatprep.subr.mxu0 %v29086_v34 }
0x1b82   : > { %v13897_v5 = vsub.f32 %v13895_v9, %v13896_v44  ;;  %v13915_v43 = vsub.f32 %v13777_v50, %v28192_v57 }
0x1b83   : > { %21652 = vmatprep.mubr.f32.mxu0 %v13868_v18  ;;  %v13887_v27 = vsub.f32 %v13885_v19, %v13886_v47  ;;  %v13905_v53 = vsub.f32 %v13774_v59, %v28194_v21 }
0x1b84   : > { %21653 = vmatmul.mubr.f32.gmra.mrb[52].mxu0 %v13878_v8  ;;  %v13898_v51 = vand.u32 4294901760, %v13897_v5  ;;  %v13916_v6 = vand.u32 4294901760, %v13915_v43 }
0x1b85   : > { %v13888_v49 = vand.u32 4294901760, %v13887_v27  ;;  %v13906_v39 = vand.u32 4294901760, %v13905_v53 }
0x1b86   : > { %v13917_v4 = vsub.f32 %v13915_v43, %v13916_v6 }
0x1b87   : > { %21655 = vmatprep.mubr.f32.mxu0 %v13888_v49  ;;  %v13907_v0 = vsub.f32 %v13905_v53, %v13906_v39 }
0x1b88   : > { %21656 = vmatmul.mubr.f32.gmra.mrb[54].mxu0 %v13898_v51  ;;  %v13918_v30 = vand.u32 4294901760, %v13917_v4  ;;  %v29485_v4 = vand.u32 4294901760, %v28160_v1 }
0x1b89   : > { %v13908_v63 = vand.u32 4294901760, %v13907_v0 }
0x1b8b   : > { %21658 = vmatprep.mubr.f32.mxu0 %v13908_v63  ;;  %v29483_v63 = vand.u32 4294901760, %v28137_v16 }
0x1b8c   : > { %21659 = vmatmul.mubr.f32.gmra.mrb[56].mxu0 %v13918_v30  ;;  %v29484_v30 = vand.u32 4294901760, %v28132_v26 }
0x1b8d   : > { %21663 = vmatprep.mubr.f32.mxu0 %v28129_v31 }
0x1b90   : > { %21664 = vmatmul.mubr.f32.vlgmr.msra.gmra.mrb[50].mxu0 %v28125_v40 }
0x1b91   : > { %21666 = vmatprep.mubr.f32.mxu0 %v28152_v14  ;;  %21676 = vmatpush3.msra.mxu0 %v29086_v34 }
0x1b92   : > { %21689 = vmatprep.subr.mxu0 %v29111_v25 }
0x1b94   : > { %21667 = vmatmul.mubr.f32.gmra.mrb[52].mxu0 %v28147_v35 }
0x1b95   : > { %21669 = vmatprep.mubr.f32.mxu0 %v28175_v3 }
0x1b98   : > { %21670 = vmatmul.mubr.f32.gmra.mrb[54].mxu0 %v28172_v17 }
0x1b99   : > { %21672 = vmatprep.mubr.f32.mxu0 %v28194_v21 }
0x1b9c   : > { %21673 = vmatmul.mubr.f32.gmra.mrb[56].mxu0 %v28192_v57 }
0x1b9d   : > { %21677 = vmatprep.mubr.f32.mxu0 %v28137_v16 }
0x1ba0   : > { %21678 = vmatmul.mubr.f32.vlgmr.msra.gmra.mrb[50].mxu0 %v28132_v26 }
0x1ba1   : > { %21680 = vmatprep.mubr.f32.mxu0 %v28165_v54  ;;  %21690 = vmatpush3.msra.mxu0 %v29111_v25 }
0x1ba2   : > { %21703 = vmatprep.subr.mxu0 %v29086_v34 }
0x1ba4   : > { %21681 = vmatmul.mubr.f32.gmra.mrb[52].mxu0 %v28160_v1 }
0x1ba5   : > { %21683 = vmatprep.mubr.f32.mxu0 %v13885_v19 }
0x1ba8   : > { %21684 = vmatmul.mubr.f32.gmra.mrb[54].mxu0 %v13895_v9 }
0x1ba9   : > { %21686 = vmatprep.mubr.f32.mxu0 %v13905_v53 }
0x1bac   : > { %21687 = vmatmul.mubr.f32.gmra.mrb[56].mxu0 %v13915_v43 }
0x1bad   : > { %21691 = vmatprep.mubr.f32.mxu0 %v29483_v63 }
0x1bb0   : > { %21692 = vmatmul.mubr.f32.vlgmr.msra.gmra.mrb[50].mxu0 %v29484_v30 }
0x1bb1   : > { %21694 = vmatprep.mubr.f32.mxu0 %v13866_v22  ;;  %21704 = vmatpush3.msra.mxu0 %v29086_v34 }
0x1bb2   : > { %21717 = vmatprep.subr.mxu0 %v29111_v25 }
0x1bb4   : > { %21695 = vmatmul.mubr.f32.gmra.mrb[52].mxu0 %v29485_v4 }
0x1bb5   : > { %21697 = vmatprep.mubr.f32.mxu0 %v13886_v47 }
0x1bb8   : > { %21698 = vmatmul.mubr.f32.gmra.mrb[54].mxu0 %v13896_v44 }
0x1bb9   : > { %21700 = vmatprep.mubr.f32.mxu0 %v13906_v39  ;;  %v29487_v39 = vld [vmem:[#allocation40_spill] sm:$0xff] }
0x1bbc   : > { %21701 = vmatmul.mubr.f32.gmra.mrb[56].mxu0 %v13916_v6 }
0x1bbd   : > { %21705 = vmatprep.mubr.f32.mxu0 %v28129_v31 }
0x1bc0   : > { %21706 = vmatmul.mubr.f32.vlgmr.msra.gmra.mrb[50].mxu0 %v28125_v40 }
0x1bc1   : > { %21708 = vmatprep.mubr.f32.mxu0 %v28152_v14  ;;  %21718 = vmatpush3.msra.mxu0 %v29111_v25 }
0x1bc2   : > { %21731 = vmatprep.subr.msk.mxu0 %vm29486_vm8, %v29111_v25 }
0x1bc4   : > { %21709 = vmatmul.mubr.f32.gmra.mrb[52].mxu0 %v28147_v35 }
0x1bc5   : > { %21711 = vmatprep.mubr.f32.mxu0 %v28175_v3 }
0x1bc8   : > { %21712 = vmatmul.mubr.f32.gmra.mrb[54].mxu0 %v28172_v17 }
0x1bc9   : > { %21714 = vmatprep.mubr.f32.mxu0 %v28194_v21 }
0x1bcc   : > { %21715 = vmatmul.mubr.f32.gmra.mrb[56].mxu0 %v28192_v57 }
0x1bcd   : > { %21719 = vmatprep.mubr.f32.mxu0 %v28129_v31 }
0x1bd0   : > { %21720 = vmatmul.mubr.f32.vlgmr.msra.gmra.mrb[50].mxu0 %v28125_v40 }
0x1bd1   : > { %21722 = vmatprep.mubr.f32.mxu0 %v28152_v14  ;;  %21732 = vmatpush3.msk.msra.mxu0 %vm29486_vm8, %v29111_v25 }
0x1bd2   : > { %21745 = vmatprep.subr.mxu0 %v29487_v39 }
0x1bd4   : > { %21723 = vmatmul.mubr.f32.gmra.mrb[52].mxu0 %v28147_v35 }
0x1bd5   : > { %21725 = vmatprep.mubr.f32.mxu0 %v28175_v3 }
0x1bd8   : > { %21726 = vmatmul.mubr.f32.gmra.mrb[54].mxu0 %v28172_v17 }
0x1bd9   : > { %21728 = vmatprep.mubr.f32.mxu0 %v28194_v21 }
0x1bdc   : > { %21729 = vmatmul.mubr.f32.gmra.mrb[56].mxu0 %v28192_v57 }
0x1ca3   : > { %v21721_v49 = vpop.f32.mrb[50].mxu0 }
0x1ca4   : > { %24363 = vrcp.f32 %v21721_v49  ;;  %v14467_v6 = vpop.f32.mrb[51].mxu0 }
0x1ca5   : > { %24365 = vrcp.f32 %v14467_v6 }
0x1ca7   : > { %v21724_v51 = vpop.f32.mrb[52].mxu0 }
0x1ca8   : > { %24367 = vrcp.f32 %v21724_v51  ;;  %v14479_v27 = vpop.f32.mrb[53].mxu0 }
0x1ca9   : > { %24369 = vrcp.f32 %v14479_v27 }
0x1cab   : > { %v21727_v47 = vpop.f32.mrb[54].mxu0 }
0x1cac   : > { %24371 = vrcp.f32 %v21727_v47  ;;  %v14491_v59 = vpop.f32.mrb[55].mxu0 }
0x1cad   : > { %24373 = vrcp.f32 %v14491_v59 }
0x1cae   : > { %v24364_v8 = vpop.eup %24363 }
0x1caf   : > { %v24366_v50 = vpop.eup %24365  ;;  %v14522_v40 = vmul.f32 %v24364_v8, %v21721_v49  ;;  %v21730_v31 = vpop.f32.mrb[56].mxu0 }
0x1cb0   : > { %v14521_v26 = vmul.f32 %v24366_v50, %v14467_v6  ;;  %24375 = vrcp.f32 %v21730_v31  ;;  %v14503_v21 = vpop.f32.mrb[57].mxu0 }
0x1cb1   : > { %v14530_v16 = vsub.f32 2.0, %v14522_v40  ;;  %24377 = vrcp.f32 %v14503_v21 }
0x1cb2   : > { %v24368_v35 = vpop.eup %24367  ;;  %v14529_v14 = vsub.f32 2.0, %v14521_v26 }
0x1cb3   : > { %v24370_v1 = vpop.eup %24369  ;;  %v14524_v54 = vmul.f32 %v24368_v35, %v21724_v51  ;;  %v14538_v57 = vmul.f32 %v24364_v8, %v14530_v16 }
0x1cb4   : > { %v14523_v17 = vmul.f32 %v24370_v1, %v14479_v27  ;;  %v14537_v22 = vmul.f32 %v24366_v50, %v14529_v14 }
0x1cb5   : > { %v14532_v3 = vsub.f32 2.0, %v14524_v54  ;;  %14552 = vperm.xlu1 %24270, %v14538_v57  }
0x1cb6   : > { %v24372_v9 = vpop.eup %24371  ;;  %v14531_v19 = vsub.f32 2.0, %v14523_v17  ;;  %14547 = vperm.xlu0 %24269, %v14537_v22  }
0x1cb7   : > { %v24374_v44 = vpop.eup %24373  ;;  %v14526_v18 = vmul.f32 %v24372_v9, %v21727_v47  ;;  %v14540_v5 = vmul.f32 %v24368_v35, %v14532_v3 }
0x1cb8   : > { %v14525_v43 = vmul.f32 %v24374_v44, %v14491_v59  ;;  %v14539_v53 = vmul.f32 %v24370_v1, %v14531_v19 }
0x1cb9   : > { %v14534_v0 = vsub.f32 2.0, %v14526_v18 }
0x1cba   : > { %v24376_v63 = vpop.eup %24375  ;;  %v14533_v30 = vsub.f32 2.0, %v14525_v43  ;;  %14562 = vperm.xlu0 %24269, %v14540_v5   ;;  %14557 = vperm.xlu1 %24270, %v14539_v53  }
0x1cbb   : > { %v24378_v4 = vpop.eup %24377  ;;  %v14528_v49 = vmul.f32 %v24376_v63, %v21730_v31  ;;  %v14542_v6 = vmul.f32 %v24372_v9, %v14534_v0 }
0x1cbc   : > { %v14527_v51 = vmul.f32 %v24378_v4, %v14503_v21  ;;  %v14541_v27 = vmul.f32 %v24374_v44, %v14533_v30 }
0x1cbd   : > { %v14536_v8 = vsub.f32 2.0, %v14528_v49 }
0x1cbe   : > { %v14535_v50 = vsub.f32 2.0, %v14527_v51  ;;  %14572 = vperm.xlu0 %24269, %v14542_v6   ;;  %14567 = vperm.xlu1 %24270, %v14541_v27  }
0x1cbf   : > { %v14544_v40 = vmul.f32 %v24376_v63, %v14536_v8 }
0x1cc0   : > { %v14543_v26 = vmul.f32 %v24378_v4, %v14535_v50 }
0x1cc2   : > { %14582 = vperm.xlu0 %24269, %v14544_v40   ;;  %14577 = vperm.xlu1 %24270, %v14543_v26  }
0x1d34   : > { %v14553_v47 = vpop.permute.xlu1 %14552 }
0x1d35   : > { %v14586_v59 = vmul.f32 %v28119_v11, %v14553_v47  ;;  %v14548_v16 = vpop.permute.xlu0 %14547 }
0x1d36   : > { %v14585_v35 = vmul.f32 %v28121_v13, %v14548_v16 }
0x1d37   : > { %v14597_v14 = vsel %vm29467_vm0, %v14586_v59, 0 }
0x1d38   : > { %v28250_v31 = vand.u32 4294901760, %v14597_v14  ;;  %v14594_v21 = vsel %vm29488_vm2, %v14585_v35, 0  ;;  %vm29493_vm2 = vmmov %vm29467_vm0 }
0x1d39   : > { %v28253_v1 = vand.u32 4294901760, %v14594_v21  ;;  %v14563_v54 = vpop.permute.xlu0 %14562  ;;  %v14558_v57 = vpop.permute.xlu1 %14557 }
0x1d3a   : > { %v28256_v17 = vsub.f32 %v14597_v14, %v28250_v31  ;;  %v14588_v22 = vmul.f32 %v28134_v56, %v14563_v54  ;;  %v14587_v11 = vmul.f32 %v28139_v24, %v14558_v57 }
0x1d3b   : > { %v28261_v3 = vsub.f32 %v14594_v21, %v28253_v1 }
0x1d3c   : > { %v14695_v13 = vand.u32 4294901760, %v28256_v17  ;;  %v14603_v9 = vsel %vm29489_vm9, %v14588_v22, 0  ;;  %v14600_v19 = vsel %vm29490_vm14, %v14587_v11, 0  ;;  %vm29498_vm9 = vcmask 523264  }
0x1d3d   : > { %v28266_v44 = vand.u32 4294901760, %v14603_v9  ;;  %v28268_v18 = vand.u32 4294901760, %v14600_v19  ;;  %v14573_v5 = vpop.permute.xlu0 %14572  ;;  %v14568_v43 = vpop.permute.xlu1 %14567  ;;  %v14685_v53 = vand.u32 4294901760, %v28261_v3  ;;  %vm29501_vm14 = vmmov %vm29498_vm9 }
0x1d3e   : > { %v14696_v56 = vsub.f32 %v28256_v17, %v14695_v13  ;;  %v14590_v24 = vmul.f32 %v28154_v37, %v14573_v5  ;;  %v14589_v0 = vmul.f32 %v28162_v38, %v14568_v43  ;;  %v29494_v5 = vld [vmem:[#allocation38_spill] sm:$0xff] }
0x1d3f   : > { %v28277_v63 = vsub.f32 %v14603_v9, %v28266_v44  ;;  %v28280_v30 = vsub.f32 %v14600_v19, %v28268_v18  ;;  %v14686_v4 = vsub.f32 %v28261_v3, %v14685_v53 }
0x1d40   : > { %v14609_v49 = vsel %vm29491_vm15, %v14590_v24, 0  ;;  %v14606_v6 = vsel %vm29492_vm10, %v14589_v0, 0  ;;  %v14697_v40 = vand.u32 4294901760, %v14696_v56  ;;  %vm29502_vm15 = vmmov %vm29498_vm9 }
0x1d41   : > { %v28287_v51 = vand.u32 4294901760, %v14609_v49  ;;  %v28289_v27 = vand.u32 4294901760, %v14606_v6  ;;  %v14583_v37 = vpop.permute.xlu0 %14582  ;;  %v14578_v38 = vpop.permute.xlu1 %14577  ;;  %v14687_v8 = vand.u32 4294901760, %v14686_v4  ;;  %v14705_v50 = vand.u32 4294901760, %v28280_v30 }
0x1d42   : > { %v14592_v26 = vmul.f32 %v28177_v36, %v14583_v37  ;;  %v14591_v47 = vmul.f32 %v28183_v41, %v14578_v38  ;;  %v14715_v59 = vand.u32 4294901760, %v28277_v63 }
0x1d43   : > { %v14734_v16 = vsub.f32 %v14609_v49, %v28287_v51  ;;  %v14724_v35 = vsub.f32 %v14606_v6, %v28289_v27  ;;  %21733 = vmatprep.mubr.f32.mxu0 %v14687_v8  ;;  %v14706_v14 = vsub.f32 %v28280_v30, %v14705_v50 }
0x1d44   : > { %v14615_v21 = vsel %vm29467_vm0, %v14592_v26, 0  ;;  %v14612_v54 = vsel %vm29493_vm2, %v14591_v47, 0  ;;  %21734 = vmatmul.mubr.f32.vlgmr.msra.gmra.mrb[58].mxu0 %v14697_v40  ;;  %v14716_v57 = vsub.f32 %v28277_v63, %v14715_v59  ;;  %v29495_v47 = vld [vmem:[#allocation39_spill] sm:$0xff] }
0x1d45   : > { %v28301_v22 = vand.u32 4294901760, %v14615_v21  ;;  %v28303_v36 = vand.u32 4294901760, %v14612_v54  ;;  %v14707_v41 = vand.u32 4294901760, %v14706_v14  ;;  %v14725_v11 = vand.u32 4294901760, %v14724_v35  ;;  %21746 = vmatpush3.msra.mxu0 %v29487_v39 }
0x1d46   : > { %v14717_v9 = vand.u32 4294901760, %v14716_v57  ;;  %v14735_v19 = vand.u32 4294901760, %v14734_v16  ;;  %21759 = vmatprep.subr.mxu0 %v29494_v5 }
0x1d47   : > { %v14754_v43 = vsub.f32 %v14615_v21, %v28301_v22  ;;  %v14744_v56 = vsub.f32 %v14612_v54, %v28303_v36  ;;  %21736 = vmatprep.mubr.f32.mxu0 %v14707_v41  ;;  %v14726_v24 = vsub.f32 %v14724_v35, %v14725_v11 }
0x1d48   : > { %21737 = vmatmul.mubr.f32.gmra.mrb[60].mxu0 %v14717_v9  ;;  %v14736_v0 = vsub.f32 %v14734_v16, %v14735_v19 }
0x1d49   : > { %v14727_v4 = vand.u32 4294901760, %v14726_v24  ;;  %v14745_v49 = vand.u32 4294901760, %v14744_v56  ;;  %v14755_v6 = vand.u32 4294901760, %v14754_v43 }
0x1d4a   : > { %v14737_v37 = vand.u32 4294901760, %v14736_v0 }
0x1d4b   : > { %21739 = vmatprep.mubr.f32.mxu0 %v14727_v4  ;;  %v14746_v38 = vsub.f32 %v14744_v56, %v14745_v49  ;;  %v14756_v8 = vsub.f32 %v14754_v43, %v14755_v6 }
0x1d4c   : > { %21740 = vmatmul.mubr.f32.gmra.mrb[62].mxu0 %v14737_v37 }
0x1d4d   : > { %v14747_v40 = vand.u32 4294901760, %v14746_v38  ;;  %v14757_v26 = vand.u32 4294901760, %v14756_v8 }
0x1d4f   : > { %21742 = vmatprep.mubr.f32.mxu0 %v14747_v40 }
0x1d50   : > { %21743 = vmatmul.mubr.f32.gmra.mrb[64].mxu0 %v14757_v26 }
0x1d51   : > { %21747 = vmatprep.mubr.f32.mxu0 %v28253_v1 }
0x1d54   : > { %21748 = vmatmul.mubr.f32.vlgmr.msra.gmra.mrb[58].mxu0 %v28250_v31 }
0x1d55   : > { %21750 = vmatprep.mubr.f32.mxu0 %v28268_v18  ;;  %21760 = vmatpush3.msra.mxu0 %v29494_v5 }
0x1d56   : > { %21773 = vmatprep.subr.msk.mxu0 %vm29486_vm8, %v29111_v25 }
0x1d58   : > { %21751 = vmatmul.mubr.f32.gmra.mrb[60].mxu0 %v28266_v44 }
0x1d59   : > { %21753 = vmatprep.mubr.f32.mxu0 %v28289_v27 }
0x1d5c   : > { %21754 = vmatmul.mubr.f32.gmra.mrb[62].mxu0 %v28287_v51 }
0x1d5d   : > { %21756 = vmatprep.mubr.f32.mxu0 %v28303_v36 }
0x1d60   : > { %21757 = vmatmul.mubr.f32.gmra.mrb[64].mxu0 %v28301_v22 }
0x1d61   : > { %21761 = vmatprep.mubr.f32.mxu0 %v28261_v3 }
0x1d64   : > { %21762 = vmatmul.mubr.f32.vlgmr.msra.gmra.mrb[58].mxu0 %v28256_v17 }
0x1d65   : > { %21764 = vmatprep.mubr.f32.mxu0 %v28280_v30  ;;  %21774 = vmatpush3.msk.msra.mxu0 %vm29486_vm8, %v29111_v25 }
0x1d66   : > { %21787 = vmatprep.subr.mxu0 %v29495_v47 }
0x1d68   : > { %21765 = vmatmul.mubr.f32.gmra.mrb[60].mxu0 %v28277_v63 }
0x1d69   : > { %21767 = vmatprep.mubr.f32.mxu0 %v14724_v35  ;;  %v24410_v35 = vld [vmem:[%s24644_s30 + $0x10] sm:$0xff] }
0x1d6c   : > { %21768 = vmatmul.mubr.f32.gmra.mrb[62].mxu0 %v14734_v16 }
0x1d6d   : > { %21770 = vmatprep.mubr.f32.mxu0 %v14744_v56 }
0x1d70   : > { %21771 = vmatmul.mubr.f32.gmra.mrb[64].mxu0 %v14754_v43 }
0x1d71   : > { %21775 = vmatprep.mubr.f32.mxu0 %v14685_v53 }
0x1d74   : > { %21776 = vmatmul.mubr.f32.vlgmr.msra.gmra.mrb[58].mxu0 %v14695_v13  ;;  %v24408_v13 = vld [vmem:[%s24644_s30] sm:$0xff] }
0x1d75   : > { %21778 = vmatprep.mubr.f32.mxu0 %v14705_v50  ;;  %21788 = vmatpush3.msra.mxu0 %v29495_v47 }
0x1d76   : > { %21801 = vmatprep.subr.msk.mxu0 %vm29486_vm8, %v29111_v25 }
0x1d78   : > { %21779 = vmatmul.mubr.f32.gmra.mrb[60].mxu0 %v14715_v59 }
0x1d79   : > { %21781 = vmatprep.mubr.f32.mxu0 %v14725_v11 }
0x1d7c   : > { %21782 = vmatmul.mubr.f32.gmra.mrb[62].mxu0 %v14735_v19  ;;  %v24411_v19 = vld [vmem:[%s24644_s30 + $0x28] sm:$0xff] }
0x1d7d   : > { %21784 = vmatprep.mubr.f32.mxu0 %v14745_v49  ;;  %v24412_v49 = vld [vmem:[%s24644_s30 + $0x20] sm:$0xff] }
0x1d80   : > { %21785 = vmatmul.mubr.f32.gmra.mrb[64].mxu0 %v14755_v6 }
0x1d81   : > { %21789 = vmatprep.mubr.f32.mxu0 %v28253_v1 }
0x1d84   : > { %21790 = vmatmul.mubr.f32.vlgmr.msra.gmra.mrb[58].mxu0 %v28250_v31 }
0x1d85   : > { %21792 = vmatprep.mubr.f32.mxu0 %v28268_v18  ;;  %21802 = vmatpush3.msk.msra.mxu0 %vm29486_vm8, %v29111_v25 }
0x1d86   : > { %23465 = vmatprep.subr.bf16.mxu0 %v29199_v7 }
0x1d88   : > { %21793 = vmatmul.mubr.f32.gmra.mrb[60].mxu0 %v28266_v44 }
0x1d89   : > { %21795 = vmatprep.mubr.f32.mxu0 %v28289_v27 }
0x1d8c   : > { %21796 = vmatmul.mubr.f32.gmra.mrb[62].mxu0 %v28287_v51 }
0x1d8d   : > { %21798 = vmatprep.mubr.f32.mxu0 %v28303_v36 }
0x1d90   : > { %21799 = vmatmul.mubr.f32.gmra.mrb[64].mxu0 %v28301_v22 }
0x1d91   : > { %21803 = vmatprep.mubr.f32.mxu0 %v28253_v1  ;;  %v24407_v1 = vld [vmem:[%s24644_s30 + $0x8] sm:$0xff] }
0x1d94   : > { %21804 = vmatmul.mubr.f32.vlgmr.msra.gmra.mrb[58].mxu0 %v28250_v31 }
0x1d95   : > { %21806 = vmatprep.mubr.f32.mxu0 %v28268_v18  ;;  %23467 = vmatpush3.bf16.msk.msra.mxu0 %vm29072_vm6, %v29071_v15 }
0x1d96   : > { %23468 = vmatprep.subr.bf16.mxu0 %v29199_v7 }
0x1d98   : > { %21807 = vmatmul.mubr.f32.gmra.mrb[60].mxu0 %v28266_v44 }
0x1d99   : > { %21809 = vmatprep.mubr.f32.mxu0 %v28289_v27  ;;  %23470 = vmatpush3.bf16.msk.msra.mxu0 %vm29073_vm7, %v29071_v15 }
0x1d9a   : > { %23471 = vmatprep.subr.bf16.mxu0 %v29199_v7 }
0x1d9c   : > { %21810 = vmatmul.mubr.f32.gmra.mrb[62].mxu0 %v28287_v51  ;;  %v24409_v51 = vld [vmem:[%s24644_s30 + $0x18] sm:$0xff] }
0x1d9d   : > { %21812 = vmatprep.mubr.f32.mxu0 %v28303_v36  ;;  %23473 = vmatpush3.bf16.msk.msra.mxu0 %vm29074_vm13, %v29071_v15 }
0x1d9e   : > { %23474 = vmatprep.subr.bf16.mxu0 %v29199_v7 }
0x1da0   : > { %21813 = vmatmul.mubr.f32.gmra.mrb[64].mxu0 %v28301_v22 }
0x1da1   : > { %23476 = vmatpush3.bf16.msk.msra.mxu0 %vm29169_vm1, %v29071_v15  ;;  %21961 = vmatprep.mubr.msk.f32.mxu0 %vm29200_vm12, %v29086_v34 }
0x1da2   : > { %23477 = vmatprep.subr.bf16.mxu0 %v29199_v7 }
0x1da5   : > { %23479 = vmatpush3.bf16.msk.msra.mxu0 %vm29172_vm3, %v29071_v15 }
0x1da6   : > { %23480 = vmatprep.subr.bf16.mxu0 %v29199_v7 }
0x1da9   : > { %23482 = vmatpush3.bf16.msk.msra.mxu0 %vm29175_vm5, %v29071_v15 }
0x1daa   : > { %23483 = vmatprep.subr.bf16.mxu0 %v29199_v7 }
0x1dad   : > { %23485 = vmatpush3.bf16.msk.msra.mxu0 %vm29176_vm11, %v29071_v15 }
0x1dae   : > { %23486 = vmatprep.subr.bf16.mxu0 %v29199_v7 }
0x1db1   : > { %23488 = vmatpush3.bf16.msk.msra.mxu0 %vm29177_vm4, %v29071_v15 }
0x1db2   : > { %23489 = vmatprep.subr.bf16.mxu0 %v29199_v7 }
0x1e67   : > { %v21805_v31 = vpop.f32.mrb[58].mxu0 }
0x1e68   : > { %v15365_v17 = vmul.f32 %v24407_v1, %v21805_v31  ;;  %v15318_v3 = vpop.f32.mrb[59].mxu0 }
0x1e69   : > { %v15364_v44 = vmul.f32 %v24408_v13, %v15318_v3 }
0x1e6a   : > { %v15376_v18 = vand.u32 4294901760, %v15365_v17 }
0x1e6b   : > { %v15373_v53 = vand.u32 4294901760, %v15364_v44  ;;  %v21808_v63 = vpop.f32.mrb[60].mxu0 }
0x1e6c   : > { %v28393_v30 = vsub.f32 %v15365_v17, %v15376_v18  ;;  %v15367_v27 = vmul.f32 %v24409_v51, %v21808_v63  ;;  %v15330_v50 = vpop.f32.mrb[61].mxu0 }
0x1e6d   : > { %v28396_v59 = vpack.c.bf16 %v15376_v18, %v15373_v53  ;;  %v28398_v16 = vsub.f32 %v15364_v44, %v15373_v53  ;;  %v15366_v14 = vmul.f32 %v24410_v35, %v15330_v50  ;;  %v24413_v18 = vld [vmem:[%s24644_s30 + $0x38] sm:$0xff]  ;;  %v24414_v35 = vld [vmem:[%s24644_s30 + $0x30] sm:$0xff] }
0x1e6e   : > { %v15465_v21 = vand.u32 4294901760, %v28393_v30  ;;  %v15382_v54 = vand.u32 4294901760, %v15367_v27 }
0x1e6f   : > { %v15458_v57 = vand.u32 4294901760, %v28398_v16  ;;  %v23418_v22 = vpack.c.bf16 %v28393_v30, %v28398_v16  ;;  %v15379_v36 = vand.u32 4294901760, %v15366_v14  ;;  %v21811_v41 = vpop.f32.mrb[62].mxu0  ;;  %23395 = vmatpush3.bf16.msra.mxu1 %v28396_v59 }
0x1e70   : > { %v15466_v11 = vsub.f32 %v28393_v30, %v15465_v21  ;;  %v28407_v9 = vsub.f32 %v15367_v27, %v15382_v54  ;;  %v15369_v43 = vmul.f32 %v24411_v19, %v21811_v41  ;;  %v15342_v56 = vpop.f32.mrb[63].mxu0  ;;  %23396 = vmatprep.subr.bf16.mxu1 %v29199_v7  ;;  %v29500_v30 = vld [vmem:[#allocation11_spill] sm:$0xff] }
0x1e71   : > { %v15459_v24 = vsub.f32 %v28398_v16, %v15458_v57  ;;  %v28412_v0 = vpack.c.bf16 %v15382_v54, %v15379_v36  ;;  %v28414_v4 = vsub.f32 %v15366_v14, %v15379_v36  ;;  %v15368_v6 = vmul.f32 %v24412_v49, %v15342_v56 }
0x1e72   : > { %v15467_v37 = vand.u32 4294901760, %v15466_v11  ;;  %v15479_v38 = vand.u32 4294901760, %v28407_v9  ;;  %v15388_v8 = vand.u32 4294901760, %v15369_v43  ;;  %v28418_v40 = vpack.c.bf16 %v15465_v21, %v15458_v57 }
0x1e73   : > { %v15460_v26 = vand.u32 4294901760, %v15459_v24  ;;  %v15472_v31 = vand.u32 4294901760, %v28414_v4  ;;  %v23421_v1 = vpack.c.bf16 %v28407_v9, %v28414_v4  ;;  %v15385_v17 = vand.u32 4294901760, %v15368_v6  ;;  %v21814_v3 = vpop.f32.mrb[64].mxu0  ;;  %23398 = vmatpush3.bf16.msra.mxu1 %v28412_v0 }
0x1e74   : > { %v15480_v13 = vsub.f32 %v28407_v9, %v15479_v38  ;;  %v15492_v44 = vsub.f32 %v15369_v43, %v15388_v8  ;;  %v15371_v53 = vmul.f32 %v24413_v18, %v21814_v3  ;;  %v15354_v63 = vpop.f32.mrb[65].mxu0  ;;  %23399 = vmatprep.subr.bf16.mxu1 %v29199_v7 }
0x1e75   : > { %v15473_v51 = vsub.f32 %v28414_v4, %v15472_v31  ;;  %v28428_v27 = vpack.c.bf16 %v15388_v8, %v15385_v17  ;;  %v15485_v50 = vsub.f32 %v15368_v6, %v15385_v17  ;;  %v15370_v14 = vmul.f32 %v24414_v35, %v15354_v63 }
0x1e76   : > { %v15481_v21 = vand.u32 4294901760, %v15480_v13  ;;  %v15493_v54 = vand.u32 4294901760, %v15492_v44  ;;  %v15394_v57 = vand.u32 4294901760, %v15371_v53  ;;  %v23406_v36 = vpack.c.bf16 %v15467_v37, %v15460_v26 }
0x1e77   : > { %v15474_v41 = vand.u32 4294901760, %v15473_v51  ;;  %v15486_v11 = vand.u32 4294901760, %v15485_v50  ;;  %v23424_v9 = vpack.c.bf16 %v15492_v44, %v15485_v50  ;;  %v15391_v19 = vand.u32 4294901760, %v15370_v14  ;;  %23401 = vmatpush3.bf16.msra.mxu1 %v28428_v27 }
0x1e78   : > { %v15494_v43 = vsub.f32 %v15492_v44, %v15493_v54  ;;  %v15506_v56 = vsub.f32 %v15371_v53, %v15394_v57  ;;  %23402 = vmatprep.subr.bf16.mxu1 %v29199_v7  ;;  %v23445_v24 = vpack.c.bf16 %v15479_v38, %v15472_v31  ;;  %v29496_v31 = vld [vmem:[#allocation12_spill] sm:$0xff] }
0x1e79   : > { %v15487_v4 = vsub.f32 %v15485_v50, %v15486_v11  ;;  %v28433_v49 = vpack.c.bf16 %v15394_v57, %v15391_v19  ;;  %v15499_v6 = vsub.f32 %v15370_v14, %v15391_v19  ;;  %v23409_v8 = vpack.c.bf16 %v15481_v21, %v15474_v41  ;;  %v29497_v14 = vld [vmem:[#allocation9_spill] sm:$0xff]  ;;  %v29499_v21 = vld [vmem:[#allocation10_spill] sm:$0xff]  ;;  %v29515_v41 = vld [vmem:[#allocation35_spill] sm:$0xff] }
0x1e7a   : > { %v15495_v17 = vand.u32 4294901760, %v15494_v43  ;;  %v15507_v3 = vand.u32 4294901760, %v15506_v56  ;;  %v23448_v13 = vpack.c.bf16 %v15493_v54, %v15486_v11  ;;  %v29513_v57 = vld [vmem:[#allocation33_spill] sm:$0xff]  ;;  %v29516_v11 = vld [vmem:[#allocation36_spill] sm:$0xff] }
0x1e7b   : > { %v15488_v37 = vand.u32 4294901760, %v15487_v4  ;;  %v15500_v26 = vand.u32 4294901760, %v15499_v6  ;;  %v23427_v18 = vpack.c.bf16 %v15506_v56, %v15499_v6  ;;  %23404 = vmatpush3.bf16.msra.mxu1 %v28433_v49 }
0x1e7c   : > { %v15508_v63 = vsub.f32 %v15506_v56, %v15507_v3  ;;  %23405 = vmatprep.subr.bf16.mxu1 %v29199_v7 }
0x1e7d   : > { %v15501_v44 = vsub.f32 %v15499_v6, %v15500_v26  ;;  %v23412_v53 = vpack.c.bf16 %v15495_v17, %v15488_v37  ;;  %v23451_v51 = vpack.c.bf16 %v15507_v3, %v15500_v26  ;;  %v29518_v3 = vld [vmem:[#allocation8_spill] sm:$0xff] }
0x1e7e   : > { %v15509_v38 = vand.u32 4294901760, %v15508_v63  ;;  %21832 = vmatmul.mubr.f32.vlgmr.msra.gmra.mrb[58].mxu1 %v29496_v31 }
0x1e7f   : > { %v15502_v50 = vand.u32 4294901760, %v15501_v44  ;;  %23407 = vmatpush3.bf16.msra.mxu1 %v23406_v36  ;;  %21850 = vmatprep.mubr.msk.f32.mxu1 %vm29200_vm12, %v29086_v34  ;;  %v29514_v36 = vld [vmem:[#allocation34_spill] sm:$0xff] }
0x1e80   : > { %23408 = vmatprep.subr.bf16.mxu1 %v29199_v7 }
0x1e81   : > { %v23415_v35 = vpack.c.bf16 %v15509_v38, %v15502_v50 }
0x1e83   : > { %23410 = vmatpush3.bf16.msra.mxu1 %v23409_v8 }
0x1e84   : > { %23411 = vmatprep.subr.bf16.mxu1 %v29199_v7 }
0x1e87   : > { %23413 = vmatpush3.bf16.msra.mxu1 %v23412_v53 }
0x1e88   : > { %23414 = vmatprep.subr.bf16.mxu1 %v29199_v7 }
0x1e8b   : > { %23416 = vmatpush3.bf16.msra.mxu1 %v23415_v35 }
0x1e8c   : > { %23417 = vmatprep.subr.bf16.mxu1 %v29199_v7 }
0x1e8e   : > { %21851 = vmatmul.mubr.msk.f32.vlgmr.msra.gmra.mrb[58].mxu1 %vm29498_vm9, %v29497_v14 }
0x1e8f   : > { %23419 = vmatpush3.bf16.msra.mxu1 %v23418_v22  ;;  %21869 = vmatprep.mubr.msk.f32.mxu1 %vm29200_vm12, %v29086_v34 }
0x1e90   : > { %23420 = vmatprep.subr.bf16.mxu1 %v29199_v7 }
0x1e93   : > { %23422 = vmatpush3.bf16.msra.mxu1 %v23421_v1 }
0x1e94   : > { %23423 = vmatprep.subr.bf16.mxu1 %v29199_v7 }
0x1e97   : > { %23425 = vmatpush3.bf16.msra.mxu1 %v23424_v9 }
0x1e98   : > { %23426 = vmatprep.subr.bf16.mxu1 %v29199_v7 }
0x1e9b   : > { %23428 = vmatpush3.bf16.msra.mxu1 %v23427_v18 }
0x1e9c   : > { %23429 = vmatprep.subr.bf16.mxu1 %v29199_v7 }
0x1e9e   : > { %21870 = vmatmul.mubr.f32.vlgmr.msra.gmra.mrb[58].mxu1 %v29499_v21 }
0x1e9f   : > { %23431 = vmatpush3.bf16.msra.mxu1 %v28396_v59  ;;  %21888 = vmatprep.mubr.msk.f32.mxu1 %vm29200_vm12, %v29086_v34 }
0x1ea0   : > { %23432 = vmatprep.subr.bf16.mxu1 %v29199_v7 }
0x1ea3   : > { %23434 = vmatpush3.bf16.msra.mxu1 %v28412_v0 }
0x1ea4   : > { %23435 = vmatprep.subr.bf16.mxu1 %v29199_v7 }
0x1ea7   : > { %23437 = vmatpush3.bf16.msra.mxu1 %v28428_v27 }
0x1ea8   : > { %23438 = vmatprep.subr.bf16.mxu1 %v29199_v7 }
0x1eab   : > { %23440 = vmatpush3.bf16.msra.mxu1 %v28433_v49 }
0x1eac   : > { %23441 = vmatprep.subr.bf16.mxu1 %v29199_v7 }
0x1eae   : > { %21889 = vmatmul.mubr.f32.vlgmr.msra.gmra.mrb[58].mxu1 %v29500_v30 }
0x1eaf   : > { %23443 = vmatpush3.bf16.msra.mxu1 %v28418_v40  ;;  %21907 = vmatprep.mubr.msk.f32.mxu1 %vm29200_vm12, %v29086_v34 }
0x1eb0   : > { %23444 = vmatprep.subr.bf16.mxu1 %v29199_v7 }
0x1eb3   : > { %23446 = vmatpush3.bf16.msra.mxu1 %v23445_v24 }
0x1eb4   : > { %23447 = vmatprep.subr.bf16.mxu1 %v29199_v7 }
0x1eb7   : > { %23449 = vmatpush3.bf16.msra.mxu1 %v23448_v13 }
0x1eb8   : > { %23450 = vmatprep.subr.bf16.mxu1 %v29199_v7 }
0x1ebb   : > { %23452 = vmatpush3.bf16.msra.mxu1 %v23451_v51 }
0x1ebc   : > { %23453 = vmatprep.subr.bf16.mxu1 %v29199_v7 }
0x1ebe   : > { %21908 = vmatmul.mubr.msk.f32.vlgmr.msra.gmra.mrb[58].mxu1 %vm29501_vm14, %v29497_v14 }
0x1ebf   : > { %23455 = vmatpush3.bf16.msra.mxu1 %v28396_v59  ;;  %21926 = vmatprep.mubr.msk.f32.mxu1 %vm29200_vm12, %v29086_v34 }
0x1ec0   : > { %23456 = vmatprep.subr.bf16.mxu1 %v29199_v7 }
0x1ec3   : > { %23458 = vmatpush3.bf16.msra.mxu1 %v28412_v0 }
0x1ec4   : > { %23459 = vmatprep.subr.bf16.mxu1 %v29199_v7 }
0x1ec7   : > { %23461 = vmatpush3.bf16.msra.mxu1 %v28428_v27 }
0x1ec8   : > { %23462 = vmatprep.subr.bf16.mxu1 %v29199_v7 }
0x1ecb   : > { %23464 = vmatpush3.bf16.msra.mxu1 %v28433_v49 }
0x1ecc   : > { %22139 = vmatprep.subr.mxu1 %v29086_v34 }
0x1ece   : > { %21927 = vmatmul.mubr.msk.f32.vlgmr.msra.gmra.mrb[58].mxu1 %vm29502_vm15, %v29497_v14 }
0x1ecf   : > { %22140 = vmatpush3.msk.msra.mxu1 %vm29486_vm8, %v29111_v25  ;;  %22141 = vmatprep.mubr.msk.f32.mxu1 %vm29200_vm12, %v29086_v34 }
0x1ed0   : > { %22144 = vmatprep.subr.mxu1 %v29086_v34 }
0x1fa1   : > { %v28494_v59 = vpop.f32.mrb[58].mxu1 }
0x1fa2   : > { %v15909_v16 = vmul.f32 %v28494_v59, %v28494_v59  ;;  %v21928_v22 = vpop.f32.mrb[59].mxu1 }
0x1fa4   : > { %v28498_v0 = vand.u32 4294901760, %v15909_v16 }
0x1fa6   : > { %v15992_v40 = vsub.f32 %v15909_v16, %v28498_v0 }
0x1fa8   : > { %v15993_v1 = vand.u32 4294901760, %v15992_v40 }
0x1faa   : > { %v15994_v27 = vsub.f32 %v15992_v40, %v15993_v1 }
0x1fac   : > { %v15995_v54 = vand.u32 4294901760, %v15994_v27 }
0x1fae   : > { %21962 = vmatmul.mubr.f32.vlgmr.msra.gmra.mrb[66].mxu0 %v15995_v54 }
0x1faf   : > { %23491 = vmatpush3.bf16.msra.mxu0 %v29378_v62  ;;  %21996 = vmatprep.mubr.msk.f32.mxu0 %vm29200_vm12, %v29086_v34  ;;  %v29507_v62 = vld [vmem:[#allocation17_spill] sm:$0xff] }
0x1fb0   : > { %23492 = vmatprep.subr.bf16.mxu0 %v29199_v7 }
0x1fb3   : > { %23494 = vmatpush3.bf16.msra.mxu0 %v29316_v45  ;;  %v29505_v45 = vld [vmem:[#allocation28_spill] sm:$0xff] }
0x1fb4   : > { %23495 = vmatprep.subr.bf16.mxu0 %v29199_v7 }
0x1fb7   : > { %23497 = vmatpush3.bf16.msra.mxu0 %v29317_v23  ;;  %v29503_v23 = vld [vmem:[#allocation26_spill] sm:$0xff] }
0x1fb8   : > { %23498 = vmatprep.subr.bf16.mxu0 %v29199_v7 }
0x1fbb   : > { %23500 = vmatpush3.bf16.msra.mxu0 %v29318_v29  ;;  %v29504_v29 = vld [vmem:[#allocation27_spill] sm:$0xff] }
0x1fbc   : > { %23501 = vmatprep.subr.bf16.mxu0 %v29199_v7 }
0x1fbf   : > { %23503 = vmatpush3.bf16.msra.mxu0 %v29319_v2  ;;  %v29506_v2 = vld [vmem:[#allocation16_spill] sm:$0xff] }
0x1fc0   : > { %23504 = vmatprep.subr.bf16.mxu0 %v29199_v7 }
0x1fc3   : > { %23506 = vmatpush3.bf16.msra.mxu0 %v29379_v48  ;;  %v29508_v48 = vld [vmem:[#allocation18_spill] sm:$0xff] }
0x1fc4   : > { %23507 = vmatprep.subr.bf16.mxu0 %v29199_v7 }
0x1fc7   : > { %23509 = vmatpush3.bf16.msra.mxu0 %v29380_v58  ;;  %v29509_v58 = vld [vmem:[#allocation29_spill] sm:$0xff] }
0x1fc8   : > { %23510 = vmatprep.subr.bf16.mxu0 %v29199_v7 }
0x1fcb   : > { %23512 = vmatpush3.bf16.msra.mxu0 %v29381_v55  ;;  %v29510_v55 = vld [vmem:[#allocation30_spill] sm:$0xff] }
0x1fcc   : > { %23513 = vmatprep.subr.bf16.mxu0 %v29199_v7 }
0x1fce   : > { %21997 = vmatmul.mubr.f32.vlgmr.msra.gmra.mrb[66].mxu0 %v28498_v0 }
0x1fcf   : > { %23515 = vmatpush3.bf16.msra.mxu0 %v29382_v61  ;;  %22031 = vmatprep.mubr.msk.f32.mxu0 %vm29200_vm12, %v29086_v34  ;;  %v29511_v61 = vld [vmem:[#allocation31_spill] sm:$0xff] }
0x1fd0   : > { %23516 = vmatprep.subr.bf16.mxu0 %v29199_v7 }
0x1fd3   : > { %23518 = vmatpush3.bf16.msra.mxu0 %v29383_v42  ;;  %v29512_v42 = vld [vmem:[#allocation32_spill] sm:$0xff] }
0x1fd4   : > { %23519 = vmatprep.subr.bf16.mxu0 %v29199_v7 }
0x1fd7   : > { %23521 = vmatpush3.bf16.msra.mxu0 %v29503_v23 }
0x1fd8   : > { %23522 = vmatprep.subr.bf16.mxu0 %v29199_v7 }
0x1fdb   : > { %23524 = vmatpush3.bf16.msra.mxu0 %v29504_v29 }
0x1fdc   : > { %23525 = vmatprep.subr.bf16.mxu0 %v29199_v7 }
0x1fdf   : > { %23527 = vmatpush3.bf16.msra.mxu0 %v29505_v45 }
0x1fe0   : > { %23528 = vmatprep.subr.bf16.mxu0 %v29199_v7 }
0x1fe3   : > { %23530 = vmatpush3.bf16.msra.mxu0 %v29506_v2 }
0x1fe4   : > { %23531 = vmatprep.subr.bf16.mxu0 %v29199_v7 }
0x1fe7   : > { %23533 = vmatpush3.bf16.msra.mxu0 %v29507_v62 }
0x1fe8   : > { %23534 = vmatprep.subr.bf16.mxu0 %v29199_v7 }
0x1feb   : > { %23536 = vmatpush3.bf16.msra.mxu0 %v29508_v48 }
0x1fec   : > { %23537 = vmatprep.subr.bf16.mxu0 %v29199_v7 }
0x1fee   : > { %22032 = vmatmul.mubr.f32.vlgmr.msra.gmra.mrb[66].mxu0 %v15992_v40 }
0x1fef   : > { %23539 = vmatpush3.bf16.msk.msra.mxu0 %vm29072_vm6, %v29071_v15  ;;  %22066 = vmatprep.mubr.msk.f32.mxu0 %vm29200_vm12, %v29086_v34 }
0x1ff0   : > { %23540 = vmatprep.subr.bf16.mxu0 %v29199_v7 }
0x1ff3   : > { %23542 = vmatpush3.bf16.msk.msra.mxu0 %vm29073_vm7, %v29071_v15 }
0x1ff4   : > { %23543 = vmatprep.subr.bf16.mxu0 %v29199_v7 }
0x1ff7   : > { %23545 = vmatpush3.bf16.msk.msra.mxu0 %vm29074_vm13, %v29071_v15 }
0x1ff8   : > { %23546 = vmatprep.subr.bf16.mxu0 %v29199_v7 }
0x1ffb   : > { %23548 = vmatpush3.bf16.msk.msra.mxu0 %vm29169_vm1, %v29071_v15 }
0x1ffc   : > { %23549 = vmatprep.subr.bf16.mxu0 %v29199_v7 }
0x1fff   : > { %23551 = vmatpush3.bf16.msk.msra.mxu0 %vm29172_vm3, %v29071_v15 }
0x2000   : > { %23552 = vmatprep.subr.bf16.mxu0 %v29199_v7 }
0x2003   : > { %23554 = vmatpush3.bf16.msk.msra.mxu0 %vm29175_vm5, %v29071_v15 }
0x2004   : > { %23555 = vmatprep.subr.bf16.mxu0 %v29199_v7 }
0x2007   : > { %23557 = vmatpush3.bf16.msk.msra.mxu0 %vm29176_vm11, %v29071_v15 }
0x2008   : > { %23558 = vmatprep.subr.bf16.mxu0 %v29199_v7 }
0x200b   : > { %23560 = vmatpush3.bf16.msk.msra.mxu0 %vm29177_vm4, %v29071_v15 }
0x200c   : > { %23561 = vmatprep.subr.bf16.mxu0 %v29199_v7 }
0x200e   : > { %22067 = vmatmul.mubr.f32.vlgmr.msra.gmra.mrb[66].mxu0 %v15993_v1 }
0x200f   : > { %23563 = vmatpush3.bf16.msra.mxu0 %v29509_v58  ;;  %22101 = vmatprep.mubr.msk.f32.mxu0 %vm29200_vm12, %v29086_v34 }
0x2010   : > { %23564 = vmatprep.subr.bf16.mxu0 %v29199_v7 }
0x2013   : > { %23566 = vmatpush3.bf16.msra.mxu0 %v29510_v55 }
0x2014   : > { %23567 = vmatprep.subr.bf16.mxu0 %v29199_v7 }
0x2017   : > { %23569 = vmatpush3.bf16.msra.mxu0 %v29511_v61 }
0x2018   : > { %23570 = vmatprep.subr.bf16.mxu0 %v29199_v7 }
0x201b   : > { %23572 = vmatpush3.bf16.msra.mxu0 %v29512_v42 }
0x201c   : > { %23573 = vmatprep.subr.bf16.mxu0 %v29199_v7 }
0x201f   : > { %23575 = vmatpush3.bf16.msra.mxu0 %v29513_v57 }
0x2020   : > { %23576 = vmatprep.subr.bf16.mxu0 %v29199_v7 }
0x2023   : > { %23578 = vmatpush3.bf16.msra.mxu0 %v29514_v36 }
0x2024   : > { %23579 = vmatprep.subr.bf16.mxu0 %v29199_v7 }
0x2027   : > { %23581 = vmatpush3.bf16.msra.mxu0 %v29515_v41 }
0x2028   : > { %23582 = vmatprep.subr.bf16.mxu0 %v29199_v7 }
0x202b   : > { %23584 = vmatpush3.bf16.msra.mxu0 %v29516_v11 }
0x202c   : > { %23585 = vmatprep.subr.bf16.mxu0 %v29199_v7 }
0x202e   : > { %22102 = vmatmul.mubr.f32.vlgmr.msra.gmra.mrb[66].mxu0 %v28498_v0 }
0x202f   : > { %23587 = vmatpush3.bf16.msk.msra.mxu0 %vm29072_vm6, %v29071_v15  ;;  %22136 = vmatprep.mubr.msk.f32.mxu0 %vm29200_vm12, %v29086_v34 }
0x2030   : > { %23588 = vmatprep.subr.bf16.mxu0 %v29199_v7 }
0x2033   : > { %23590 = vmatpush3.bf16.msk.msra.mxu0 %vm29073_vm7, %v29071_v15 }
0x2034   : > { %23591 = vmatprep.subr.bf16.mxu0 %v29199_v7 }
0x2037   : > { %23593 = vmatpush3.bf16.msk.msra.mxu0 %vm29074_vm13, %v29071_v15  ;;  %vm29517_vm13 = vmmov %vm29467_vm0 }
0x2038   : > { %23594 = vmatprep.subr.bf16.mxu0 %v29199_v7 }
0x203b   : > { %23596 = vmatpush3.bf16.msk.msra.mxu0 %vm29169_vm1, %v29071_v15 }
0x203c   : > { %23597 = vmatprep.subr.bf16.mxu0 %v29199_v7 }
0x203f   : > { %23599 = vmatpush3.bf16.msk.msra.mxu0 %vm29172_vm3, %v29071_v15 }
0x2040   : > { %23600 = vmatprep.subr.bf16.mxu0 %v29199_v7 }
0x2043   : > { %23602 = vmatpush3.bf16.msk.msra.mxu0 %vm29175_vm5, %v29071_v15 }
0x2044   : > { %23603 = vmatprep.subr.bf16.mxu0 %v29199_v7 }
0x2047   : > { %23605 = vmatpush3.bf16.msk.msra.mxu0 %vm29176_vm11, %v29071_v15 }
0x2048   : > { %23606 = vmatprep.subr.bf16.mxu0 %v29199_v7 }
0x204b   : > { %23608 = vmatpush3.bf16.msk.msra.mxu0 %vm29177_vm4, %v29071_v15 }
0x204e   : > { %22137 = vmatmul.mubr.f32.vlgmr.msra.gmra.mrb[66].mxu0 %v28498_v0 }
0x2121   : > { %v16547_v12 = vpop.f32.mrb[66].mxu0 }
0x2122   : > { %v23621_v28 = vadd.f32 1e-07, %v16547_v12  ;;  %v22138_v52 = vpop.f32.mrb[67].mxu0 }
0x2124   : > { %24379 = vrsqrt.f32 %v23621_v28  ;;  %v16558_v60 = vadd.f32 1.0, %v23621_v28  ;;  %vm16553_vm6 = vcmp.eq.f32.partialorder %v23621_v28, inf  ;;  %v16556_v7 = vand.u32 2147483648, %v23621_v28 }
0x2125   : > { %vm16555_vm7 = vcmp.eq.f32.partialorder %v23621_v28, 0.0 }
0x2126   : > { %24381 = vrcp.f32 %v16558_v60 }
0x212e   : > { %v24380_v10 = vpop.eup %24379 }
0x212f   : > { %v16552_v32 = vmul.f32 %v24380_v10, %v23621_v28 }
0x2130   : > { %v24382_v9 = vpop.eup %24381 }
0x2131   : > { %v16560_v19 = vmul.f32 %v24382_v9, %v16558_v60  ;;  %v16554_v46 = vsel %vm16553_vm6, %v23621_v28, %v16552_v32 }
0x2132   : > { %v16557_v33 = vsel %vm16555_vm7, %v16556_v7, %v16554_v46 }
0x2133   : > { %v16561_v43 = vsub.f32 2.0, %v16560_v19 }
0x2135   : > { %v16562_v56 = vmul.f32 %v24382_v9, %v16561_v43 }
0x2137   : > { %v16563_v15 = vmul.f32 %v16562_v56, %v16557_v33 }
0x2139   : > { %v16565_v24 = vsel %vm29517_vm13, %v16563_v15, 0 }
0x213a   : > { %v16633_v4 = vand.u32 4294901760, %v16565_v24 }
0x213c   : > { %v16634_v49 = vsub.f32 %v16565_v24, %v16633_v4 }
0x213e   : > { %v16635_v6 = vand.u32 4294901760, %v16634_v49 }
0x2140   : > { %v16636_v8 = vsub.f32 %v16634_v49, %v16635_v6 }
0x2142   : > { %v16637_v17 = vand.u32 4294901760, %v16636_v8 }
0x2144   : > { %22142 = vmatmul.mubr.f32.vlgmr.msra.gmra.mrb[60].mxu1 %v16637_v17 }
0x2145   : > { %22145 = vmatpush3.msra.mxu1 %v29487_v39  ;;  %22146 = vmatprep.mubr.msk.f32.mxu1 %vm29200_vm12, %v29086_v34  ;;  %v24522_v39 = vmov 1966171168  }
0x2146   : > { %22149 = vmatprep.subr.mxu1 %v29086_v34 }
0x214c   : > { %22147 = vmatmul.mubr.f32.vlgmr.msra.gmra.mrb[60].mxu1 %v16633_v4 }
0x214d   : > { %22150 = vmatpush3.msra.mxu1 %v29494_v5  ;;  %22151 = vmatprep.mubr.msk.f32.mxu1 %vm29200_vm12, %v29086_v34  ;;  %v17016_v5 = vunpack.c.l.s4 %v24522_v39 }
0x214e   : > { %22154 = vmatprep.subr.mxu1 %v29086_v34 }
0x2154   : > { %22152 = vmatmul.mubr.f32.vlgmr.msra.gmra.mrb[60].mxu1 %v16634_v49 }
0x2155   : > { %22155 = vmatpush3.msk.msra.mxu1 %vm29486_vm8, %v29111_v25  ;;  %22156 = vmatprep.mubr.msk.f32.mxu1 %vm29200_vm12, %v29086_v34 }
0x2156   : > { %22159 = vmatprep.subr.mxu1 %v29086_v34 }
0x215c   : > { %22157 = vmatmul.mubr.f32.vlgmr.msra.gmra.mrb[60].mxu1 %v16635_v6 }
0x215d   : > { %22160 = vmatpush3.msra.mxu1 %v29495_v47  ;;  %22161 = vmatprep.mubr.msk.f32.mxu1 %vm29200_vm12, %v29086_v34  ;;  %v17017_v47 = vunpack.c.0.s8 %v17016_v5 }
0x215e   : > { %22164 = vmatprep.subr.mxu1 %v29086_v34 }
0x215f   : > { %v17020_v13 = vsub.s32 %v17017_v47, %v29518_v3 }
0x2164   : > { %22162 = vmatmul.mubr.f32.vlgmr.msra.gmra.mrb[60].mxu1 %v16633_v4 }
0x2165   : > { %22165 = vmatpush3.msk.msra.mxu1 %vm29486_vm8, %v29111_v25  ;;  %22166 = vmatprep.mubr.msk.f32.mxu1 %vm29200_vm12, %v29086_v34 }
0x216c   : > { %22167 = vmatmul.mubr.f32.vlgmr.msra.gmra.mrb[60].mxu1 %v16633_v4 }
0x223f   : > { %v17009_v37 = vpop.f32.mrb[60].mxu1 }
0x2240   : > { %v17013_v26 = vmul.f32 %v17009_v37, %v28494_v59  ;;  %v22168_v18 = vpop.f32.mrb[61].mxu1 }
0x2242   : > { %v17021_v25 = vrot.slane %v17013_v26, %v17020_v13 }
0x2244   : > { %v17022_v34 = vcombine.high %v17021_v25, %v17021_v25  ;;  %17605 = vst.sshfl [vmem:[%s135_s25] sm:$0x1 pattern:$0x73625140] %v17021_v25 }
0x2246   : > { %17606 = vst.sshfl [vmem:[%s135_s25 + $0x1] sm:$0x1 pattern:$0x73625140] %v17022_v34 }
0x2247   : > { %24458 = shalt.err (!%p24455_p2)
}
0x2248   : > { %s24459_s14 = scalar_lea.hbm %s28658_s3, 32  ;;  %s24463_s21 = scalar_lea.hbm %s28703_s1, 64 }
0x2249   : > { %p24460_p4 = scmp.ne.s32.totalorder %s28658_s3, %s24459_s14  ;;  %p24464_p9 = scmp.lt.u32.totalorder %s28658_s3, %s28703_s1 }
0x224a   : > { %p24465_p1 = scmp.lt.u32.totalorder %s24463_s21, %s24459_s14  ;;  %p24467_p6 = scmp.lt.u32.totalorder %s24459_s14, %s28658_s3 }
0x224b   : > { %p24461_p5 = pnand %p24460_p4, %p29519_p11 }
0x224c   : > { %p24466_p3 = por %p24465_p1, %p24464_p9 }
0x224d   : > { %p24462_p7 = pneg %p24461_p5 }
0x224e   : > { %p24468_p12 = por %p24467_p6, %p24466_p3 }
0x2250   : > { %p24469_p13 = pnand %p24468_p12, %p24462_p7 }
0x2252   : > { %24472 = shalt.err (!%p24469_p13)
}
0x2253   : > { %s24524_s26 = smov 16   ;;  %s24525_s30 = smov 1  }
0x2254   : > { %24214 = dma.vmem_to_hbm [thread:$0]  (%p29519_p11), %s28653_s27, 32, %s28658_s3, %s17042_s4, %s24524_s26, %s24524_s26, %s24525_s30  }
0x2255 PF: > { %s17070_s17 = sand.u32 1, %s24499_s6   ;;  %p29520_p8 = scmp.ne.s32.totalorder %s28988_s19, 0 }
0x2256   : > { %p29521_p10 = scmp.ge.s32.totalorder %s24511_s9, 2  ;;  %s17071_s25 = scalar_lea.sflag [#allocation4], %s17070_s17 }
0x2258   : > { %p24221_p0 = pnand %p29521_p10, %p29520_p8 }
0x225a   : > { %24494 = dma.done.wait (!%p24221_p0), %s17071_s25, 32  }
0x225b   : > { %24496 = vsyncadd (!%p24221_p0), %s17071_s25, 4294967264  ;;  %p14_p2 = scmp.ge.s32.totalorder %s24561_s12, 4   ;;  %s29522_s6 = smov %s24503_s7 }
0x225c   : > { %s29523_s7 = smov %s24507_s8  ;;  %s29524_s8 = smov %s24573_s15 }
0x225d   : > { %s29525_s9 = smov %s24561_s12  ;;  %16 = sbr.rel (!%p14_p2) target bundleno = 5 (0x5), region = 69 }
0x2264   :  { %17076 = vsyncpa [#allocation3], 1 }
0x2265   :  { %17078 = vsyncpa [#allocation3 + $0x1], 1 }
0x2266   :  { %17079 = vsyncpa [#allocation4], 1 }
0x2267   :  { %17081 = vsyncpa [#allocation4 + $0x1], 1 }

</bundles_post_ra>
